<compile_context>
chip_gen: v7x
topology: tpu7x:2x2x1
jax: 0.10.0
libtpu: 0.0.40
codegen_flags: <defaults>
</compile_context>

<pallas_src>
import functools
import math

import jax
import jax.numpy as jnp
import numpy as np
from jax.experimental import pallas as pl
from jax.experimental.pallas import tpu as pltpu


# --------------------------------------------------------------------------
# Pallas kernel: multi-input, multi-tap conv-as-matmul with fused
# (folded) BatchNorm affine + optional ReLU.
# --------------------------------------------------------------------------
def _conv_kernel(*refs, offsets, m, relu):
    """refs = x_0, w_0, x_1, w_1, ..., sb, o_ref.

    x_i : (1, R_i, Cin_i)  bf16   flattened padded activation (VMEM resident)
    w_i : (T_i, Cin_i, TC) bf16   one (Cin_i, TC) matrix per tap
    sb  : (2, TC)          f32    row0 = scale, row1 = shift (folded BN + bias)
    o   : (1, m, TC)              output block
    """
    n_in = len(offsets)
    sb_ref = refs[2 * n_in]
    o_ref = refs[2 * n_in + 1]

    acc = None
    for i in range(n_in):
        x_ref = refs[2 * i]
        w_ref = refs[2 * i + 1]
        for t, off in enumerate(offsets[i]):
            xt = x_ref[0, pl.ds(off, m), :]                       # (m, Cin_i)
            part = jnp.dot(xt, w_ref[t], preferred_element_type=jnp.float32)
            acc = part if acc is None else acc + part

    y = acc * sb_ref[0:1, :] + sb_ref[1:2, :]
    if relu:
        y = jnp.maximum(y, 0.0)
    o_ref[0] = y.astype(o_ref.dtype)


def conv_layer(xs, ws, bias, bn=None, *, stride=1, relu=True,
               out_dtype=jnp.bfloat16):
    """Conv2d(kernel k, stride, padding=k//2) over concat(xs, channel axis),
    with weight concat(ws, Cin axis), + folded BN + optional ReLU.

    xs : list of NHWC f32/bf16 arrays (same N, H, W)
    ws : list of (kh, kw, Cin_i, Cout) f32 weights (same kh, kw, Cout)
    """
    N, H, W, _ = xs[0].shape
    kh, kw, _, Cout = ws[0].shape

    if stride == 1:
        Ho, Wo = H, W
        Wflat = W + 2 * (kh // 2)
    else:
        assert stride == 2 and H % 2 == 0 and W % 2 == 0
        Ho, Wo = H // 2, W // 2
        Wflat = W // 2 + 1
    M = Ho * Wflat

    flat_inputs, flat_weights, tap_offsets = [], [], []
    for x, w in zip(xs, ws):
        Cin = x.shape[-1]
        kh_i, kw_i = w.shape[0], w.shape[1]
        pad = kh_i // 2
        xb = x.astype(jnp.bfloat16)
        if pad:
            xb = jnp.pad(xb, ((0, 0), (pad, pad), (pad, pad), (0, 0)))
        Hp, Wp = xb.shape[1], xb.shape[2]

        if stride == 1:
            offs, wk = [], []
            for dy in range(kh_i):
                for dx in range(kw_i):
                    offs.append(dy * Wp + dx)
                    wk.append(w[dy, dx])
            xf = xb.reshape(N, Hp * Wp, Cin)
            need = max(offs) + M
            if need > Hp * Wp:
                xf = jnp.pad(xf, ((0, 0), (0, need - Hp * Wp), (0, 0)))
            flat_inputs.append(xf)
            flat_weights.append(jnp.stack(wk).astype(jnp.bfloat16))
            tap_offsets.append(tuple(offs))
        else:
            # polyphase split: stride-2 conv == stride-1 conv over 4 phases.
            for a in range(2):
                for b in range(2):
                    ph = xb[:, a::2, b::2, :]
                    Hph, Wph = ph.shape[1], ph.shape[2]
                    offs, wk = [], []
                    for dy in range(a, kh_i, 2):
                        for dx in range(b, kw_i, 2):
                            offs.append((dy // 2) * Wph + (dx // 2))
                            wk.append(w[dy, dx])
                    xf = ph.reshape(N, Hph * Wph, Cin)
                    need = max(offs) + M
                    if need > Hph * Wph:
                        xf = jnp.pad(xf, ((0, 0), (0, need - Hph * Wph), (0, 0)))
                    flat_inputs.append(xf)
                    flat_weights.append(jnp.stack(wk).astype(jnp.bfloat16))
                    tap_offsets.append(tuple(offs))

    # Folded BatchNorm affine (inference mode) + conv bias.
    if bn is not None:
        gamma, beta, mean, var = bn
        scale = gamma * jax.lax.rsqrt(var + 1e-5)
        shift = beta + (bias - mean) * scale
    else:
        scale = jnp.ones((Cout,), jnp.float32)
        shift = bias.astype(jnp.float32)
    sb = jnp.stack([scale, shift], axis=0).astype(jnp.float32)     # (2, Cout)

    # Tile the output-channel axis (keeps VMEM per block modest and adds
    # parallel grid points for megacore); inputs stay resident across it.
    TCout = 256 if (Cout > 256 and Cout % 256 == 0) else Cout
    nct = Cout // TCout
    grid = (N, nct)

    in_specs, kernel_args = [], []
    for xf, wk in zip(flat_inputs, flat_weights):
        R, Ci = xf.shape[1], xf.shape[2]
        T = wk.shape[0]
        in_specs.append(pl.BlockSpec((1, R, Ci), lambda n, c: (n, 0, 0)))
        in_specs.append(pl.BlockSpec((T, Ci, TCout), lambda n, c: (0, 0, c)))
        kernel_args.extend([xf, wk])
    in_specs.append(pl.BlockSpec((2, TCout), lambda n, c: (0, c)))
    kernel_args.append(sb)

    out = pl.pallas_call(
        functools.partial(_conv_kernel, offsets=tuple(tap_offsets), m=M,
                          relu=relu),
        out_shape=jax.ShapeDtypeStruct((N, M, Cout), out_dtype),
        grid_spec=pltpu.PrefetchScalarGridSpec(
            num_scalar_prefetch=0,
            grid=grid,
            in_specs=in_specs,
            out_specs=pl.BlockSpec((1, M, TCout), lambda n, c: (n, 0, c)),
        ),
        compiler_params=pltpu.CompilerParams(
            dimension_semantics=("parallel", "parallel"),
            vmem_limit_bytes=48 * 1024 * 1024),
    )(*kernel_args)

    # Drop the padded columns of the full-width flattened layout.
    out = out.reshape(N, Ho, Wflat, Cout)[:, :, :Wo, :]
    return out


# --------------------------------------------------------------------------
# Parameters (deterministic init)
# --------------------------------------------------------------------------
def _conv_params(key, kh, kw, cin, cout):
    k1, k2 = jax.random.split(key)
    fan_in = cin * kh * kw
    w = jax.random.normal(k1, (kh, kw, cin, cout), jnp.float32) / math.sqrt(fan_in)
    b = jax.random.normal(k2, (cout,), jnp.float32) * 0.01
    return w, b


def _bn_params(cout):
    return (jnp.ones((cout,), jnp.float32), jnp.zeros((cout,), jnp.float32),
            jnp.zeros((cout,), jnp.float32), jnp.ones((cout,), jnp.float32))


def build_params(in_channels, category_num, anchor_num, box_code_size):
    key = jax.random.PRNGKey(0)
    keys = iter(jax.random.split(key, 64))
    P = {}

    def add(name, kh, cin, cout, bn=True):
        w, b = _conv_params(next(keys), kh, kh, cin, cout)
        P[name] = dict(w=w, b=b, bn=_bn_params(cout) if bn else None)

    # lidar_encoder (STPN-style): 32 channels at full res, x2 per level down.
    add('pre1', 3, in_channels, 32); add('pre2', 3, 32, 32)
    add('e1_1', 3, 32, 64);          add('e1_2', 3, 64, 64)
    add('e2_1', 3, 64, 128);         add('e2_2', 3, 128, 128)
    add('e3_1', 3, 128, 256);        add('e3_2', 3, 256, 256)
    add('e4_1', 3, 256, 512);        add('e4_2', 3, 512, 512)
    # lidar_decoder (U-Net skip fusion back to 32 channels at full res)
    add('d5_1', 3, 512 + 256, 256);  add('d5_2', 3, 256, 256)
    add('d6_1', 3, 256 + 128, 128);  add('d6_2', 3, 128, 128)
    add('d7_1', 3, 128 + 64, 64);    add('d7_2', 3, 64, 64)
    add('d8_1', 3, 64 + 32, 32);     add('d8_2', 3, 32, 32)
    # ClassificationHead
    add('cls1', 3, 32, 32)
    add('cls2', 1, 32, category_num * anchor_num, bn=False)
    # SingleRegressionHead (binary=True, only_det=True)
    add('reg1', 3, 32, 32)
    add('reg2', 1, 32, anchor_num * box_code_size * 1, bn=False)
    return P


def _layer(P, name, x, *, stride=1, relu=True, out_dtype=jnp.bfloat16):
    p = P[name]
    return conv_layer([x], [p['w']], p['b'], p['bn'], stride=stride, relu=relu,
                      out_dtype=out_dtype)


# --------------------------------------------------------------------------
# Encoder / decoder (all convs go through the fused Pallas kernel)
# --------------------------------------------------------------------------
def lidar_encoder(P, bevs_nchw):
    # bevs_nchw: (N, seq, C, H, W); seq collapsed into batch (seq=1 here).
    N, seq, C, H, W = bevs_nchw.shape
    x = bevs_nchw.reshape(N * seq, C, H, W).transpose(0, 2, 3, 1)  # -> NHWC
    x = _layer(P, 'pre1', x);             x = _layer(P, 'pre2', x)
    x1 = _layer(P, 'e1_1', x, stride=2);  x1 = _layer(P, 'e1_2', x1)
    x2 = _layer(P, 'e2_1', x1, stride=2); x2 = _layer(P, 'e2_2', x2)
    x3 = _layer(P, 'e3_1', x2, stride=2); x3 = _layer(P, 'e3_2', x3)
    x4 = _layer(P, 'e4_1', x3, stride=2); x4 = _layer(P, 'e4_2', x4)
    return x, x1, x2, x3, x4


def _dec_block(P, n1, n2, deep, skip):
    # nearest 2x upsample (TODO(synk): could be folded into the conv kernel),
    # then a concat-FUSED conv: two inputs, channel-split weights.
    up = jnp.repeat(jnp.repeat(deep, 2, axis=1), 2, axis=2)
    p1 = P[n1]
    ca = up.shape[-1]
    y = conv_layer([up, skip],
                   [p1['w'][:, :, :ca, :], p1['w'][:, :, ca:, :]],
                   p1['b'], p1['bn'], relu=True)
    return _layer(P, n2, y)


def lidar_decoder(P, x_fused, x1, x2, x3, x4, batch_size):
    y = _dec_block(P, 'd5_1', 'd5_2', x4, x3)
    y = _dec_block(P, 'd6_1', 'd6_2', y, x2)
    y = _dec_block(P, 'd7_1', 'd7_2', y, x1)
    y = _dec_block(P, 'd8_1', 'd8_2', y, x_fused)
    return y  # (N, H, W, 32) bf16


# --------------------------------------------------------------------------
# Fused classification + regression heads (lane-dense output store).
# --------------------------------------------------------------------------
def fused_heads(P, xd, cfg):
    # cls1 + reg1 merged into one 3x3 conv (Cout = 64) with concatenated BN.
    w1 = jnp.concatenate([P['cls1']['w'], P['reg1']['w']], axis=3)
    b1 = jnp.concatenate([P['cls1']['b'], P['reg1']['b']], axis=0)
    bn1 = tuple(jnp.concatenate([a, b], axis=0)
                for a, b in zip(P['cls1']['bn'], P['reg1']['bn']))
    h = conv_layer([xd], [w1], b1, bn1, relu=True)

    # cls2 + reg2 merged into one block-diagonal 1x1 conv (Cout = 12 + 36).
    w_cls2, w_reg2 = P['cls2']['w'], P['reg2']['w']
    ch = w_cls2.shape[2]
    c_cls = w_cls2.shape[3]
    c_reg = w_reg2.shape[3]
    w2 = jnp.zeros((1, 1, 2 * ch, c_cls + c_reg), jnp.float32)
    w2 = w2.at[:, :, :ch, :c_cls].set(w_cls2)
    w2 = w2.at[:, :, ch:, c_cls:].set(w_reg2)
    b2 = jnp.concatenate([P['cls2']['b'], P['reg2']['b']], axis=0)
    out = conv_layer([h], [w2], b2, None, relu=False, out_dtype=jnp.float32)
    return out[..., :c_cls], out[..., c_cls:]


# --------------------------------------------------------------------------
# affine_grid + grid_sample (bilinear, zeros padding, align_corners=False)
# Plain JAX: data-dependent 2D gather (see TODO at top).
# --------------------------------------------------------------------------
def _affine_grids(theta, H, W):
    xs = (2.0 * jnp.arange(W, dtype=jnp.float32) + 1.0) / W - 1.0
    ys = (2.0 * jnp.arange(H, dtype=jnp.float32) + 1.0) / H - 1.0
    X, Y = jnp.meshgrid(xs, ys)                        # (H, W) each
    gx = theta[0, 0] * X + theta[0, 1] * Y + theta[0, 2]
    gy = theta[1, 0] * X + theta[1, 1] * Y + theta[1, 2]
    return gx, gy


def _grid_sample(img_chw, gx, gy):
    C, H, W = img_chw.shape
    ix = ((gx + 1.0) * W - 1.0) / 2.0
    iy = ((gy + 1.0) * H - 1.0) / 2.0
    x0 = jnp.floor(ix); y0 = jnp.floor(iy)
    x1 = x0 + 1.0;      y1 = y0 + 1.0
    wx1 = ix - x0; wx0 = 1.0 - wx1
    wy1 = iy - y0; wy0 = 1.0 - wy1

    def gather(xi, yi):
        valid = (xi >= 0) & (xi <= W - 1) & (yi >= 0) & (yi <= H - 1)
        xc = jnp.clip(xi, 0, W - 1).astype(jnp.int32)
        yc = jnp.clip(yi, 0, H - 1).astype(jnp.int32)
        vals = img_chw[:, yc, xc]                      # (C, H, W)
        return vals * valid[None].astype(img_chw.dtype)

    return (gather(x0, y0) * (wx0 * wy0)[None] +
            gather(x1, y0) * (wx1 * wy0)[None] +
            gather(x0, y1) * (wx0 * wy1)[None] +
            gather(x1, y1) * (wx1 * wy1)[None])


def _warp_pair(nb_chw, theta_rot, theta_trans):
    # Two sequential resamplings, exactly as in the reference module.
    C, H, W = nb_chw.shape
    gxr, gyr = _affine_grids(theta_rot, H, W)
    gxt, gyt = _affine_grids(theta_trans, H, W)
    w1 = _grid_sample(nb_chw, gxr, gyr)
    return _grid_sample(w1, gxt, gyt)


# --------------------------------------------------------------------------
# Multi-agent feature fusion (rotation + translation warps, then sum)
# --------------------------------------------------------------------------
def fuse_features(x_enc_nhwc, trans_matrices, num_agent_tensor, batch_size,
                  agent_num=5):
    N, H, W, C = x_enc_nhwc.shape
    x_chw = jnp.transpose(x_enc_nhwc.astype(jnp.float32), (0, 3, 1, 2))
    # feat_maps[batch*i : batch*(i+1)] is agent i  ->  (batch, agent, C, H, W)
    local = x_chw.reshape(agent_num, batch_size, C, H, W).transpose(1, 0, 2, 3, 4)
    local_flat = local.reshape(batch_size * agent_num, C, H, W)

    tm = np.asarray(trans_matrices, dtype=np.float32)
    nat = np.asarray(num_agent_tensor)

    # TODO(synk): host-side pair enumeration (num_agent pulled to host); under
    # jit with traced agent counts this would need a masked dense formulation.
    src_idx, tgt_idx, th_rot, th_tr = [], [], [], []
    for b in range(batch_size):
        num_agent = int(nat[b, 0])
        for i in range(num_agent):
            for j in range(num_agent):
                if j == i:
                    continue
                nb_warp = tm[b, i, j]                              # (4, 4)
                x_trans = 4.0 * nb_warp[0, 3] / 128.0
                y_trans = -(4.0 * nb_warp[1, 3]) / 128.0
                th_rot.append([[nb_warp[0, 0], nb_warp[0, 1], 0.0],
                               [nb_warp[1, 0], nb_warp[1, 1], 0.0]])
                th_tr.append([[1.0, 0.0, x_trans],
                              [0.0, 1.0, y_trans]])
                src_idx.append(b * agent_num + j)
                tgt_idx.append(b * agent_num + i)

    if src_idx:
        nb_feats = local_flat[np.asarray(src_idx, np.int32)]       # (P, C, H, W)
        warped = jax.vmap(_warp_pair)(
            nb_feats,
            jnp.asarray(np.asarray(th_rot, np.float32)),
            jnp.asarray(np.asarray(th_tr, np.float32)))
        local_flat = local_flat.at[np.asarray(tgt_idx, np.int32)].add(warped)

    upd = local_flat.reshape(batch_size, agent_num, C, H, W)
    # agents2batch: concat over agents along batch axis (agent-major)
    feat_fuse = upd.transpose(1, 0, 2, 3, 4).reshape(agent_num * batch_size,
                                                     C, H, W)
    return jnp.transpose(feat_fuse, (0, 2, 3, 1))      # NHWC, f32


# --------------------------------------------------------------------------
# Full FaFMIMONet_32_256_256 forward
# --------------------------------------------------------------------------
def faf_mimo_forward(P, bevs, trans_matrices, num_agent_tensor, cfg,
                     batch_size=1):
    # bevs: (batch*agent, seq, H, W, C)  ->  permute(0,1,4,2,3)
    bevs_nchw = jnp.transpose(bevs, (0, 1, 4, 2, 3))
    x, x1, x2, x3, x4 = lidar_encoder(P, bevs_nchw)

    feat_fuse = fuse_features(x, trans_matrices, num_agent_tensor, batch_size)
    xd = lidar_decoder(P, feat_fuse, x1, x2, x3, x4, batch_size)

    cls_out, reg_out = fused_heads(P, xd, cfg)          # NHWC, f32
    N, H, W, _ = cls_out.shape
    cls_preds = cls_out.reshape(N, -1, cfg['category_num'])
    loc_preds = reg_out.reshape(-1, H, W,
                                cfg['anchor_num'], cfg['out_seq_len'],
                                cfg['box_code_size'])
    return {'loc': loc_preds, 'cls': cls_preds}
    # motion_state=False -> no 'state' output.


# --------------------------------------------------------------------------
if __name__ == "__main__":
    H = W = 32            # small stand-in for the 256x256 reference resolution
    in_channels = 13
    batch_size = 1
    agent_num = 5
    cfg = dict(category_num=2, anchor_num=6, box_code_size=6, out_seq_len=1)

    P = build_params(in_channels, cfg['category_num'], cfg['anchor_num'],
                     cfg['box_code_size'])

    key = jax.random.PRNGKey(0)
    bevs = jax.random.uniform(
        key, (batch_size * agent_num, 1, H, W, in_channels), jnp.float32)

    # Deterministic 4x4 transforms: small rotation + translation per pair.
    tms = np.zeros((batch_size, agent_num, agent_num, 4, 4), np.float32)
    for b in range(batch_size):
        for i in range(agent_num):
            for j in range(agent_num):
                ang = 0.1 * (i - j)
                m = np.eye(4, dtype=np.float32)
                m[0, 0] = np.cos(ang); m[0, 1] = -np.sin(ang)
                m[1, 0] = np.sin(ang); m[1, 1] = np.cos(ang)
                m[0, 3] = 2.0 * (j - i)
                m[1, 3] = -1.5 * (j - i)
                tms[b, i, j] = m
    num_agent_tensor = np.full((batch_size, agent_num), 3, np.int32)

    out = faf_mimo_forward(P, bevs, jnp.asarray(tms), num_agent_tensor, cfg,
                           batch_size=batch_size)
    jax.block_until_ready(out)

    assert out['cls'].shape == (batch_size * agent_num,
                                H * W * cfg['anchor_num'], cfg['category_num'])
    assert out['loc'].shape == (batch_size * agent_num, H, W,
                                cfg['anchor_num'], cfg['out_seq_len'],
                                cfg['box_code_size'])
    assert bool(np.isfinite(np.asarray(out['cls'])).all())
    assert bool(np.isfinite(np.asarray(out['loc'])).all())
    print("KERNEL_OK")
</pallas_src>

<mosaic_0001>
module attributes {stable_mosaic.version = 11 : i64} {
  func.func @_conv_kernel(%arg0: i32, %arg1: i32, %arg2: memref<1x1158x13xbf16, #tpu.memory_space<vmem>>, %arg3: memref<9x13x32xbf16, #tpu.memory_space<vmem>>, %arg4: memref<2x32xf32, #tpu.memory_space<vmem>>, %arg5: memref<1x1088x32xbf16, #tpu.memory_space<vmem>>) attributes {dimension_semantics = [#tpu.dimension_semantics<parallel>, #tpu.dimension_semantics<parallel>], iteration_bounds = array<i64: 5, 1>, scalar_prefetch = 0 : i64, scratch_operands = 0 : i64, tpu.core_type = #tpu.core_type<tc>, window_params = [{transform_indices = @transform_0, window_bounds = array<i64: 1, 1158, 13>}, {transform_indices = @transform_1, window_bounds = array<i64: 9, 13, 32>}, {transform_indices = @transform_2, window_bounds = array<i64: 2, 32>}, {transform_indices = @transform_3, window_bounds = array<i64: 1, 1088, 32>}]} {
    %c0 = arith.constant 0 : index
    %c0_0 = arith.constant 0 : index
    %c0_1 = arith.constant 0 : index
    %0 = vector.load %arg2[%c0, %c0_0, %c0_1] : memref<1x1158x13xbf16, #tpu.memory_space<vmem>>, vector<1x1088x13xbf16>
    %1 = vector.shape_cast %0 : vector<1x1088x13xbf16> to vector<1088x13xbf16>
    %c0_2 = arith.constant 0 : index
    %c0_3 = arith.constant 0 : index
    %c0_4 = arith.constant 0 : index
    %2 = vector.load %arg3[%c0_2, %c0_3, %c0_4] : memref<9x13x32xbf16, #tpu.memory_space<vmem>>, vector<1x13x32xbf16>
    %3 = vector.shape_cast %2 : vector<1x13x32xbf16> to vector<13x32xbf16>
    %cst = arith.constant dense<0.000000e+00> : vector<1088x32xf32>
    %4 = tpu.matmul %1, %3, %cst {dimension_numbers = #tpu.dot_dimension_numbers<[1], [0], [0], [1], [0, 0, 1, 1], [], []>} : vector<1088x13xbf16>, vector<13x32xbf16>, vector<1088x32xf32> -> vector<1088x32xf32>
    %c0_5 = arith.constant 0 : index
    %c1 = arith.constant 1 : index
    %c0_6 = arith.constant 0 : index
    %5 = vector.load %arg2[%c0_5, %c1, %c0_6] : memref<1x1158x13xbf16, #tpu.memory_space<vmem>>, vector<1x1088x13xbf16>
    %6 = vector.shape_cast %5 : vector<1x1088x13xbf16> to vector<1088x13xbf16>
    %c1_7 = arith.constant 1 : index
    %c0_8 = arith.constant 0 : index
    %c0_9 = arith.constant 0 : index
    %7 = vector.load %arg3[%c1_7, %c0_8, %c0_9] : memref<9x13x32xbf16, #tpu.memory_space<vmem>>, vector<1x13x32xbf16>
    %8 = vector.shape_cast %7 : vector<1x13x32xbf16> to vector<13x32xbf16>
    %cst_10 = arith.constant dense<0.000000e+00> : vector<1088x32xf32>
    %9 = tpu.matmul %6, %8, %cst_10 {dimension_numbers = #tpu.dot_dimension_numbers<[1], [0], [0], [1], [0, 0, 1, 1], [], []>} : vector<1088x13xbf16>, vector<13x32xbf16>, vector<1088x32xf32> -> vector<1088x32xf32>
    %10 = arith.addf %4, %9 : vector<1088x32xf32>
    %c0_11 = arith.constant 0 : index
    %c2 = arith.constant 2 : index
    %c0_12 = arith.constant 0 : index
    %11 = vector.load %arg2[%c0_11, %c2, %c0_12] : memref<1x1158x13xbf16, #tpu.memory_space<vmem>>, vector<1x1088x13xbf16>
    %12 = vector.shape_cast %11 : vector<1x1088x13xbf16> to vector<1088x13xbf16>
    %c2_13 = arith.constant 2 : index
    %c0_14 = arith.constant 0 : index
    %c0_15 = arith.constant 0 : index
    %13 = vector.load %arg3[%c2_13, %c0_14, %c0_15] : memref<9x13x32xbf16, #tpu.memory_space<vmem>>, vector<1x13x32xbf16>
    %14 = vector.shape_cast %13 : vector<1x13x32xbf16> to vector<13x32xbf16>
    %cst_16 = arith.constant dense<0.000000e+00> : vector<1088x32xf32>
    %15 = tpu.matmul %12, %14, %cst_16 {dimension_numbers = #tpu.dot_dimension_numbers<[1], [0], [0], [1], [0, 0, 1, 1], [], []>} : vector<1088x13xbf16>, vector<13x32xbf16>, vector<1088x32xf32> -> vector<1088x32xf32>
    %16 = arith.addf %10, %15 : vector<1088x32xf32>
    %c0_17 = arith.constant 0 : index
    %c34 = arith.constant 34 : index
    %c0_18 = arith.constant 0 : index
    %17 = vector.load %arg2[%c0_17, %c34, %c0_18] : memref<1x1158x13xbf16, #tpu.memory_space<vmem>>, vector<1x1088x13xbf16>
    %18 = vector.shape_cast %17 : vector<1x1088x13xbf16> to vector<1088x13xbf16>
    %c3 = arith.constant 3 : index
    %c0_19 = arith.constant 0 : index
    %c0_20 = arith.constant 0 : index
    %19 = vector.load %arg3[%c3, %c0_19, %c0_20] : memref<9x13x32xbf16, #tpu.memory_space<vmem>>, vector<1x13x32xbf16>
    %20 = vector.shape_cast %19 : vector<1x13x32xbf16> to vector<13x32xbf16>
    %cst_21 = arith.constant dense<0.000000e+00> : vector<1088x32xf32>
    %21 = tpu.matmul %18, %20, %cst_21 {dimension_numbers = #tpu.dot_dimension_numbers<[1], [0], [0], [1], [0, 0, 1, 1], [], []>} : vector<1088x13xbf16>, vector<13x32xbf16>, vector<1088x32xf32> -> vector<1088x32xf32>
    %22 = arith.addf %16, %21 : vector<1088x32xf32>
    %c0_22 = arith.constant 0 : index
    %c35 = arith.constant 35 : index
    %c0_23 = arith.constant 0 : index
    %23 = vector.load %arg2[%c0_22, %c35, %c0_23] : memref<1x1158x13xbf16, #tpu.memory_space<vmem>>, vector<1x1088x13xbf16>
    %24 = vector.shape_cast %23 : vector<1x1088x13xbf16> to vector<1088x13xbf16>
    %c4 = arith.constant 4 : index
    %c0_24 = arith.constant 0 : index
    %c0_25 = arith.constant 0 : index
    %25 = vector.load %arg3[%c4, %c0_24, %c0_25] : memref<9x13x32xbf16, #tpu.memory_space<vmem>>, vector<1x13x32xbf16>
    %26 = vector.shape_cast %25 : vector<1x13x32xbf16> to vector<13x32xbf16>
    %cst_26 = arith.constant dense<0.000000e+00> : vector<1088x32xf32>
    %27 = tpu.matmul %24, %26, %cst_26 {dimension_numbers = #tpu.dot_dimension_numbers<[1], [0], [0], [1], [0, 0, 1, 1], [], []>} : vector<1088x13xbf16>, vector<13x32xbf16>, vector<1088x32xf32> -> vector<1088x32xf32>
    %28 = arith.addf %22, %27 : vector<1088x32xf32>
    %c0_27 = arith.constant 0 : index
    %c36 = arith.constant 36 : index
    %c0_28 = arith.constant 0 : index
    %29 = vector.load %arg2[%c0_27, %c36, %c0_28] : memref<1x1158x13xbf16, #tpu.memory_space<vmem>>, vector<1x1088x13xbf16>
    %30 = vector.shape_cast %29 : vector<1x1088x13xbf16> to vector<1088x13xbf16>
    %c5 = arith.constant 5 : index
    %c0_29 = arith.constant 0 : index
    %c0_30 = arith.constant 0 : index
    %31 = vector.load %arg3[%c5, %c0_29, %c0_30] : memref<9x13x32xbf16, #tpu.memory_space<vmem>>, vector<1x13x32xbf16>
    %32 = vector.shape_cast %31 : vector<1x13x32xbf16> to vector<13x32xbf16>
    %cst_31 = arith.constant dense<0.000000e+00> : vector<1088x32xf32>
    %33 = tpu.matmul %30, %32, %cst_31 {dimension_numbers = #tpu.dot_dimension_numbers<[1], [0], [0], [1], [0, 0, 1, 1], [], []>} : vector<1088x13xbf16>, vector<13x32xbf16>, vector<1088x32xf32> -> vector<1088x32xf32>
    %34 = arith.addf %28, %33 : vector<1088x32xf32>
    %c0_32 = arith.constant 0 : index
    %c68 = arith.constant 68 : index
    %c0_33 = arith.constant 0 : index
    %35 = vector.load %arg2[%c0_32, %c68, %c0_33] : memref<1x1158x13xbf16, #tpu.memory_space<vmem>>, vector<1x1088x13xbf16>
    %36 = vector.shape_cast %35 : vector<1x1088x13xbf16> to vector<1088x13xbf16>
    %c6 = arith.constant 6 : index
    %c0_34 = arith.constant 0 : index
    %c0_35 = arith.constant 0 : index
    %37 = vector.load %arg3[%c6, %c0_34, %c0_35] : memref<9x13x32xbf16, #tpu.memory_space<vmem>>, vector<1x13x32xbf16>
    %38 = vector.shape_cast %37 : vector<1x13x32xbf16> to vector<13x32xbf16>
    %cst_36 = arith.constant dense<0.000000e+00> : vector<1088x32xf32>
    %39 = tpu.matmul %36, %38, %cst_36 {dimension_numbers = #tpu.dot_dimension_numbers<[1], [0], [0], [1], [0, 0, 1, 1], [], []>} : vector<1088x13xbf16>, vector<13x32xbf16>, vector<1088x32xf32> -> vector<1088x32xf32>
    %40 = arith.addf %34, %39 : vector<1088x32xf32>
    %c0_37 = arith.constant 0 : index
    %c69 = arith.constant 69 : index
    %c0_38 = arith.constant 0 : index
    %41 = vector.load %arg2[%c0_37, %c69, %c0_38] : memref<1x1158x13xbf16, #tpu.memory_space<vmem>>, vector<1x1088x13xbf16>
    %42 = vector.shape_cast %41 : vector<1x1088x13xbf16> to vector<1088x13xbf16>
    %c7 = arith.constant 7 : index
    %c0_39 = arith.constant 0 : index
    %c0_40 = arith.constant 0 : index
    %43 = vector.load %arg3[%c7, %c0_39, %c0_40] : memref<9x13x32xbf16, #tpu.memory_space<vmem>>, vector<1x13x32xbf16>
    %44 = vector.shape_cast %43 : vector<1x13x32xbf16> to vector<13x32xbf16>
    %cst_41 = arith.constant dense<0.000000e+00> : vector<1088x32xf32>
    %45 = tpu.matmul %42, %44, %cst_41 {dimension_numbers = #tpu.dot_dimension_numbers<[1], [0], [0], [1], [0, 0, 1, 1], [], []>} : vector<1088x13xbf16>, vector<13x32xbf16>, vector<1088x32xf32> -> vector<1088x32xf32>
    %46 = arith.addf %40, %45 : vector<1088x32xf32>
    %c0_42 = arith.constant 0 : index
    %c70 = arith.constant 70 : index
    %c0_43 = arith.constant 0 : index
    %47 = vector.load %arg2[%c0_42, %c70, %c0_43] : memref<1x1158x13xbf16, #tpu.memory_space<vmem>>, vector<1x1088x13xbf16>
    %48 = vector.shape_cast %47 : vector<1x1088x13xbf16> to vector<1088x13xbf16>
    %c8 = arith.constant 8 : index
    %c0_44 = arith.constant 0 : index
    %c0_45 = arith.constant 0 : index
    %49 = vector.load %arg3[%c8, %c0_44, %c0_45] : memref<9x13x32xbf16, #tpu.memory_space<vmem>>, vector<1x13x32xbf16>
    %50 = vector.shape_cast %49 : vector<1x13x32xbf16> to vector<13x32xbf16>
    %cst_46 = arith.constant dense<0.000000e+00> : vector<1088x32xf32>
    %51 = tpu.matmul %48, %50, %cst_46 {dimension_numbers = #tpu.dot_dimension_numbers<[1], [0], [0], [1], [0, 0, 1, 1], [], []>} : vector<1088x13xbf16>, vector<13x32xbf16>, vector<1088x32xf32> -> vector<1088x32xf32>
    %52 = arith.addf %46, %51 : vector<1088x32xf32>
    %c0_47 = arith.constant 0 : index
    %c0_48 = arith.constant 0 : index
    %53 = vector.load %arg4[%c0_47, %c0_48] : memref<2x32xf32, #tpu.memory_space<vmem>>, vector<1x32xf32>
    %54 = vector.broadcast %53 : vector<1x32xf32> to vector<1088x32xf32>
    %55 = arith.mulf %52, %54 : vector<1088x32xf32>
    %c1_49 = arith.constant 1 : index
    %c0_50 = arith.constant 0 : index
    %56 = vector.load %arg4[%c1_49, %c0_50] : memref<2x32xf32, #tpu.memory_space<vmem>>, vector<1x32xf32>
    %57 = vector.broadcast %56 : vector<1x32xf32> to vector<1088x32xf32>
    %58 = arith.addf %55, %57 : vector<1088x32xf32>
    %cst_51 = arith.constant 0.000000e+00 : f32
    %59 = vector.broadcast %cst_51 : f32 to vector<1088x32xf32>
    %60 = arith.maximumf %58, %59 : vector<1088x32xf32>
    %61 = arith.truncf %60 : vector<1088x32xf32> to vector<1088x32xbf16>
    %c0_52 = arith.constant 0 : index
    %c0_53 = arith.constant 0 : index
    %c0_54 = arith.constant 0 : index
    %62 = vector.load %arg5[%c0_52, %c0_53, %c0_54] : memref<1x1088x32xbf16, #tpu.memory_space<vmem>>, vector<1x1088x32xbf16>
    %63 = vector.shape_cast %62 : vector<1x1088x32xbf16> to vector<1088x32xbf16>
    %64 = vector.shape_cast %61 : vector<1088x32xbf16> to vector<1x1088x32xbf16>
    tpu.vector_store %arg5[%c0_52, %c0_53, %c0_54], %64 {strides = array<i32>} : memref<1x1088x32xbf16, #tpu.memory_space<vmem>>, vector<1x1088x32xbf16>,
    return
  }
  func.func @transform_0(%arg0: i32, %arg1: i32) -> (i32, i32, i32) {
    %c0_i32 = arith.constant 0 : i32
    %c0_i32_0 = arith.constant 0 : i32
    %c0_i32_1 = arith.constant 0 : i32
    return %arg0, %c0_i32, %c0_i32_0 : i32, i32, i32
  }
  func.func @transform_1(%arg0: i32, %arg1: i32) -> (i32, i32, i32) {
    %c0_i32 = arith.constant 0 : i32
    %c0_i32_0 = arith.constant 0 : i32
    %c0_i32_1 = arith.constant 0 : i32
    return %c0_i32, %c0_i32_0, %arg1 : i32, i32, i32
  }
  func.func @transform_2(%arg0: i32, %arg1: i32) -> (i32, i32) {
    %c0_i32 = arith.constant 0 : i32
    %c0_i32_0 = arith.constant 0 : i32
    return %c0_i32, %arg1 : i32, i32
  }
  func.func @transform_3(%arg0: i32, %arg1: i32) -> (i32, i32, i32) {
    %c0_i32 = arith.constant 0 : i32
    %c0_i32_0 = arith.constant 0 : i32
    return %arg0, %c0_i32, %arg1 : i32, i32, i32
  }
}

</mosaic_0001>

<bundles_post_ra>
// kernel: tpu_custom_call.1
= control target key start
LH: loop header
LB: loop body
LE: loop exit
PB: predicated region body
PF: predicated region fallthrough
CT: control target
= control target key end

     0   :  { %s18064_s12 = smov 0   ;;  %s18066_s13 = smov 0   ;;  %s21214_s0 = inlined_call_operand.vmem [shape: bf16[5,1158,13], index: 0, kind: input, shape index: {}]   ;;  %s21215_s1 = inlined_call_operand.vmem [shape: bf16[9,13,32], index: 1, kind: input, shape index: {}]   ;;  %s21216_s2 = inlined_call_operand.vmem [shape: f32[2,32], index: 2, kind: input, shape index: {}]   ;;  %s21217_s3 = inlined_call_operand.vmem [shape: bf16[5,1088,32], index: 3, kind: output, shape index: {}]  }
   0x1   :  { %s18068_s14 = smov 0  }
   0x2 LB: > { %s25_s15 = sadd.s32 1, %s18037_s13  ;;  %p13394_p0 = scmp.ge.s32.totalorder %s18041_s14, 1  ;;  %s18041_s14 = sphi %s18068_s14, %s13_s14   ;;  %s18037_s13 = sphi %s18066_s13, %s21424_s13   ;;  %s18033_s12 = sphi %s18064_s12, %s21423_s12  }
   0x3   : > { %p27_p1 = scmp.ge.s32.totalorder %s25_s15, 5  ;;  %p169_p2 = scmp.lt.s32.totalorder %s18041_s14, 6 }
   0x5   : > { %s21426_s15 = smov (%p27_p1, %s25_s15), 0  ;;  %p170_p3 = pnand %p13394_p0, %p169_p2 }
   0x7   : > { %173 = sbr.rel (%p170_p3) target bundleno = 1476 (0x5c4), region = 32 }
   0xe   : > { %v17502_v0 = vld [vmem:[%s21215_s1 + $0x8] sm:$0x7f]   ;;  %vm1470_vm0 = vcmask 1045504   ;;  %vm1471_vm1 = vcmask 1046528   ;;  %p204_p4 = scmp.lt.s32.totalorder %s18033_s12, 4  ;;  %v18043_v1 = vmov 65535  }
   0xf   : > { %v1472_v2 = vsel %vm1470_vm0, 4294967295, %v18043_v1  ;;  %v17503_v3 = vld [vmem:[%s21215_s1 + $0x20] sm:$0x7f]   ;;  %vm711_vm2 = vsmask.f32 7424  ;;  %vm1265_vm3 = vcmask 105472  }
  0x10   : > { %v18090_v4 = vsel %vm1471_vm1, %v1472_v2, 0  ;;  %s21428_s12 = smov (!%p204_p4, %s18033_s12), 4  ;;  %v17506_v7 = vld [vmem:[%s21215_s1] sm:$0x7f]   ;;  %v17509_v9 = vld [vmem:[%s21215_s1 + $0x28] sm:$0x7f]  }
  0x11   : > { %v1475_v5 = vand.u32 %v17502_v0, %v18090_v4  ;;  %v18096_v6 = vand.u32 %v17503_v3, %v18090_v4  ;;  %s17475_s22 = smul.u32 580, %s21428_s12  ;;  %v2196_v8 = vand.u32 %v17506_v7, %v18090_v4  ;;  %v18116_v12 = vand.u32 %v17509_v9, %v18090_v4 }
  0x12   : > { %vm5397_vm4 = vsmask.f32 6400  ;;  %vm9565_vm5 = vsmask.f32 5376  ;;  %vm11118_vm6 = vcmask 1044480   ;;  %vm13143_vm7 = vcmask 257024  }
  0x13   : > { %15143 = vmatprep.subr.bf16.mxu1 %v1475_v5  ;;  %15695 = vmatprep.subr.bf16.mxu0 %v18096_v6  ;;  %s18111_s27 = scalar_lea.vmem %s21214_s0, %s17475_s22  ;;  %s17476_s19 = smul.u32 544, %s21428_s12 }
  0x14   : > { %15144 = vmatpush3.bf16.msra.mxu1 %v1475_v5  ;;  %15696 = vmatpush3.bf16.msra.mxu0 %v18096_v6  ;;  %v226_v10 = vld [vmem:[%s18111_s27] sm:$0xf]  ;;  %v227_v11 = vld [vmem:[%s18111_s27 + $0x4] sm:$0xf]  ;;  %v17505_v14 = vld [vmem:[%s18111_s27 + $0x8] sm:$0xff]  }
  0x15   : > { %15281 = vmatprep.subr.bf16.mxu1 %v2196_v8  ;;  %v18118_v13 = vcombine.low %v226_v10, %v227_v11  ;;  %v3845_v15 = vld [vmem:[%s18111_s27 + $0x10] sm:$0xe]  ;;  %v3846_v16 = vld [vmem:[%s18111_s27 + $0x14] sm:$0xf]  ;;  %15833 = vmatprep.subr.bf16.mxu0 %v18116_v12  ;;  %v720_v19 = vshll.u32 %v17505_v14, 16  ;;  %v724_v20 = vshrl.u32 %v17505_v14, 16  ;;  %s20485_s21 = scalar_lea.vmem %s21217_s3, %s17476_s19 }
  0x16   : > { %v17508_v21 = vld [vmem:[%s18111_s27 + $0x18] sm:$0xff]   ;;  %v17510_v22 = vld [vmem:[%s18111_s27 + $0x10] sm:$0xff]   ;;  %v18128_v23 = vcombine.low %v3845_v15, %v3846_v16  ;;  %v17511_v31 = vld [vmem:[%s18111_s27 + $0x20] sm:$0xff]  }
  0x17   : > { %v713_v17 = vshrl.u32 %v18118_v13, 16  ;;  %v715_v18 = vshll.u32 %v18118_v13, 16  ;;  %v722_v25 = vrot.slane %v720_v19, 1  ;;  %v5407_v26 = vshrl.u32 %v17508_v21, 16  ;;  %v17512_v36 = vld [vmem:[%s18111_s27 + $0x18] sm:$0xff]   ;;  %v17513_v37 = vld [vmem:[%s18111_s27 + $0x28] sm:$0xff]  }
  0x18   : > { %21273 = vst [vmem:[#allocation2_spill] sm:$0xff] %v18128_v23  ;;  %v5410_v27 = vshll.u32 %v17508_v21, 16  ;;  %v5399_v28 = vshrl.u32 %v18128_v23, 16  ;;  %v5402_v29 = vshll.u32 %v18128_v23, 16  ;;  %v728_v30 = vshll.u32 %v17510_v22, 16  ;;  %v17514_v50 = vld [vmem:[%s18111_s27 + $0x20] sm:$0xff]  }
  0x19   : > { %v717_v24 = vrot.slane %v715_v18, 1  ;;  %v726_v33 = vor.u32 %v724_v20, %v722_v25  ;;  %v5409_v34 = vrot.slane %v5407_v26, 1  ;;  %v5416_v41 = vshrl.u32 %v17511_v31, 16  ;;  %v17515_v51 = vld [vmem:[%s18111_s27 + $0x30] sm:$0xff]   ;;  %v17516_v56 = vld [vmem:[%s18111_s27 + $0x28] sm:$0xff]   ;;  %v17517_v61 = vld [vmem:[%s18111_s27 + $0x38] sm:$0xff]  }
  0x1a   : > { %v5412_v35 = vrot.slane %v5410_v27, 2  ;;  %v5401_v38 = vrot.slane %v5399_v28, 1  ;;  %v5404_v39 = vrot.slane %v5402_v29, 2  ;;  %v730_v40 = vrot.slane %v728_v30, 1  ;;  %v17518_v2 = vld [vmem:[%s18111_s27 + $0x30] sm:$0xff]   ;;  %v17519_v19 = vld [vmem:[%s18111_s27 + $0x40] sm:$0xff]  }
  0x1b   : > { %v718_v32 = vor.u32 %v717_v24, %v713_v17  ;;  %v5419_v44 = vshll.u32 %v17511_v31, 16  ;;  %v732_v45 = vshrl.u32 %v17510_v22, 16  ;;  %v5418_v48 = vrot.slane %v5416_v41, 1  ;;  %v17520_v29 = vld [vmem:[%s18111_s27 + $0x38] sm:$0xff]  }
  0x1c   : > { %v5413_v43 = vor.u32 %v5412_v35, %v5409_v34  ;;  %v5405_v46 = vor.u32 %v5404_v39, %v5401_v38  ;;  %v731_v47 = vsel %vm711_vm2, %v726_v33, %v730_v40  ;;  %v736_v49 = vshll.u32 %v17512_v36, 16  ;;  %v18945_v23 = vld [vmem:[%s18111_s27 + $0x58] sm:$0xff]  }
  0x1d   : > { %v723_v42 = vsel %vm711_vm2, %v718_v32, %v722_v25  ;;  %v5421_v52 = vrot.slane %v5419_v44, 2  ;;  %v734_v53 = vor.u32 %v732_v45, %v730_v40  ;;  %v5425_v54 = vshrl.u32 %v17513_v37, 16  ;;  %21281 = vst [vmem:[#allocation10_spill] sm:$0xff] %v18945_v23 }
  0x1e   : > { %15145 = vmatprep.mubr.msk.bf16.mxu1 %vm1265_vm3, %v723_v42  ;;  %v5428_v55 = vshll.u32 %v17513_v37, 16  ;;  %v5414_v57 = vsel %vm5397_vm4, %v5405_v46, %v5413_v43  ;;  %v738_v58 = vrot.slane %v736_v49, 1  ;;  %v740_v59 = vshrl.u32 %v17512_v36, 16  ;;  %v17521_v37 = vld [vmem:[%s18111_s27 + $0x48] sm:$0xff]   ;;  %v17522_v42 = vld [vmem:[%s18111_s27 + $0x40] sm:$0xff]  }
  0x1f   : > { %15146 = vmatmul.mubr.msk.bf16.vlgmr.msra.gmra.mrb[0].mxu1 %vm1265_vm3, %v731_v47  ;;  %v744_v60 = vshll.u32 %v17514_v50, 16  ;;  %15697 = vmatprep.mubr.msk.bf16.mxu0 %vm1265_vm3, %v5414_v57  ;;  %v5422_v62 = vor.u32 %v5421_v52, %v5418_v48  ;;  %v5427_v63 = vrot.slane %v5425_v54, 1  ;;  %v5434_v1 = vshrl.u32 %v17515_v51, 16 }
  0x20   : > { %15282 = vmatpush3.bf16.msra.mxu1 %v2196_v8  ;;  %v5430_v0 = vrot.slane %v5428_v55, 2  ;;  %v739_v3 = vsel %vm711_vm2, %v734_v53, %v738_v58  ;;  %v742_v5 = vor.u32 %v740_v59, %v738_v58  ;;  %v5437_v9 = vshll.u32 %v17515_v51, 16  ;;  %v17524_v51 = vld [vmem:[%s18111_s27 + $0x48] sm:$0xff]   ;;  %v17525_v59 = vld [vmem:[%s18111_s27 + $0x58] sm:$0xff]  }
  0x21   : > { %v746_v7 = vrot.slane %v744_v60, 1  ;;  %v5423_v10 = vsel %vm5397_vm4, %v5413_v43, %v5422_v62  ;;  %15149 = vmatprep.mubr.msk.bf16.mxu1 %vm1265_vm3, %v739_v3  ;;  %v5436_v11 = vrot.slane %v5434_v1, 1  ;;  %v748_v14 = vshrl.u32 %v17514_v50, 16  ;;  %v17523_v50 = vld [vmem:[%s18111_s27 + $0x50] sm:$0xff]  }
  0x22   : > { %v5431_v8 = vor.u32 %v5430_v0, %v5427_v63  ;;  %15698 = vmatmul.mubr.msk.bf16.vlgmr.msra.gmra.mrb[0].mxu0 %vm1265_vm3, %v5423_v10  ;;  %v5439_v16 = vrot.slane %v5437_v9, 2  ;;  %v752_v17 = vshll.u32 %v17516_v56, 16  ;;  %v5443_v18 = vshrl.u32 %v17517_v61, 16  ;;  %v17526_v3 = vld [vmem:[%s18111_s27 + $0x50] sm:$0xff]   ;;  %v17527_v9 = vld [vmem:[%s18111_s27 + $0x60] sm:$0xff]  }
  0x23   : > { %v747_v15 = vsel %vm711_vm2, %v742_v5, %v746_v7  ;;  %15834 = vmatpush3.bf16.msra.mxu0 %v18116_v12  ;;  %v750_v21 = vor.u32 %v748_v14, %v746_v7  ;;  %v5446_v22 = vshll.u32 %v17517_v61, 16  ;;  %v756_v24 = vshrl.u32 %v17516_v56, 16 }
  0x24   : > { %v5432_v20 = vsel %vm5397_vm4, %v5422_v62, %v5431_v8  ;;  %v5440_v25 = vor.u32 %v5439_v16, %v5436_v11  ;;  %v754_v26 = vrot.slane %v752_v17, 1  ;;  %v5445_v27 = vrot.slane %v5443_v18, 1  ;;  %v17528_v18 = vld [vmem:[%s18111_s27 + $0x58] sm:$0xff]  }
  0x25   : > { %15701 = vmatprep.mubr.msk.bf16.mxu0 %vm1265_vm3, %v5432_v20  ;;  %v760_v28 = vshll.u32 %v17518_v2, 16  ;;  %v5448_v30 = vrot.slane %v5446_v22, 2  ;;  %v5452_v31 = vshrl.u32 %v17519_v19, 16  ;;  %v5455_v32 = vshll.u32 %v17519_v19, 16 }
  0x26   : > { %v764_v12 = vshrl.u32 %v17518_v2, 16  ;;  %v5441_v33 = vsel %vm5397_vm4, %v5431_v8, %v5440_v25  ;;  %v755_v34 = vsel %vm711_vm2, %v750_v21, %v754_v26  ;;  %v758_v35 = vor.u32 %v756_v24, %v754_v26  ;;  %v17529_v24 = vld [vmem:[%s18111_s27 + $0x68] sm:$0xff]  }
  0x27   : > { %15150 = vmatmul.mubr.msk.bf16.gmra.mrb[4].mxu1 %vm1265_vm3, %v747_v15  ;;  %v762_v36 = vrot.slane %v760_v28, 1  ;;  %v5449_v38 = vor.u32 %v5448_v30, %v5445_v27  ;;  %v5454_v39 = vrot.slane %v5452_v31, 1  ;;  %v5457_v40 = vrot.slane %v5455_v32, 2 }
  0x28   : > { %15153 = vmatprep.mubr.msk.bf16.mxu1 %vm1265_vm3, %v755_v34  ;;  %v768_v41 = vshll.u32 %v17520_v29, 16  ;;  %v5461_v44 = vshrl.u32 %v17521_v37, 16  ;;  %v5464_v45 = vshll.u32 %v17521_v37, 16  ;;  %v772_v49 = vshrl.u32 %v17520_v29, 16 }
  0x29   : > { %v766_v43 = vor.u32 %v764_v12, %v762_v36  ;;  %v5450_v46 = vsel %vm5397_vm4, %v5440_v25, %v5449_v38  ;;  %v763_v47 = vsel %vm711_vm2, %v758_v35, %v762_v36  ;;  %v776_v54 = vshll.u32 %v17522_v42, 16  ;;  %v17530_v12 = vld [vmem:[%s18111_s27 + $0x60] sm:$0xff]   ;;  %v17532_v36 = vld [vmem:[%s18111_s27 + $0x68] sm:$0xff]  }
  0x2a   : > { %v770_v48 = vrot.slane %v768_v41, 1  ;;  %15702 = vmatmul.mubr.msk.bf16.gmra.mrb[4].mxu0 %vm1265_vm3, %v5441_v33  ;;  %v5463_v52 = vrot.slane %v5461_v44, 1  ;;  %v5466_v53 = vrot.slane %v5464_v45, 2  ;;  %v780_v55 = vshrl.u32 %v17522_v42, 16  ;;  %v17531_v33 = vld [vmem:[%s18111_s27 + $0x70] sm:$0xff]   ;;  %v17533_v45 = vld [vmem:[%s18111_s27 + $0x78] sm:$0xff]  }
  0x2b   : > { %15705 = vmatprep.mubr.msk.bf16.mxu0 %vm1265_vm3, %v5450_v46  ;;  %v5458_v56 = vor.u32 %v5457_v40, %v5454_v39  ;;  %v5470_v58 = vshrl.u32 %v17523_v50, 16  ;;  %v778_v61 = vrot.slane %v776_v54, 1  ;;  %v5473_v62 = vshll.u32 %v17523_v50, 16  ;;  %v17534_v54 = vld [vmem:[%s18111_s27 + $0x70] sm:$0xff]  }
  0x2c   : > { %v771_v57 = vsel %vm711_vm2, %v766_v43, %v770_v48  ;;  %v5467_v60 = vor.u32 %v5466_v53, %v5463_v52  ;;  %v784_v63 = vshll.u32 %v17524_v51, 16  ;;  %v5479_v1 = vshrl.u32 %v17525_v59, 16 }
  0x2d   : > { %v5472_v0 = vrot.slane %v5470_v58, 1  ;;  %v5482_v2 = vshll.u32 %v17525_v59, 16  ;;  %v774_v5 = vor.u32 %v772_v49, %v770_v48  ;;  %v5475_v7 = vrot.slane %v5473_v62, 2 }
  0x2e   : > { %v5459_v10 = vsel %vm5397_vm4, %v5449_v38, %v5458_v56  ;;  %v782_v8 = vor.u32 %v780_v55, %v778_v61  ;;  %v786_v11 = vrot.slane %v784_v63, 1  ;;  %v5468_v14 = vsel %vm5397_vm4, %v5458_v56, %v5467_v60  ;;  %v17535_v55 = vld [vmem:[%s18111_s27 + $0x80] sm:$0xff]  }
  0x2f   : > { %15154 = vmatmul.mubr.msk.bf16.gmra.mrb[8].mxu1 %vm1265_vm3, %v763_v47  ;;  %v5481_v15 = vrot.slane %v5479_v1, 1  ;;  %v5484_v16 = vrot.slane %v5482_v2, 2  ;;  %v792_v17 = vshll.u32 %v17526_v3, 16  ;;  %v779_v19 = vsel %vm711_vm2, %v774_v5, %v778_v61 }
  0x30   : > { %15157 = vmatprep.mubr.msk.bf16.mxu1 %vm1265_vm3, %v771_v57  ;;  %v5476_v20 = vor.u32 %v5475_v7, %v5472_v0  ;;  %v788_v21 = vshrl.u32 %v17524_v51, 16  ;;  %v5488_v22 = vshrl.u32 %v17527_v9, 16  ;;  %v787_v25 = vsel %vm711_vm2, %v782_v8, %v786_v11  ;;  %v17537_v8 = vld [vmem:[%s18111_s27 + $0x88] sm:$0xff]  }
  0x31   : > { %v5491_v26 = vshll.u32 %v17527_v9, 16  ;;  %v796_v27 = vshrl.u32 %v17526_v3, 16  ;;  %v800_v28 = vshll.u32 %v17528_v18, 16  ;;  %v5485_v29 = vor.u32 %v5484_v16, %v5481_v15  ;;  %v17536_v3 = vld [vmem:[%s18111_s27 + $0x78] sm:$0xff]  }
  0x32   : > { %15706 = vmatmul.mubr.msk.bf16.gmra.mrb[8].mxu0 %vm1265_vm3, %v5459_v10  ;;  %v5497_v30 = vshrl.u32 %v17529_v24, 16  ;;  %v5500_v31 = vshll.u32 %v17529_v24, 16  ;;  %v794_v32 = vrot.slane %v792_v17, 1  ;;  %v790_v34 = vor.u32 %v788_v21, %v786_v11 }
  0x33   : > { %15709 = vmatprep.mubr.msk.bf16.mxu0 %vm1265_vm3, %v5468_v14  ;;  %v5490_v35 = vrot.slane %v5488_v22, 1  ;;  %v5477_v37 = vsel %vm5397_vm4, %v5467_v60, %v5476_v20  ;;  %v5493_v38 = vrot.slane %v5491_v26, 2  ;;  %v802_v40 = vrot.slane %v800_v28, 1  ;;  %v17538_v28 = vld [vmem:[%s18111_s27 + $0x80] sm:$0xff]  }
  0x34   : > { %v798_v39 = vor.u32 %v796_v27, %v794_v32  ;;  %v5486_v41 = vsel %vm5397_vm4, %v5476_v20, %v5485_v29  ;;  %v5499_v42 = vrot.slane %v5497_v30, 1  ;;  %v5502_v43 = vrot.slane %v5500_v31, 2  ;;  %v17540_v30 = vld [vmem:[%s18111_s27 + $0x88] sm:$0xff]  }
  0x35   : > { %v804_v44 = vshrl.u32 %v17528_v18, 16  ;;  %v808_v46 = vshll.u32 %v17530_v12, 16  ;;  %v5506_v47 = vshrl.u32 %v17531_v33, 16  ;;  %v795_v48 = vsel %vm711_vm2, %v790_v34, %v794_v32 }
  0x36   : > { %v5509_v49 = vshll.u32 %v17531_v33, 16  ;;  %v816_v50 = vshll.u32 %v17532_v36, 16  ;;  %v5494_v51 = vor.u32 %v5493_v38, %v5490_v35  ;;  %v803_v52 = vsel %vm711_vm2, %v798_v39, %v802_v40  ;;  %v17541_v33 = vld [vmem:[%s18111_s27 + $0x98] sm:$0xff]  }
  0x37   : > { %15158 = vmatmul.mubr.msk.bf16.gmra.mrb[12].mxu1 %vm1265_vm3, %v779_v19  ;;  %v812_v53 = vshrl.u32 %v17530_v12, 16  ;;  %v5503_v56 = vor.u32 %v5502_v43, %v5499_v42  ;;  %v5515_v57 = vshrl.u32 %v17533_v45, 16  ;;  %v5518_v58 = vshll.u32 %v17533_v45, 16 }
  0x38   : > { %15161 = vmatprep.mubr.msk.bf16.mxu1 %vm1265_vm3, %v787_v25  ;;  %v810_v59 = vrot.slane %v808_v46, 1  ;;  %v5508_v60 = vrot.slane %v5506_v47, 1  ;;  %v806_v61 = vor.u32 %v804_v44, %v802_v40  ;;  %v5511_v62 = vrot.slane %v5509_v49, 2  ;;  %v17542_v49 = vld [vmem:[%s18111_s27 + $0x90] sm:$0xff]  }
  0x39   : > { %v818_v63 = vrot.slane %v816_v50, 1  ;;  %v5495_v0 = vsel %vm5397_vm4, %v5485_v29, %v5494_v51  ;;  %v824_v2 = vshll.u32 %v17534_v54, 16  ;;  %v5504_v5 = vsel %vm5397_vm4, %v5494_v51, %v5503_v56  ;;  %v17539_v29 = vld [vmem:[%s18111_s27 + $0x90] sm:$0xff]   ;;  %v17543_v51 = vld [vmem:[%s18111_s27 + $0xa0] sm:$0xff]  }
  0x3a   : > { %15710 = vmatmul.mubr.msk.bf16.gmra.mrb[12].mxu0 %vm1265_vm3, %v5477_v37  ;;  %v814_v1 = vor.u32 %v812_v53, %v810_v59  ;;  %v5517_v7 = vrot.slane %v5515_v57, 1  ;;  %v5520_v9 = vrot.slane %v5518_v58, 2  ;;  %v5524_v10 = vshrl.u32 %v17535_v55, 16 }
  0x3b   : > { %15713 = vmatprep.mubr.msk.bf16.mxu0 %vm1265_vm3, %v5486_v41  ;;  %v820_v11 = vshrl.u32 %v17532_v36, 16  ;;  %v5527_v14 = vshll.u32 %v17535_v55, 16  ;;  %v811_v15 = vsel %vm711_vm2, %v806_v61, %v810_v59  ;;  %v5512_v16 = vor.u32 %v5511_v62, %v5508_v60  ;;  %v17544_v59 = vld [vmem:[%s18111_s27 + $0x98] sm:$0xff]   ;;  %v17545_v62 = vld [vmem:[%s18111_s27 + $0xa8] sm:$0xff]  }
  0x3c   : > { %v819_v17 = vsel %vm711_vm2, %v814_v1, %v818_v63  ;;  %v826_v18 = vrot.slane %v824_v2, 1  ;;  %v828_v19 = vshrl.u32 %v17534_v54, 16  ;;  %v832_v20 = vshll.u32 %v17536_v3, 16 }
  0x3d   : > { %v5521_v21 = vor.u32 %v5520_v9, %v5517_v7  ;;  %v5526_v22 = vrot.slane %v5524_v10, 1  ;;  %v5533_v24 = vshrl.u32 %v17537_v8, 16  ;;  %v5536_v25 = vshll.u32 %v17537_v8, 16 }
  0x3e   : > { %v822_v26 = vor.u32 %v820_v11, %v818_v63  ;;  %v5529_v27 = vrot.slane %v5527_v14, 2  ;;  %v5513_v31 = vsel %vm5397_vm4, %v5503_v56, %v5512_v16  ;;  %v830_v32 = vor.u32 %v828_v19, %v826_v18 }
  0x3f   : > { %15162 = vmatmul.mubr.msk.bf16.gmra.mrb[16].mxu1 %vm1265_vm3, %v795_v48  ;;  %v834_v12 = vrot.slane %v832_v20, 1  ;;  %v5522_v34 = vsel %vm5397_vm4, %v5512_v16, %v5521_v21  ;;  %v5535_v35 = vrot.slane %v5533_v24, 1  ;;  %v5538_v36 = vrot.slane %v5536_v25, 2  ;;  %v17547_v20 = vld [vmem:[%s18111_s27 + $0xb0] sm:$0xff]   ;;  %v17548_v25 = vld [vmem:[%s18111_s27 + $0xa8] sm:$0xff]  }
  0x40   : > { %15165 = vmatprep.mubr.msk.bf16.mxu1 %vm1265_vm3, %v803_v52  ;;  %v827_v37 = vsel %vm711_vm2, %v822_v26, %v826_v18  ;;  %v5530_v38 = vor.u32 %v5529_v27, %v5526_v22  ;;  %v840_v39 = vshll.u32 %v17538_v28, 16  ;;  %v836_v40 = vshrl.u32 %v17536_v3, 16  ;;  %v17546_v18 = vld [vmem:[%s18111_s27 + $0xa0] sm:$0xff]  }
  0x41   : > { %v5542_v41 = vshrl.u32 %v17539_v29, 16  ;;  %v5545_v42 = vshll.u32 %v17539_v29, 16  ;;  %v844_v43 = vshrl.u32 %v17538_v28, 16  ;;  %v835_v44 = vsel %vm711_vm2, %v830_v32, %v834_v12  ;;  %v17549_v29 = vld [vmem:[%s18111_s27 + $0xb8] sm:$0xff]  }
  0x42   : > { %15714 = vmatmul.mubr.msk.bf16.gmra.mrb[16].mxu0 %vm1265_vm3, %v5495_v0  ;;  %v848_v45 = vshll.u32 %v17540_v30, 16  ;;  %v5551_v46 = vshrl.u32 %v17541_v33, 16  ;;  %v5539_v47 = vor.u32 %v5538_v36, %v5535_v35  ;;  %v5554_v48 = vshll.u32 %v17541_v33, 16 }
  0x43   : > { %15717 = vmatprep.mubr.msk.bf16.mxu0 %vm1265_vm3, %v5504_v5  ;;  %v842_v50 = vrot.slane %v840_v39, 1  ;;  %v5531_v52 = vsel %vm5397_vm4, %v5521_v21, %v5530_v38  ;;  %v838_v53 = vor.u32 %v836_v40, %v834_v12  ;;  %v5544_v54 = vrot.slane %v5542_v41, 1 }
  0x44   : > { %v5547_v55 = vrot.slane %v5545_v42, 2  ;;  %v850_v57 = vrot.slane %v848_v45, 1  ;;  %v5553_v58 = vrot.slane %v5551_v46, 1  ;;  %v5540_v60 = vsel %vm5397_vm4, %v5530_v38, %v5539_v47  ;;  %v17550_v42 = vld [vmem:[%s18111_s27 + $0xb0] sm:$0xff]   ;;  %v17551_v45 = vld [vmem:[%s18111_s27 + $0xc0] sm:$0xff]  }
  0x45   : > { %v846_v56 = vor.u32 %v844_v43, %v842_v50  ;;  %v5556_v61 = vrot.slane %v5554_v48, 2  ;;  %v852_v63 = vshrl.u32 %v17540_v30, 16  ;;  %v856_v0 = vshll.u32 %v17542_v49, 16 }
  0x46   : > { %v5560_v1 = vshrl.u32 %v17543_v51, 16  ;;  %v843_v2 = vsel %vm711_vm2, %v838_v53, %v842_v50  ;;  %v5563_v3 = vshll.u32 %v17543_v51, 16  ;;  %v5548_v5 = vor.u32 %v5547_v55, %v5544_v54  ;;  %v17552_v50 = vld [vmem:[%s18111_s27 + $0xb8] sm:$0xff]   ;;  %v17553_v54 = vld [vmem:[%s18111_s27 + $0xc8] sm:$0xff]  }
  0x47   : > { %15166 = vmatmul.mubr.msk.bf16.gmra.mrb[20].mxu1 %vm1265_vm3, %v811_v15  ;;  %v851_v7 = vsel %vm711_vm2, %v846_v56, %v850_v57  ;;  %v860_v9 = vshrl.u32 %v17542_v49, 16  ;;  %v864_v10 = vshll.u32 %v17544_v59, 16  ;;  %v5557_v8 = vor.u32 %v5556_v61, %v5553_v58 }
  0x48   : > { %15169 = vmatprep.mubr.msk.bf16.mxu1 %vm1265_vm3, %v819_v17  ;;  %v5569_v11 = vshrl.u32 %v17545_v62, 16  ;;  %v5572_v14 = vshll.u32 %v17545_v62, 16  ;;  %v854_v15 = vor.u32 %v852_v63, %v850_v57  ;;  %v858_v16 = vrot.slane %v856_v0, 1 }
  0x49   : > { %v5562_v17 = vrot.slane %v5560_v1, 1  ;;  %v5565_v19 = vrot.slane %v5563_v3, 2  ;;  %v5549_v21 = vsel %vm5397_vm4, %v5539_v47, %v5548_v5  ;;  %v866_v24 = vrot.slane %v864_v10, 1 }
  0x4a   : > { %15718 = vmatmul.mubr.msk.bf16.gmra.mrb[20].mxu0 %vm1265_vm3, %v5513_v31  ;;  %v862_v22 = vor.u32 %v860_v9, %v858_v16  ;;  %v5558_v26 = vsel %vm5397_vm4, %v5548_v5, %v5557_v8  ;;  %v5571_v27 = vrot.slane %v5569_v11, 1  ;;  %v5574_v28 = vrot.slane %v5572_v14, 2  ;;  %v17554_v5 = vld [vmem:[%s18111_s27 + $0xc0] sm:$0xff]  }
  0x4b   : > { %15721 = vmatprep.mubr.msk.bf16.mxu0 %vm1265_vm3, %v5522_v34  ;;  %v859_v30 = vsel %vm711_vm2, %v854_v15, %v858_v16  ;;  %v872_v31 = vshll.u32 %v17546_v18, 16  ;;  %v5566_v32 = vor.u32 %v5565_v19, %v5562_v17  ;;  %v868_v12 = vshrl.u32 %v17544_v59, 16  ;;  %v17556_v16 = vld [vmem:[%s18111_s27 + $0xc8] sm:$0xff]  }
  0x4c   : > { %v5578_v33 = vshrl.u32 %v17547_v20, 16  ;;  %v5581_v34 = vshll.u32 %v17547_v20, 16  ;;  %v867_v35 = vsel %vm711_vm2, %v862_v22, %v866_v24  ;;  %v876_v36 = vshrl.u32 %v17546_v18, 16  ;;  %v17557_v20 = vld [vmem:[%s18111_s27 + $0xd8] sm:$0xff]  }
  0x4d   : > { %v5575_v38 = vor.u32 %v5574_v28, %v5571_v27  ;;  %v5587_v39 = vshrl.u32 %v17549_v29, 16  ;;  %v5590_v40 = vshll.u32 %v17549_v29, 16  ;;  %v874_v41 = vrot.slane %v872_v31, 1 }
  0x4e   : > { %v5567_v43 = vsel %vm5397_vm4, %v5557_v8, %v5566_v32  ;;  %v5580_v46 = vrot.slane %v5578_v33, 1  ;;  %v5583_v47 = vrot.slane %v5581_v34, 2  ;;  %v888_v55 = vshll.u32 %v17550_v42, 16 }
  0x4f   : > { %15170 = vmatmul.mubr.msk.bf16.gmra.mrb[24].mxu1 %vm1265_vm3, %v827_v37  ;;  %v880_v37 = vshll.u32 %v17548_v25, 16  ;;  %v878_v48 = vor.u32 %v876_v36, %v874_v41  ;;  %v5576_v51 = vsel %vm5397_vm4, %v5566_v32, %v5575_v38  ;;  %v5592_v53 = vrot.slane %v5590_v40, 2  ;;  %v17559_v36 = vld [vmem:[%s18111_s27 + $0xe0] sm:$0xff]  }
  0x50   : > { %15173 = vmatprep.mubr.msk.bf16.mxu1 %vm1265_vm3, %v835_v44  ;;  %v870_v44 = vor.u32 %v868_v12, %v866_v24  ;;  %v884_v57 = vshrl.u32 %v17548_v25, 16  ;;  %v5596_v58 = vshrl.u32 %v17551_v45, 16  ;;  %v5599_v59 = vshll.u32 %v17551_v45, 16 }
  0x51   : > { %v882_v49 = vrot.slane %v880_v37, 1  ;;  %v892_v62 = vshrl.u32 %v17550_v42, 16  ;;  %v896_v63 = vshll.u32 %v17552_v50, 16  ;;  %v5605_v1 = vshrl.u32 %v17553_v54, 16 }
  0x52   : > { %15722 = vmatmul.mubr.msk.bf16.gmra.mrb[24].mxu0 %vm1265_vm3, %v5531_v52  ;;  %v5589_v52 = vrot.slane %v5587_v39, 1  ;;  %v875_v56 = vsel %vm711_vm2, %v870_v44, %v874_v41  ;;  %v890_v3 = vrot.slane %v888_v55, 1  ;;  %v5598_v10 = vrot.slane %v5596_v58, 1  ;;  %v17560_v39 = vld [vmem:[%s18111_s27 + $0xd8] sm:$0xff]  }
  0x53   : > { %15725 = vmatprep.mubr.msk.bf16.mxu0 %vm1265_vm3, %v5540_v60  ;;  %v5584_v60 = vor.u32 %v5583_v47, %v5580_v46  ;;  %v883_v61 = vsel %vm711_vm2, %v878_v48, %v882_v49  ;;  %v886_v9 = vor.u32 %v884_v57, %v882_v49  ;;  %v5601_v8 = vrot.slane %v5599_v59, 2 }
  0x54   : > { %v5593_v0 = vor.u32 %v5592_v53, %v5589_v52  ;;  %v894_v14 = vor.u32 %v892_v62, %v890_v3  ;;  %v898_v15 = vrot.slane %v896_v63, 1  ;;  %v5607_v18 = vrot.slane %v5605_v1, 1  ;;  %v17578_v62 = vld [vmem:[%s21215_s1 + $0x30] sm:$0x7f]  }
  0x55   : > { %v5585_v11 = vsel %vm5397_vm4, %v5575_v38, %v5584_v60  ;;  %v891_v24 = vsel %vm711_vm2, %v886_v9, %v890_v3  ;;  %v900_v25 = vshrl.u32 %v17552_v50, 16  ;;  %v5602_v27 = vor.u32 %v5601_v8, %v5598_v10  ;;  %v17564_v9 = vld [vmem:[%s18111_s27 + $0xe8] sm:$0xff]  }
  0x56   : > { %v5594_v17 = vsel %vm5397_vm4, %v5584_v60, %v5593_v0  ;;  %v899_v28 = vsel %vm711_vm2, %v894_v14, %v898_v15  ;;  %v908_v29 = vshrl.u32 %v17554_v5, 16  ;;  %v5623_v32 = vshrl.u32 %v17557_v20, 16  ;;  %v17562_v60 = vld [vmem:[%s18111_s27 + $0xe0] sm:$0xff]  }
  0x57   : > { %15174 = vmatmul.mubr.msk.bf16.gmra.mrb[28].mxu1 %vm1265_vm3, %v843_v2  ;;  %v5608_v2 = vshll.u32 %v17553_v54, 16  ;;  %v5626_v12 = vshll.u32 %v17557_v20, 16  ;;  %v902_v37 = vor.u32 %v900_v25, %v898_v15  ;;  %v5603_v40 = vsel %vm5397_vm4, %v5593_v0, %v5602_v27 }
  0x58   : > { %15177 = vmatprep.mubr.msk.bf16.mxu1 %vm1265_vm3, %v851_v7  ;;  %v17555_v7 = vld [vmem:[%s18111_s27 + $0xd0] sm:$0xff]   ;;  %v5625_v45 = vrot.slane %v5623_v32, 1  ;;  %v916_v47 = vshrl.u32 %v17556_v16, 16  ;;  %v5632_v49 = vshrl.u32 %v17559_v36, 16  ;;  %v928_v52 = vshll.u32 %v17560_v39, 16 }
  0x59   : > { %v5610_v19 = vrot.slane %v5608_v2, 2  ;;  %v5614_v22 = vshrl.u32 %v17555_v7, 16  ;;  %v5628_v46 = vrot.slane %v5626_v12, 2  ;;  %v18290_v14 = vand.u32 %v17578_v62, %v18090_v4  ;;  %v17567_v12 = vld [vmem:[%s18111_s27 + $0x100] sm:$0xff]  }
  0x5a   : > { %15726 = vmatmul.mubr.msk.bf16.gmra.mrb[28].mxu0 %vm1265_vm3, %v5549_v21  ;;  %v904_v21 = vshll.u32 %v17554_v5, 16  ;;  %v5634_v0 = vrot.slane %v5632_v49, 1  ;;  %v930_v2 = vrot.slane %v928_v52, 1  ;;  %v932_v15 = vshrl.u32 %v17560_v39, 16 }
  0x5b   : > { %15729 = vmatprep.mubr.msk.bf16.mxu0 %vm1265_vm3, %v5558_v26  ;;  %v5617_v26 = vshll.u32 %v17555_v7, 16  ;;  %v5611_v31 = vor.u32 %v5610_v19, %v5607_v18  ;;  %v5616_v34 = vrot.slane %v5614_v22, 1  ;;  %v5629_v57 = vor.u32 %v5628_v46, %v5625_v45  ;;  %15971 = vmatprep.subr.bf16.mxu0 %v18290_v14 }
  0x5c   : > { %v906_v33 = vrot.slane %v904_v21, 1  ;;  %v940_v22 = vshrl.u32 %v17562_v60, 16  ;;  %v5668_v45 = vshrl.u32 %v17567_v12, 16  ;;  %v5671_v46 = vshll.u32 %v17567_v12, 16 }
  0x5d   : > { %v5619_v38 = vrot.slane %v5617_v26, 2  ;;  %v5612_v44 = vsel %vm5397_vm4, %v5602_v27, %v5611_v31 }
  0x5e   : > { %v910_v41 = vor.u32 %v908_v29, %v906_v33  ;;  %v907_v50 = vsel %vm711_vm2, %v902_v37, %v906_v33  ;;  %v934_v29 = vor.u32 %v932_v15, %v930_v2  ;;  %v17568_v33 = vld [vmem:[%s18111_s27 + $0xf8] sm:$0xff]   ;;  %v17569_v37 = vld [vmem:[%s18111_s27 + $0x108] sm:$0xff]  }
  0x5f   : > { %15178 = vmatmul.mubr.msk.bf16.gmra.mrb[32].mxu1 %vm1265_vm3, %v859_v30  ;;  %v912_v30 = vshll.u32 %v17556_v16, 16  ;;  %v5620_v53 = vor.u32 %v5619_v38, %v5616_v34  ;;  %v936_v16 = vshll.u32 %v17562_v60, 16  ;;  %v960_v49 = vshll.u32 %v17568_v33, 16 }
  0x60   : > { %15181 = vmatprep.mubr.msk.bf16.mxu1 %vm1265_vm3, %v867_v35  ;;  %v17558_v35 = vld [vmem:[%s18111_s27 + $0xd0] sm:$0xff]   ;;  %v5680_v52 = vshll.u32 %v17569_v37, 16 }
  0x61   : > { %v914_v42 = vrot.slane %v912_v30, 1  ;;  %v920_v48 = vshll.u32 %v17558_v35, 16  ;;  %v924_v55 = vshrl.u32 %v17558_v35, 16  ;;  %v5621_v3 = vsel %vm5397_vm4, %v5611_v31, %v5620_v53 }
  0x62   : > { %15730 = vmatmul.mubr.msk.bf16.gmra.mrb[32].mxu0 %vm1265_vm3, %v5567_v43  ;;  %v17561_v43 = vld [vmem:[%s18111_s27 + $0xe8] sm:$0xff]   ;;  %v5630_v10 = vsel %vm5397_vm4, %v5620_v53, %v5629_v57  ;;  %v938_v30 = vrot.slane %v936_v16, 1 }
  0x63   : > { %15733 = vmatprep.mubr.msk.bf16.mxu0 %vm1265_vm3, %v5576_v51  ;;  %v5635_v51 = vshll.u32 %v17559_v36, 16  ;;  %v915_v54 = vsel %vm711_vm2, %v910_v41, %v914_v42  ;;  %v5644_v58 = vshll.u32 %v17561_v43, 16  ;;  %v922_v59 = vrot.slane %v920_v48, 1 }
  0x64   : > { %v918_v63 = vor.u32 %v916_v47, %v914_v42  ;;  %v942_v35 = vor.u32 %v940_v22, %v938_v30  ;;  %v939_v41 = vsel %vm711_vm2, %v934_v29, %v938_v30  ;;  %v17576_v30 = vld [vmem:[%s18111_s27 + $0x118] sm:$0xff]  }
  0x65   : > { %v5637_v1 = vrot.slane %v5635_v51, 2  ;;  %v926_v5 = vor.u32 %v924_v55, %v922_v59  ;;  %v5646_v8 = vrot.slane %v5644_v58, 2  ;;  %v17571_v58 = vld [vmem:[%s18111_s27 + $0x110] sm:$0xff]  }
  0x66   : > { %v923_v19 = vsel %vm711_vm2, %v918_v63, %v922_v59  ;;  %v5673_v59 = vrot.slane %v5671_v46, 2  ;;  %v17572_v63 = vld [vmem:[%s18111_s27 + $0x108] sm:$0xff]  }
  0x67   : > { %15182 = vmatmul.mubr.msk.bf16.gmra.mrb[36].mxu1 %vm1265_vm3, %v875_v56  ;;  %v5641_v56 = vshrl.u32 %v17561_v43, 16  ;;  %v5638_v20 = vor.u32 %v5637_v1, %v5634_v0  ;;  %v931_v21 = vsel %vm711_vm2, %v926_v5, %v930_v2  ;;  %v5682_v1 = vrot.slane %v5680_v52, 2  ;;  %v17573_v2 = vld [vmem:[%s18111_s27 + $0x118] sm:$0xff]   ;;  %v17580_v52 = vld [vmem:[%s18111_s27 + $0x128] sm:$0xff]  }
  0x68   : > { %15185 = vmatprep.mubr.msk.bf16.mxu1 %vm1265_vm3, %v883_v61  ;;  %v17563_v61 = vld [vmem:[%s18111_s27 + $0xf0] sm:$0xff]   ;;  %v976_v16 = vshll.u32 %v17572_v63, 16 }
  0x69   : > { %v5643_v7 = vrot.slane %v5641_v56, 1  ;;  %v5653_v18 = vshll.u32 %v17563_v61, 16  ;;  %v5639_v34 = vsel %vm5397_vm4, %v5629_v57, %v5638_v20  ;;  %v5670_v57 = vrot.slane %v5668_v45, 1  ;;  %v17579_v45 = vld [vmem:[%s18111_s27 + $0x120] sm:$0xff]  }
  0x6a   : > { %15734 = vmatmul.mubr.msk.bf16.gmra.mrb[36].mxu0 %vm1265_vm3, %v5585_v11  ;;  %v17565_v11 = vld [vmem:[%s18111_s27 + $0xf8] sm:$0xff]   ;;  %v978_v29 = vrot.slane %v976_v16, 1 }
  0x6b   : > { %15737 = vmatprep.mubr.msk.bf16.mxu0 %vm1265_vm3, %v5594_v17  ;;  %v5650_v17 = vshrl.u32 %v17563_v61, 16  ;;  %v5647_v25 = vor.u32 %v5646_v8, %v5643_v7  ;;  %v5659_v26 = vshrl.u32 %v17565_v11, 16  ;;  %v5662_v27 = vshll.u32 %v17565_v11, 16 }
  0x6c   : > { %v5655_v32 = vrot.slane %v5653_v18, 2  ;;  %v962_v61 = vrot.slane %v960_v49, 1  ;;  %v5674_v8 = vor.u32 %v5673_v59, %v5670_v57  ;;  %v5695_v18 = vshrl.u32 %v17573_v2, 16 }
  0x6d   : > { %v5652_v31 = vrot.slane %v5650_v17, 1  ;;  %v5648_v38 = vsel %vm5397_vm4, %v5638_v20, %v5647_v25  ;;  %v5661_v39 = vrot.slane %v5659_v26, 1  ;;  %v17575_v26 = vld [vmem:[%s18111_s27 + $0x120] sm:$0xff]  }
  0x6f   : > { %15186 = vmatmul.mubr.msk.bf16.gmra.mrb[40].mxu1 %vm1265_vm3, %v891_v24  ;;  %v944_v24 = vshll.u32 %v17564_v9, 16  ;;  %v5656_v42 = vor.u32 %v5655_v32, %v5652_v31  ;;  %v5697_v32 = vrot.slane %v5695_v18, 1  ;;  %v17725_v18 = vld [vmem:[%s18111_s27 + $0x20] sm:$0xff]  }
  0x70   : > { %15189 = vmatprep.mubr.msk.bf16.mxu1 %vm1265_vm3, %v899_v28  ;;  %v17566_v28 = vld [vmem:[%s18111_s27 + $0xf0] sm:$0xff]  }
  0x71   : > { %v946_v36 = vrot.slane %v944_v24, 1  ;;  %v952_v43 = vshll.u32 %v17566_v28, 16  ;;  %v956_v47 = vshrl.u32 %v17566_v28, 16  ;;  %v5657_v55 = vsel %vm5397_vm4, %v5647_v25, %v5656_v42 }
  0x72   : > { %15738 = vmatmul.mubr.msk.bf16.gmra.mrb[40].mxu0 %vm1265_vm3, %v5603_v40  ;;  %v5664_v40 = vrot.slane %v5662_v27, 2 }
  0x73   : > { %15741 = vmatprep.mubr.msk.bf16.mxu0 %vm1265_vm3, %v5612_v44  ;;  %v948_v44 = vshrl.u32 %v17564_v9, 16  ;;  %v947_v48 = vsel %vm711_vm2, %v942_v35, %v946_v36  ;;  %v954_v53 = vrot.slane %v952_v43, 1  ;;  %v5686_v9 = vshrl.u32 %v17571_v58, 16 }
  0x74   : > { %v5665_v51 = vor.u32 %v5664_v40, %v5661_v39  ;;  %v5707_v39 = vshll.u32 %v17575_v26, 16 }
  0x75   : > { %v950_v56 = vor.u32 %v948_v44, %v946_v36  ;;  %v958_v60 = vor.u32 %v956_v47, %v954_v53  ;;  %v5688_v24 = vrot.slane %v5686_v9, 1  ;;  %v980_v36 = vshrl.u32 %v17572_v63, 16  ;;  %v6943_v44 = vld [vmem:[%s18111_s27 + $0x10] sm:$0xc] }
  0x76   : > { %v5666_v0 = vsel %vm5397_vm4, %v5656_v42, %v5665_v51  ;;  %v5675_v27 = vsel %vm5397_vm4, %v5665_v51, %v5674_v8  ;;  %v5709_v49 = vrot.slane %v5707_v39, 2 }
  0x77   : > { %15190 = vmatmul.mubr.msk.bf16.gmra.mrb[44].mxu1 %vm1265_vm3, %v907_v50  ;;  %v5677_v50 = vshrl.u32 %v17569_v37, 16  ;;  %v955_v7 = vsel %vm711_vm2, %v950_v56, %v954_v53  ;;  %v963_v11 = vsel %vm711_vm2, %v958_v60, %v962_v61  ;;  %v5704_v37 = vshrl.u32 %v17575_v26, 16 }
  0x78   : > { %15193 = vmatprep.mubr.msk.bf16.mxu1 %vm1265_vm3, %v915_v54  ;;  %v17570_v54 = vld [vmem:[%s18111_s27 + $0x100] sm:$0xff]   ;;  %v982_v47 = vor.u32 %v980_v36, %v978_v29  ;;  %v1000_v56 = vshll.u32 %v17579_v45, 16 }
  0x79   : > { %v5679_v62 = vrot.slane %v5677_v50, 1  ;;  %v968_v5 = vshll.u32 %v17570_v54, 16  ;;  %v972_v15 = vshrl.u32 %v17570_v54, 16  ;;  %v17723_v54 = vld [vmem:[%s18111_s27 + $0x14] sm:$0xf] }
  0x7a   : > { %15742 = vmatmul.mubr.msk.bf16.gmra.mrb[44].mxu0 %vm1265_vm3, %v5621_v3  ;;  %v964_v3 = vshrl.u32 %v17568_v33, 16 }
  0x7b   : > { %15745 = vmatprep.mubr.msk.bf16.mxu0 %vm1265_vm3, %v5630_v10  ;;  %v5689_v10 = vshll.u32 %v17571_v58, 16  ;;  %v5683_v17 = vor.u32 %v5682_v1, %v5679_v62  ;;  %v970_v20 = vrot.slane %v968_v5, 1  ;;  %v996_v58 = vshrl.u32 %v17576_v30, 16 }
  0x7c   : > { %v966_v22 = vor.u32 %v964_v3, %v962_v61  ;;  %v1004_v61 = vshrl.u32 %v17579_v45, 16  ;;  %v1008_v62 = vshll.u32 %v17580_v52, 16  ;;  %v17581_v3 = vld [vmem:[%s18111_s27 + $0x130] sm:$0xff]   ;;  %v17586_v45 = vld [vmem:[%s18111_s27 + $0x158] sm:$0xff]  }
  0x7d   : > { %v5691_v25 = vrot.slane %v5689_v10, 2  ;;  %v974_v28 = vor.u32 %v972_v15, %v970_v20  ;;  %v5684_v31 = vsel %vm5397_vm4, %v5674_v8, %v5683_v17  ;;  %v17582_v8 = vld [vmem:[%s18111_s27 + $0x138] sm:$0xff]   ;;  %v1016_v15 = vshll.u32 %v17581_v3, 16 }
  0x7e   : > { %v1010_v10 = vrot.slane %v1008_v62, 1 }
  0x7f   : > { %15194 = vmatmul.mubr.msk.bf16.gmra.mrb[48].mxu1 %vm1265_vm3, %v923_v19  ;;  %v5698_v19 = vshll.u32 %v17573_v2, 16  ;;  %v5692_v35 = vor.u32 %v5691_v25, %v5688_v24  ;;  %v1002_v2 = vrot.slane %v1000_v56, 1  ;;  %v17726_v24 = vld [vmem:[%s18111_s27 + $0x28] sm:$0xff]   ;;  %v1018_v26 = vrot.slane %v1016_v15, 1 }
  0x80   : > { %15197 = vmatprep.mubr.msk.bf16.mxu1 %vm1265_vm3, %v931_v21  ;;  %v17574_v21 = vld [vmem:[%s18111_s27 + $0x110] sm:$0xff]   ;;  %v6956_v25 = vrot.slane %v17726_v24, 2 }
  0x81   : > { %v5700_v12 = vrot.slane %v5698_v19, 2  ;;  %v984_v33 = vshll.u32 %v17574_v21, 16  ;;  %v988_v40 = vshrl.u32 %v17574_v21, 16  ;;  %v5693_v46 = vsel %vm5397_vm4, %v5683_v17, %v5692_v35 }
  0x82   : > { %15746 = vmatmul.mubr.msk.bf16.gmra.mrb[48].mxu0 %vm1265_vm3, %v5639_v34  ;;  %v971_v34 = vsel %vm711_vm2, %v966_v22, %v970_v20  ;;  %v1006_v9 = vor.u32 %v1004_v61, %v1002_v2  ;;  %v1012_v17 = vshrl.u32 %v17580_v52, 16  ;;  %v6954_v19 = vrot.slane %v17725_v18, 2  ;;  %v17588_v61 = vld [vmem:[%s18111_s27 + $0x168] sm:$0xff]  }
  0x83   : > { %15749 = vmatprep.mubr.msk.bf16.mxu0 %vm1265_vm3, %v5648_v38  ;;  %v979_v38 = vsel %vm711_vm2, %v974_v28, %v978_v29  ;;  %v5701_v42 = vor.u32 %v5700_v12, %v5697_v32  ;;  %v986_v43 = vrot.slane %v984_v33, 1  ;;  %v1020_v21 = vshrl.u32 %v17581_v3, 16  ;;  %v17584_v32 = vld [vmem:[%s18111_s27 + $0x148] sm:$0xff]  }
  0x84   : > { %v1011_v20 = vsel %vm711_vm2, %v1006_v9, %v1010_v10  ;;  %v1024_v22 = vshll.u32 %v17582_v8, 16  ;;  %v1014_v28 = vor.u32 %v1012_v17, %v1010_v10  ;;  %v6957_v12 = vsel %vm1470_vm0, %v6954_v19, %v6956_v25  ;;  %v17590_v17 = vld [vmem:[%s18111_s27 + $0x178] sm:$0xff]  }
  0x85   : > { %v990_v50 = vor.u32 %v988_v40, %v986_v43  ;;  %v5702_v53 = vsel %vm5397_vm4, %v5692_v35, %v5701_v42  ;;  %v987_v57 = vsel %vm711_vm2, %v982_v47, %v986_v43  ;;  %v17727_v35 = vld [vmem:[%s18111_s27 + $0x30] sm:$0xff]   ;;  %v1040_v40 = vshll.u32 %v17584_v32, 16 }
  0x86   : > { %v6958_v36 = vrot.slane %v17727_v35, 2  ;;  %v1044_v56 = vshrl.u32 %v17584_v32, 16  ;;  %v17592_v35 = vld [vmem:[%s18111_s27 + $0x188] sm:$0xff]  }
  0x87   : > { %15198 = vmatmul.mubr.msk.bf16.gmra.mrb[52].mxu1 %vm1265_vm3, %v939_v41  ;;  %v992_v41 = vshll.u32 %v17576_v30, 16  ;;  %v1022_v30 = vor.u32 %v1020_v21, %v1018_v26 }
  0x88   : > { %15201 = vmatprep.mubr.msk.bf16.mxu1 %vm1265_vm3, %v947_v48  ;;  %v5706_v48 = vrot.slane %v5704_v37, 1  ;;  %v1028_v37 = vshrl.u32 %v17582_v8, 16 }
  0x89   : > { %v994_v51 = vrot.slane %v992_v41, 1  ;;  %v17728_v41 = vld [vmem:[%s18111_s27 + $0x38] sm:$0xff]  }
  0x8a   : > { %15750 = vmatmul.mubr.msk.bf16.gmra.mrb[52].mxu0 %vm1265_vm3, %v5657_v55  ;;  %v13892_v55 = vcombine.low %v6943_v44, %v17723_v54  ;;  %v18343_v59 = vor.u32 %v5709_v49, %v5706_v48  ;;  %v17585_v44 = vld [vmem:[%s18111_s27 + $0x150] sm:$0xff]   ;;  %v1042_v48 = vrot.slane %v1040_v40, 1  ;;  %v1056_v54 = vshll.u32 %v17586_v45, 16  ;;  %v17734_v40 = vld [vmem:[%s18111_s27 + $0x68] sm:$0xff]  }
  0x8b   : > { %15753 = vmatprep.mubr.msk.bf16.mxu0 %vm1265_vm3, %v5666_v0  ;;  %v995_v60 = vsel %vm711_vm2, %v990_v50, %v994_v51  ;;  %v17724_v0 = vld [vmem:[%s18111_s27 + $0x18] sm:$0xff]   ;;  %v998_v5 = vor.u32 %v996_v58, %v994_v51  ;;  %v17612_v49 = vld [vmem:[%s21215_s1 + $0x10] sm:$0x7f]   ;;  %v17729_v51 = vld [vmem:[%s18111_s27 + $0x40] sm:$0xff]  }
  0x8c   : > { %21274 = vst [vmem:[#allocation3_spill] sm:$0xff] %v18343_v59  ;;  %v6951_v63 = vrot.slane %v13892_v55, 2  ;;  %v6952_v1 = vrot.slane %v17724_v0, 2  ;;  %v6962_v52 = vrot.slane %v17729_v51, 2  ;;  %v18390_v62 = vand.u32 %v17612_v49, %v18090_v4  ;;  %v17593_v51 = vld [vmem:[%s18111_s27 + $0x190] sm:$0xff]  }
  0x8d   : > { %v1003_v16 = vsel %vm711_vm2, %v998_v5, %v1002_v2  ;;  %v1058_v5 = vrot.slane %v1056_v54, 1  ;;  %v1104_v49 = vshll.u32 %v17592_v35, 16  ;;  %v1092_v54 = vshrl.u32 %v17590_v17, 16 }
  0x8e   : > { %v6955_v29 = vsel %vm1470_vm0, %v6952_v1, %v6954_v19  ;;  %15419 = vmatprep.subr.bf16.mxu1 %v18390_v62  ;;  %v1060_v19 = vshrl.u32 %v17586_v45, 16 }
  0x8f   : > { %15202 = vmatmul.mubr.msk.bf16.gmra.mrb[56].mxu1 %vm1265_vm3, %v955_v7  ;;  %v5711_v7 = vsel %vm5397_vm4, %v5701_v42, %v18343_v59  ;;  %v6960_v42 = vrot.slane %v17728_v41, 2  ;;  %v6972_v41 = vrot.slane %v17734_v40, 2  ;;  %v18929_v59 = vld [vmem:[%s18111_s27 + $0x128] sm:$0xff]  }
  0x90   : > { %15205 = vmatprep.mubr.msk.bf16.mxu1 %vm1265_vm3, %v963_v11  ;;  %v6953_v11 = vsel %vm1470_vm0, %v6951_v63, %v6952_v1  ;;  %v17730_v63 = vld [vmem:[%s18111_s27 + $0x48] sm:$0xff]   ;;  %v17731_v1 = vld [vmem:[%s18111_s27 + $0x50] sm:$0xff]   ;;  %21278 = vst [vmem:[#allocation7_spill] sm:$0xff] %v18929_v59 }
  0x91   : > { %v6961_v50 = vsel %vm1470_vm0, %v6958_v36, %v6960_v42  ;;  %v6964_v0 = vrot.slane %v17730_v63, 2  ;;  %v6966_v2 = vrot.slane %v17731_v1, 2  ;;  %v6963_v9 = vsel %vm1470_vm0, %v6960_v42, %v6962_v52  ;;  %v17735_v42 = vld [vmem:[%s18111_s27 + $0x70] sm:$0xff]  }
  0x92   : > { %15754 = vmatmul.mubr.msk.bf16.gmra.mrb[56].mxu0 %vm1265_vm3, %v5675_v27  ;;  %v17583_v27 = vld [vmem:[%s18111_s27 + $0x140] sm:$0xff]  }
  0x93   : > { %15757 = vmatprep.mubr.msk.bf16.mxu0 %vm1265_vm3, %v5684_v31  ;;  %v1026_v31 = vrot.slane %v1024_v22, 1  ;;  %v1032_v33 = vshll.u32 %v17583_v27, 16  ;;  %v1036_v39 = vshrl.u32 %v17583_v27, 16  ;;  %v6965_v15 = vsel %vm1470_vm0, %v6962_v52, %v6964_v0  ;;  %v17732_v22 = vld [vmem:[%s18111_s27 + $0x58] sm:$0xff]  }
  0x94   : > { %v6968_v24 = vrot.slane %v17732_v22, 2  ;;  %v17594_v52 = vld [vmem:[%s18111_s27 + $0x198] sm:$0xff]  }
  0x95   : > { %v1034_v43 = vrot.slane %v1032_v33, 1 }
  0x96   : > { %v6969_v33 = vsel %vm1470_vm0, %v6966_v2, %v6968_v24 }
  0x97   : > { %15206 = vmatmul.mubr.msk.bf16.gmra.mrb[60].mxu1 %vm1265_vm3, %v971_v34  ;;  %v1019_v34 = vsel %vm711_vm2, %v1014_v28, %v1018_v26  ;;  %v1038_v47 = vor.u32 %v1036_v39, %v1034_v43 }
  0x98   : > { %15209 = vmatprep.mubr.msk.bf16.mxu1 %vm1265_vm3, %v979_v38  ;;  %v1027_v38 = vsel %vm711_vm2, %v1022_v30, %v1026_v31  ;;  %v6967_v30 = vsel %vm1470_vm0, %v6964_v0, %v6966_v2  ;;  %v1106_v0 = vrot.slane %v1104_v49, 1 }
  0x99   : > { %v1043_v58 = vsel %vm711_vm2, %v1038_v47, %v1042_v48 }
  0x9a   : > { %15758 = vmatmul.mubr.msk.bf16.gmra.mrb[60].mxu0 %vm1265_vm3, %v5693_v46  ;;  %v1030_v46 = vor.u32 %v1028_v37, %v1026_v31  ;;  %v1076_v37 = vshrl.u32 %v17588_v61, 16 }
  0x9b   : > { %15761 = vmatprep.mubr.msk.bf16.mxu0 %vm1265_vm3, %v5702_v53  ;;  %v1048_v53 = vshll.u32 %v17585_v44, 16 }
  0x9c   : > { %v1035_v55 = vsel %vm711_vm2, %v1030_v46, %v1034_v43  ;;  %v6974_v43 = vrot.slane %v17735_v42, 2 }
  0x9d   : > { %v1050_v3 = vrot.slane %v1048_v53, 1 }
  0x9e   : > { %v6975_v2 = vsel %vm1470_vm0, %v6972_v41, %v6974_v43 }
  0x9f   : > { %15210 = vmatmul.mubr.msk.bf16.gmra.mrb[64].mxu1 %vm1265_vm3, %v987_v57  ;;  %v17587_v57 = vld [vmem:[%s18111_s27 + $0x160] sm:$0xff]  }
  0xa0   : > { %15213 = vmatprep.mubr.msk.bf16.mxu1 %vm1265_vm3, %v995_v60  ;;  %v1052_v60 = vshrl.u32 %v17585_v44, 16  ;;  %v1064_v8 = vshll.u32 %v17587_v57, 16 }
  0xa2   : > { %15762 = vmatmul.mubr.msk.bf16.gmra.mrb[64].mxu0 %vm1265_vm3, %v5711_v7  ;;  %v1046_v7 = vor.u32 %v1044_v56, %v1042_v48  ;;  %v1054_v10 = vor.u32 %v1052_v60, %v1050_v3  ;;  %v1066_v27 = vrot.slane %v1064_v8, 1  ;;  %v17737_v60 = vld [vmem:[%s18111_s27 + $0x80] sm:$0xff]   ;;  %v17596_v8 = vld [vmem:[%s18111_s27 + $0x1a8] sm:$0xff]  }
  0xa3   : > { %15835 = vmatprep.mubr.msk.bf16.mxu0 %vm1265_vm3, %v6953_v11  ;;  %v1072_v11 = vshll.u32 %v17588_v61, 16  ;;  %v6978_v61 = vrot.slane %v17737_v60, 2 }
  0xa4   : > { %v1051_v18 = vsel %vm711_vm2, %v1046_v7, %v1050_v3  ;;  %v1059_v21 = vsel %vm711_vm2, %v1054_v10, %v1058_v5  ;;  %v1120_v7 = vshll.u32 %v17594_v52, 16  ;;  %v17595_v10 = vld [vmem:[%s18111_s27 + $0x1a0] sm:$0xff]  }
  0xa5   : > { %v1074_v28 = vrot.slane %v1072_v11, 1 }
  0xa7   : > { %15214 = vmatmul.mubr.msk.bf16.gmra.mrb[68].mxu1 %vm1265_vm3, %v1003_v16  ;;  %v17589_v16 = vld [vmem:[%s18111_s27 + $0x170] sm:$0xff]   ;;  %v1078_v46 = vor.u32 %v1076_v37, %v1074_v28 }
  0xa8   : > { %15217 = vmatprep.mubr.msk.bf16.mxu1 %vm1265_vm3, %v1011_v20  ;;  %v1068_v20 = vshrl.u32 %v17587_v57, 16  ;;  %v1080_v32 = vshll.u32 %v17589_v16, 16  ;;  %v17736_v57 = vld [vmem:[%s18111_s27 + $0x78] sm:$0xff]  }
  0xaa   : > { %15836 = vmatmul.mubr.msk.bf16.vlgmr.msra.gmra.mrb[0].mxu0 %vm1265_vm3, %v6955_v29  ;;  %v1062_v29 = vor.u32 %v1060_v19, %v1058_v5  ;;  %v1070_v31 = vor.u32 %v1068_v20, %v1066_v27  ;;  %v1082_v44 = vrot.slane %v1080_v32, 1  ;;  %v1112_v5 = vshll.u32 %v17593_v51, 16  ;;  %v17739_v20 = vld [vmem:[%s18111_s27 + $0x90] sm:$0xff]   ;;  %v17598_v32 = vld [vmem:[%s18111_s27 + $0x1b8] sm:$0xff]  }
  0xab   : > { %15972 = vmatpush3.bf16.msra.mxu0 %v18290_v14  ;;  %15839 = vmatprep.mubr.msk.bf16.mxu0 %vm1265_vm3, %v6957_v12  ;;  %v6959_v14 = vsel %vm1470_vm0, %v6956_v25, %v6958_v36  ;;  %v17733_v25 = vld [vmem:[%s18111_s27 + $0x60] sm:$0xff]   ;;  %v1088_v12 = vshll.u32 %v17590_v17, 16 }
  0xac   : > { %v6970_v26 = vrot.slane %v17733_v25, 2  ;;  %v1067_v36 = vsel %vm711_vm2, %v1062_v29, %v1066_v27  ;;  %v1075_v39 = vsel %vm711_vm2, %v1070_v31, %v1074_v28  ;;  %v1083_v53 = vsel %vm711_vm2, %v1078_v46, %v1082_v44  ;;  %v17597_v31 = vld [vmem:[%s18111_s27 + $0x1b0] sm:$0xff]  }
  0xad   : > { %v1090_v45 = vrot.slane %v1088_v12, 1  ;;  %v1114_v22 = vrot.slane %v1112_v5, 1  ;;  %v1128_v28 = vshll.u32 %v17595_v10, 16  ;;  %v1136_v29 = vshll.u32 %v17596_v8, 16  ;;  %v18475_v5 = vld [vmem:[%s18111_s27 + $0x1d8] sm:$0xff]  }
  0xae   : > { %v1152_v46 = vshll.u32 %v17598_v32, 16 }
  0xaf   : > { %15218 = vmatmul.mubr.msk.bf16.gmra.mrb[72].mxu1 %vm1265_vm3, %v1019_v34  ;;  %v17591_v34 = vld [vmem:[%s18111_s27 + $0x180] sm:$0xff]   ;;  %v1094_v1 = vor.u32 %v1092_v54, %v1090_v45  ;;  %v1130_v40 = vrot.slane %v1128_v28, 1 }
  0xb0   : > { %15221 = vmatprep.mubr.msk.bf16.mxu1 %vm1265_vm3, %v1027_v38  ;;  %v1084_v38 = vshrl.u32 %v17589_v16, 16  ;;  %v1096_v48 = vshll.u32 %v17591_v34, 16  ;;  %v1116_v16 = vshrl.u32 %v17593_v51, 16  ;;  %v1148_v51 = vshrl.u32 %v17597_v31, 16 }
  0xb2   : > { %15840 = vmatmul.mubr.msk.bf16.gmra.mrb[4].mxu0 %vm1265_vm3, %v6959_v14  ;;  %v6971_v14 = vsel %vm1470_vm0, %v6968_v24, %v6970_v26  ;;  %v1086_v47 = vor.u32 %v1084_v38, %v1082_v44  ;;  %v1098_v63 = vrot.slane %v1096_v48, 1  ;;  %v1122_v24 = vrot.slane %v1120_v7, 1  ;;  %v17741_v38 = vld [vmem:[%s18111_s27 + $0xa0] sm:$0xff]   ;;  %v17600_v48 = vld [vmem:[%s18111_s27 + $0x1c8] sm:$0xff]  }
  0xb3   : > { %15843 = vmatprep.mubr.msk.bf16.mxu0 %vm1265_vm3, %v6961_v50  ;;  %v6973_v50 = vsel %vm1470_vm0, %v6970_v26, %v6972_v41  ;;  %v1118_v27 = vor.u32 %v1116_v16, %v1114_v22  ;;  %v1138_v41 = vrot.slane %v1136_v29, 1  ;;  %v17745_v16 = vld [vmem:[%s18111_s27 + $0xc0] sm:$0xff]   ;;  %v1172_v29 = vshrl.u32 %v17600_v48, 16 }
  0xb4   : > { %v1091_v56 = vsel %vm711_vm2, %v1086_v47, %v1090_v45  ;;  %v1099_v11 = vsel %vm711_vm2, %v1094_v1, %v1098_v63  ;;  %v1144_v45 = vshll.u32 %v17597_v31, 16  ;;  %v17599_v47 = vld [vmem:[%s18111_s27 + $0x1c0] sm:$0xff]   ;;  %v1168_v1 = vshll.u32 %v17600_v48, 16 }
  0xb7   : > { %15222 = vmatmul.mubr.msk.bf16.gmra.mrb[76].mxu1 %vm1265_vm3, %v1035_v55  ;;  %v1100_v55 = vshrl.u32 %v17591_v34, 16  ;;  %v1132_v34 = vshrl.u32 %v17595_v10, 16  ;;  %v1164_v10 = vshrl.u32 %v17599_v47, 16 }
  0xb8   : > { %15225 = vmatprep.mubr.msk.bf16.mxu1 %vm1265_vm3, %v1043_v58  ;;  %v6976_v58 = vrot.slane %v17736_v57, 2  ;;  %v1146_v57 = vrot.slane %v1144_v45, 1 }
  0xb9   : > { %v1102_v3 = vor.u32 %v1100_v55, %v1098_v63  ;;  %v1134_v44 = vor.u32 %v1132_v34, %v1130_v40  ;;  %v17743_v55 = vld [vmem:[%s18111_s27 + $0xb0] sm:$0xff]  }
  0xba   : > { %15844 = vmatmul.mubr.msk.bf16.gmra.mrb[8].mxu0 %vm1265_vm3, %v6963_v9  ;;  %v6977_v9 = vsel %vm1470_vm0, %v6974_v43, %v6976_v58  ;;  %v6979_v26 = vsel %vm1470_vm0, %v6976_v58, %v6978_v61  ;;  %v1154_v58 = vrot.slane %v1152_v46, 1  ;;  %v1150_v63 = vor.u32 %v1148_v51, %v1146_v57 }
  0xbb   : > { %15847 = vmatprep.mubr.msk.bf16.mxu0 %vm1265_vm3, %v6965_v15  ;;  %v1108_v15 = vshrl.u32 %v17592_v35, 16  ;;  %v1107_v17 = vsel %vm711_vm2, %v1102_v3, %v1106_v0  ;;  %v1123_v35 = vsel %vm711_vm2, %v1118_v27, %v1122_v24  ;;  %v18472_v3 = vld [vmem:[%s18111_s27 + $0x1d0] sm:$0xff]   ;;  %v18490_v27 = vld [vmem:[%s18111_s27 + $0x1e0] sm:$0xff]  }
  0xbc   : > { %v1196_v45 = vshrl.u32 %v18490_v27, 16 }
  0xbd   : > { %v1110_v25 = vor.u32 %v1108_v15, %v1106_v0  ;;  %v1160_v0 = vshll.u32 %v17599_v47, 16  ;;  %v17748_v47 = vld [vmem:[%s18111_s27 + $0xd8] sm:$0xff]  }
  0xbe   : > { %v7000_v48 = vrot.slane %v17748_v47, 2  ;;  %v17754_v47 = vld [vmem:[%s18111_s27 + $0x108] sm:$0xff]  }
  0xbf   : > { %15226 = vmatmul.mubr.msk.bf16.gmra.mrb[80].mxu1 %vm1265_vm3, %v1051_v18  ;;  %v17738_v18 = vld [vmem:[%s18111_s27 + $0x88] sm:$0xff]   ;;  %v1115_v12 = vsel %vm711_vm2, %v1110_v25, %v1114_v22  ;;  %v1184_v25 = vshll.u32 %v18475_v5, 16 }
  0xc0   : > { %15229 = vmatprep.mubr.msk.bf16.mxu1 %vm1265_vm3, %v1059_v21  ;;  %v6980_v19 = vrot.slane %v17738_v18, 2  ;;  %v6982_v21 = vrot.slane %v17739_v20, 2  ;;  %v1162_v18 = vrot.slane %v1160_v0, 1 }
  0xc2   : > { %15848 = vmatmul.mubr.msk.bf16.gmra.mrb[12].mxu0 %vm1265_vm3, %v6967_v30  ;;  %v6981_v30 = vsel %vm1470_vm0, %v6978_v61, %v6980_v19  ;;  %v6983_v43 = vsel %vm1470_vm0, %v6980_v19, %v6982_v21  ;;  %v1170_v19 = vrot.slane %v1168_v1, 1  ;;  %v1166_v22 = vor.u32 %v1164_v10, %v1162_v18 }
  0xc3   : > { %15851 = vmatprep.mubr.msk.bf16.mxu0 %vm1265_vm3, %v6969_v33  ;;  %v1124_v33 = vshrl.u32 %v17594_v52, 16  ;;  %v1139_v52 = vsel %vm711_vm2, %v1134_v44, %v1138_v41 }
  0xc4   : > { %v1171_v31 = vsel %vm711_vm2, %v1166_v22, %v1170_v19 }
  0xc5   : > { %v1126_v42 = vor.u32 %v1124_v33, %v1122_v24  ;;  %v1176_v24 = vshll.u32 %v18472_v3, 16  ;;  %v17747_v33 = vld [vmem:[%s18111_s27 + $0xd0] sm:$0xff]  }
  0xc6   : > { %v6998_v34 = vrot.slane %v17747_v33, 2 }
  0xc7   : > { %15230 = vmatmul.mubr.msk.bf16.gmra.mrb[84].mxu1 %vm1265_vm3, %v1067_v36  ;;  %v17740_v36 = vld [vmem:[%s18111_s27 + $0x98] sm:$0xff]   ;;  %v1131_v49 = vsel %vm711_vm2, %v1126_v42, %v1130_v40  ;;  %v1192_v42 = vshll.u32 %v18490_v27, 16 }
  0xc8   : > { %15233 = vmatprep.mubr.msk.bf16.mxu1 %vm1265_vm3, %v1075_v39  ;;  %v6984_v37 = vrot.slane %v17740_v36, 2  ;;  %v6986_v39 = vrot.slane %v17741_v38, 2  ;;  %v1178_v36 = vrot.slane %v1176_v24, 1  ;;  %v1174_v38 = vor.u32 %v1172_v29, %v1170_v19  ;;  %v17751_v24 = vld [vmem:[%s18111_s27 + $0xf0] sm:$0xff]  }
  0xca   : > { %15852 = vmatmul.mubr.msk.bf16.gmra.mrb[16].mxu0 %vm1265_vm3, %v6971_v14  ;;  %v6985_v14 = vsel %vm1470_vm0, %v6982_v21, %v6984_v37  ;;  %v6987_v61 = vsel %vm1470_vm0, %v6984_v37, %v6986_v39  ;;  %v1186_v37 = vrot.slane %v1184_v25, 1  ;;  %v1179_v44 = vsel %vm711_vm2, %v1174_v38, %v1178_v36  ;;  %v18562_v38 = vld [vmem:[%s18111_s27 + $0x218] sm:$0xff]  }
  0xcb   : > { %15855 = vmatprep.mubr.msk.bf16.mxu0 %vm1265_vm3, %v6973_v50  ;;  %v1140_v50 = vshrl.u32 %v17596_v8, 16  ;;  %v1155_v8 = vsel %vm711_vm2, %v1150_v63, %v1154_v58  ;;  %v7006_v25 = vrot.slane %v17751_v24, 2  ;;  %v17614_v24 = vld [vmem:[%s18111_s27 + $0x130] sm:$0xff]  }
  0xcd   : > { %v1142_v60 = vor.u32 %v1140_v50, %v1138_v41  ;;  %v1188_v41 = vshrl.u32 %v18475_v5, 16  ;;  %v18517_v50 = vld [vmem:[%s18111_s27 + $0x1f0] sm:$0xff]  }
  0xce   : > { %v1212_v1 = vshrl.u32 %v18517_v50, 16 }
  0xcf   : > { %15234 = vmatmul.mubr.msk.bf16.gmra.mrb[88].mxu1 %vm1265_vm3, %v1083_v53  ;;  %v17742_v53 = vld [vmem:[%s18111_s27 + $0xa8] sm:$0xff]   ;;  %v1147_v7 = vsel %vm711_vm2, %v1142_v60, %v1146_v57  ;;  %v1190_v51 = vor.u32 %v1188_v41, %v1186_v37  ;;  %v1208_v57 = vshll.u32 %v18517_v50, 16 }
  0xd0   : > { %15237 = vmatprep.mubr.msk.bf16.mxu1 %vm1265_vm3, %v1091_v56  ;;  %v6988_v54 = vrot.slane %v17742_v53, 2  ;;  %v6990_v56 = vrot.slane %v17743_v55, 2  ;;  %v18522_v55 = vld [vmem:[%s18111_s27 + $0x1f8] sm:$0xff]  }
  0xd1   : > { %v1210_v10 = vrot.slane %v1208_v57, 1  ;;  %v1220_v22 = vshrl.u32 %v18522_v55, 16 }
  0xd2   : > { %15856 = vmatmul.mubr.msk.bf16.gmra.mrb[20].mxu0 %vm1265_vm3, %v6975_v2  ;;  %v6989_v2 = vsel %vm1470_vm0, %v6986_v39, %v6988_v54  ;;  %v6991_v21 = vsel %vm1470_vm0, %v6988_v54, %v6990_v56 }
  0xd3   : > { %15859 = vmatprep.mubr.msk.bf16.mxu0 %vm1265_vm3, %v6977_v9  ;;  %v1156_v9 = vshrl.u32 %v17598_v32, 16  ;;  %v17746_v32 = vld [vmem:[%s18111_s27 + $0xc8] sm:$0xff]  }
  0xd5   : > { %v1158_v20 = vor.u32 %v1156_v9, %v1154_v58 }
  0xd7   : > { %15238 = vmatmul.mubr.msk.bf16.gmra.mrb[92].mxu1 %vm1265_vm3, %v1099_v11  ;;  %v17744_v11 = vld [vmem:[%s18111_s27 + $0xb8] sm:$0xff]   ;;  %v1163_v28 = vsel %vm711_vm2, %v1158_v20, %v1162_v18  ;;  %v18542_v18 = vld [vmem:[%s18111_s27 + $0x208] sm:$0xff]  }
  0xd8   : > { %15241 = vmatprep.mubr.msk.bf16.mxu1 %vm1265_vm3, %v1107_v17  ;;  %v6992_v15 = vrot.slane %v17744_v11, 2  ;;  %v6994_v17 = vrot.slane %v17745_v16, 2  ;;  %v1214_v16 = vor.u32 %v1212_v1, %v1210_v10  ;;  %v1232_v29 = vshll.u32 %v18542_v18, 16 }
  0xda   : > { %15860 = vmatmul.mubr.msk.bf16.gmra.mrb[24].mxu0 %vm1265_vm3, %v6979_v26  ;;  %v6993_v26 = vsel %vm1470_vm0, %v6990_v56, %v6992_v15  ;;  %v6995_v39 = vsel %vm1470_vm0, %v6992_v15, %v6994_v17  ;;  %v7001_v56 = vsel %vm1470_vm0, %v6998_v34, %v7000_v48 }
  0xdb   : > { %15863 = vmatprep.mubr.msk.bf16.mxu0 %vm1265_vm3, %v6981_v30  ;;  %v1180_v30 = vshrl.u32 %v18472_v3, 16 }
  0xdd   : > { %v1182_v40 = vor.u32 %v1180_v30, %v1178_v36  ;;  %v17752_v30 = vld [vmem:[%s18111_s27 + $0xf8] sm:$0xff]  }
  0xdf   : > { %15242 = vmatmul.mubr.msk.bf16.gmra.mrb[96].mxu1 %vm1265_vm3, %v1115_v12  ;;  %v6996_v12 = vrot.slane %v17746_v32, 2 }
  0xe0   : > { %15245 = vmatprep.mubr.msk.bf16.mxu1 %vm1265_vm3, %v1123_v35  ;;  %v18500_v35 = vld [vmem:[%s18111_s27 + $0x1e8] sm:$0xff]  }
  0xe1   : > { %v1200_v46 = vshll.u32 %v18500_v35, 16  ;;  %v1204_v60 = vshrl.u32 %v18500_v35, 16 }
  0xe2   : > { %15864 = vmatmul.mubr.msk.bf16.gmra.mrb[28].mxu0 %vm1265_vm3, %v6983_v43  ;;  %v6997_v43 = vsel %vm1470_vm0, %v6994_v17, %v6996_v12 }
  0xe3   : > { %15867 = vmatprep.mubr.msk.bf16.mxu0 %vm1265_vm3, %v6985_v14  ;;  %v1187_v14 = vsel %vm711_vm2, %v1182_v40, %v1186_v37  ;;  %v1202_v54 = vrot.slane %v1200_v46, 1  ;;  %v1234_v37 = vrot.slane %v1232_v29, 1 }
  0xe5   : > { %v1206_v11 = vor.u32 %v1204_v60, %v1202_v54  ;;  %v1252_v60 = vshrl.u32 %v18562_v38, 16 }
  0xe7   : > { %15246 = vmatmul.mubr.msk.bf16.gmra.mrb[100].mxu1 %vm1265_vm3, %v1131_v49  ;;  %v1194_v49 = vrot.slane %v1192_v42, 1  ;;  %v1236_v42 = vshrl.u32 %v18542_v18, 16 }
  0xe8   : > { %15249 = vmatprep.mubr.msk.bf16.mxu1 %vm1265_vm3, %v1139_v52  ;;  %v6999_v52 = vsel %vm1470_vm0, %v6996_v12, %v6998_v34  ;;  %v18557_v12 = vld [vmem:[%s18111_s27 + $0x210] sm:$0xff]  }
  0xe9   : > { %v1198_v53 = vor.u32 %v1196_v45, %v1194_v49  ;;  %v1195_v58 = vsel %vm711_vm2, %v1190_v51, %v1194_v49  ;;  %v1240_v40 = vshll.u32 %v18557_v12, 16  ;;  %v1244_v46 = vshrl.u32 %v18557_v12, 16 }
  0xea   : > { %15868 = vmatmul.mubr.msk.bf16.gmra.mrb[32].mxu0 %vm1265_vm3, %v6987_v61  ;;  %v17749_v61 = vld [vmem:[%s18111_s27 + $0xe0] sm:$0xff]   ;;  %v1238_v51 = vor.u32 %v1236_v42, %v1234_v37 }
  0xeb   : > { %15871 = vmatprep.mubr.msk.bf16.mxu0 %vm1265_vm3, %v6989_v2  ;;  %v7002_v63 = vrot.slane %v17749_v61, 2  ;;  %v1203_v0 = vsel %vm711_vm2, %v1198_v53, %v1202_v54  ;;  %v1216_v2 = vshll.u32 %v18522_v55, 16  ;;  %v1242_v49 = vrot.slane %v1240_v40, 1 }
  0xed   : > { %v7003_v15 = vsel %vm1470_vm0, %v7000_v48, %v7002_v63  ;;  %v1218_v17 = vrot.slane %v1216_v2, 1  ;;  %v7012_v48 = vrot.slane %v17754_v47, 2  ;;  %v1246_v54 = vor.u32 %v1244_v46, %v1242_v49  ;;  %v17756_v2 = vld [vmem:[%s18111_s27 + $0x118] sm:$0xff]   ;;  %v18646_v47 = vld [vmem:[%s18111_s27 + $0x28] sm:$0xff]  }
  0xef   : > { %15250 = vmatmul.mubr.msk.bf16.gmra.mrb[104].mxu1 %vm1265_vm3, %v1147_v7  ;;  %v17750_v7 = vld [vmem:[%s18111_s27 + $0xe8] sm:$0xff]   ;;  %v1222_v33 = vor.u32 %v1220_v22, %v1218_v17 }
  0xf0   : > { %15253 = vmatprep.mubr.msk.bf16.mxu1 %vm1265_vm3, %v1155_v8  ;;  %v7004_v9 = vrot.slane %v17750_v7, 2  ;;  %v18537_v8 = vld [vmem:[%s18111_s27 + $0x200] sm:$0xff]   ;;  %v7016_v7 = vrot.slane %v17756_v2, 2 }
  0xf1   : > { %v1224_v20 = vshll.u32 %v18537_v8, 16 }
  0xf2   : > { %15872 = vmatmul.mubr.msk.bf16.gmra.mrb[36].mxu0 %vm1265_vm3, %v6991_v21  ;;  %v7005_v19 = vsel %vm1470_vm0, %v7002_v63, %v7004_v9  ;;  %v1211_v21 = vsel %vm711_vm2, %v1206_v11, %v1210_v10  ;;  %v7007_v34 = vsel %vm1470_vm0, %v7004_v9, %v7006_v25  ;;  %v17755_v63 = vld [vmem:[%s18111_s27 + $0x110] sm:$0xff]  }
  0xf3   : > { %15875 = vmatprep.mubr.msk.bf16.mxu0 %vm1265_vm3, %v6993_v26  ;;  %v1219_v26 = vsel %vm711_vm2, %v1214_v16, %v1218_v17  ;;  %v1226_v32 = vrot.slane %v1224_v20, 1  ;;  %v17613_v16 = vld [vmem:[%s18111_s27 + $0x128] sm:$0xff]  }
  0xf5   : > { %v1227_v41 = vsel %vm711_vm2, %v1222_v33, %v1226_v32 }
  0xf7   : > { %15254 = vmatmul.mubr.msk.bf16.gmra.mrb[108].mxu1 %vm1265_vm3, %v1163_v28  ;;  %v1228_v28 = vshrl.u32 %v18537_v8, 16 }
  0xf8   : > { %15257 = vmatprep.mubr.msk.bf16.mxu1 %vm1265_vm3, %v1171_v31  ;;  %v7008_v31 = vrot.slane %v17752_v30, 2  ;;  %v18606_v30 = vld [vmem:[%s18111_s27 + $0x8] sm:$0xff]  }
  0xf9   : > { %v1230_v36 = vor.u32 %v1228_v28, %v1226_v32  ;;  %v7022_v28 = vrot.slane %v17614_v24, 2  ;;  %v17616_v32 = vld [vmem:[%s18111_s27 + $0x140] sm:$0xff]   ;;  %v17626_v24 = vld [vmem:[%s18111_s27 + $0x190] sm:$0xff]  }
  0xfa   : > { %15876 = vmatmul.mubr.msk.bf16.gmra.mrb[40].mxu0 %vm1265_vm3, %v6995_v39  ;;  %v7009_v39 = vsel %vm1470_vm0, %v7006_v25, %v7008_v31 }
  0xfb   : > { %15879 = vmatprep.mubr.msk.bf16.mxu0 %vm1265_vm3, %v6997_v43  ;;  %v17753_v43 = vld [vmem:[%s18111_s27 + $0x100] sm:$0xff]   ;;  %v1235_v45 = vsel %vm711_vm2, %v1230_v36, %v1234_v37  ;;  %v7026_v36 = vrot.slane %v17616_v32, 2  ;;  %v18715_v32 = vld [vmem:[%s18111_s27 + $0x70] sm:$0xff]  }
  0xff   : > { %15258 = vmatmul.mubr.msk.bf16.gmra.mrb[112].mxu1 %vm1265_vm3, %v1179_v44  ;;  %v7010_v44 = vrot.slane %v17753_v43, 2  ;;  %v17618_v43 = vld [vmem:[%s18111_s27 + $0x150] sm:$0xff]  }
 0x100   : > { %15261 = vmatprep.mubr.msk.bf16.mxu1 %vm1265_vm3, %v1187_v14  ;;  %v1248_v14 = vshll.u32 %v18562_v38, 16  ;;  %v7030_v46 = vrot.slane %v17618_v43, 2  ;;  %v18726_v43 = vld [vmem:[%s18111_s27 + $0x78] sm:$0xff]  }
 0x101   : > { %v7011_v53 = vsel %vm1470_vm0, %v7008_v31, %v7010_v44  ;;  %v7013_v57 = vsel %vm1470_vm0, %v7010_v44, %v7012_v48 }
 0x102   : > { %15880 = vmatmul.mubr.msk.bf16.gmra.mrb[44].mxu0 %vm1265_vm3, %v6999_v52  ;;  %v17611_v52 = vld [vmem:[%s18111_s27 + $0x220] ss:$0 sps:$4 sm:$0x11]  }
 0x103   : > { %15883 = vmatprep.mubr.msk.bf16.mxu0 %vm1265_vm3, %v7001_v56  ;;  %v1250_v56 = vrot.slane %v1248_v14, 1  ;;  %v1256_v61 = vshll.u32 %v17611_v52, 16 }
 0x105   : > { %v1251_v1 = vsel %vm711_vm2, %v1246_v54, %v1250_v56  ;;  %v1254_v9 = vor.u32 %v1252_v60, %v1250_v56  ;;  %v1258_v10 = vrot.slane %v1256_v61, 1  ;;  %v17622_v61 = vld [vmem:[%s18111_s27 + $0x170] sm:$0xff]  }
 0x107   : > { %15262 = vmatmul.mubr.msk.bf16.gmra.mrb[116].mxu1 %vm1265_vm3, %v1195_v58  ;;  %v1243_v58 = vsel %vm711_vm2, %v1238_v51, %v1242_v49  ;;  %v1259_v17 = vsel %vm711_vm2, %v1254_v9, %v1258_v10  ;;  %v17620_v51 = vld [vmem:[%s18111_s27 + $0x160] sm:$0xff]   ;;  %v18683_v9 = vld [vmem:[%s18111_s27 + $0x50] sm:$0xff]  }
 0x108   : > { %15265 = vmatprep.mubr.msk.bf16.mxu1 %vm1265_vm3, %v1203_v0  ;;  %v7014_v0 = vrot.slane %v17755_v63, 2  ;;  %v7034_v54 = vrot.slane %v17620_v51, 2 }
 0x10a   : > { %15884 = vmatmul.mubr.msk.bf16.gmra.mrb[48].mxu0 %vm1265_vm3, %v7003_v15  ;;  %v7015_v11 = vsel %vm1470_vm0, %v7012_v48, %v7014_v0  ;;  %v7017_v15 = vsel %vm1470_vm0, %v7014_v0, %v7016_v7  ;;  %v18651_v48 = vld [vmem:[%s18111_s27 + $0x30] sm:$0xff]   ;;  %v17623_v0 = vld [vmem:[%s18111_s27 + $0x178] sm:$0xff]  }
 0x10b   : > { %15887 = vmatprep.mubr.msk.bf16.mxu0 %vm1265_vm3, %v7005_v19  ;;  %v17757_v19 = vld [vmem:[%s18111_s27 + $0x120] sm:$0xff]   ;;  %v7040_v2 = vrot.slane %v17623_v0, 2 }
 0x10c   : > { %v7018_v20 = vrot.slane %v17757_v19, 2 }
 0x10e   : > { %v7019_v22 = vsel %vm1470_vm0, %v7016_v7, %v7018_v20  ;;  %v18678_v7 = vld [vmem:[%s18111_s27 + $0x48] sm:$0xff]  }
 0x10f   : > { %15266 = vmatmul.mubr.msk.bf16.gmra.mrb[120].mxu1 %vm1265_vm3, %v1211_v21  ;;  %v7020_v21 = vrot.slane %v17613_v16, 2  ;;  %v17625_v16 = vld [vmem:[%s18111_s27 + $0x188] sm:$0xff]  }
 0x110   : > { %15269 = vmatprep.mubr.msk.bf16.mxu1 %vm1265_vm3, %v1219_v26  ;;  %v17615_v26 = vld [vmem:[%s18111_s27 + $0x138] sm:$0xff]   ;;  %v7044_v19 = vrot.slane %v17625_v16, 2 }
 0x111   : > { %v7021_v25 = vsel %vm1470_vm0, %v7018_v20, %v7020_v21  ;;  %v7024_v29 = vrot.slane %v17615_v26, 2  ;;  %v7023_v31 = vsel %vm1470_vm0, %v7020_v21, %v7022_v28  ;;  %v18694_v20 = vld [vmem:[%s18111_s27 + $0x58] sm:$0xff]   ;;  %v18699_v21 = vld [vmem:[%s18111_s27 + $0x60] sm:$0xff]  }
 0x112   : > { %15888 = vmatmul.mubr.msk.bf16.gmra.mrb[52].mxu0 %vm1265_vm3, %v7007_v34  ;;  %v17617_v34 = vld [vmem:[%s18111_s27 + $0x148] sm:$0xff]   ;;  %v17627_v26 = vld [vmem:[%s18111_s27 + $0x198] sm:$0xff]  }
 0x113   : > { %15891 = vmatprep.mubr.msk.bf16.mxu0 %vm1265_vm3, %v7009_v39  ;;  %v7025_v33 = vsel %vm1470_vm0, %v7022_v28, %v7024_v29  ;;  %v7028_v37 = vrot.slane %v17617_v34, 2  ;;  %v18626_v39 = vld [vmem:[%s18111_s27 + $0x18] sm:$0xff]   ;;  %v7027_v42 = vsel %vm1470_vm0, %v7024_v29, %v7026_v36  ;;  %v7046_v28 = vrot.slane %v17626_v24, 2  ;;  %v17628_v34 = vld [vmem:[%s18111_s27 + $0x1a0] sm:$0xff]   ;;  %v18774_v24 = vld [vmem:[%s18111_s27 + $0xa8] sm:$0xff]  }
 0x114   : > { %v7048_v29 = vrot.slane %v17627_v26, 2 }
 0x115   : > { %v7029_v44 = vsel %vm1470_vm0, %v7026_v36, %v7028_v37  ;;  %v7031_v49 = vsel %vm1470_vm0, %v7028_v37, %v7030_v46  ;;  %v7050_v37 = vrot.slane %v17628_v34, 2 }
 0x116   : > { %v7049_v36 = vsel %vm1470_vm0, %v7046_v28, %v7048_v29 }
 0x117   : > { %15270 = vmatmul.mubr.msk.bf16.gmra.mrb[124].mxu1 %vm1265_vm3, %v1227_v41  ;;  %v18634_v41 = vld [vmem:[%s18111_s27 + $0x20] sm:$0xff]  }
 0x118   : > { %15273 = vmatprep.mubr.msk.bf16.mxu1 %vm1265_vm3, %v1235_v45  ;;  %v17619_v45 = vld [vmem:[%s18111_s27 + $0x158] sm:$0xff]  }
 0x119   : > { %v7032_v14 = vrot.slane %v17619_v45, 2  ;;  %v7051_v45 = vsel %vm1470_vm0, %v7048_v29, %v7050_v37 }
 0x11a   : > { %15892 = vmatmul.mubr.msk.bf16.gmra.mrb[56].mxu0 %vm1265_vm3, %v7011_v53  ;;  %v17621_v53 = vld [vmem:[%s18111_s27 + $0x168] sm:$0xff]  }
 0x11b   : > { %15895 = vmatprep.mubr.msk.bf16.mxu0 %vm1265_vm3, %v7013_v57  ;;  %v7033_v52 = vsel %vm1470_vm0, %v7030_v46, %v7032_v14  ;;  %v7036_v56 = vrot.slane %v17621_v53, 2  ;;  %v18662_v57 = vld [vmem:[%s18111_s27 + $0x38] sm:$0xff]   ;;  %v7035_v60 = vsel %vm1470_vm0, %v7032_v14, %v7034_v54  ;;  %v17630_v46 = vld [vmem:[%s18111_s27 + $0x1b0] sm:$0xff]   ;;  %v18742_v53 = vld [vmem:[%s18111_s27 + $0x88] sm:$0xff]  }
 0x11c   : > { %v7054_v51 = vrot.slane %v17630_v46, 2 }
 0x11d   : > { %v7037_v63 = vsel %vm1470_vm0, %v7034_v54, %v7036_v56  ;;  %v18747_v54 = vld [vmem:[%s18111_s27 + $0x90] sm:$0xff]  }
 0x11f   : > { %15274 = vmatmul.mubr.msk.bf16.gmra.mrb[128].mxu1 %vm1265_vm3, %v1243_v58  ;;  %v18667_v58 = vld [vmem:[%s18111_s27 + $0x40] sm:$0xff]  }
 0x120   : > { %15277 = vmatprep.mubr.msk.bf16.mxu1 %vm1265_vm3, %v1251_v1  ;;  %v7038_v1 = vrot.slane %v17622_v61, 2 }
 0x122   : > { %15896 = vmatmul.mubr.msk.bf16.gmra.mrb[60].mxu0 %vm1265_vm3, %v7015_v11  ;;  %v7039_v10 = vsel %vm1470_vm0, %v7036_v56, %v7038_v1  ;;  %v17624_v11 = vld [vmem:[%s18111_s27 + $0x180] sm:$0xff]  }
 0x123   : > { %15899 = vmatprep.mubr.msk.bf16.mxu0 %vm1265_vm3, %v7017_v15  ;;  %v7041_v15 = vsel %vm1470_vm0, %v7038_v1, %v7040_v2 }
 0x127   : > { %15278 = vmatmul.mubr.msk.bf16.gmra.mrb[132].mxu1 %vm1265_vm3, %v1259_v17  ;;  %v7042_v17 = vrot.slane %v17624_v11, 2 }
 0x128   : > { %15283 = vmatprep.mubr.msk.bf16.mxu1 %vm1265_vm3, %v18118_v13  ;;  %v18612_v13 = vld [vmem:[%s18111_s27 + $0x10] sm:$0xff]  }
 0x12a   : > { %15900 = vmatmul.mubr.msk.bf16.gmra.mrb[64].mxu0 %vm1265_vm3, %v7019_v22  ;;  %v7043_v22 = vsel %vm1470_vm0, %v7040_v2, %v7042_v17  ;;  %v18758_v2 = vld [vmem:[%s18111_s27 + $0x98] sm:$0xff]  }
 0x12b   : > { %15903 = vmatprep.mubr.msk.bf16.mxu0 %vm1265_vm3, %v7021_v25  ;;  %v7045_v25 = vsel %vm1470_vm0, %v7042_v17, %v7044_v19  ;;  %v17635_v17 = vld [vmem:[%s18111_s27 + $0x1d8] sm:$0xff]  }
 0x12f   : > { %15284 = vmatmul.mubr.msk.bf16.vlgmr.msra.gmra.mrb[0].mxu1 %vm1265_vm3, %v18606_v30 }
 0x130   : > { %15420 = vmatpush3.bf16.msra.mxu1 %v18390_v62  ;;  %15287 = vmatprep.mubr.msk.bf16.mxu1 %vm1265_vm3, %v18612_v13  ;;  %v17649_v62 = vld [vmem:[%s21215_s1 + $0x38] sm:$0x7f]  }
 0x131   : > { %v18631_v40 = vand.u32 %v17649_v62, %v18090_v4  ;;  %v17629_v62 = vld [vmem:[%s18111_s27 + $0x1a8] sm:$0xff]  }
 0x132   : > { %15904 = vmatmul.mubr.msk.bf16.gmra.mrb[68].mxu0 %vm1265_vm3, %v7023_v31  ;;  %v18710_v31 = vld [vmem:[%s18111_s27 + $0x68] sm:$0xff]  }
 0x133   : > { %15907 = vmatprep.mubr.msk.bf16.mxu0 %vm1265_vm3, %v7025_v33  ;;  %16109 = vmatprep.subr.bf16.mxu0 %v18631_v40  ;;  %v7047_v33 = vsel %vm1470_vm0, %v7044_v19, %v7046_v28  ;;  %v17636_v28 = vld [vmem:[%s18111_s27 + $0x1e0] sm:$0xff]  }
 0x134   : > { %v7066_v34 = vrot.slane %v17636_v28, 2 }
 0x137   : > { %15288 = vmatmul.mubr.msk.bf16.gmra.mrb[4].mxu1 %vm1265_vm3, %v18626_v39 }
 0x138   : > { %15291 = vmatprep.mubr.msk.bf16.mxu1 %vm1265_vm3, %v18634_v41 }
 0x13a   : > { %15908 = vmatmul.mubr.msk.bf16.gmra.mrb[72].mxu0 %vm1265_vm3, %v7027_v42  ;;  %v7052_v42 = vrot.slane %v17629_v62, 2  ;;  %v18790_v62 = vld [vmem:[%s18111_s27 + $0xb8] sm:$0xff]  }
 0x13b   : > { %15911 = vmatprep.mubr.msk.bf16.mxu0 %vm1265_vm3, %v7029_v44  ;;  %v18731_v44 = vld [vmem:[%s18111_s27 + $0x80] sm:$0xff]  }
 0x13c   : > { %v7053_v14 = vsel %vm1470_vm0, %v7050_v37, %v7052_v42  ;;  %v7055_v56 = vsel %vm1470_vm0, %v7052_v42, %v7054_v51  ;;  %v18795_v37 = vld [vmem:[%s18111_s27 + $0xc0] sm:$0xff]  }
 0x13f   : > { %15292 = vmatmul.mubr.msk.bf16.gmra.mrb[8].mxu1 %vm1265_vm3, %v18646_v47 }
 0x140   : > { %15295 = vmatprep.mubr.msk.bf16.mxu1 %vm1265_vm3, %v18651_v48 }
 0x142   : > { %15912 = vmatmul.mubr.msk.bf16.gmra.mrb[76].mxu0 %vm1265_vm3, %v7031_v49  ;;  %v17631_v49 = vld [vmem:[%s18111_s27 + $0x1b8] sm:$0xff]  }
 0x143   : > { %15915 = vmatprep.mubr.msk.bf16.mxu0 %vm1265_vm3, %v7033_v52  ;;  %v7056_v52 = vrot.slane %v17631_v49, 2 }
 0x145   : > { %v7057_v61 = vsel %vm1470_vm0, %v7054_v51, %v7056_v52 }
 0x147   : > { %15296 = vmatmul.mubr.msk.bf16.gmra.mrb[12].mxu1 %vm1265_vm3, %v18662_v57 }
 0x148   : > { %15299 = vmatprep.mubr.msk.bf16.mxu1 %vm1265_vm3, %v18667_v58 }
 0x14a   : > { %15916 = vmatmul.mubr.msk.bf16.gmra.mrb[80].mxu0 %vm1265_vm3, %v7035_v60  ;;  %v17632_v60 = vld [vmem:[%s18111_s27 + $0x1c0] sm:$0xff]  }
 0x14b   : > { %15919 = vmatprep.mubr.msk.bf16.mxu0 %vm1265_vm3, %v7037_v63  ;;  %v17633_v63 = vld [vmem:[%s18111_s27 + $0x1c8] sm:$0xff]   ;;  %v7058_v0 = vrot.slane %v17632_v60, 2 }
 0x14c   : > { %v7060_v1 = vrot.slane %v17633_v63, 2 }
 0x14d   : > { %v7059_v11 = vsel %vm1470_vm0, %v7056_v52, %v7058_v0  ;;  %v18806_v52 = vld [vmem:[%s18111_s27 + $0xc8] sm:$0xff]  }
 0x14e   : > { %v7061_v16 = vsel %vm1470_vm0, %v7058_v0, %v7060_v1  ;;  %v17641_v0 = vld [vmem:[%s18111_s27 + $0x208] sm:$0xff]  }
 0x14f   : > { %15300 = vmatmul.mubr.msk.bf16.gmra.mrb[16].mxu1 %vm1265_vm3, %v18678_v7 }
 0x150   : > { %15303 = vmatprep.mubr.msk.bf16.mxu1 %vm1265_vm3, %v18683_v9 }
 0x152   : > { %15920 = vmatmul.mubr.msk.bf16.gmra.mrb[84].mxu0 %vm1265_vm3, %v7039_v10  ;;  %v18763_v10 = vld [vmem:[%s18111_s27 + $0xa0] sm:$0xff]  }
 0x153   : > { %15923 = vmatprep.mubr.msk.bf16.mxu0 %vm1265_vm3, %v7041_v15  ;;  %v17634_v15 = vld [vmem:[%s18111_s27 + $0x1d0] sm:$0xff]  }
 0x154   : > { %v7062_v19 = vrot.slane %v17634_v15, 2  ;;  %v18822_v15 = vld [vmem:[%s18111_s27 + $0xd8] sm:$0xff]  }
 0x156   : > { %v7063_v26 = vsel %vm1470_vm0, %v7060_v1, %v7062_v19 }
 0x157   : > { %15304 = vmatmul.mubr.msk.bf16.gmra.mrb[20].mxu1 %vm1265_vm3, %v18694_v20 }
 0x158   : > { %15307 = vmatprep.mubr.msk.bf16.mxu1 %vm1265_vm3, %v18699_v21 }
 0x15a   : > { %15924 = vmatmul.mubr.msk.bf16.gmra.mrb[88].mxu0 %vm1265_vm3, %v7043_v22  ;;  %v7064_v22 = vrot.slane %v17635_v17, 2 }
 0x15b   : > { %15927 = vmatprep.mubr.msk.bf16.mxu0 %vm1265_vm3, %v7045_v25  ;;  %v18779_v25 = vld [vmem:[%s18111_s27 + $0xb0] sm:$0xff]  }
 0x15c   : > { %v7065_v29 = vsel %vm1470_vm0, %v7062_v19, %v7064_v22  ;;  %v7067_v42 = vsel %vm1470_vm0, %v7064_v22, %v7066_v34  ;;  %v17642_v19 = vld [vmem:[%s18111_s27 + $0x210] sm:$0xff]  }
 0x15d   : > { %v7078_v28 = vrot.slane %v17642_v19, 2  ;;  %v18871_v19 = vld [vmem:[%s18111_s27 + $0x28] sm:$0xff]  }
 0x15f   : > { %15308 = vmatmul.mubr.msk.bf16.gmra.mrb[24].mxu1 %vm1265_vm3, %v18710_v31 }
 0x160   : > { %15311 = vmatprep.mubr.msk.bf16.mxu1 %vm1265_vm3, %v18715_v32 }
 0x162   : > { %15928 = vmatmul.mubr.msk.bf16.gmra.mrb[92].mxu0 %vm1265_vm3, %v7047_v33  ;;  %v17637_v33 = vld [vmem:[%s18111_s27 + $0x1e8] sm:$0xff]  }
 0x163   : > { %15931 = vmatprep.mubr.msk.bf16.mxu0 %vm1265_vm3, %v7049_v36  ;;  %v7068_v36 = vrot.slane %v17637_v33, 2  ;;  %v18838_v33 = vld [vmem:[%s18111_s27 + $0xe8] sm:$0xff]  }
 0x165   : > { %v7069_v46 = vsel %vm1470_vm0, %v7066_v34, %v7068_v36  ;;  %v18843_v34 = vld [vmem:[%s18111_s27 + $0xf0] sm:$0xff]  }
 0x167   : > { %15312 = vmatmul.mubr.msk.bf16.gmra.mrb[28].mxu1 %vm1265_vm3, %v18726_v43 }
 0x168   : > { %15315 = vmatprep.mubr.msk.bf16.mxu1 %vm1265_vm3, %v18731_v44 }
 0x16a   : > { %15932 = vmatmul.mubr.msk.bf16.gmra.mrb[96].mxu0 %vm1265_vm3, %v7051_v45  ;;  %v17638_v45 = vld [vmem:[%s18111_s27 + $0x1f0] sm:$0xff]  }
 0x16b   : > { %15935 = vmatprep.mubr.msk.bf16.mxu0 %vm1265_vm3, %v7053_v14  ;;  %v17639_v14 = vld [vmem:[%s18111_s27 + $0x1f8] sm:$0xff]   ;;  %v7070_v49 = vrot.slane %v17638_v45, 2 }
 0x16c   : > { %v7072_v51 = vrot.slane %v17639_v14, 2 }
 0x16d   : > { %v7071_v60 = vsel %vm1470_vm0, %v7068_v36, %v7070_v49 }
 0x16e   : > { %v7073_v63 = vsel %vm1470_vm0, %v7070_v49, %v7072_v51 }
 0x16f   : > { %15316 = vmatmul.mubr.msk.bf16.gmra.mrb[32].mxu1 %vm1265_vm3, %v18742_v53 }
 0x170   : > { %15319 = vmatprep.mubr.msk.bf16.mxu1 %vm1265_vm3, %v18747_v54 }
 0x172   : > { %15936 = vmatmul.mubr.msk.bf16.gmra.mrb[100].mxu0 %vm1265_vm3, %v7055_v56  ;;  %v18811_v56 = vld [vmem:[%s18111_s27 + $0xd0] sm:$0xff]  }
 0x173   : > { %15939 = vmatprep.mubr.msk.bf16.mxu0 %vm1265_vm3, %v7057_v61  ;;  %v17640_v61 = vld [vmem:[%s18111_s27 + $0x200] sm:$0xff]  }
 0x174   : > { %v7074_v1 = vrot.slane %v17640_v61, 2  ;;  %v8014_v61 = vld [vmem:[%s18111_s27 + $0x24] sm:$0xf] }
 0x176   : > { %v7075_v17 = vsel %vm1470_vm0, %v7072_v51, %v7074_v1  ;;  %v18854_v51 = vld [vmem:[%s18111_s27 + $0xf8] sm:$0xff]  }
 0x177   : > { %15320 = vmatmul.mubr.msk.bf16.gmra.mrb[36].mxu1 %vm1265_vm3, %v18758_v2 }
 0x178   : > { %15323 = vmatprep.mubr.msk.bf16.mxu1 %vm1265_vm3, %v18763_v10 }
 0x17a   : > { %15940 = vmatmul.mubr.msk.bf16.gmra.mrb[104].mxu0 %vm1265_vm3, %v7059_v11  ;;  %v7076_v11 = vrot.slane %v17641_v0, 2 }
 0x17b   : > { %15943 = vmatprep.mubr.msk.bf16.mxu0 %vm1265_vm3, %v7061_v16  ;;  %v18827_v16 = vld [vmem:[%s18111_s27 + $0xe0] sm:$0xff]  }
 0x17c   : > { %v7077_v22 = vsel %vm1470_vm0, %v7074_v1, %v7076_v11  ;;  %v7079_v36 = vsel %vm1470_vm0, %v7076_v11, %v7078_v28  ;;  %v17646_v1 = vld [vmem:[%s18111_s27 + $0x230] ss:$0 sps:$4 sm:$0x33]  }
 0x17f   : > { %15324 = vmatmul.mubr.msk.bf16.gmra.mrb[40].mxu1 %vm1265_vm3, %v18774_v24 }
 0x180   : > { %15327 = vmatprep.mubr.msk.bf16.mxu1 %vm1265_vm3, %v18779_v25 }
 0x182   : > { %15944 = vmatmul.mubr.msk.bf16.gmra.mrb[108].mxu0 %vm1265_vm3, %v7063_v26  ;;  %v17643_v26 = vld [vmem:[%s18111_s27 + $0x218] sm:$0xff]  }
 0x183   : > { %15947 = vmatprep.mubr.msk.bf16.mxu0 %vm1265_vm3, %v7065_v29  ;;  %v7080_v29 = vrot.slane %v17643_v26, 2 }
 0x185   : > { %v7081_v45 = vsel %vm1470_vm0, %v7078_v28, %v7080_v29  ;;  %v8497_v28 = vrot.slane %v18871_v19, 2 }
 0x187   : > { %15328 = vmatmul.mubr.msk.bf16.gmra.mrb[44].mxu1 %vm1265_vm3, %v18790_v62 }
 0x188   : > { %15331 = vmatprep.mubr.msk.bf16.mxu1 %vm1265_vm3, %v18795_v37 }
 0x18a   : > { %15948 = vmatmul.mubr.msk.bf16.gmra.mrb[112].mxu0 %vm1265_vm3, %v7067_v42  ;;  %v17644_v42 = vld [vmem:[%s18111_s27 + $0x220] sm:$0xff]  }
 0x18b   : > { %15951 = vmatprep.mubr.msk.bf16.mxu0 %vm1265_vm3, %v7069_v46  ;;  %v17645_v46 = vld [vmem:[%s18111_s27 + $0x228] sm:$0xff]   ;;  %v7082_v14 = vrot.slane %v17644_v42, 2 }
 0x18c   : > { %v7084_v49 = vrot.slane %v17645_v46, 2 }
 0x18d   : > { %v7083_v0 = vsel %vm1470_vm0, %v7080_v29, %v7082_v14  ;;  %v18878_v29 = vld [vmem:[%s18111_s27 + $0x108] sm:$0xff]  }
 0x18e   : > { %v7085_v11 = vsel %vm1470_vm0, %v7082_v14, %v7084_v49  ;;  %v18893_v14 = vld [vmem:[%s18111_s27 + $0x38] sm:$0xff]  }
 0x18f   : > { %15332 = vmatmul.mubr.msk.bf16.gmra.mrb[48].mxu1 %vm1265_vm3, %v18806_v52 }
 0x190   : > { %15335 = vmatprep.mubr.msk.bf16.mxu1 %vm1265_vm3, %v18811_v56 }
 0x192   : > { %15952 = vmatmul.mubr.msk.bf16.gmra.mrb[116].mxu0 %vm1265_vm3, %v7071_v60  ;;  %v8013_v60 = vld [vmem:[%s18111_s27 + $0x20] sm:$0xc] }
 0x193   : > { %15955 = vmatprep.mubr.msk.bf16.mxu0 %vm1265_vm3, %v7073_v63  ;;  %v18861_v63 = vld [vmem:[%s18111_s27 + $0x100] sm:$0xff]  }
 0x197   : > { %15336 = vmatmul.mubr.msk.bf16.gmra.mrb[52].mxu1 %vm1265_vm3, %v18822_v15 }
 0x198   : > { %15339 = vmatprep.mubr.msk.bf16.mxu1 %vm1265_vm3, %v18827_v16 }
 0x19a   : > { %15956 = vmatmul.mubr.msk.bf16.gmra.mrb[120].mxu0 %vm1265_vm3, %v7075_v17  ;;  %v18868_v17 = vcombine.low %v8013_v60, %v8014_v61  ;;  %v8501_v61 = vrot.slane %v18893_v14, 2 }
 0x19b   : > { %15959 = vmatprep.mubr.msk.bf16.mxu0 %vm1265_vm3, %v7077_v22  ;;  %v7086_v22 = vrot.slane %v17646_v1, 2 }
 0x19c   : > { %v8496_v26 = vrot.slane %v18868_v17, 2 }
 0x19d   : > { %v7087_v42 = vsel %vm1470_vm0, %v7084_v49, %v7086_v22  ;;  %v18905_v49 = vld [vmem:[%s18111_s27 + $0x120] sm:$0xff]  }
 0x19e   : > { %v8498_v46 = vsel %vm1470_vm0, %v8496_v26, %v8497_v28  ;;  %21275 = vst [vmem:[#allocation4_spill] sm:$0xff] %v18905_v49  ;;  %v18915_v26 = vld [vmem:[%s18111_s27 + $0x48] sm:$0xff]  }
 0x19f   : > { %15340 = vmatmul.mubr.msk.bf16.gmra.mrb[56].mxu1 %vm1265_vm3, %v18838_v33  ;;  %21277 = vst [vmem:[#allocation6_spill] sm:$0xff] %v18915_v26 }
 0x1a0   : > { %15343 = vmatprep.mubr.msk.bf16.mxu1 %vm1265_vm3, %v18843_v34 }
 0x1a2   : > { %15960 = vmatmul.mubr.msk.bf16.gmra.mrb[124].mxu0 %vm1265_vm3, %v7079_v36  ;;  %v18883_v36 = vld [vmem:[%s18111_s27 + $0x110] sm:$0xff]  }
 0x1a3   : > { %15963 = vmatprep.mubr.msk.bf16.mxu0 %vm1265_vm3, %v7081_v45  ;;  %v18889_v45 = vld [vmem:[%s18111_s27 + $0x30] sm:$0xff]  }
 0x1a4   : > { %v8499_v60 = vrot.slane %v18889_v45, 2 }
 0x1a6   : > { %v8500_v1 = vsel %vm1470_vm0, %v8497_v28, %v8499_v60  ;;  %v8502_v22 = vsel %vm1470_vm0, %v8499_v60, %v8501_v61 }
 0x1a7   : > { %15344 = vmatmul.mubr.msk.bf16.gmra.mrb[60].mxu1 %vm1265_vm3, %v18854_v51 }
 0x1a8   : > { %15347 = vmatprep.mubr.msk.bf16.mxu1 %vm1265_vm3, %v18861_v63 }
 0x1aa   : > { %15964 = vmatmul.mubr.msk.bf16.gmra.mrb[128].mxu0 %vm1265_vm3, %v7083_v0  ;;  %v18900_v0 = vld [vmem:[%s18111_s27 + $0x118] sm:$0xff]  }
 0x1ab   : > { %15967 = vmatprep.mubr.msk.bf16.mxu0 %vm1265_vm3, %v7085_v11  ;;  %v18911_v11 = vld [vmem:[%s18111_s27 + $0x40] sm:$0xff]  }
 0x1ac   : > { %21276 = vst [vmem:[#allocation5_spill] sm:$0xff] %v18911_v11  ;;  %v8503_v28 = vrot.slane %v18911_v11, 2  ;;  %v18952_v11 = vld [vmem:[%s18111_s27 + $0x138] sm:$0xff]  }
 0x1ad   : > { %21282 = vst [vmem:[#allocation11_spill] sm:$0xff] %v18952_v11 }
 0x1af   : > { %15348 = vmatmul.mubr.msk.bf16.gmra.mrb[64].mxu1 %vm1265_vm3, %v18878_v29 }
 0x1b0   : > { %15351 = vmatprep.mubr.msk.bf16.mxu1 %vm1265_vm3, %v18883_v36 }
 0x1b2   : > { %15968 = vmatmul.mubr.msk.bf16.gmra.mrb[132].mxu0 %vm1265_vm3, %v7087_v42  ;;  %v17684_v42 = vld [vmem:[%s21215_s1 + $0x18] sm:$0x7f]  }
 0x1b3   : > { %15973 = vmatprep.mubr.msk.bf16.mxu0 %vm1265_vm3, %v8498_v46  ;;  %v8505_v46 = vrot.slane %v18915_v26, 2  ;;  %v18926_v60 = vand.u32 %v17684_v42, %v18090_v4 }
 0x1b5   : > { %15557 = vmatprep.subr.bf16.mxu1 %v18926_v60  ;;  %v8506_v42 = vsel %vm1470_vm0, %v8503_v28, %v8505_v46 }
 0x1b7   : > { %15352 = vmatmul.mubr.msk.bf16.gmra.mrb[68].mxu1 %vm1265_vm3, %v18900_v0 }
 0x1b8   : > { %15355 = vmatprep.mubr.msk.bf16.mxu1 %vm1265_vm3, %v18905_v49  ;;  %v17671_v49 = vld [vmem:[%s18111_s27 + $0xd8] sm:$0xff]  }
 0x1ba   : > { %15974 = vmatmul.mubr.msk.bf16.vlgmr.msra.gmra.mrb[0].mxu0 %vm1265_vm3, %v8500_v1  ;;  %v18934_v1 = vld [vmem:[%s18111_s27 + $0x130] sm:$0xff]  }
 0x1bb   : > { %16110 = vmatpush3.bf16.msra.mxu0 %v18631_v40  ;;  %15977 = vmatprep.mubr.msk.bf16.mxu0 %vm1265_vm3, %v8502_v22  ;;  %21279 = vst [vmem:[#allocation8_spill] sm:$0xff] %v18934_v1  ;;  %v8504_v40 = vsel %vm1470_vm0, %v8501_v61, %v8503_v28  ;;  %v18941_v22 = vld [vmem:[%s18111_s27 + $0x50] sm:$0xff]   ;;  %v18957_v61 = vld [vmem:[%s18111_s27 + $0x140] sm:$0xff]  }
 0x1bc   : > { %21280 = vst [vmem:[#allocation9_spill] sm:$0xff] %v18941_v22  ;;  %v8507_v26 = vrot.slane %v18941_v22, 2  ;;  %21283 = vst [vmem:[#allocation12_spill] sm:$0xff] %v18957_v61  ;;  %v18967_v22 = vld [vmem:[%s18111_s27 + $0x68] sm:$0xff]  }
 0x1bd   : > { %21285 = vst [vmem:[#allocation14_spill] sm:$0xff] %v18967_v22 }
 0x1be   : > { %v8508_v28 = vsel %vm1470_vm0, %v8505_v46, %v8507_v26  ;;  %v18979_v46 = vld [vmem:[%s18111_s27 + $0x150] sm:$0xff]  }
 0x1bf   : > { %15356 = vmatmul.mubr.msk.bf16.gmra.mrb[72].mxu1 %vm1265_vm3, %v18929_v59  ;;  %21287 = vst [vmem:[#allocation16_spill] sm:$0xff] %v18979_v46  ;;  %v19100_v59 = vld [vmem:[%s18111_s27 + $0x1a8] sm:$0xff]  }
 0x1c0   : > { %15359 = vmatprep.mubr.msk.bf16.mxu1 %vm1265_vm3, %v18934_v1  ;;  %v8509_v1 = vrot.slane %v18945_v23, 2  ;;  %21308 = vst [vmem:[#allocation37_spill] sm:$0xff] %v19100_v59 }
 0x1c2   : > { %15978 = vmatmul.mubr.msk.bf16.gmra.mrb[4].mxu0 %vm1265_vm3, %v8504_v40  ;;  %v18963_v40 = vld [vmem:[%s18111_s27 + $0x60] sm:$0xff]  }
 0x1c3   : > { %15981 = vmatprep.mubr.msk.bf16.mxu0 %vm1265_vm3, %v8506_v42  ;;  %21284 = vst [vmem:[#allocation13_spill] sm:$0xff] %v18963_v40  ;;  %v8510_v42 = vsel %vm1470_vm0, %v8507_v26, %v8509_v1  ;;  %v8511_v23 = vrot.slane %v18963_v40, 2  ;;  %v18989_v40 = vld [vmem:[%s18111_s27 + $0x78] sm:$0xff]  }
 0x1c4   : > { %21289 = vst [vmem:[#allocation18_spill] sm:$0xff] %v18989_v40 }
 0x1c5   : > { %v8512_v26 = vsel %vm1470_vm0, %v8509_v1, %v8511_v23  ;;  %v19001_v1 = vld [vmem:[%s18111_s27 + $0x160] sm:$0xff]  }
 0x1c6   : > { %21291 = vst [vmem:[#allocation20_spill] sm:$0xff] %v19001_v1 }
 0x1c7   : > { %15360 = vmatmul.mubr.msk.bf16.gmra.mrb[76].mxu1 %vm1265_vm3, %v18952_v11  ;;  %v8513_v11 = vrot.slane %v18967_v22, 2 }
 0x1c8   : > { %15363 = vmatprep.mubr.msk.bf16.mxu1 %vm1265_vm3, %v18957_v61  ;;  %v18974_v61 = vld [vmem:[%s18111_s27 + $0x148] sm:$0xff]  }
 0x1c9   : > { %21286 = vst [vmem:[#allocation15_spill] sm:$0xff] %v18974_v61 }
 0x1ca   : > { %15982 = vmatmul.mubr.msk.bf16.gmra.mrb[8].mxu0 %vm1265_vm3, %v8508_v28  ;;  %v18985_v28 = vld [vmem:[%s18111_s27 + $0x70] sm:$0xff]  }
 0x1cb   : > { %15985 = vmatprep.mubr.msk.bf16.mxu0 %vm1265_vm3, %v8510_v42  ;;  %21288 = vst [vmem:[#allocation17_spill] sm:$0xff] %v18985_v28  ;;  %v8514_v42 = vsel %vm1470_vm0, %v8511_v23, %v8513_v11  ;;  %v8515_v22 = vrot.slane %v18985_v28, 2  ;;  %v19011_v28 = vld [vmem:[%s18111_s27 + $0x88] sm:$0xff]  }
 0x1cc   : > { %21293 = vst [vmem:[#allocation22_spill] sm:$0xff] %v19011_v28 }
 0x1cd   : > { %v8516_v23 = vsel %vm1470_vm0, %v8513_v11, %v8515_v22  ;;  %v19023_v11 = vld [vmem:[%s18111_s27 + $0x170] sm:$0xff]  }
 0x1ce   : > { %21295 = vst [vmem:[#allocation24_spill] sm:$0xff] %v19023_v11 }
 0x1cf   : > { %15364 = vmatmul.mubr.msk.bf16.gmra.mrb[80].mxu1 %vm1265_vm3, %v18974_v61  ;;  %v8517_v61 = vrot.slane %v18989_v40, 2 }
 0x1d0   : > { %15367 = vmatprep.mubr.msk.bf16.mxu1 %vm1265_vm3, %v18979_v46  ;;  %v18996_v46 = vld [vmem:[%s18111_s27 + $0x158] sm:$0xff]  }
 0x1d1   : > { %21290 = vst [vmem:[#allocation19_spill] sm:$0xff] %v18996_v46 }
 0x1d2   : > { %15986 = vmatmul.mubr.msk.bf16.gmra.mrb[12].mxu0 %vm1265_vm3, %v8512_v26  ;;  %v19007_v26 = vld [vmem:[%s18111_s27 + $0x80] sm:$0xff]  }
 0x1d3   : > { %15989 = vmatprep.mubr.msk.bf16.mxu0 %vm1265_vm3, %v8514_v42  ;;  %21292 = vst [vmem:[#allocation21_spill] sm:$0xff] %v19007_v26  ;;  %v8518_v42 = vsel %vm1470_vm0, %v8515_v22, %v8517_v61  ;;  %v8519_v40 = vrot.slane %v19007_v26, 2  ;;  %v19033_v26 = vld [vmem:[%s18111_s27 + $0x98] sm:$0xff]  }
 0x1d4   : > { %21297 = vst [vmem:[#allocation26_spill] sm:$0xff] %v19033_v26 }
 0x1d5   : > { %v8520_v22 = vsel %vm1470_vm0, %v8517_v61, %v8519_v40  ;;  %v19045_v61 = vld [vmem:[%s18111_s27 + $0x180] sm:$0xff]  }
 0x1d6   : > { %21299 = vst [vmem:[#allocation28_spill] sm:$0xff] %v19045_v61 }
 0x1d7   : > { %15368 = vmatmul.mubr.msk.bf16.gmra.mrb[84].mxu1 %vm1265_vm3, %v18996_v46  ;;  %v8521_v46 = vrot.slane %v19011_v28, 2 }
 0x1d8   : > { %15371 = vmatprep.mubr.msk.bf16.mxu1 %vm1265_vm3, %v19001_v1  ;;  %v19018_v1 = vld [vmem:[%s18111_s27 + $0x168] sm:$0xff]  }
 0x1d9   : > { %21294 = vst [vmem:[#allocation23_spill] sm:$0xff] %v19018_v1 }
 0x1da   : > { %15990 = vmatmul.mubr.msk.bf16.gmra.mrb[16].mxu0 %vm1265_vm3, %v8516_v23  ;;  %v19029_v23 = vld [vmem:[%s18111_s27 + $0x90] sm:$0xff]  }
 0x1db   : > { %15993 = vmatprep.mubr.msk.bf16.mxu0 %vm1265_vm3, %v8518_v42  ;;  %21296 = vst [vmem:[#allocation25_spill] sm:$0xff] %v19029_v23  ;;  %v8522_v42 = vsel %vm1470_vm0, %v8519_v40, %v8521_v46  ;;  %v8523_v28 = vrot.slane %v19029_v23, 2  ;;  %v19055_v23 = vld [vmem:[%s18111_s27 + $0xa8] sm:$0xff]  }
 0x1dc   : > { %21301 = vst [vmem:[#allocation30_spill] sm:$0xff] %v19055_v23 }
 0x1dd   : > { %v8524_v40 = vsel %vm1470_vm0, %v8521_v46, %v8523_v28  ;;  %v19067_v46 = vld [vmem:[%s18111_s27 + $0x190] sm:$0xff]  }
 0x1de   : > { %21303 = vst [vmem:[#allocation32_spill] sm:$0xff] %v19067_v46 }
 0x1df   : > { %15372 = vmatmul.mubr.msk.bf16.gmra.mrb[88].mxu1 %vm1265_vm3, %v19018_v1  ;;  %v8525_v1 = vrot.slane %v19033_v26, 2 }
 0x1e0   : > { %15375 = vmatprep.mubr.msk.bf16.mxu1 %vm1265_vm3, %v19023_v11  ;;  %v19040_v11 = vld [vmem:[%s18111_s27 + $0x178] sm:$0xff]  }
 0x1e1   : > { %21298 = vst [vmem:[#allocation27_spill] sm:$0xff] %v19040_v11 }
 0x1e2   : > { %15994 = vmatmul.mubr.msk.bf16.gmra.mrb[20].mxu0 %vm1265_vm3, %v8520_v22  ;;  %v19051_v22 = vld [vmem:[%s18111_s27 + $0xa0] sm:$0xff]  }
 0x1e3   : > { %15997 = vmatprep.mubr.msk.bf16.mxu0 %vm1265_vm3, %v8522_v42  ;;  %21300 = vst [vmem:[#allocation29_spill] sm:$0xff] %v19051_v22  ;;  %v8526_v42 = vsel %vm1470_vm0, %v8523_v28, %v8525_v1  ;;  %v8527_v26 = vrot.slane %v19051_v22, 2  ;;  %v19077_v22 = vld [vmem:[%s18111_s27 + $0xb8] sm:$0xff]  }
 0x1e4   : > { %21305 = vst [vmem:[#allocation34_spill] sm:$0xff] %v19077_v22 }
 0x1e5   : > { %v8528_v28 = vsel %vm1470_vm0, %v8525_v1, %v8527_v26  ;;  %v19089_v1 = vld [vmem:[%s18111_s27 + $0x1a0] sm:$0xff]  }
 0x1e6   : > { %21307 = vst [vmem:[#allocation36_spill] sm:$0xff] %v19089_v1 }
 0x1e7   : > { %15376 = vmatmul.mubr.msk.bf16.gmra.mrb[92].mxu1 %vm1265_vm3, %v19040_v11  ;;  %v8529_v11 = vrot.slane %v19055_v23, 2 }
 0x1e8   : > { %15379 = vmatprep.mubr.msk.bf16.mxu1 %vm1265_vm3, %v19045_v61  ;;  %v19062_v61 = vld [vmem:[%s18111_s27 + $0x188] sm:$0xff]  }
 0x1e9   : > { %21302 = vst [vmem:[#allocation31_spill] sm:$0xff] %v19062_v61 }
 0x1ea   : > { %15998 = vmatmul.mubr.msk.bf16.gmra.mrb[24].mxu0 %vm1265_vm3, %v8524_v40  ;;  %v19073_v40 = vld [vmem:[%s18111_s27 + $0xb0] sm:$0xff]  }
 0x1eb   : > { %16001 = vmatprep.mubr.msk.bf16.mxu0 %vm1265_vm3, %v8526_v42  ;;  %21304 = vst [vmem:[#allocation33_spill] sm:$0xff] %v19073_v40  ;;  %v8530_v42 = vsel %vm1470_vm0, %v8527_v26, %v8529_v11  ;;  %v8531_v23 = vrot.slane %v19073_v40, 2  ;;  %v17669_v40 = vld [vmem:[%s18111_s27 + $0xc8] sm:$0xff]  }
 0x1ed   : > { %v8532_v26 = vsel %vm1470_vm0, %v8529_v11, %v8531_v23 }
 0x1ef   : > { %15380 = vmatmul.mubr.msk.bf16.gmra.mrb[96].mxu1 %vm1265_vm3, %v19062_v61  ;;  %v8533_v61 = vrot.slane %v19077_v22, 2 }
 0x1f0   : > { %15383 = vmatprep.mubr.msk.bf16.mxu1 %vm1265_vm3, %v19067_v46  ;;  %v19084_v46 = vld [vmem:[%s18111_s27 + $0x198] sm:$0xff]  }
 0x1f1   : > { %21306 = vst [vmem:[#allocation35_spill] sm:$0xff] %v19084_v46 }
 0x1f2   : > { %16002 = vmatmul.mubr.msk.bf16.gmra.mrb[28].mxu0 %vm1265_vm3, %v8528_v28  ;;  %v17668_v28 = vld [vmem:[%s18111_s27 + $0xc0] sm:$0xff]  }
 0x1f3   : > { %16005 = vmatprep.mubr.msk.bf16.mxu0 %vm1265_vm3, %v8530_v42  ;;  %v8534_v42 = vsel %vm1470_vm0, %v8531_v23, %v8533_v61  ;;  %v8535_v22 = vrot.slane %v17668_v28, 2  ;;  %v17670_v23 = vld [vmem:[%s18111_s27 + $0xd0] sm:$0xff]   ;;  %v8541_v28 = vrot.slane %v17671_v49, 2 }
 0x1f5   : > { %v8536_v11 = vsel %vm1470_vm0, %v8533_v61, %v8535_v22 }
 0x1f7   : > { %15384 = vmatmul.mubr.msk.bf16.gmra.mrb[100].mxu1 %vm1265_vm3, %v19084_v46  ;;  %v8537_v46 = vrot.slane %v17669_v40, 2  ;;  %v8539_v40 = vrot.slane %v17670_v23, 2 }
 0x1f8   : > { %15387 = vmatprep.mubr.msk.bf16.mxu1 %vm1265_vm3, %v19089_v1  ;;  %v17811_v1 = vld [vmem:[%s18111_s27 + $0x1b0] sm:$0xff]  }
 0x1f9   : > { %v8540_v61 = vsel %vm1470_vm0, %v8537_v46, %v8539_v40 }
 0x1fa   : > { %16006 = vmatmul.mubr.msk.bf16.gmra.mrb[32].mxu0 %vm1265_vm3, %v8532_v26  ;;  %v8538_v26 = vsel %vm1470_vm0, %v8535_v22, %v8537_v46  ;;  %v17672_v22 = vld [vmem:[%s18111_s27 + $0xe0] sm:$0xff]  }
 0x1fb   : > { %16009 = vmatprep.mubr.msk.bf16.mxu0 %vm1265_vm3, %v8534_v42  ;;  %v19113_v42 = vld [vmem:[%s18111_s27 + $0x1b8] sm:$0xff]   ;;  %v8543_v49 = vrot.slane %v17672_v22, 2 }
 0x1fc   : > { %21309 = vst [vmem:[#allocation38_spill] sm:$0xff] %v19113_v42 }
 0x1fd   : > { %v8544_v46 = vsel %vm1470_vm0, %v8541_v28, %v8543_v49 }
 0x1ff   : > { %15388 = vmatmul.mubr.msk.bf16.gmra.mrb[104].mxu1 %vm1265_vm3, %v19100_v59  ;;  %v17673_v59 = vld [vmem:[%s18111_s27 + $0xe8] sm:$0xff]  }
 0x200   : > { %15391 = vmatprep.mubr.msk.bf16.mxu1 %vm1265_vm3, %v17811_v1  ;;  %v17813_v1 = vld [vmem:[%s18111_s27 + $0x1c0] sm:$0xff]   ;;  %v8545_v23 = vrot.slane %v17673_v59, 2 }
 0x202   : > { %16010 = vmatmul.mubr.msk.bf16.gmra.mrb[36].mxu0 %vm1265_vm3, %v8536_v11  ;;  %v8542_v11 = vsel %vm1470_vm0, %v8539_v40, %v8541_v28  ;;  %v8546_v40 = vsel %vm1470_vm0, %v8543_v49, %v8545_v23  ;;  %v17676_v28 = vld [vmem:[%s18111_s27 + $0x100] sm:$0xff]  }
 0x203   : > { %16013 = vmatprep.mubr.msk.bf16.mxu0 %vm1265_vm3, %v8538_v26  ;;  %v17814_v26 = vld [vmem:[%s18111_s27 + $0x1c8] sm:$0xff]   ;;  %v8551_v49 = vrot.slane %v17676_v28, 2  ;;  %v17815_v28 = vld [vmem:[%s18111_s27 + $0x4] sm:$0xf] }
 0x207   : > { %15392 = vmatmul.mubr.msk.bf16.gmra.mrb[108].mxu1 %vm1265_vm3, %v19113_v42  ;;  %v17675_v42 = vld [vmem:[%s18111_s27 + $0xf8] sm:$0xff]  }
 0x208   : > { %15395 = vmatprep.mubr.msk.bf16.mxu1 %vm1265_vm3, %v17813_v1  ;;  %v17674_v1 = vld [vmem:[%s18111_s27 + $0xf0] sm:$0xff]   ;;  %v8549_v59 = vrot.slane %v17675_v42, 2 }
 0x20a   : > { %16014 = vmatmul.mubr.msk.bf16.gmra.mrb[40].mxu0 %vm1265_vm3, %v8540_v61  ;;  %v8547_v61 = vrot.slane %v17674_v1, 2 }
 0x20b   : > { %16017 = vmatprep.mubr.msk.bf16.mxu0 %vm1265_vm3, %v8542_v11  ;;  %v17677_v11 = vld [vmem:[%s18111_s27 + $0x108] sm:$0xff]  }
 0x20c   : > { %v8550_v22 = vsel %vm1470_vm0, %v8547_v61, %v8549_v59  ;;  %v8553_v42 = vrot.slane %v17677_v11, 2  ;;  %v17682_v11 = vld [vmem:[%s18111_s27 + $0x130] sm:$0xff]  }
 0x20f   : > { %15396 = vmatmul.mubr.msk.bf16.gmra.mrb[112].mxu1 %vm1265_vm3, %v17814_v26  ;;  %v17679_v26 = vld [vmem:[%s18111_s27 + $0x118] sm:$0xff]  }
 0x210   : > { %15399 = vmatprep.mubr.msk.bf16.mxu1 %vm1265_vm3, %v18472_v3  ;;  %v8548_v3 = vsel %vm1470_vm0, %v8545_v23, %v8547_v61  ;;  %v8554_v23 = vsel %vm1470_vm0, %v8551_v49, %v8553_v42  ;;  %v8557_v1 = vrot.slane %v17679_v26, 2  ;;  %v17681_v61 = vld [vmem:[%s18111_s27 + $0x128] sm:$0xff]  }
 0x212   : > { %16018 = vmatmul.mubr.msk.bf16.gmra.mrb[44].mxu0 %vm1265_vm3, %v8544_v46 }
 0x213   : > { %16021 = vmatprep.mubr.msk.bf16.mxu0 %vm1265_vm3, %v8546_v40 }
 0x217   : > { %15400 = vmatmul.mubr.msk.bf16.gmra.mrb[116].mxu1 %vm1265_vm3, %v18475_v5  ;;  %v8552_v5 = vsel %vm1470_vm0, %v8549_v59, %v8551_v49  ;;  %v2775_v59 = vld [vmem:[%s18111_s27] sm:$0xe] }
 0x218   : > { %15403 = vmatprep.mubr.msk.bf16.mxu1 %vm1265_vm3, %v18490_v27  ;;  %v17678_v27 = vld [vmem:[%s18111_s27 + $0x110] sm:$0xff]  }
 0x219   : > { %v8555_v46 = vrot.slane %v17678_v27, 2  ;;  %v17685_v27 = vld [vmem:[%s18111_s27 + $0x138] sm:$0xff]  }
 0x21a   : > { %16022 = vmatmul.mubr.msk.bf16.gmra.mrb[48].mxu0 %vm1265_vm3, %v8548_v3  ;;  %v8565_v26 = vrot.slane %v17685_v27, 2  ;;  %v17690_v27 = vld [vmem:[%s18111_s27 + $0x160] sm:$0xff]  }
 0x21b   : > { %16025 = vmatprep.mubr.msk.bf16.mxu0 %vm1265_vm3, %v8550_v22  ;;  %v8558_v40 = vsel %vm1470_vm0, %v8555_v46, %v8557_v1  ;;  %v13608_v22 = vcombine.low %v2775_v59, %v17815_v28  ;;  %v2792_v28 = vrot.slane %v18646_v47, 1  ;;  %v17719_v47 = vld [vmem:[%s21215_s1 + $0x40] sm:$0x7f]  }
 0x21d   : > { %v2783_v49 = vrot.slane %v13608_v22, 1 }
 0x21f   : > { %15404 = vmatmul.mubr.msk.bf16.gmra.mrb[120].mxu1 %vm1265_vm3, %v18500_v35  ;;  %v8556_v35 = vsel %vm1470_vm0, %v8553_v42, %v8555_v46  ;;  %v2784_v42 = vrot.slane %v18606_v30, 1  ;;  %v17686_v46 = vld [vmem:[%s18111_s27 + $0x140] sm:$0xff]  }
 0x220   : > { %15407 = vmatprep.mubr.msk.bf16.mxu1 %vm1265_vm3, %v18517_v50  ;;  %v17680_v50 = vld [vmem:[%s18111_s27 + $0x120] sm:$0xff]  }
 0x221   : > { %v8559_v3 = vrot.slane %v17680_v50, 2  ;;  %v17687_v50 = vld [vmem:[%s18111_s27 + $0x148] sm:$0xff]  }
 0x222   : > { %16026 = vmatmul.mubr.msk.bf16.gmra.mrb[52].mxu0 %vm1265_vm3, %v8552_v5 }
 0x223   : > { %16029 = vmatprep.mubr.msk.bf16.mxu0 %vm1265_vm3, %v8554_v23  ;;  %v8563_v23 = vrot.slane %v17682_v11, 2 }
 0x227   : > { %15408 = vmatmul.mubr.msk.bf16.gmra.mrb[124].mxu1 %vm1265_vm3, %v18522_v55  ;;  %v8561_v55 = vrot.slane %v17681_v61, 2 }
 0x228   : > { %15411 = vmatprep.mubr.msk.bf16.mxu1 %vm1265_vm3, %v18537_v8  ;;  %v8560_v8 = vsel %vm1470_vm0, %v8557_v1, %v8559_v3  ;;  %v2788_v1 = vrot.slane %v18626_v39, 1  ;;  %v2790_v39 = vrot.slane %v18634_v41, 1 }
 0x229   : > { %v8562_v5 = vsel %vm1470_vm0, %v8559_v3, %v8561_v55  ;;  %v8564_v30 = vsel %vm1470_vm0, %v8561_v55, %v8563_v23  ;;  %v17688_v3 = vld [vmem:[%s18111_s27 + $0x150] sm:$0xff]   ;;  %v17689_v55 = vld [vmem:[%s18111_s27 + $0x158] sm:$0xff]  }
 0x22a   : > { %16030 = vmatmul.mubr.msk.bf16.gmra.mrb[56].mxu0 %vm1265_vm3, %v8556_v35  ;;  %v8566_v35 = vsel %vm1470_vm0, %v8563_v23, %v8565_v26  ;;  %v2793_v41 = vsel %vm1471_vm1, %v2790_v39, %v2792_v28  ;;  %v8573_v11 = vrot.slane %v17689_v55, 2  ;;  %v2796_v23 = vrot.slane %v18662_v57, 1 }
 0x22b   : > { %16033 = vmatprep.mubr.msk.bf16.mxu0 %vm1265_vm3, %v8558_v40  ;;  %v2798_v57 = vrot.slane %v18667_v58, 1 }
 0x22f   : > { %15412 = vmatmul.mubr.msk.bf16.gmra.mrb[128].mxu1 %vm1265_vm3, %v18542_v18  ;;  %v2785_v18 = vsel %vm1471_vm1, %v2783_v49, %v2784_v42  ;;  %v19211_v49 = vand.u32 %v17719_v47, %v18090_v4  ;;  %v17696_v47 = vld [vmem:[%s18111_s27 + $0x190] sm:$0xff]  }
 0x230   : > { %15415 = vmatprep.mubr.msk.bf16.mxu1 %vm1265_vm3, %v18557_v12  ;;  %v2786_v12 = vrot.slane %v18612_v13, 1  ;;  %v8569_v13 = vrot.slane %v17687_v50, 2 }
 0x231   : > { %16247 = vmatprep.subr.bf16.mxu0 %v19211_v49 }
 0x232   : > { %16034 = vmatmul.mubr.msk.bf16.gmra.mrb[60].mxu0 %vm1265_vm3, %v8560_v8  ;;  %v2787_v40 = vsel %vm1471_vm1, %v2784_v42, %v2786_v12  ;;  %v2789_v61 = vsel %vm1471_vm1, %v2786_v12, %v2788_v1  ;;  %v8571_v8 = vrot.slane %v17688_v3, 2  ;;  %v2794_v42 = vrot.slane %v18651_v48, 1 }
 0x233   : > { %16037 = vmatprep.mubr.msk.bf16.mxu0 %vm1265_vm3, %v8562_v5  ;;  %v8575_v12 = vrot.slane %v17690_v27, 2  ;;  %v2804_v3 = vrot.slane %v18694_v20, 1  ;;  %v2806_v20 = vrot.slane %v18699_v21, 1 }
 0x234   : > { %v8572_v5 = vsel %vm1470_vm0, %v8569_v13, %v8571_v8  ;;  %v2795_v4 = vsel %vm1471_vm1, %v2792_v28, %v2794_v42  ;;  %v2797_v48 = vsel %vm1471_vm1, %v2794_v42, %v2796_v23 }
 0x235   : > { %v2807_v27 = vsel %vm1471_vm1, %v2804_v3, %v2806_v20 }
 0x237   : > { %15416 = vmatmul.mubr.msk.bf16.gmra.mrb[132].mxu1 %vm1265_vm3, %v18562_v38  ;;  %v8567_v38 = vrot.slane %v17686_v46, 2  ;;  %v8576_v46 = vsel %vm1470_vm0, %v8573_v11, %v8575_v12 }
 0x238   : > { %15421 = vmatprep.mubr.msk.bf16.mxu1 %vm1265_vm3, %v2785_v18  ;;  %v8574_v18 = vsel %vm1470_vm0, %v8571_v8, %v8573_v11  ;;  %v2808_v11 = vrot.slane %v18710_v31, 1  ;;  %v2810_v31 = vrot.slane %v18715_v32, 1 }
 0x239   : > { %v8568_v59 = vsel %vm1470_vm0, %v8565_v26, %v8567_v38  ;;  %v8570_v22 = vsel %vm1470_vm0, %v8567_v38, %v8569_v13  ;;  %v17691_v26 = vld [vmem:[%s18111_s27 + $0x168] sm:$0xff]   ;;  %v2799_v38 = vsel %vm1471_vm1, %v2796_v23, %v2798_v57  ;;  %v8587_v23 = vrot.slane %v17696_v47, 2 }
 0x23a   : > { %16038 = vmatmul.mubr.msk.bf16.gmra.mrb[64].mxu0 %vm1265_vm3, %v8564_v30  ;;  %v8577_v30 = vrot.slane %v17691_v26, 2 }
 0x23b   : > { %16041 = vmatprep.mubr.msk.bf16.mxu0 %vm1265_vm3, %v8566_v35  ;;  %v2800_v35 = vrot.slane %v18678_v7, 1  ;;  %v2802_v7 = vrot.slane %v18683_v9, 1 }
 0x23c   : > { %v8578_v50 = vsel %vm1470_vm0, %v8575_v12, %v8577_v30  ;;  %v2812_v12 = vrot.slane %v18726_v43, 1  ;;  %v2814_v43 = vrot.slane %v18731_v44, 1 }
 0x23d   : > { %v2801_v13 = vsel %vm1471_vm1, %v2798_v57, %v2800_v35  ;;  %v2803_v55 = vsel %vm1471_vm1, %v2800_v35, %v2802_v7  ;;  %v2805_v8 = vsel %vm1471_vm1, %v2802_v7, %v2804_v3  ;;  %v2811_v57 = vsel %vm1471_vm1, %v2808_v11, %v2810_v31 }
 0x23e   : > { %v2820_v3 = vrot.slane %v18758_v2, 1  ;;  %v2822_v2 = vrot.slane %v18763_v10, 1 }
 0x23f   : > { %15422 = vmatmul.mubr.msk.bf16.vlgmr.msra.gmra.mrb[0].mxu1 %vm1265_vm3, %v2787_v40  ;;  %v17693_v40 = vld [vmem:[%s18111_s27 + $0x178] sm:$0xff]  }
 0x240   : > { %15558 = vmatpush3.bf16.msra.mxu1 %v18926_v60  ;;  %15425 = vmatprep.mubr.msk.bf16.mxu1 %vm1265_vm3, %v2789_v61  ;;  %v2791_v60 = vsel %vm1471_vm1, %v2788_v1, %v2790_v39  ;;  %v17692_v1 = vld [vmem:[%s18111_s27 + $0x170] sm:$0xff]   ;;  %v8581_v58 = vrot.slane %v17693_v40, 2  ;;  %v2816_v40 = vrot.slane %v18742_v53, 1  ;;  %v2818_v53 = vrot.slane %v18747_v54, 1 }
 0x241   : > { %16385 = vmatprep.subr.bf16.mxu1 %v18096_v6  ;;  %v8579_v61 = vrot.slane %v17692_v1, 2  ;;  %v2813_v1 = vsel %vm1471_vm1, %v2810_v31, %v2812_v12 }
 0x242   : > { %16042 = vmatmul.mubr.msk.bf16.gmra.mrb[68].mxu0 %vm1265_vm3, %v8568_v59  ;;  %v17694_v59 = vld [vmem:[%s18111_s27 + $0x180] sm:$0xff]   ;;  %v2817_v7 = vsel %vm1471_vm1, %v2814_v43, %v2816_v40 }
 0x243   : > { %16045 = vmatprep.mubr.msk.bf16.mxu0 %vm1265_vm3, %v8570_v22  ;;  %v8580_v39 = vsel %vm1470_vm0, %v8577_v30, %v8579_v61  ;;  %v8582_v28 = vsel %vm1470_vm0, %v8579_v61, %v8581_v58  ;;  %v17695_v22 = vld [vmem:[%s18111_s27 + $0x188] sm:$0xff]   ;;  %v17701_v61 = vld [vmem:[%s18111_s27 + $0x1b8] sm:$0xff]  }
 0x244   : > { %v8585_v9 = vrot.slane %v17695_v22, 2  ;;  %v17699_v30 = vld [vmem:[%s18111_s27 + $0x1a8] sm:$0xff]   ;;  %v8597_v44 = vrot.slane %v17701_v61, 2  ;;  %v2836_v61 = vrot.slane %v18822_v15, 1  ;;  %v2838_v15 = vrot.slane %v18827_v16, 1 }
 0x245   : > { %v8593_v32 = vrot.slane %v17699_v30, 2  ;;  %v17703_v22 = vld [vmem:[%s18111_s27 + $0x1c8] sm:$0xff]  }
 0x246   : > { %v8588_v26 = vsel %vm1470_vm0, %v8585_v9, %v8587_v23  ;;  %v8601_v54 = vrot.slane %v17703_v22, 2  ;;  %v17713_v22 = vld [vmem:[%s18111_s27 + $0x218] sm:$0xff]  }
 0x247   : > { %15426 = vmatmul.mubr.msk.bf16.gmra.mrb[4].mxu1 %vm1265_vm3, %v2791_v60  ;;  %v8583_v60 = vrot.slane %v17694_v59, 2  ;;  %v17702_v59 = vld [vmem:[%s18111_s27 + $0x1c0] sm:$0xff]   ;;  %v8621_v16 = vrot.slane %v17713_v22, 2 }
 0x248   : > { %15429 = vmatprep.mubr.msk.bf16.mxu1 %vm1265_vm3, %v2793_v41 }
 0x249   : > { %v8584_v41 = vsel %vm1470_vm0, %v8581_v58, %v8583_v60  ;;  %v8586_v42 = vsel %vm1470_vm0, %v8583_v60, %v8585_v9  ;;  %v8599_v60 = vrot.slane %v17702_v59, 2  ;;  %v17712_v59 = vld [vmem:[%s18111_s27 + $0x210] sm:$0xff]  }
 0x24a   : > { %16046 = vmatmul.mubr.msk.bf16.gmra.mrb[72].mxu0 %vm1265_vm3, %v8572_v5  ;;  %v17697_v5 = vld [vmem:[%s18111_s27 + $0x198] sm:$0xff]  }
 0x24b   : > { %16049 = vmatprep.mubr.msk.bf16.mxu0 %vm1265_vm3, %v8574_v18  ;;  %v2809_v18 = vsel %vm1471_vm1, %v2806_v20, %v2808_v11  ;;  %v8589_v21 = vrot.slane %v17697_v5, 2  ;;  %v8600_v9 = vsel %vm1470_vm0, %v8597_v44, %v8599_v60  ;;  %v17704_v20 = vld [vmem:[%s18111_s27 + $0x1d0] sm:$0xff]   ;;  %v8602_v47 = vsel %vm1470_vm0, %v8599_v60, %v8601_v54  ;;  %v17705_v11 = vld [vmem:[%s18111_s27 + $0x1d8] sm:$0xff]  }
 0x24c   : > { %v8603_v5 = vrot.slane %v17704_v20, 2  ;;  %v8605_v10 = vrot.slane %v17705_v11, 2  ;;  %v8619_v60 = vrot.slane %v17712_v59, 2 }
 0x24e   : > { %v8606_v31 = vsel %vm1470_vm0, %v8603_v5, %v8605_v10  ;;  %v8622_v20 = vsel %vm1470_vm0, %v8619_v60, %v8621_v16 }
 0x24f   : > { %15430 = vmatmul.mubr.msk.bf16.gmra.mrb[8].mxu1 %vm1265_vm3, %v2795_v4  ;;  %v17698_v4 = vld [vmem:[%s18111_s27 + $0x1a0] sm:$0xff]  }
 0x250   : > { %15433 = vmatprep.mubr.msk.bf16.mxu1 %vm1265_vm3, %v2797_v48  ;;  %v8590_v48 = vsel %vm1470_vm0, %v8587_v23, %v8589_v21  ;;  %v8604_v23 = vsel %vm1470_vm0, %v8601_v54, %v8603_v5  ;;  %v2846_v5 = vrot.slane %v18861_v63, 1  ;;  %v9567_v63 = vshrl.u32 %v18868_v17, 16 }
 0x252   : > { %16050 = vmatmul.mubr.msk.bf16.gmra.mrb[76].mxu0 %vm1265_vm3, %v8576_v46  ;;  %v8591_v46 = vrot.slane %v17698_v4, 2 }
 0x253   : > { %16053 = vmatprep.mubr.msk.bf16.mxu0 %vm1265_vm3, %v8578_v50  ;;  %v17700_v50 = vld [vmem:[%s18111_s27 + $0x1b0] sm:$0xff]  }
 0x254   : > { %v8592_v35 = vsel %vm1470_vm0, %v8589_v21, %v8591_v46  ;;  %v8595_v58 = vrot.slane %v17700_v50, 2  ;;  %v2828_v21 = vrot.slane %v18790_v62, 1  ;;  %v2830_v62 = vrot.slane %v18795_v37, 1 }
 0x257   : > { %15434 = vmatmul.mubr.msk.bf16.gmra.mrb[12].mxu1 %vm1265_vm3, %v2799_v38  ;;  %v8594_v38 = vsel %vm1470_vm0, %v8591_v46, %v8593_v32  ;;  %v2832_v46 = vrot.slane %v18806_v52, 1  ;;  %v2834_v52 = vrot.slane %v18811_v56, 1 }
 0x258   : > { %15437 = vmatprep.mubr.msk.bf16.mxu1 %vm1265_vm3, %v2801_v13  ;;  %v2815_v13 = vsel %vm1471_vm1, %v2812_v12, %v2814_v43  ;;  %v2831_v43 = vsel %vm1471_vm1, %v2828_v21, %v2830_v62 }
 0x259   : > { %v2833_v50 = vsel %vm1471_vm1, %v2830_v62, %v2832_v46 }
 0x25a   : > { %16054 = vmatmul.mubr.msk.bf16.gmra.mrb[80].mxu0 %vm1265_vm3, %v8580_v39  ;;  %v8596_v39 = vsel %vm1470_vm0, %v8593_v32, %v8595_v58  ;;  %v17709_v32 = vld [vmem:[%s18111_s27 + $0x1f8] sm:$0xff]  }
 0x25b   : > { %16057 = vmatprep.mubr.msk.bf16.mxu0 %vm1265_vm3, %v8582_v28  ;;  %v8598_v28 = vsel %vm1470_vm0, %v8595_v58, %v8597_v44  ;;  %v8613_v37 = vrot.slane %v17709_v32, 2  ;;  %v17711_v58 = vld [vmem:[%s18111_s27 + $0x208] sm:$0xff]  }
 0x25c   : > { %v8617_v56 = vrot.slane %v17711_v58, 2 }
 0x25e   : > { %v8620_v54 = vsel %vm1470_vm0, %v8617_v56, %v8619_v60  ;;  %v21313_v60 = vld [vmem:[#allocation6_spill] sm:$0xff] }
 0x25f   : > { %15438 = vmatmul.mubr.msk.bf16.gmra.mrb[16].mxu1 %vm1265_vm3, %v2803_v55  ;;  %v2819_v55 = vsel %vm1471_vm1, %v2816_v40, %v2818_v53 }
 0x260   : > { %15441 = vmatprep.mubr.msk.bf16.mxu1 %vm1265_vm3, %v2805_v8  ;;  %v2821_v8 = vsel %vm1471_vm1, %v2818_v53, %v2820_v3  ;;  %v2837_v53 = vsel %vm1471_vm1, %v2834_v52, %v2836_v61 }
 0x262   : > { %16058 = vmatmul.mubr.msk.bf16.gmra.mrb[84].mxu0 %vm1265_vm3, %v8584_v41  ;;  %v2824_v41 = vrot.slane %v18774_v24, 1  ;;  %v2826_v24 = vrot.slane %v18779_v25, 1 }
 0x263   : > { %16061 = vmatprep.mubr.msk.bf16.mxu0 %vm1265_vm3, %v8586_v42  ;;  %v2823_v42 = vsel %vm1471_vm1, %v2820_v3, %v2822_v2  ;;  %v2840_v3 = vrot.slane %v18838_v33, 1  ;;  %v2842_v33 = vrot.slane %v18843_v34, 1 }
 0x264   : > { %v2827_v4 = vsel %vm1471_vm1, %v2824_v41, %v2826_v24 }
 0x267   : > { %15442 = vmatmul.mubr.msk.bf16.gmra.mrb[20].mxu1 %vm1265_vm3, %v2807_v27  ;;  %v2825_v27 = vsel %vm1471_vm1, %v2822_v2, %v2824_v41  ;;  %v17714_v2 = vld [vmem:[%s18111_s27 + $0x220] sm:$0xff]   ;;  %v17715_v41 = vld [vmem:[%s18111_s27 + $0x228] sm:$0xff]  }
 0x268   : > { %15445 = vmatprep.mubr.msk.bf16.mxu1 %vm1265_vm3, %v2809_v18  ;;  %v17706_v18 = vld [vmem:[%s18111_s27 + $0x1e0] sm:$0xff]   ;;  %v8623_v11 = vrot.slane %v17714_v2, 2  ;;  %v8625_v34 = vrot.slane %v17715_v41, 2  ;;  %v21315_v41 = vld [vmem:[#allocation11_spill] sm:$0xff] }
 0x269   : > { %v8607_v12 = vrot.slane %v17706_v18, 2 }
 0x26a   : > { %16062 = vmatmul.mubr.msk.bf16.gmra.mrb[88].mxu0 %vm1265_vm3, %v8588_v26  ;;  %v17707_v26 = vld [vmem:[%s18111_s27 + $0x1e8] sm:$0xff]  }
 0x26b   : > { %16065 = vmatprep.mubr.msk.bf16.mxu0 %vm1265_vm3, %v8590_v48  ;;  %v2829_v48 = vsel %vm1471_vm1, %v2826_v24, %v2828_v21  ;;  %v8609_v25 = vrot.slane %v17707_v26, 2  ;;  %v8608_v30 = vsel %vm1470_vm0, %v8605_v10, %v8607_v12  ;;  %v2848_v10 = vrot.slane %v18878_v29, 1  ;;  %v17717_v24 = vld [vmem:[%s18111_s27 + $0x238] sm:$0xff]  }
 0x26c   : > { %v8629_v26 = vrot.slane %v17717_v24, 2  ;;  %v9575_v29 = vshrl.u32 %v18871_v19, 16 }
 0x26f   : > { %15446 = vmatmul.mubr.msk.bf16.gmra.mrb[24].mxu1 %vm1265_vm3, %v2811_v57  ;;  %v17708_v57 = vld [vmem:[%s18111_s27 + $0x1f0] sm:$0xff]  }
 0x270   : > { %15449 = vmatprep.mubr.msk.bf16.mxu1 %vm1265_vm3, %v2813_v1  ;;  %v8610_v1 = vsel %vm1470_vm0, %v8607_v12, %v8609_v25  ;;  %v9578_v12 = vshll.u32 %v18871_v19, 16 }
 0x272   : > { %16066 = vmatmul.mubr.msk.bf16.gmra.mrb[92].mxu0 %vm1265_vm3, %v8592_v35  ;;  %v8611_v35 = vrot.slane %v17708_v57, 2  ;;  %v2852_v57 = vrot.slane %v18900_v0, 1  ;;  %v9580_v32 = vrot.slane %v9578_v12, 3  ;;  %v9593_v0 = vshrl.u32 %v18893_v14, 16 }
 0x273   : > { %16069 = vmatprep.mubr.msk.bf16.mxu0 %vm1265_vm3, %v8594_v38  ;;  %v17710_v38 = vld [vmem:[%s18111_s27 + $0x200] sm:$0xff]  }
 0x274   : > { %v8612_v40 = vsel %vm1470_vm0, %v8609_v25, %v8611_v35  ;;  %v8615_v44 = vrot.slane %v17710_v38, 2  ;;  %v21310_v38 = vld [vmem:[#allocation4_spill] sm:$0xff] }
 0x277   : > { %15450 = vmatmul.mubr.msk.bf16.gmra.mrb[28].mxu1 %vm1265_vm3, %v2815_v13  ;;  %v8614_v13 = vsel %vm1470_vm0, %v8611_v35, %v8613_v37  ;;  %v9584_v35 = vshrl.u32 %v18889_v45, 16 }
 0x278   : > { %15453 = vmatprep.mubr.msk.bf16.mxu1 %vm1265_vm3, %v2817_v7  ;;  %v2835_v7 = vsel %vm1471_vm1, %v2832_v46, %v2834_v52  ;;  %v9569_v46 = vrot.slane %v9567_v63, 2  ;;  %v21318_v63 = vld [vmem:[#allocation12_spill] sm:$0xff] }
 0x279   : > { %v9586_v58 = vrot.slane %v9584_v35, 2  ;;  %v21321_v35 = vld [vmem:[#allocation14_spill] sm:$0xff] }
 0x27a   : > { %16070 = vmatmul.mubr.msk.bf16.gmra.mrb[96].mxu0 %vm1265_vm3, %v8596_v39  ;;  %v8616_v39 = vsel %vm1470_vm0, %v8613_v37, %v8615_v44 }
 0x27b   : > { %16073 = vmatprep.mubr.msk.bf16.mxu0 %vm1265_vm3, %v8598_v28  ;;  %v8618_v28 = vsel %vm1470_vm0, %v8615_v44, %v8617_v56  ;;  %v21311_v44 = vld [vmem:[#allocation7_spill] sm:$0xff]  ;;  %v9595_v56 = vrot.slane %v9593_v0, 2 }
 0x27f   : > { %15454 = vmatmul.mubr.msk.bf16.gmra.mrb[32].mxu1 %vm1265_vm3, %v2819_v55  ;;  %v2839_v55 = vsel %vm1471_vm1, %v2836_v61, %v2838_v15  ;;  %v2854_v61 = vrot.slane %v21310_v38, 1 }
 0x280   : > { %15457 = vmatprep.mubr.msk.bf16.mxu1 %vm1265_vm3, %v2821_v8  ;;  %v2841_v8 = vsel %vm1471_vm1, %v2838_v15, %v2840_v3 }
 0x282   : > { %16074 = vmatmul.mubr.msk.bf16.gmra.mrb[100].mxu0 %vm1265_vm3, %v8600_v9  ;;  %v2844_v9 = vrot.slane %v18854_v51, 1  ;;  %v8624_v51 = vsel %vm1470_vm0, %v8621_v16, %v8623_v11  ;;  %v9614_v16 = vshll.u32 %v21313_v60, 16 }
 0x283   : > { %16077 = vmatprep.mubr.msk.bf16.mxu0 %vm1265_vm3, %v8602_v47  ;;  %v2843_v47 = vsel %vm1471_vm1, %v2840_v3, %v2842_v33  ;;  %v21312_v3 = vld [vmem:[#allocation5_spill] sm:$0xff] }
 0x284   : > { %v2847_v18 = vsel %vm1471_vm1, %v2844_v9, %v2846_v5  ;;  %v9605_v22 = vshll.u32 %v21312_v3, 16 }
 0x287   : > { %15458 = vmatmul.mubr.msk.bf16.gmra.mrb[36].mxu1 %vm1265_vm3, %v2823_v42  ;;  %v2845_v42 = vsel %vm1471_vm1, %v2842_v33, %v2844_v9  ;;  %v21314_v33 = vld [vmem:[#allocation8_spill] sm:$0xff] }
 0x288   : > { %15461 = vmatprep.mubr.msk.bf16.mxu1 %vm1265_vm3, %v2825_v27  ;;  %v17716_v27 = vld [vmem:[%s18111_s27 + $0x230] sm:$0xff]  }
 0x289   : > { %v8627_v21 = vrot.slane %v17716_v27, 2 }
 0x28a   : > { %16078 = vmatmul.mubr.msk.bf16.gmra.mrb[104].mxu0 %vm1265_vm3, %v8604_v23  ;;  %v8626_v23 = vsel %vm1470_vm0, %v8623_v11, %v8625_v34 }
 0x28b   : > { %16081 = vmatprep.mubr.msk.bf16.mxu0 %vm1265_vm3, %v8606_v31  ;;  %v2849_v31 = vsel %vm1471_vm1, %v2846_v5, %v2848_v10  ;;  %v8628_v25 = vsel %vm1470_vm0, %v8625_v34, %v8627_v21  ;;  %v8630_v62 = vsel %vm1470_vm0, %v8627_v21, %v8629_v26  ;;  %v9616_v34 = vrot.slane %v9614_v16, 3  ;;  %v21317_v21 = vld [vmem:[#allocation10_spill] sm:$0xff] }
 0x28f   : > { %15462 = vmatmul.mubr.msk.bf16.gmra.mrb[40].mxu1 %vm1265_vm3, %v2827_v4  ;;  %v9570_v4 = vshll.u32 %v18868_v17, 16  ;;  %v9577_v17 = vrot.slane %v9575_v29, 2 }
 0x290   : > { %15465 = vmatprep.mubr.msk.bf16.mxu1 %vm1265_vm3, %v2829_v48  ;;  %v2850_v48 = vrot.slane %v18883_v36, 1 }
 0x291   : > { %v9581_v52 = vor.u32 %v9580_v32, %v9577_v17  ;;  %v21320_v32 = vld [vmem:[#allocation13_spill] sm:$0xff] }
 0x292   : > { %16082 = vmatmul.mubr.msk.bf16.gmra.mrb[108].mxu0 %vm1265_vm3, %v8608_v30  ;;  %v17718_v30 = vld [vmem:[%s18111_s27 + $0x240] ss:$0 sps:$4 sm:$0x33]   ;;  %v2851_v19 = vsel %vm1471_vm1, %v2848_v10, %v2850_v48  ;;  %v2853_v36 = vsel %vm1471_vm1, %v2850_v48, %v2852_v57  ;;  %v21316_v10 = vld [vmem:[#allocation9_spill] sm:$0xff]  ;;  %v21319_v48 = vld [vmem:[#allocation15_spill] sm:$0xff] }
 0x293   : > { %16085 = vmatprep.mubr.msk.bf16.mxu0 %vm1265_vm3, %v8610_v1  ;;  %v9572_v1 = vrot.slane %v9570_v4, 3  ;;  %v9620_v24 = vshrl.u32 %v21316_v10, 16 }
 0x295   : > { %v9573_v37 = vor.u32 %v9572_v1, %v9569_v46  ;;  %v9622_v29 = vrot.slane %v9620_v24, 2  ;;  %v21329_v24 = vld [vmem:[#allocation22_spill] sm:$0xff] }
 0x297   : > { %15466 = vmatmul.mubr.msk.bf16.gmra.mrb[44].mxu1 %vm1265_vm3, %v2831_v43  ;;  %v8631_v43 = vrot.slane %v17718_v30, 2 }
 0x298   : > { %15469 = vmatprep.mubr.msk.bf16.mxu1 %vm1265_vm3, %v2833_v50  ;;  %v9587_v50 = vshll.u32 %v18889_v45, 16  ;;  %v9582_v45 = vsel %vm9565_vm5, %v9573_v37, %v9581_v52  ;;  %v9650_v37 = vshll.u32 %v21321_v35, 16 }
 0x29a   : > { %16086 = vmatmul.mubr.msk.bf16.gmra.mrb[112].mxu0 %vm1265_vm3, %v8612_v40  ;;  %v9596_v40 = vshll.u32 %v18893_v14, 16  ;;  %v2855_v14 = vsel %vm1471_vm1, %v2852_v57, %v2854_v61 }
 0x29b   : > { %16089 = vmatprep.mubr.msk.bf16.mxu0 %vm1265_vm3, %v8614_v13  ;;  %v8632_v13 = vsel %vm1470_vm0, %v8629_v26, %v8631_v43  ;;  %v9632_v26 = vshll.u32 %v21317_v21, 16  ;;  %v9641_v43 = vshll.u32 %v21320_v32, 16 }
 0x29c   : > { %v9598_v15 = vrot.slane %v9596_v40, 3 }
 0x29d   : > { %v9634_v57 = vrot.slane %v9632_v26, 3 }
 0x29f   : > { %15470 = vmatmul.mubr.msk.bf16.gmra.mrb[48].mxu1 %vm1265_vm3, %v2835_v7  ;;  %v9589_v7 = vrot.slane %v9587_v50, 3  ;;  %v9647_v50 = vshrl.u32 %v21321_v35, 16  ;;  %v21334_v35 = vld [vmem:[#allocation28_spill] sm:$0xff] }
 0x2a0   : > { %15473 = vmatprep.mubr.msk.bf16.mxu1 %vm1265_vm3, %v2837_v53  ;;  %v2856_v53 = vrot.slane %v21311_v44, 1 }
 0x2a1   : > { %v9649_v44 = vrot.slane %v9647_v50, 2  ;;  %v2878_v50 = vrot.slane %v21334_v35, 1 }
 0x2a2   : > { %16090 = vmatmul.mubr.msk.bf16.gmra.mrb[116].mxu0 %vm1265_vm3, %v8616_v39  ;;  %v9590_v39 = vor.u32 %v9589_v7, %v9586_v58  ;;  %v2857_v59 = vsel %vm1471_vm1, %v2854_v61, %v2856_v53  ;;  %v9643_v61 = vrot.slane %v9641_v43, 3 }
 0x2a3   : > { %16093 = vmatprep.mubr.msk.bf16.mxu0 %vm1265_vm3, %v8618_v28  ;;  %v9602_v28 = vshrl.u32 %v21312_v3, 16 }
 0x2a4   : > { %v9591_v2 = vsel %vm9565_vm5, %v9581_v52, %v9590_v39  ;;  %v21322_v52 = vld [vmem:[#allocation16_spill] sm:$0xff] }
 0x2a5   : > { %v9604_v9 = vrot.slane %v9602_v28, 2  ;;  %v2866_v0 = vrot.slane %v21322_v52, 1  ;;  %v21325_v28 = vld [vmem:[#allocation18_spill] sm:$0xff] }
 0x2a7   : > { %15474 = vmatmul.mubr.msk.bf16.gmra.mrb[52].mxu1 %vm1265_vm3, %v2839_v55  ;;  %v9599_v55 = vor.u32 %v9598_v15, %v9595_v56 }
 0x2a8   : > { %15477 = vmatprep.mubr.msk.bf16.mxu1 %vm1265_vm3, %v2841_v8  ;;  %v9611_v8 = vshrl.u32 %v21313_v60, 16  ;;  %v21326_v60 = vld [vmem:[#allocation20_spill] sm:$0xff] }
 0x2a9   : > { %v9600_v11 = vsel %vm9565_vm5, %v9590_v39, %v9599_v55 }
 0x2aa   : > { %16094 = vmatmul.mubr.msk.bf16.gmra.mrb[120].mxu0 %vm1265_vm3, %v8620_v54  ;;  %v2858_v54 = vrot.slane %v21314_v33, 1 }
 0x2ab   : > { %16097 = vmatprep.mubr.msk.bf16.mxu0 %vm1265_vm3, %v8622_v20  ;;  %v9607_v20 = vrot.slane %v9605_v22, 3  ;;  %v9665_v22 = vshrl.u32 %v21325_v28, 16 }
 0x2ac   : > { %v2859_v5 = vsel %vm1471_vm1, %v2856_v53, %v2858_v54  ;;  %v9652_v53 = vrot.slane %v9650_v37, 3 }
 0x2ae   : > { %v9653_v3 = vor.u32 %v9652_v53, %v9649_v44 }
 0x2af   : > { %15478 = vmatmul.mubr.msk.bf16.gmra.mrb[56].mxu1 %vm1265_vm3, %v2843_v47  ;;  %v2860_v47 = vrot.slane %v21315_v41, 1  ;;  %v9667_v41 = vrot.slane %v9665_v22, 2 }
 0x2b0   : > { %15481 = vmatprep.mubr.msk.bf16.mxu1 %vm1265_vm3, %v2845_v42  ;;  %v9613_v42 = vrot.slane %v9611_v8, 2  ;;  %v2870_v8 = vrot.slane %v21326_v60, 1 }
 0x2b1   : > { %v2861_v27 = vsel %vm1471_vm1, %v2858_v54, %v2860_v47 }
 0x2b2   : > { %16098 = vmatmul.mubr.msk.bf16.gmra.mrb[124].mxu0 %vm1265_vm3, %v8624_v51  ;;  %v9608_v51 = vor.u32 %v9607_v20, %v9604_v9 }
 0x2b3   : > { %16101 = vmatprep.mubr.msk.bf16.mxu0 %vm1265_vm3, %v8626_v23  ;;  %v9623_v23 = vshll.u32 %v21316_v10, 16 }
 0x2b4   : > { %v9609_v4 = vsel %vm9565_vm5, %v9599_v55, %v9608_v51  ;;  %v9668_v55 = vshll.u32 %v21325_v28, 16  ;;  %v21338_v28 = vld [vmem:[#allocation32_spill] sm:$0xff] }
 0x2b5   : > { %v9625_v12 = vrot.slane %v9623_v23, 3  ;;  %v9683_v23 = vshrl.u32 %v21329_v24, 16  ;;  %v2882_v22 = vrot.slane %v21338_v28, 1 }
 0x2b7   : > { %15482 = vmatmul.mubr.msk.bf16.gmra.mrb[60].mxu1 %vm1265_vm3, %v2847_v18  ;;  %v9617_v18 = vor.u32 %v9616_v34, %v9613_v42  ;;  %v9626_v1 = vor.u32 %v9625_v12, %v9622_v29 }
 0x2b8   : > { %15485 = vmatprep.mubr.msk.bf16.mxu1 %vm1265_vm3, %v2849_v31  ;;  %v9629_v31 = vshrl.u32 %v21317_v21, 16  ;;  %v21330_v21 = vld [vmem:[#allocation24_spill] sm:$0xff] }
 0x2b9   : > { %v9627_v40 = vsel %vm9565_vm5, %v9617_v18, %v9626_v1 }
 0x2ba   : > { %16102 = vmatmul.mubr.msk.bf16.gmra.mrb[128].mxu0 %vm1265_vm3, %v8628_v25  ;;  %v2864_v25 = vrot.slane %v21319_v48, 1  ;;  %v9631_v30 = vrot.slane %v9629_v31, 2  ;;  %v2874_v31 = vrot.slane %v21330_v21, 1  ;;  %v9685_v48 = vrot.slane %v9683_v23, 2 }
 0x2bb   : > { %16105 = vmatprep.mubr.msk.bf16.mxu0 %vm1265_vm3, %v8630_v62  ;;  %v9618_v62 = vsel %vm9565_vm5, %v9608_v51, %v9617_v18  ;;  %v9686_v18 = vshll.u32 %v21329_v24, 16  ;;  %v21342_v24 = vld [vmem:[#allocation36_spill] sm:$0xff] }
 0x2bc   : > { %v2886_v23 = vrot.slane %v21342_v24, 1 }
 0x2bf   : > { %15486 = vmatmul.mubr.msk.bf16.gmra.mrb[64].mxu1 %vm1265_vm3, %v2851_v19  ;;  %v9638_v19 = vshrl.u32 %v21320_v32, 16 }
 0x2c0   : > { %15489 = vmatprep.mubr.msk.bf16.mxu1 %vm1265_vm3, %v2853_v36  ;;  %v9635_v36 = vor.u32 %v9634_v57, %v9631_v30 }
 0x2c1   : > { %v9640_v38 = vrot.slane %v9638_v19, 2  ;;  %v21333_v19 = vld [vmem:[#allocation26_spill] sm:$0xff] }
 0x2c2   : > { %16106 = vmatmul.mubr.msk.bf16.gmra.mrb[132].mxu0 %vm1265_vm3, %v8632_v13  ;;  %v21323_v13 = vld [vmem:[#allocation19_spill] sm:$0xff]  ;;  %v9636_v7 = vsel %vm9565_vm5, %v9626_v1, %v9635_v36  ;;  %v9701_v43 = vshrl.u32 %v21333_v19, 16 }
 0x2c3   : > { %16111 = vmatprep.mubr.msk.bf16.mxu0 %vm1265_vm3, %v9582_v45  ;;  %v2868_v58 = vrot.slane %v21323_v13, 1  ;;  %v2867_v45 = vsel %vm1471_vm1, %v2864_v25, %v2866_v0  ;;  %v9644_v56 = vor.u32 %v9643_v61, %v9640_v38 }
 0x2c4   : > { %v9703_v13 = vrot.slane %v9701_v43, 2 }
 0x2c5   : > { %v2869_v15 = vsel %vm1471_vm1, %v2866_v0, %v2868_v58  ;;  %v9645_v16 = vsel %vm9565_vm5, %v9635_v36, %v9644_v56  ;;  %v9654_v20 = vsel %vm9565_vm5, %v9644_v56, %v9653_v3  ;;  %v9704_v36 = vshll.u32 %v21333_v19, 16  ;;  %v17818_v19 = vld [vmem:[%s18111_s27 + $0x1b0] sm:$0xff]  }
 0x2c6   : > { %v2890_v43 = vrot.slane %v17818_v19, 1 }
 0x2c7   : > { %15490 = vmatmul.mubr.msk.bf16.gmra.mrb[68].mxu1 %vm1265_vm3, %v2855_v14  ;;  %v21324_v14 = vld [vmem:[#allocation17_spill] sm:$0xff] }
 0x2c8   : > { %15493 = vmatprep.mubr.msk.bf16.mxu1 %vm1265_vm3, %v2857_v59  ;;  %v9656_v39 = vshrl.u32 %v21324_v14, 16  ;;  %v9659_v59 = vshll.u32 %v21324_v14, 16 }
 0x2ca   : > { %16112 = vmatmul.mubr.msk.bf16.vlgmr.msra.gmra.mrb[0].mxu0 %vm1265_vm3, %v9591_v2  ;;  %v9658_v33 = vrot.slane %v9656_v39, 2  ;;  %v9661_v54 = vrot.slane %v9659_v59, 3  ;;  %v21327_v2 = vld [vmem:[#allocation23_spill] sm:$0xff]  ;;  %v21337_v39 = vld [vmem:[#allocation30_spill] sm:$0xff] }
 0x2cb   : > { %16248 = vmatpush3.bf16.msra.mxu0 %v19211_v49  ;;  %16115 = vmatprep.mubr.msk.bf16.mxu0 %vm1265_vm3, %v9600_v11  ;;  %v2862_v49 = vrot.slane %v21318_v63, 1  ;;  %v2872_v9 = vrot.slane %v21327_v2, 1  ;;  %v2871_v11 = vsel %vm1471_vm1, %v2868_v58, %v2870_v8  ;;  %v9706_v58 = vrot.slane %v9704_v36, 3 }
 0x2cc   : > { %v9662_v42 = vor.u32 %v9661_v54, %v9658_v33  ;;  %v9719_v59 = vshrl.u32 %v21337_v39, 16 }
 0x2cd   : > { %v2863_v46 = vsel %vm1471_vm1, %v2860_v47, %v2862_v49  ;;  %v2865_v17 = vsel %vm1471_vm1, %v2862_v49, %v2864_v25  ;;  %v9670_v47 = vrot.slane %v9668_v55, 3  ;;  %v2873_v34 = vsel %vm1471_vm1, %v2870_v8, %v2872_v9 }
 0x2ce   : > { %v9663_v26 = vsel %vm9565_vm5, %v9653_v3, %v9662_v42  ;;  %v9688_v25 = vrot.slane %v9686_v18, 3  ;;  %v9707_v14 = vor.u32 %v9706_v58, %v9703_v13  ;;  %v9722_v3 = vshll.u32 %v21337_v39, 16  ;;  %v17821_v39 = vld [vmem:[%s18111_s27 + $0x1c0] sm:$0xff]  }
 0x2cf   : > { %15494 = vmatmul.mubr.msk.bf16.gmra.mrb[72].mxu1 %vm1265_vm3, %v2859_v5  ;;  %v21328_v5 = vld [vmem:[#allocation21_spill] sm:$0xff]  ;;  %v9671_v10 = vor.u32 %v9670_v47, %v9667_v41  ;;  %v9721_v2 = vrot.slane %v9719_v59, 2  ;;  %v2894_v59 = vrot.slane %v17821_v39, 1 }
 0x2d0   : > { %15497 = vmatprep.mubr.msk.bf16.mxu1 %vm1265_vm3, %v2861_v27  ;;  %v9674_v51 = vshrl.u32 %v21328_v5, 16  ;;  %v9677_v27 = vshll.u32 %v21328_v5, 16  ;;  %v9689_v32 = vor.u32 %v9688_v25, %v9685_v48 }
 0x2d1   : > { %v9672_v12 = vsel %vm9565_vm5, %v9662_v42, %v9671_v10 }
 0x2d2   : > { %16116 = vmatmul.mubr.msk.bf16.gmra.mrb[4].mxu0 %vm1265_vm3, %v9609_v4  ;;  %v9676_v63 = vrot.slane %v9674_v51, 2  ;;  %v9679_v49 = vrot.slane %v9677_v27, 3  ;;  %v21331_v4 = vld [vmem:[#allocation27_spill] sm:$0xff]  ;;  %v21341_v51 = vld [vmem:[#allocation34_spill] sm:$0xff] }
 0x2d3   : > { %16119 = vmatprep.mubr.msk.bf16.mxu0 %vm1265_vm3, %v9618_v62  ;;  %v2876_v29 = vrot.slane %v21331_v4, 1  ;;  %v2875_v62 = vsel %vm1471_vm1, %v2872_v9, %v2874_v31  ;;  %v9724_v9 = vrot.slane %v9722_v3, 3  ;;  %v9737_v27 = vshrl.u32 %v21341_v51, 16 }
 0x2d4   : > { %v9680_v30 = vor.u32 %v9679_v49, %v9676_v63 }
 0x2d5   : > { %v2877_v57 = vsel %vm1471_vm1, %v2874_v31, %v2876_v29  ;;  %v9725_v5 = vor.u32 %v9724_v9, %v9721_v2  ;;  %v9739_v4 = vrot.slane %v9737_v27, 2 }
 0x2d6   : > { %v9681_v37 = vsel %vm9565_vm5, %v9671_v10, %v9680_v30  ;;  %v9690_v61 = vsel %vm9565_vm5, %v9680_v30, %v9689_v32  ;;  %v9740_v10 = vshll.u32 %v21341_v51, 16  ;;  %v17825_v51 = vld [vmem:[%s18111_s27 + $0x1d0] sm:$0xff]  }
 0x2d7   : > { %15498 = vmatmul.mubr.msk.bf16.gmra.mrb[76].mxu1 %vm1265_vm3, %v2863_v46  ;;  %v21332_v46 = vld [vmem:[#allocation25_spill] sm:$0xff]  ;;  %v2898_v27 = vrot.slane %v17825_v51, 1 }
 0x2d8   : > { %15501 = vmatprep.mubr.msk.bf16.mxu1 %vm1265_vm3, %v2865_v17  ;;  %v9692_v1 = vshrl.u32 %v21332_v46, 16  ;;  %v9695_v17 = vshll.u32 %v21332_v46, 16 }
 0x2da   : > { %16120 = vmatmul.mubr.msk.bf16.gmra.mrb[8].mxu0 %vm1265_vm3, %v9627_v40  ;;  %v9694_v52 = vrot.slane %v9692_v1, 2  ;;  %v9697_v0 = vrot.slane %v9695_v17, 3  ;;  %v21335_v40 = vld [vmem:[#allocation31_spill] sm:$0xff] }
 0x2db   : > { %16123 = vmatprep.mubr.msk.bf16.mxu0 %vm1265_vm3, %v9636_v7  ;;  %v2880_v38 = vrot.slane %v21335_v40, 1  ;;  %v2879_v7 = vsel %vm1471_vm1, %v2876_v29, %v2878_v50  ;;  %v9742_v29 = vrot.slane %v9740_v10, 3  ;;  %v17817_v1 = vld [vmem:[%s18111_s27 + $0xc8] sm:$0xff]  }
 0x2dc   : > { %v9698_v44 = vor.u32 %v9697_v0, %v9694_v52  ;;  %v9755_v17 = vshrl.u32 %v17817_v1, 16 }
 0x2dd   : > { %v2881_v53 = vsel %vm1471_vm1, %v2878_v50, %v2880_v38  ;;  %v9743_v46 = vor.u32 %v9742_v29, %v9739_v4 }
 0x2de   : > { %v9699_v55 = vsel %vm9565_vm5, %v9689_v32, %v9698_v44  ;;  %v9708_v54 = vsel %vm9565_vm5, %v9698_v44, %v9707_v14  ;;  %v9758_v32 = vshll.u32 %v17817_v1, 16  ;;  %v9757_v40 = vrot.slane %v9755_v17, 2  ;;  %v17829_v1 = vld [vmem:[%s18111_s27 + $0x1e0] sm:$0xff]  }
 0x2df   : > { %15502 = vmatmul.mubr.msk.bf16.gmra.mrb[80].mxu1 %vm1265_vm3, %v2867_v45  ;;  %v21336_v45 = vld [vmem:[#allocation29_spill] sm:$0xff]  ;;  %v2902_v17 = vrot.slane %v17829_v1, 1 }
 0x2e0   : > { %15505 = vmatprep.mubr.msk.bf16.mxu1 %vm1265_vm3, %v2869_v15  ;;  %v9710_v56 = vshrl.u32 %v21336_v45, 16  ;;  %v9713_v15 = vshll.u32 %v21336_v45, 16 }
 0x2e2   : > { %16124 = vmatmul.mubr.msk.bf16.gmra.mrb[12].mxu0 %vm1265_vm3, %v9645_v16  ;;  %v9712_v60 = vrot.slane %v9710_v56, 2  ;;  %v9715_v8 = vrot.slane %v9713_v15, 3  ;;  %v21339_v16 = vld [vmem:[#allocation35_spill] sm:$0xff]  ;;  %v17820_v56 = vld [vmem:[%s18111_s27 + $0xd8] sm:$0xff]  }
 0x2e3   : > { %16127 = vmatprep.mubr.msk.bf16.mxu0 %vm1265_vm3, %v9654_v20  ;;  %v2884_v33 = vrot.slane %v21339_v16, 1  ;;  %v2883_v20 = vsel %vm1471_vm1, %v2880_v38, %v2882_v22  ;;  %v9760_v38 = vrot.slane %v9758_v32, 3  ;;  %v9773_v15 = vshrl.u32 %v17820_v56, 16 }
 0x2e4   : > { %v9716_v41 = vor.u32 %v9715_v8, %v9712_v60 }
 0x2e5   : > { %v2885_v47 = vsel %vm1471_vm1, %v2882_v22, %v2884_v33  ;;  %v9761_v45 = vor.u32 %v9760_v38, %v9757_v40  ;;  %v9775_v16 = vrot.slane %v9773_v15, 2 }
 0x2e6   : > { %v9717_v18 = vsel %vm9565_vm5, %v9707_v14, %v9716_v41  ;;  %v9726_v49 = vsel %vm9565_vm5, %v9716_v41, %v9725_v5  ;;  %v9776_v14 = vshll.u32 %v17820_v56, 16  ;;  %v17833_v56 = vld [vmem:[%s18111_s27 + $0x1f0] sm:$0xff]  }
 0x2e7   : > { %15506 = vmatmul.mubr.msk.bf16.gmra.mrb[84].mxu1 %vm1265_vm3, %v2871_v11  ;;  %v21340_v11 = vld [vmem:[#allocation33_spill] sm:$0xff]  ;;  %v2906_v15 = vrot.slane %v17833_v56, 1 }
 0x2e8   : > { %15509 = vmatprep.mubr.msk.bf16.mxu1 %vm1265_vm3, %v2873_v34  ;;  %v9728_v42 = vshrl.u32 %v21340_v11, 16  ;;  %v9731_v34 = vshll.u32 %v21340_v11, 16 }
 0x2ea   : > { %16128 = vmatmul.mubr.msk.bf16.gmra.mrb[16].mxu0 %vm1265_vm3, %v9663_v26  ;;  %v9730_v21 = vrot.slane %v9728_v42, 2  ;;  %v9733_v31 = vrot.slane %v9731_v34, 3  ;;  %v21343_v26 = vld [vmem:[#allocation37_spill] sm:$0xff]  ;;  %v17824_v42 = vld [vmem:[%s18111_s27 + $0xe8] sm:$0xff]  }
 0x2eb   : > { %16131 = vmatprep.mubr.msk.bf16.mxu0 %vm1265_vm3, %v9672_v12  ;;  %v2888_v63 = vrot.slane %v21343_v26, 1  ;;  %v2887_v12 = vsel %vm1471_vm1, %v2884_v33, %v2886_v23  ;;  %v9778_v33 = vrot.slane %v9776_v14, 3  ;;  %v9791_v34 = vshrl.u32 %v17824_v42, 16 }
 0x2ec   : > { %v9734_v48 = vor.u32 %v9733_v31, %v9730_v21 }
 0x2ed   : > { %v2889_v25 = vsel %vm1471_vm1, %v2886_v23, %v2888_v63  ;;  %v9779_v11 = vor.u32 %v9778_v33, %v9775_v16  ;;  %v9793_v26 = vrot.slane %v9791_v34, 2 }
 0x2ee   : > { %v9735_v36 = vsel %vm9565_vm5, %v9725_v5, %v9734_v48  ;;  %v9744_v0 = vsel %vm9565_vm5, %v9734_v48, %v9743_v46  ;;  %v9794_v5 = vshll.u32 %v17824_v42, 16  ;;  %v17837_v42 = vld [vmem:[%s18111_s27 + $0x200] sm:$0xff]  }
 0x2ef   : > { %15510 = vmatmul.mubr.msk.bf16.gmra.mrb[88].mxu1 %vm1265_vm3, %v2875_v62  ;;  %v17816_v62 = vld [vmem:[%s18111_s27 + $0xc0] sm:$0xff]   ;;  %v2910_v34 = vrot.slane %v17837_v42, 1 }
 0x2f0   : > { %15513 = vmatprep.mubr.msk.bf16.mxu1 %vm1265_vm3, %v2877_v57  ;;  %v9746_v30 = vshrl.u32 %v17816_v62, 16  ;;  %v9749_v57 = vshll.u32 %v17816_v62, 16 }
 0x2f2   : > { %16132 = vmatmul.mubr.msk.bf16.gmra.mrb[20].mxu0 %vm1265_vm3, %v9681_v37  ;;  %v9748_v35 = vrot.slane %v9746_v30, 2  ;;  %v9751_v50 = vrot.slane %v9749_v57, 3  ;;  %v21344_v37 = vld [vmem:[#allocation38_spill] sm:$0xff]  ;;  %v17828_v30 = vld [vmem:[%s18111_s27 + $0xf8] sm:$0xff]  }
 0x2f3   : > { %16135 = vmatprep.mubr.msk.bf16.mxu0 %vm1265_vm3, %v9690_v61  ;;  %v2892_v52 = vrot.slane %v21344_v37, 1  ;;  %v2891_v61 = vsel %vm1471_vm1, %v2888_v63, %v2890_v43  ;;  %v9796_v63 = vrot.slane %v9794_v5, 3  ;;  %v9809_v57 = vshrl.u32 %v17828_v30, 16 }
 0x2f4   : > { %v9752_v13 = vor.u32 %v9751_v50, %v9748_v35 }
 0x2f5   : > { %v2893_v58 = vsel %vm1471_vm1, %v2890_v43, %v2892_v52  ;;  %v9797_v62 = vor.u32 %v9796_v63, %v9793_v26  ;;  %v9811_v37 = vrot.slane %v9809_v57, 2  ;;  %v17839_v26 = vld [vmem:[%s18111_s27 + $0x120] sm:$0xff]  }
 0x2f6   : > { %v9753_v3 = vsel %vm9565_vm5, %v9743_v46, %v9752_v13  ;;  %v9762_v8 = vsel %vm9565_vm5, %v9752_v13, %v9761_v45  ;;  %v9812_v46 = vshll.u32 %v17828_v30, 16  ;;  %v9854_v63 = vshrl.u32 %v17839_v26, 16  ;;  %v17841_v30 = vld [vmem:[%s18111_s27 + $0x210] sm:$0xff]  }
 0x2f7   : > { %15514 = vmatmul.mubr.msk.bf16.gmra.mrb[92].mxu1 %vm1265_vm3, %v2879_v7  ;;  %v17819_v7 = vld [vmem:[%s18111_s27 + $0xd0] sm:$0xff]   ;;  %v2914_v57 = vrot.slane %v17841_v30, 1 }
 0x2f8   : > { %15517 = vmatprep.mubr.msk.bf16.mxu1 %vm1265_vm3, %v2881_v53  ;;  %v9764_v44 = vshrl.u32 %v17819_v7, 16  ;;  %v9767_v53 = vshll.u32 %v17819_v7, 16 }
 0x2fa   : > { %16136 = vmatmul.mubr.msk.bf16.gmra.mrb[24].mxu0 %vm1265_vm3, %v9699_v55  ;;  %v9766_v28 = vrot.slane %v9764_v44, 2  ;;  %v9769_v22 = vrot.slane %v9767_v53, 3  ;;  %v17822_v55 = vld [vmem:[%s18111_s27 + $0x1c8] sm:$0xff]  }
 0x2fb   : > { %16139 = vmatprep.mubr.msk.bf16.mxu0 %vm1265_vm3, %v9708_v54  ;;  %v2896_v60 = vrot.slane %v17822_v55, 1  ;;  %v2895_v54 = vsel %vm1471_vm1, %v2892_v52, %v2894_v59  ;;  %v9814_v52 = vrot.slane %v9812_v46, 3  ;;  %v17832_v44 = vld [vmem:[%s18111_s27 + $0x108] sm:$0xff]   ;;  %v9856_v46 = vrot.slane %v9854_v63, 2  ;;  %v17851_v63 = vld [vmem:[%s18111_s27 + $0x150] sm:$0xff]  }
 0x2fc   : > { %v9770_v2 = vor.u32 %v9769_v22, %v9766_v28  ;;  %v9827_v53 = vshrl.u32 %v17832_v44, 16 }
 0x2fd   : > { %v2897_v9 = vsel %vm1471_vm1, %v2894_v59, %v2896_v60  ;;  %v9815_v7 = vor.u32 %v9814_v52, %v9811_v37 }
 0x2fe   : > { %v9771_v10 = vsel %vm9565_vm5, %v9761_v45, %v9770_v2  ;;  %v9780_v31 = vsel %vm9565_vm5, %v9770_v2, %v9779_v11  ;;  %v9830_v45 = vshll.u32 %v17832_v44, 16  ;;  %v9829_v55 = vrot.slane %v9827_v53, 2  ;;  %v17845_v53 = vld [vmem:[%s18111_s27 + $0x220] ss:$0 sps:$4 sm:$0x11]  }
 0x2ff   : > { %15518 = vmatmul.mubr.msk.bf16.gmra.mrb[96].mxu1 %vm1265_vm3, %v2883_v20  ;;  %v17823_v20 = vld [vmem:[%s18111_s27 + $0xe0] sm:$0xff]  }
 0x300   : > { %15521 = vmatprep.mubr.msk.bf16.mxu1 %vm1265_vm3, %v2885_v47  ;;  %v9782_v41 = vshrl.u32 %v17823_v20, 16  ;;  %v9785_v47 = vshll.u32 %v17823_v20, 16 }
 0x302   : > { %16140 = vmatmul.mubr.msk.bf16.gmra.mrb[28].mxu0 %vm1265_vm3, %v9717_v18  ;;  %v9784_v24 = vrot.slane %v9782_v41, 2  ;;  %v9787_v23 = vrot.slane %v9785_v47, 3  ;;  %v17826_v18 = vld [vmem:[%s18111_s27 + $0x1d8] sm:$0xff]  }
 0x303   : > { %16143 = vmatprep.mubr.msk.bf16.mxu0 %vm1265_vm3, %v9726_v49  ;;  %v2900_v21 = vrot.slane %v17826_v18, 1  ;;  %v2899_v49 = vsel %vm1471_vm1, %v2896_v60, %v2898_v27  ;;  %v9832_v60 = vrot.slane %v9830_v45, 3  ;;  %v17836_v41 = vld [vmem:[%s18111_s27 + $0x118] sm:$0xff]   ;;  %v2918_v45 = vrot.slane %v17845_v53, 1 }
 0x304   : > { %v9788_v4 = vor.u32 %v9787_v23, %v9784_v24  ;;  %v9845_v47 = vshrl.u32 %v17836_v41, 16 }
 0x305   : > { %v2901_v29 = vsel %vm1471_vm1, %v2898_v27, %v2900_v21  ;;  %v9833_v20 = vor.u32 %v9832_v60, %v9829_v55 }
 0x306   : > { %v9789_v32 = vsel %vm9565_vm5, %v9779_v11, %v9788_v4  ;;  %v9798_v50 = vsel %vm9565_vm5, %v9788_v4, %v9797_v62  ;;  %v9848_v11 = vshll.u32 %v17836_v41, 16  ;;  %v9847_v18 = vrot.slane %v9845_v47, 2 }
 0x307   : > { %15522 = vmatmul.mubr.msk.bf16.gmra.mrb[100].mxu1 %vm1265_vm3, %v2887_v12  ;;  %v17827_v12 = vld [vmem:[%s18111_s27 + $0xf0] sm:$0xff]  }
 0x308   : > { %15525 = vmatprep.mubr.msk.bf16.mxu1 %vm1265_vm3, %v2889_v25  ;;  %v9800_v48 = vshrl.u32 %v17827_v12, 16  ;;  %v9803_v25 = vshll.u32 %v17827_v12, 16 }
 0x30a   : > { %16144 = vmatmul.mubr.msk.bf16.gmra.mrb[32].mxu0 %vm1265_vm3, %v9735_v36  ;;  %v9802_v19 = vrot.slane %v9800_v48, 2  ;;  %v9805_v43 = vrot.slane %v9803_v25, 3  ;;  %v17830_v36 = vld [vmem:[%s18111_s27 + $0x1e8] sm:$0xff]  }
 0x30b   : > { %16147 = vmatprep.mubr.msk.bf16.mxu0 %vm1265_vm3, %v9744_v0  ;;  %v2904_v35 = vrot.slane %v17830_v36, 1  ;;  %v2903_v0 = vsel %vm1471_vm1, %v2900_v21, %v2902_v17  ;;  %v9850_v21 = vrot.slane %v9848_v11, 3  ;;  %v17840_v48 = vld [vmem:[%s18111_s27 + $0x128] sm:$0xff]   ;;  %v17849_v11 = vld [vmem:[%s18111_s27 + $0x20] sm:$0xff]  }
 0x30c   : > { %v9806_v40 = vor.u32 %v9805_v43, %v9802_v19  ;;  %v9863_v25 = vshrl.u32 %v17840_v48, 16  ;;  %v4331_v42 = vrot.slane %v17849_v11, 1 }
 0x30d   : > { %v2905_v38 = vsel %vm1471_vm1, %v2902_v17, %v2904_v35  ;;  %v9851_v12 = vor.u32 %v9850_v21, %v9847_v18 }
 0x30e   : > { %v9807_v14 = vsel %vm9565_vm5, %v9797_v62, %v9806_v40  ;;  %v9816_v22 = vsel %vm9565_vm5, %v9806_v40, %v9815_v7  ;;  %v9866_v62 = vshll.u32 %v17840_v48, 16  ;;  %v9865_v36 = vrot.slane %v9863_v25, 2 }
 0x30f   : > { %15526 = vmatmul.mubr.msk.bf16.gmra.mrb[104].mxu1 %vm1265_vm3, %v2891_v61  ;;  %v17831_v61 = vld [vmem:[%s18111_s27 + $0x100] sm:$0xff]  }
 0x310   : > { %15529 = vmatprep.mubr.msk.bf16.mxu1 %vm1265_vm3, %v2893_v58  ;;  %v9818_v13 = vshrl.u32 %v17831_v61, 16  ;;  %v9821_v58 = vshll.u32 %v17831_v61, 16 }
 0x312   : > { %16148 = vmatmul.mubr.msk.bf16.gmra.mrb[36].mxu0 %vm1265_vm3, %v9753_v3  ;;  %v9820_v39 = vrot.slane %v9818_v13, 2  ;;  %v9823_v59 = vrot.slane %v9821_v58, 3  ;;  %v17834_v3 = vld [vmem:[%s18111_s27 + $0x1f8] sm:$0xff]  }
 0x313   : > { %16151 = vmatprep.mubr.msk.bf16.mxu0 %vm1265_vm3, %v9762_v8  ;;  %v2908_v28 = vrot.slane %v17834_v3, 1  ;;  %v2907_v8 = vsel %vm1471_vm1, %v2904_v35, %v2906_v15  ;;  %v9868_v35 = vrot.slane %v9866_v62, 3  ;;  %v17844_v13 = vld [vmem:[%s18111_s27 + $0x138] sm:$0xff]   ;;  %v17853_v62 = vld [vmem:[%s18111_s27 + $0x30] sm:$0xff]  }
 0x314   : > { %v9824_v16 = vor.u32 %v9823_v59, %v9820_v39  ;;  %v9881_v58 = vshrl.u32 %v17844_v13, 16  ;;  %v17846_v59 = vld [vmem:[%s18111_s27 + $0x18] sm:$0xff]   ;;  %v4335_v30 = vrot.slane %v17853_v62, 1 }
 0x315   : > { %v2909_v33 = vsel %vm1471_vm1, %v2906_v15, %v2908_v28  ;;  %v9869_v61 = vor.u32 %v9868_v35, %v9865_v36  ;;  %v4329_v3 = vrot.slane %v17846_v59, 1 }
 0x316   : > { %v9825_v5 = vsel %vm9565_vm5, %v9815_v7, %v9824_v16  ;;  %v9834_v23 = vsel %vm9565_vm5, %v9824_v16, %v9833_v20  ;;  %v9884_v7 = vshll.u32 %v17844_v13, 16 }
 0x317   : > { %15530 = vmatmul.mubr.msk.bf16.gmra.mrb[108].mxu1 %vm1265_vm3, %v2895_v54  ;;  %v17835_v54 = vld [vmem:[%s18111_s27 + $0x110] sm:$0xff]   ;;  %v4332_v21 = vsel %vm1471_vm1, %v4329_v3, %v4331_v42 }
 0x318   : > { %15533 = vmatprep.mubr.msk.bf16.mxu1 %vm1265_vm3, %v2897_v9  ;;  %v9836_v2 = vshrl.u32 %v17835_v54, 16  ;;  %v9839_v9 = vshll.u32 %v17835_v54, 16  ;;  %v9886_v55 = vrot.slane %v9884_v7, 3 }
 0x31a   : > { %16152 = vmatmul.mubr.msk.bf16.gmra.mrb[40].mxu0 %vm1265_vm3, %v9771_v10  ;;  %v9838_v51 = vrot.slane %v9836_v2, 2  ;;  %v9841_v27 = vrot.slane %v9839_v9, 3  ;;  %v17838_v10 = vld [vmem:[%s18111_s27 + $0x208] sm:$0xff]  }
 0x31b   : > { %16155 = vmatprep.mubr.msk.bf16.mxu0 %vm1265_vm3, %v9780_v31  ;;  %v2912_v24 = vrot.slane %v17838_v10, 1  ;;  %v2911_v31 = vsel %vm1471_vm1, %v2908_v28, %v2910_v34 }
 0x31c   : > { %v9842_v4 = vor.u32 %v9841_v27, %v9838_v51  ;;  %v17850_v27 = vld [vmem:[%s18111_s27 + $0x28] sm:$0xff]  }
 0x31d   : > { %v4333_v10 = vrot.slane %v17850_v27, 1 }
 0x31e   : > { %v9843_v17 = vsel %vm9565_vm5, %v9833_v20, %v9842_v4  ;;  %v9852_v43 = vsel %vm9565_vm5, %v9842_v4, %v9851_v12  ;;  %v17848_v20 = vld [vmem:[%s18111_s27 + $0x148] sm:$0xff]   ;;  %v9911_v4 = vshll.u32 %v17851_v63, 16 }
 0x31f   : > { %15534 = vmatmul.mubr.msk.bf16.gmra.mrb[112].mxu1 %vm1265_vm3, %v2899_v49  ;;  %v9857_v49 = vshll.u32 %v17839_v26, 16  ;;  %v9899_v41 = vshrl.u32 %v17848_v20, 16  ;;  %v9902_v47 = vshll.u32 %v17848_v20, 16  ;;  %v4334_v26 = vsel %vm1471_vm1, %v4331_v42, %v4333_v10  ;;  %v17862_v42 = vld [vmem:[%s18111_s27 + $0x58] sm:$0xff]  }
 0x320   : > { %15537 = vmatprep.mubr.msk.bf16.mxu1 %vm1265_vm3, %v2901_v29  ;;  %v2913_v29 = vsel %vm1471_vm1, %v2910_v34, %v2912_v24 }
 0x321   : > { %v9859_v1 = vrot.slane %v9857_v49, 3  ;;  %v9904_v18 = vrot.slane %v9902_v47, 3  ;;  %v9908_v49 = vshrl.u32 %v17851_v63, 16  ;;  %v17864_v63 = vld [vmem:[%s18111_s27 + $0x188] sm:$0xff]  }
 0x322   : > { %16156 = vmatmul.mubr.msk.bf16.gmra.mrb[44].mxu0 %vm1265_vm3, %v9789_v32  ;;  %v17842_v32 = vld [vmem:[%s18111_s27 + $0x218] sm:$0xff]  }
 0x323   : > { %16159 = vmatprep.mubr.msk.bf16.mxu0 %vm1265_vm3, %v9798_v50  ;;  %v2916_v19 = vrot.slane %v17842_v32, 1  ;;  %v2915_v50 = vsel %vm1471_vm1, %v2912_v24, %v2914_v57  ;;  %v9860_v37 = vor.u32 %v9859_v1, %v9856_v46  ;;  %v9910_v46 = vrot.slane %v9908_v49, 2 }
 0x324   : > { %v9913_v1 = vrot.slane %v9911_v4, 3  ;;  %v9971_v49 = vshrl.u32 %v17864_v63, 16  ;;  %v9974_v4 = vshll.u32 %v17864_v63, 16 }
 0x325   : > { %v2917_v52 = vsel %vm1471_vm1, %v2914_v57, %v2916_v19  ;;  %v9861_v44 = vsel %vm9565_vm5, %v9851_v12, %v9860_v37  ;;  %v9870_v28 = vsel %vm9565_vm5, %v9860_v37, %v9869_v61  ;;  %v2919_v60 = vsel %vm1471_vm1, %v2916_v19, %v2918_v45  ;;  %v17852_v12 = vld [vmem:[%s18111_s27 + $0x158] sm:$0xff]   ;;  %v17855_v37 = vld [vmem:[%s18111_s27 + $0x160] sm:$0xff]  }
 0x326   : > { %v9917_v48 = vshrl.u32 %v17852_v12, 16  ;;  %v9920_v25 = vshll.u32 %v17852_v12, 16  ;;  %v9914_v35 = vor.u32 %v9913_v1, %v9910_v46  ;;  %v9973_v1 = vrot.slane %v9971_v49, 2 }
 0x327   : > { %15538 = vmatmul.mubr.msk.bf16.gmra.mrb[116].mxu1 %vm1265_vm3, %v2903_v0  ;;  %v17843_v0 = vld [vmem:[%s18111_s27 + $0x130] sm:$0xff]  }
 0x328   : > { %15541 = vmatprep.mubr.msk.bf16.mxu1 %vm1265_vm3, %v2905_v38  ;;  %v9872_v40 = vshrl.u32 %v17843_v0, 16  ;;  %v9875_v38 = vshll.u32 %v17843_v0, 16  ;;  %v9922_v36 = vrot.slane %v9920_v25, 3  ;;  %v9929_v0 = vshll.u32 %v17855_v37, 16 }
 0x32a   : > { %16160 = vmatmul.mubr.msk.bf16.gmra.mrb[48].mxu0 %vm1265_vm3, %v9807_v14  ;;  %v9874_v56 = vrot.slane %v9872_v40, 2  ;;  %v9877_v15 = vrot.slane %v9875_v38, 3  ;;  %v21345_v14 = vld [vmem:[#allocation2_spill] sm:$0xff]  ;;  %v17856_v38 = vld [vmem:[%s18111_s27 + $0x168] sm:$0xff]   ;;  %v9931_v45 = vrot.slane %v9929_v0, 3 }
 0x32b   : > { %16163 = vmatprep.mubr.msk.bf16.mxu0 %vm1265_vm3, %v9816_v22  ;;  %v4328_v39 = vrot.slane %v21345_v14, 1  ;;  %v9883_v22 = vrot.slane %v9881_v58, 2  ;;  %v9938_v13 = vshll.u32 %v17856_v38, 16  ;;  %v17857_v58 = vld [vmem:[%s18111_s27 + $0x40] sm:$0xff]  }
 0x32c   : > { %v4339_v7 = vrot.slane %v17857_v58, 1 }
 0x32d   : > { %v4330_v16 = vsel %vm1471_vm1, %v4328_v39, %v4329_v3  ;;  %v9887_v9 = vor.u32 %v9886_v55, %v9883_v22  ;;  %v9940_v59 = vrot.slane %v9938_v13, 3  ;;  %v17859_v55 = vld [vmem:[%s18111_s27 + $0x170] sm:$0xff]  }
 0x32f   : > { %15542 = vmatmul.mubr.msk.bf16.gmra.mrb[120].mxu1 %vm1265_vm3, %v2907_v8  ;;  %v9878_v8 = vor.u32 %v9877_v15, %v9874_v56  ;;  %v17858_v56 = vld [vmem:[%s18111_s27 + $0x48] sm:$0xff]  }
 0x330   : > { %15545 = vmatprep.mubr.msk.bf16.mxu1 %vm1265_vm3, %v2909_v33  ;;  %v17847_v33 = vld [vmem:[%s18111_s27 + $0x140] sm:$0xff]   ;;  %v4341_v15 = vrot.slane %v17858_v56, 1 }
 0x331   : > { %v9890_v54 = vshrl.u32 %v17847_v33, 16  ;;  %v9893_v2 = vshll.u32 %v17847_v33, 16  ;;  %v9879_v34 = vsel %vm9565_vm5, %v9869_v61, %v9878_v8  ;;  %v9888_v24 = vsel %vm9565_vm5, %v9878_v8, %v9887_v9  ;;  %v17860_v33 = vld [vmem:[%s18111_s27 + $0x178] sm:$0xff]  }
 0x332   : > { %16164 = vmatmul.mubr.msk.bf16.gmra.mrb[52].mxu0 %vm1265_vm3, %v9825_v5  ;;  %v9935_v61 = vshrl.u32 %v17856_v38, 16  ;;  %v4342_v22 = vsel %vm1471_vm1, %v4339_v7, %v4341_v15  ;;  %v9947_v8 = vshll.u32 %v17859_v55, 16 }
 0x333   : > { %16167 = vmatprep.mubr.msk.bf16.mxu0 %vm1265_vm3, %v9834_v23  ;;  %v9892_v5 = vrot.slane %v9890_v54, 2  ;;  %v9895_v51 = vrot.slane %v9893_v2, 3  ;;  %v9901_v23 = vrot.slane %v9899_v41, 2  ;;  %v9953_v54 = vshrl.u32 %v17860_v33, 16 }
 0x334   : > { %v9937_v39 = vrot.slane %v9935_v61, 2  ;;  %v9956_v2 = vshll.u32 %v17860_v33, 16  ;;  %v9949_v11 = vrot.slane %v9947_v8, 3 }
 0x336   : > { %v9958_v27 = vrot.slane %v9956_v2, 3 }
 0x337   : > { %15546 = vmatmul.mubr.msk.bf16.gmra.mrb[124].mxu1 %vm1265_vm3, %v2911_v31  ;;  %v9896_v31 = vor.u32 %v9895_v51, %v9892_v5  ;;  %v9955_v51 = vrot.slane %v9953_v54, 2 }
 0x338   : > { %15549 = vmatprep.mubr.msk.bf16.mxu1 %vm1265_vm3, %v2913_v29  ;;  %v9905_v29 = vor.u32 %v9904_v18, %v9901_v23  ;;  %v17863_v18 = vld [vmem:[%s18111_s27 + $0x180] sm:$0xff]  }
 0x339   : > { %v9897_v57 = vsel %vm9565_vm5, %v9887_v9, %v9896_v31  ;;  %v17861_v9 = vld [vmem:[%s18111_s27 + $0x50] sm:$0xff]  }
 0x33a   : > { %16168 = vmatmul.mubr.msk.bf16.gmra.mrb[56].mxu0 %vm1265_vm3, %v9843_v17  ;;  %v17854_v17 = vld [vmem:[%s18111_s27 + $0x38] sm:$0xff]   ;;  %v9906_v19 = vsel %vm9565_vm5, %v9896_v31, %v9905_v29  ;;  %v4343_v20 = vrot.slane %v17861_v9, 1  ;;  %v9965_v31 = vshll.u32 %v17863_v18, 16 }
 0x33b   : > { %16171 = vmatprep.mubr.msk.bf16.mxu0 %vm1265_vm3, %v9852_v43  ;;  %v4337_v32 = vrot.slane %v17854_v17, 1  ;;  %v9919_v43 = vrot.slane %v9917_v48, 2  ;;  %v9976_v17 = vrot.slane %v9974_v4, 3 }
 0x33c   : > { %v9967_v62 = vrot.slane %v9965_v31, 3 }
 0x33d   : > { %v9923_v40 = vor.u32 %v9922_v36, %v9919_v43  ;;  %v4340_v3 = vsel %vm1471_vm1, %v4337_v32, %v4339_v7  ;;  %v17867_v36 = vld [vmem:[%s18111_s27 + $0x190] sm:$0xff]   ;;  %v17870_v7 = vld [vmem:[%s18111_s27 + $0x78] sm:$0xff]  }
 0x33f   : > { %15550 = vmatmul.mubr.msk.bf16.gmra.mrb[128].mxu1 %vm1265_vm3, %v2915_v50  ;;  %v4338_v50 = vsel %vm1471_vm1, %v4335_v30, %v4337_v32  ;;  %v9924_v14 = vsel %vm9565_vm5, %v9914_v35, %v9923_v40 }
 0x340   : > { %15553 = vmatprep.mubr.msk.bf16.mxu1 %vm1265_vm3, %v2917_v52  ;;  %v9926_v52 = vshrl.u32 %v17855_v37, 16  ;;  %v17868_v37 = vld [vmem:[%s18111_s27 + $0x198] sm:$0xff]  }
 0x341   : > { %v9992_v0 = vshll.u32 %v17868_v37, 16 }
 0x342   : > { %16172 = vmatmul.mubr.msk.bf16.gmra.mrb[60].mxu0 %vm1265_vm3, %v9861_v44  ;;  %v9915_v44 = vsel %vm9565_vm5, %v9905_v29, %v9914_v35  ;;  %v9928_v53 = vrot.slane %v9926_v52, 2  ;;  %v17865_v29 = vld [vmem:[%s18111_s27 + $0x60] sm:$0xff]   ;;  %v9983_v35 = vshll.u32 %v17867_v36, 16  ;;  %v9989_v52 = vshrl.u32 %v17868_v37, 16 }
 0x343   : > { %16175 = vmatprep.mubr.msk.bf16.mxu0 %vm1265_vm3, %v9870_v28  ;;  %v4347_v12 = vrot.slane %v17865_v29, 1  ;;  %v9994_v56 = vrot.slane %v9992_v0, 3 }
 0x344   : > { %v9932_v28 = vor.u32 %v9931_v45, %v9928_v53  ;;  %v9985_v58 = vrot.slane %v9983_v35, 3  ;;  %v9991_v45 = vrot.slane %v9989_v52, 2 }
 0x346   : > { %v9933_v41 = vsel %vm9565_vm5, %v9923_v40, %v9932_v28  ;;  %v17869_v40 = vld [vmem:[%s18111_s27 + $0x70] sm:$0xff]  }
 0x347   : > { %15554 = vmatmul.mubr.msk.bf16.gmra.mrb[132].mxu1 %vm1265_vm3, %v2919_v60  ;;  %v9944_v60 = vshrl.u32 %v17859_v55, 16  ;;  %v4351_v38 = vrot.slane %v17869_v40, 1  ;;  %v17872_v55 = vld [vmem:[%s18111_s27 + $0x1a8] sm:$0xff]  }
 0x348   : > { %15559 = vmatprep.mubr.msk.bf16.mxu1 %vm1265_vm3, %v4330_v16  ;;  %v9941_v16 = vor.u32 %v9940_v59, %v9937_v39  ;;  %v17871_v59 = vld [vmem:[%s18111_s27 + $0x1a0] sm:$0xff]   ;;  %v10010_v8 = vshll.u32 %v17872_v55, 16 }
 0x349   : > { %v9946_v47 = vrot.slane %v9944_v60, 2  ;;  %v10007_v60 = vshrl.u32 %v17872_v55, 16 }
 0x34a   : > { %16176 = vmatmul.mubr.msk.bf16.gmra.mrb[64].mxu0 %vm1265_vm3, %v9879_v34  ;;  %v4345_v34 = vrot.slane %v17862_v42, 1  ;;  %v9942_v5 = vsel %vm9565_vm5, %v9932_v28, %v9941_v16  ;;  %v10001_v28 = vshll.u32 %v17871_v59, 16  ;;  %v10012_v42 = vrot.slane %v10010_v8, 3 }
 0x34b   : > { %16179 = vmatprep.mubr.msk.bf16.mxu0 %vm1265_vm3, %v9888_v24  ;;  %v9950_v24 = vor.u32 %v9949_v11, %v9946_v47  ;;  %v10009_v11 = vrot.slane %v10007_v60, 2 }
 0x34c   : > { %v4346_v23 = vsel %vm1471_vm1, %v4343_v20, %v4345_v34  ;;  %v4348_v32 = vsel %vm1471_vm1, %v4345_v34, %v4347_v12  ;;  %v10003_v9 = vrot.slane %v10001_v28, 3 }
 0x34d   : > { %v9951_v48 = vsel %vm9565_vm5, %v9941_v16, %v9950_v24  ;;  %v17873_v16 = vld [vmem:[%s18111_s27 + $0x80] sm:$0xff]  }
 0x34e   : > { %v4355_v33 = vrot.slane %v17873_v16, 1 }
 0x34f   : > { %15560 = vmatmul.mubr.msk.bf16.vlgmr.msra.gmra.mrb[0].mxu1 %vm1265_vm3, %v4332_v21  ;;  %v9962_v21 = vshrl.u32 %v17863_v18, 16  ;;  %v17876_v18 = vld [vmem:[%s18111_s27 + $0x1b8] sm:$0xff]  }
 0x350   : > { %16386 = vmatpush3.bf16.msra.mxu1 %v18096_v6  ;;  %15563 = vmatprep.mubr.msk.bf16.mxu1 %vm1265_vm3, %v4334_v26  ;;  %v4336_v6 = vsel %vm1471_vm1, %v4333_v10, %v4335_v30  ;;  %v4344_v10 = vsel %vm1471_vm1, %v4341_v15, %v4343_v20  ;;  %v9959_v26 = vor.u32 %v9958_v27, %v9955_v51  ;;  %v17866_v30 = vld [vmem:[%s18111_s27 + $0x68] sm:$0xff]   ;;  %v17875_v27 = vld [vmem:[%s18111_s27 + $0x1b0] sm:$0xff]   ;;  %v10028_v31 = vshll.u32 %v17876_v18, 16 }
 0x351   : > { %v9964_v25 = vrot.slane %v9962_v21, 2  ;;  %v17874_v20 = vld [vmem:[%s18111_s27 + $0x88] sm:$0xff]   ;;  %v10025_v21 = vshrl.u32 %v17876_v18, 16 }
 0x352   : > { %16180 = vmatmul.mubr.msk.bf16.gmra.mrb[68].mxu0 %vm1265_vm3, %v9897_v57  ;;  %v4349_v57 = vrot.slane %v17866_v30, 1  ;;  %v9960_v46 = vsel %vm9565_vm5, %v9950_v24, %v9959_v26  ;;  %v10019_v24 = vshll.u32 %v17875_v27, 16  ;;  %v10030_v30 = vrot.slane %v10028_v31, 3 }
 0x353   : > { %16183 = vmatprep.mubr.msk.bf16.mxu0 %vm1265_vm3, %v9906_v19  ;;  %v9968_v19 = vor.u32 %v9967_v62, %v9964_v25  ;;  %v10027_v62 = vrot.slane %v10025_v21, 2 }
 0x354   : > { %v4350_v43 = vsel %vm1471_vm1, %v4347_v12, %v4349_v57  ;;  %v4352_v15 = vsel %vm1471_vm1, %v4349_v57, %v4351_v38  ;;  %v10021_v29 = vrot.slane %v10019_v24, 3  ;;  %v17878_v12 = vld [vmem:[%s18111_s27 + $0x98] sm:$0xff]  }
 0x355   : > { %v9969_v61 = vsel %vm9565_vm5, %v9959_v26, %v9968_v19  ;;  %v17877_v26 = vld [vmem:[%s18111_s27 + $0x90] sm:$0xff]  }
 0x356   : > { %v4359_v63 = vrot.slane %v17877_v26, 1 }
 0x357   : > { %15564 = vmatmul.mubr.msk.bf16.gmra.mrb[4].mxu1 %vm1265_vm3, %v4336_v6  ;;  %v9980_v6 = vshrl.u32 %v17867_v36, 16  ;;  %v17880_v36 = vld [vmem:[%s18111_s27 + $0x1c8] sm:$0xff]  }
 0x358   : > { %15567 = vmatprep.mubr.msk.bf16.mxu1 %vm1265_vm3, %v4338_v50  ;;  %v9977_v50 = vor.u32 %v9976_v17, %v9973_v1  ;;  %v17879_v17 = vld [vmem:[%s18111_s27 + $0x1c0] sm:$0xff]   ;;  %v10046_v35 = vshll.u32 %v17880_v36, 16 }
 0x359   : > { %v9982_v13 = vrot.slane %v9980_v6, 2  ;;  %v10043_v6 = vshrl.u32 %v17880_v36, 16 }
 0x35a   : > { %16184 = vmatmul.mubr.msk.bf16.gmra.mrb[72].mxu0 %vm1265_vm3, %v9915_v44  ;;  %v4353_v44 = vrot.slane %v17870_v7, 1  ;;  %v9978_v53 = vsel %vm9565_vm5, %v9968_v19, %v9977_v50  ;;  %v10037_v19 = vshll.u32 %v17879_v17, 16  ;;  %v10048_v7 = vrot.slane %v10046_v35, 3 }
 0x35b   : > { %16187 = vmatprep.mubr.msk.bf16.mxu0 %vm1265_vm3, %v9924_v14  ;;  %v9986_v14 = vor.u32 %v9985_v58, %v9982_v13  ;;  %v10045_v58 = vrot.slane %v10043_v6, 2 }
 0x35c   : > { %v4354_v39 = vsel %vm1471_vm1, %v4351_v38, %v4353_v44  ;;  %v4356_v34 = vsel %vm1471_vm1, %v4353_v44, %v4355_v33  ;;  %v10039_v40 = vrot.slane %v10037_v19, 3  ;;  %v17882_v38 = vld [vmem:[%s18111_s27 + $0xa8] sm:$0xff]  }
 0x35d   : > { %v9987_v54 = vsel %vm9565_vm5, %v9977_v50, %v9986_v14  ;;  %v17881_v50 = vld [vmem:[%s18111_s27 + $0xa0] sm:$0xff]  }
 0x35e   : > { %v4363_v37 = vrot.slane %v17881_v50, 1 }
 0x35f   : > { %15568 = vmatmul.mubr.msk.bf16.gmra.mrb[8].mxu1 %vm1265_vm3, %v4340_v3  ;;  %v9998_v3 = vshrl.u32 %v17871_v59, 16  ;;  %v17884_v59 = vld [vmem:[%s18111_s27 + $0x1d8] sm:$0xff]  }
 0x360   : > { %15571 = vmatprep.mubr.msk.bf16.mxu1 %vm1265_vm3, %v4342_v22  ;;  %v9995_v22 = vor.u32 %v9994_v56, %v9991_v45  ;;  %v17883_v56 = vld [vmem:[%s18111_s27 + $0x1d0] sm:$0xff]   ;;  %v10064_v28 = vshll.u32 %v17884_v59, 16 }
 0x361   : > { %v10000_v2 = vrot.slane %v9998_v3, 2  ;;  %v10061_v3 = vshrl.u32 %v17884_v59, 16 }
 0x362   : > { %16188 = vmatmul.mubr.msk.bf16.gmra.mrb[76].mxu0 %vm1265_vm3, %v9933_v41  ;;  %v4357_v41 = vrot.slane %v17874_v20, 1  ;;  %v9996_v47 = vsel %vm9565_vm5, %v9986_v14, %v9995_v22  ;;  %v10055_v14 = vshll.u32 %v17883_v56, 16  ;;  %v10066_v20 = vrot.slane %v10064_v28, 3 }
 0x363   : > { %16191 = vmatprep.mubr.msk.bf16.mxu0 %vm1265_vm3, %v9942_v5  ;;  %v10004_v5 = vor.u32 %v10003_v9, %v10000_v2  ;;  %v10063_v9 = vrot.slane %v10061_v3, 2 }
 0x364   : > { %v4358_v51 = vsel %vm1471_vm1, %v4355_v33, %v4357_v41  ;;  %v4360_v57 = vsel %vm1471_vm1, %v4357_v41, %v4359_v63  ;;  %v10057_v16 = vrot.slane %v10055_v14, 3  ;;  %v17886_v33 = vld [vmem:[%s18111_s27 + $0xb8] sm:$0xff]  }
 0x365   : > { %v10005_v49 = vsel %vm9565_vm5, %v9995_v22, %v10004_v5  ;;  %v17885_v22 = vld [vmem:[%s18111_s27 + $0xb0] sm:$0xff]  }
 0x366   : > { %v4367_v55 = vrot.slane %v17885_v22, 1 }
 0x367   : > { %15572 = vmatmul.mubr.msk.bf16.gmra.mrb[12].mxu1 %vm1265_vm3, %v4344_v10  ;;  %v10016_v10 = vshrl.u32 %v17875_v27, 16  ;;  %v17888_v27 = vld [vmem:[%s18111_s27 + $0x1e8] sm:$0xff]  }
 0x368   : > { %15575 = vmatprep.mubr.msk.bf16.mxu1 %vm1265_vm3, %v4346_v23  ;;  %v10013_v23 = vor.u32 %v10012_v42, %v10009_v11  ;;  %v17887_v42 = vld [vmem:[%s18111_s27 + $0x1e0] sm:$0xff]   ;;  %v10082_v24 = vshll.u32 %v17888_v27, 16 }
 0x369   : > { %v10018_v4 = vrot.slane %v10016_v10, 2  ;;  %v10079_v10 = vshrl.u32 %v17888_v27, 16 }
 0x36a   : > { %16192 = vmatmul.mubr.msk.bf16.gmra.mrb[80].mxu0 %vm1265_vm3, %v9951_v48  ;;  %v4361_v48 = vrot.slane %v17878_v12, 1  ;;  %v10014_v25 = vsel %vm9565_vm5, %v10004_v5, %v10013_v23  ;;  %v10073_v5 = vshll.u32 %v17887_v42, 16  ;;  %v10084_v12 = vrot.slane %v10082_v24, 3 }
 0x36b   : > { %16195 = vmatprep.mubr.msk.bf16.mxu0 %vm1265_vm3, %v9960_v46  ;;  %v10022_v46 = vor.u32 %v10021_v29, %v10018_v4  ;;  %v10081_v29 = vrot.slane %v10079_v10, 2 }
 0x36c   : > { %v4362_v1 = vsel %vm1471_vm1, %v4359_v63, %v4361_v48  ;;  %v4364_v44 = vsel %vm1471_vm1, %v4361_v48, %v4363_v37  ;;  %v10075_v26 = vrot.slane %v10073_v5, 3  ;;  %v17890_v63 = vld [vmem:[%s18111_s27 + $0xc8] sm:$0xff]  }
 0x36d   : > { %v10023_v52 = vsel %vm9565_vm5, %v10013_v23, %v10022_v46  ;;  %v17889_v23 = vld [vmem:[%s18111_s27 + $0xc0] sm:$0xff]  }
 0x36e   : > { %v4371_v18 = vrot.slane %v17889_v23, 1 }
 0x36f   : > { %15576 = vmatmul.mubr.msk.bf16.gmra.mrb[16].mxu1 %vm1265_vm3, %v4348_v32  ;;  %v10034_v32 = vshrl.u32 %v17879_v17, 16  ;;  %v17892_v17 = vld [vmem:[%s18111_s27 + $0x1f8] sm:$0xff]  }
 0x370   : > { %15579 = vmatprep.mubr.msk.bf16.mxu1 %vm1265_vm3, %v4350_v43  ;;  %v10031_v43 = vor.u32 %v10030_v30, %v10027_v62  ;;  %v17891_v30 = vld [vmem:[%s18111_s27 + $0x1f0] sm:$0xff]   ;;  %v10100_v19 = vshll.u32 %v17892_v17, 16 }
 0x371   : > { %v10036_v0 = vrot.slane %v10034_v32, 2  ;;  %v10097_v32 = vshrl.u32 %v17892_v17, 16 }
 0x372   : > { %16196 = vmatmul.mubr.msk.bf16.gmra.mrb[84].mxu0 %vm1265_vm3, %v9969_v61  ;;  %v4365_v61 = vrot.slane %v17882_v38, 1  ;;  %v10032_v13 = vsel %vm9565_vm5, %v10022_v46, %v10031_v43  ;;  %v10091_v46 = vshll.u32 %v17891_v30, 16  ;;  %v10102_v38 = vrot.slane %v10100_v19, 3 }
 0x373   : > { %16199 = vmatprep.mubr.msk.bf16.mxu0 %vm1265_vm3, %v9978_v53  ;;  %v10040_v53 = vor.u32 %v10039_v40, %v10036_v0  ;;  %v10099_v40 = vrot.slane %v10097_v32, 2 }
 0x374   : > { %v4366_v45 = vsel %vm1471_vm1, %v4363_v37, %v4365_v61  ;;  %v4368_v41 = vsel %vm1471_vm1, %v4365_v61, %v4367_v55  ;;  %v10093_v50 = vrot.slane %v10091_v46, 3  ;;  %v17894_v37 = vld [vmem:[%s18111_s27 + $0xd8] sm:$0xff]  }
 0x375   : > { %v10041_v60 = vsel %vm9565_vm5, %v10031_v43, %v10040_v53  ;;  %v17893_v43 = vld [vmem:[%s18111_s27 + $0xd0] sm:$0xff]  }
 0x376   : > { %v4375_v36 = vrot.slane %v17893_v43, 1 }
 0x377   : > { %15580 = vmatmul.mubr.msk.bf16.gmra.mrb[20].mxu1 %vm1265_vm3, %v4352_v15  ;;  %v10052_v15 = vshrl.u32 %v17883_v56, 16  ;;  %v17896_v56 = vld [vmem:[%s18111_s27 + $0x208] sm:$0xff]  }
 0x378   : > { %15583 = vmatprep.mubr.msk.bf16.mxu1 %vm1265_vm3, %v4354_v39  ;;  %v10049_v39 = vor.u32 %v10048_v7, %v10045_v58  ;;  %v17895_v7 = vld [vmem:[%s18111_s27 + $0x200] sm:$0xff]   ;;  %v10118_v14 = vshll.u32 %v17896_v56, 16 }
 0x379   : > { %v10054_v8 = vrot.slane %v10052_v15, 2  ;;  %v10115_v15 = vshrl.u32 %v17896_v56, 16 }
 0x37a   : > { %16200 = vmatmul.mubr.msk.bf16.gmra.mrb[88].mxu0 %vm1265_vm3, %v9987_v54  ;;  %v4369_v54 = vrot.slane %v17886_v33, 1  ;;  %v10050_v2 = vsel %vm9565_vm5, %v10040_v53, %v10049_v39  ;;  %v10109_v53 = vshll.u32 %v17895_v7, 16  ;;  %v10120_v33 = vrot.slane %v10118_v14, 3 }
 0x37b   : > { %16203 = vmatprep.mubr.msk.bf16.mxu0 %vm1265_vm3, %v9996_v47  ;;  %v10058_v47 = vor.u32 %v10057_v16, %v10054_v8  ;;  %v10117_v16 = vrot.slane %v10115_v15, 2 }
 0x37c   : > { %v4370_v11 = vsel %vm1471_vm1, %v4367_v55, %v4369_v54  ;;  %v4372_v48 = vsel %vm1471_vm1, %v4369_v54, %v4371_v18  ;;  %v10111_v22 = vrot.slane %v10109_v53, 3  ;;  %v17898_v55 = vld [vmem:[%s18111_s27 + $0xe8] sm:$0xff]  }
 0x37d   : > { %v10059_v21 = vsel %vm9565_vm5, %v10049_v39, %v10058_v47  ;;  %v17897_v39 = vld [vmem:[%s18111_s27 + $0xe0] sm:$0xff]  }
 0x37e   : > { %v4379_v59 = vrot.slane %v17897_v39, 1 }
 0x37f   : > { %15584 = vmatmul.mubr.msk.bf16.gmra.mrb[24].mxu1 %vm1265_vm3, %v4356_v34  ;;  %v10070_v34 = vshrl.u32 %v17887_v42, 16  ;;  %v17900_v42 = vld [vmem:[%s18111_s27 + $0x218] sm:$0xff]  }
 0x380   : > { %15587 = vmatprep.mubr.msk.bf16.mxu1 %vm1265_vm3, %v4358_v51  ;;  %v10067_v51 = vor.u32 %v10066_v20, %v10063_v9  ;;  %v17899_v20 = vld [vmem:[%s18111_s27 + $0x210] sm:$0xff]   ;;  %v10136_v5 = vshll.u32 %v17900_v42, 16 }
 0x381   : > { %v10072_v31 = vrot.slane %v10070_v34, 2  ;;  %v10133_v34 = vshrl.u32 %v17900_v42, 16 }
 0x382   : > { %16204 = vmatmul.mubr.msk.bf16.gmra.mrb[92].mxu0 %vm1265_vm3, %v10005_v49  ;;  %v4373_v49 = vrot.slane %v17890_v63, 1  ;;  %v10068_v4 = vsel %vm9565_vm5, %v10058_v47, %v10067_v51  ;;  %v10127_v47 = vshll.u32 %v17899_v20, 16  ;;  %v10138_v63 = vrot.slane %v10136_v5, 3  ;;  %v19820_v5 = vld [vmem:[%s18111_s27 + $0x128] sm:$0xff]  }
 0x383   : > { %16207 = vmatprep.mubr.msk.bf16.mxu0 %vm1265_vm3, %v10014_v25  ;;  %v10076_v25 = vor.u32 %v10075_v26, %v10072_v31  ;;  %v10135_v26 = vrot.slane %v10133_v34, 2 }
 0x384   : > { %v4374_v62 = vsel %vm1471_vm1, %v4371_v18, %v4373_v49  ;;  %v4376_v61 = vsel %vm1471_vm1, %v4373_v49, %v4375_v36  ;;  %v10129_v23 = vrot.slane %v10127_v47, 3  ;;  %v17902_v18 = vld [vmem:[%s18111_s27 + $0xf8] sm:$0xff]  }
 0x385   : > { %v10077_v6 = vsel %vm9565_vm5, %v10067_v51, %v10076_v25  ;;  %v17901_v51 = vld [vmem:[%s18111_s27 + $0xf0] sm:$0xff]  }
 0x386   : > { %v4383_v27 = vrot.slane %v17901_v51, 1  ;;  %v4397_v51 = vrot.slane %v19820_v5, 1 }
 0x387   : > { %15588 = vmatmul.mubr.msk.bf16.gmra.mrb[28].mxu1 %vm1265_vm3, %v4360_v57  ;;  %v10088_v57 = vshrl.u32 %v17891_v30, 16  ;;  %v17904_v30 = vld [vmem:[%s18111_s27 + $0x228] sm:$0xff]  }
 0x388   : > { %15591 = vmatprep.mubr.msk.bf16.mxu1 %vm1265_vm3, %v4362_v1  ;;  %v10085_v1 = vor.u32 %v10084_v12, %v10081_v29  ;;  %v17903_v12 = vld [vmem:[%s18111_s27 + $0x220] sm:$0xff]   ;;  %v10154_v46 = vshll.u32 %v17904_v30, 16 }
 0x389   : > { %v10090_v35 = vrot.slane %v10088_v57, 2  ;;  %v10151_v57 = vshrl.u32 %v17904_v30, 16  ;;  %v17917_v30 = vld [vmem:[%s18111_s27 + $0x30] sm:$0xff]  }
 0x38a   : > { %16208 = vmatmul.mubr.msk.bf16.gmra.mrb[96].mxu0 %vm1265_vm3, %v10023_v52  ;;  %v4377_v52 = vrot.slane %v17894_v37, 1  ;;  %v10086_v0 = vsel %vm9565_vm5, %v10076_v25, %v10085_v1  ;;  %v10145_v25 = vshll.u32 %v17903_v12, 16  ;;  %v10156_v37 = vrot.slane %v10154_v46, 3 }
 0x38b   : > { %16211 = vmatprep.mubr.msk.bf16.mxu0 %vm1265_vm3, %v10032_v13  ;;  %v10094_v13 = vor.u32 %v10093_v50, %v10090_v35  ;;  %v10153_v50 = vrot.slane %v10151_v57, 2  ;;  %v11122_v57 = vrot.slane %v17917_v30, 3 }
 0x38c   : > { %v4378_v58 = vsel %vm1471_vm1, %v4375_v36, %v4377_v52  ;;  %v4380_v54 = vsel %vm1471_vm1, %v4377_v52, %v4379_v59  ;;  %v10147_v43 = vrot.slane %v10145_v25, 3  ;;  %v17906_v36 = vld [vmem:[%s18111_s27 + $0x108] sm:$0xff]  }
 0x38d   : > { %v10095_v3 = vsel %vm9565_vm5, %v10085_v1, %v10094_v13  ;;  %v17905_v1 = vld [vmem:[%s18111_s27 + $0x100] sm:$0xff]  }
 0x38e   : > { %v4387_v17 = vrot.slane %v17905_v1, 1  ;;  %v17918_v1 = vld [vmem:[%s18111_s27 + $0x38] sm:$0xff]  }
 0x38f   : > { %15592 = vmatmul.mubr.msk.bf16.gmra.mrb[32].mxu1 %vm1265_vm3, %v4364_v44  ;;  %v10106_v44 = vshrl.u32 %v17895_v7, 16  ;;  %v17908_v7 = vld [vmem:[%s18111_s27 + $0x238] sm:$0xff]  }
 0x390   : > { %15595 = vmatprep.mubr.msk.bf16.mxu1 %vm1265_vm3, %v4366_v45  ;;  %v10103_v45 = vor.u32 %v10102_v38, %v10099_v40  ;;  %v17907_v38 = vld [vmem:[%s18111_s27 + $0x230] sm:$0xff]   ;;  %v10172_v53 = vshll.u32 %v17908_v7, 16 }
 0x391   : > { %v10108_v28 = vrot.slane %v10106_v44, 2  ;;  %v10169_v44 = vshrl.u32 %v17908_v7, 16  ;;  %v19874_v7 = vld [vmem:[%s18111_s27 + $0x158] sm:$0xff]  }
 0x392   : > { %16212 = vmatmul.mubr.msk.bf16.gmra.mrb[100].mxu0 %vm1265_vm3, %v10041_v60  ;;  %v4381_v60 = vrot.slane %v17898_v55, 1  ;;  %v10104_v8 = vsel %vm9565_vm5, %v10094_v13, %v10103_v45  ;;  %v10163_v13 = vshll.u32 %v17907_v38, 16 }
 0x393   : > { %16215 = vmatprep.mubr.msk.bf16.mxu0 %vm1265_vm3, %v10050_v2  ;;  %v10112_v2 = vor.u32 %v10111_v22, %v10108_v28  ;;  %v17720_v28 = vld [vmem:[%s18111_s27 + $0x240] ss:$0 sps:$4 sm:$0x77]   ;;  %v10171_v55 = vrot.slane %v10169_v44, 2  ;;  %v4409_v44 = vrot.slane %v19874_v7, 1 }
 0x394   : > { %v4382_v9 = vsel %vm1471_vm1, %v4379_v59, %v4381_v60  ;;  %v4384_v49 = vsel %vm1471_vm1, %v4381_v60, %v4383_v27  ;;  %v10165_v39 = vrot.slane %v10163_v13, 3  ;;  %v17910_v59 = vld [vmem:[%s18111_s27 + $0x118] sm:$0xff]   ;;  %v10174_v60 = vrot.slane %v10172_v53, 3 }
 0x395   : > { %v10113_v10 = vsel %vm9565_vm5, %v10103_v45, %v10112_v2  ;;  %v17909_v45 = vld [vmem:[%s18111_s27 + $0x110] sm:$0xff]  }
 0x396   : > { %v4391_v56 = vrot.slane %v17909_v45, 1 }
 0x397   : > { %15596 = vmatmul.mubr.msk.bf16.gmra.mrb[36].mxu1 %vm1265_vm3, %v4368_v41  ;;  %v10124_v41 = vshrl.u32 %v17899_v20, 16  ;;  %v11111_v20 = vld [vmem:[%s18111_s27 + $0x20] sm:$0x8] }
 0x398   : > { %15599 = vmatprep.mubr.msk.bf16.mxu1 %vm1265_vm3, %v4370_v11  ;;  %v10121_v11 = vor.u32 %v10120_v33, %v10117_v16 }
 0x399   : > { %v10126_v24 = vrot.slane %v10124_v41, 2  ;;  %v17911_v41 = vld [vmem:[%s18111_s27 + $0x120] sm:$0xff]  }
 0x39a   : > { %16216 = vmatmul.mubr.msk.bf16.gmra.mrb[104].mxu0 %vm1265_vm3, %v10059_v21  ;;  %v4385_v21 = vrot.slane %v17902_v18, 1  ;;  %v10122_v31 = vsel %vm9565_vm5, %v10112_v2, %v10121_v11  ;;  %v10181_v2 = vshll.u32 %v17720_v28, 16  ;;  %v4395_v47 = vrot.slane %v17911_v41, 1  ;;  %v19905_v41 = vld [vmem:[%s18111_s27 + $0x170] sm:$0xff]  }
 0x39b   : > { %16219 = vmatprep.mubr.msk.bf16.mxu0 %vm1265_vm3, %v10068_v4  ;;  %v10130_v4 = vor.u32 %v10129_v23, %v10126_v24 }
 0x39c   : > { %v4386_v29 = vsel %vm1471_vm1, %v4383_v27, %v4385_v21  ;;  %v4388_v52 = vsel %vm1471_vm1, %v4385_v21, %v4387_v17  ;;  %v10183_v34 = vrot.slane %v10181_v2, 3  ;;  %v4398_v21 = vsel %vm1471_vm1, %v4395_v47, %v4397_v51 }
 0x39d   : > { %v10131_v32 = vsel %vm9565_vm5, %v10121_v11, %v10130_v4 }
 0x39f   : > { %15600 = vmatmul.mubr.msk.bf16.gmra.mrb[40].mxu1 %vm1265_vm3, %v4372_v48  ;;  %v10142_v48 = vshrl.u32 %v17903_v12, 16  ;;  %v19838_v12 = vld [vmem:[%s18111_s27 + $0x138] sm:$0xff]  }
 0x3a0   : > { %15603 = vmatprep.mubr.msk.bf16.mxu1 %vm1265_vm3, %v4374_v62  ;;  %v10139_v62 = vor.u32 %v10138_v63, %v10135_v26  ;;  %v17914_v26 = vld [vmem:[%s18111_s27 + $0x28] sm:$0xff]  }
 0x3a1   : > { %v10144_v19 = vrot.slane %v10142_v48, 2  ;;  %v11120_v63 = vrot.slane %v17914_v26, 3  ;;  %v4401_v48 = vrot.slane %v19838_v12, 1 }
 0x3a2   : > { %16220 = vmatmul.mubr.msk.bf16.gmra.mrb[108].mxu0 %vm1265_vm3, %v10077_v6  ;;  %v4389_v6 = vrot.slane %v17906_v36, 1  ;;  %v10140_v35 = vsel %vm9565_vm5, %v10130_v4, %v10139_v62  ;;  %v19856_v36 = vld [vmem:[%s18111_s27 + $0x148] sm:$0xff]  }
 0x3a3   : > { %16223 = vmatprep.mubr.msk.bf16.mxu0 %vm1265_vm3, %v10086_v0  ;;  %v10148_v0 = vor.u32 %v10147_v43, %v10144_v19  ;;  %v11123_v43 = vsel %vm11118_vm6, %v11120_v63, %v11122_v57 }
 0x3a4   : > { %v4390_v40 = vsel %vm1471_vm1, %v4387_v17, %v4389_v6  ;;  %v11124_v17 = vrot.slane %v17918_v1, 3 }
 0x3a5   : > { %v10149_v15 = vsel %vm9565_vm5, %v10139_v62, %v10148_v0 }
 0x3a7   : > { %15604 = vmatmul.mubr.msk.bf16.gmra.mrb[44].mxu1 %vm1265_vm3, %v4376_v61  ;;  %v10160_v61 = vshrl.u32 %v17907_v38, 16 }
 0x3a8   : > { %15607 = vmatprep.mubr.msk.bf16.mxu1 %vm1265_vm3, %v4378_v58  ;;  %v10157_v58 = vor.u32 %v10156_v37, %v10153_v50  ;;  %v17921_v37 = vld [vmem:[%s18111_s27 + $0x40] sm:$0xff]  }
 0x3a9   : > { %v10162_v14 = vrot.slane %v10160_v61, 2  ;;  %v19869_v61 = vld [vmem:[%s18111_s27 + $0x150] sm:$0xff]  }
 0x3aa   : > { %16224 = vmatmul.mubr.msk.bf16.gmra.mrb[112].mxu0 %vm1265_vm3, %v10095_v3  ;;  %v4393_v3 = vrot.slane %v17910_v59, 1  ;;  %v10158_v22 = vsel %vm9565_vm5, %v10148_v0, %v10157_v58  ;;  %v4407_v13 = vrot.slane %v19869_v61, 1 }
 0x3ab   : > { %16227 = vmatprep.mubr.msk.bf16.mxu0 %vm1265_vm3, %v10104_v8  ;;  %v4392_v8 = vsel %vm1471_vm1, %v4389_v6, %v4391_v56  ;;  %v10166_v16 = vor.u32 %v10165_v39, %v10162_v14  ;;  %v4405_v6 = vrot.slane %v19856_v36, 1  ;;  %v17926_v39 = vld [vmem:[%s18111_s27 + $0x58] sm:$0xff]  }
 0x3ac   : > { %v4394_v33 = vsel %vm1471_vm1, %v4391_v56, %v4393_v3  ;;  %v4396_v23 = vsel %vm1471_vm1, %v4393_v3, %v4395_v47  ;;  %v17925_v56 = vld [vmem:[%s18111_s27 + $0x50] sm:$0xff]   ;;  %v4410_v14 = vsel %vm1471_vm1, %v4407_v13, %v4409_v44  ;;  %v11132_v59 = vrot.slane %v17926_v39, 3  ;;  %v19887_v3 = vld [vmem:[%s18111_s27 + $0x160] sm:$0xff]  }
 0x3ad   : > { %v10167_v11 = vsel %vm9565_vm5, %v10157_v58, %v10166_v16  ;;  %v4408_v45 = vsel %vm1471_vm1, %v4405_v6, %v4407_v13  ;;  %v4415_v47 = vrot.slane %v19905_v41, 1  ;;  %v17945_v39 = vld [vmem:[%s18111_s27 + $0xa0] sm:$0xff]  }
 0x3af   : > { %15608 = vmatmul.mubr.msk.bf16.gmra.mrb[48].mxu1 %vm1265_vm3, %v4380_v54  ;;  %v10178_v54 = vshrl.u32 %v17720_v28, 16  ;;  %v4411_v28 = vrot.slane %v19887_v3, 1 }
 0x3b0   : > { %15611 = vmatprep.mubr.msk.bf16.mxu1 %vm1265_vm3, %v4382_v9  ;;  %v10175_v9 = vor.u32 %v10174_v60, %v10171_v55  ;;  %v19892_v55 = vld [vmem:[%s18111_s27 + $0x168] sm:$0xff]  }
 0x3b1   : > { %v10180_v42 = vrot.slane %v10178_v54, 2  ;;  %v4413_v60 = vrot.slane %v19892_v55, 1 }
 0x3b2   : > { %16228 = vmatmul.mubr.msk.bf16.gmra.mrb[116].mxu0 %vm1265_vm3, %v10113_v10  ;;  %v10176_v27 = vsel %vm9565_vm5, %v10166_v16, %v10175_v9  ;;  %v17913_v10 = vld [vmem:[%s18111_s27 + $0x24] sm:$0xf]  ;;  %v4412_v16 = vsel %vm1471_vm1, %v4409_v44, %v4411_v28 }
 0x3b3   : > { %16231 = vmatprep.mubr.msk.bf16.mxu0 %vm1265_vm3, %v10122_v31  ;;  %v14176_v24 = vcombine.low %v11111_v20, %v17913_v10  ;;  %v10184_v18 = vor.u32 %v10183_v34, %v10180_v42  ;;  %v4414_v2 = vsel %vm1471_vm1, %v4411_v28, %v4413_v60  ;;  %v19910_v42 = vld [vmem:[%s18111_s27 + $0x178] sm:$0xff]   ;;  %v17933_v10 = vld [vmem:[%s18111_s27 + $0x70] sm:$0xff]  }
 0x3b4   : > { %v4417_v34 = vrot.slane %v19910_v42, 1 }
 0x3b5   : > { %v11119_v31 = vrot.slane %v14176_v24, 3  ;;  %v11138_v24 = vrot.slane %v17933_v10, 3  ;;  %v19995_v10 = vld [vmem:[%s18111_s27 + $0x1c0] sm:$0xff]  }
 0x3b7   : > { %15612 = vmatmul.mubr.msk.bf16.gmra.mrb[52].mxu1 %vm1265_vm3, %v4384_v49  ;;  %v19833_v49 = vld [vmem:[%s18111_s27 + $0x130] sm:$0xff]   ;;  %v11121_v25 = vsel %vm11118_vm6, %v11119_v31, %v11120_v63  ;;  %v19923_v31 = vld [vmem:[%s18111_s27 + $0x180] sm:$0xff]  }
 0x3b8   : > { %15615 = vmatprep.mubr.msk.bf16.mxu1 %vm1265_vm3, %v4386_v29  ;;  %v4399_v4 = vrot.slane %v19833_v49, 1  ;;  %v10185_v29 = vsel %vm9565_vm5, %v10175_v9, %v10184_v18  ;;  %v17930_v9 = vld [vmem:[%s18111_s27 + $0x68] sm:$0xff]   ;;  %v17934_v18 = vld [vmem:[%s18111_s27 + $0x78] sm:$0xff]   ;;  %v4419_v26 = vrot.slane %v19923_v31, 1 }
 0x3b9   : > { %v11136_v20 = vrot.slane %v17930_v9, 3 }
 0x3ba   : > { %16232 = vmatmul.mubr.msk.bf16.gmra.mrb[120].mxu0 %vm1265_vm3, %v10131_v32  ;;  %v4400_v62 = vsel %vm1471_vm1, %v4397_v51, %v4399_v4  ;;  %v4402_v46 = vsel %vm1471_vm1, %v4399_v4, %v4401_v48  ;;  %v19851_v32 = vld [vmem:[%s18111_s27 + $0x140] sm:$0xff]   ;;  %v19928_v4 = vld [vmem:[%s18111_s27 + $0x188] sm:$0xff]  }
 0x3bb   : > { %16235 = vmatprep.mubr.msk.bf16.mxu0 %vm1265_vm3, %v10140_v35  ;;  %v4403_v19 = vrot.slane %v19851_v32, 1  ;;  %v11125_v35 = vsel %vm11118_vm6, %v11122_v57, %v11124_v17  ;;  %v11139_v63 = vsel %vm11118_vm6, %v11136_v20, %v11138_v24 }
 0x3bd   : > { %v4404_v50 = vsel %vm1471_vm1, %v4401_v48, %v4403_v19  ;;  %v4406_v0 = vsel %vm1471_vm1, %v4403_v19, %v4405_v6  ;;  %v19946_v6 = vld [vmem:[%s18111_s27 + $0x198] sm:$0xff]  }
 0x3bf   : > { %15616 = vmatmul.mubr.msk.bf16.gmra.mrb[56].mxu1 %vm1265_vm3, %v4388_v52  ;;  %v11126_v52 = vrot.slane %v17921_v37, 3 }
 0x3c0   : > { %15619 = vmatprep.mubr.msk.bf16.mxu1 %vm1265_vm3, %v4390_v40  ;;  %v17922_v40 = vld [vmem:[%s18111_s27 + $0x48] sm:$0xff]  }
 0x3c1   : > { %v11128_v38 = vrot.slane %v17922_v40, 3  ;;  %v11127_v58 = vsel %vm11118_vm6, %v11124_v17, %v11126_v52  ;;  %v19941_v17 = vld [vmem:[%s18111_s27 + $0x190] sm:$0xff]  }
 0x3c2   : > { %16236 = vmatmul.mubr.msk.bf16.gmra.mrb[124].mxu0 %vm1265_vm3, %v10149_v15  ;;  %v11130_v15 = vrot.slane %v17925_v56, 3  ;;  %v4423_v19 = vrot.slane %v19941_v17, 1 }
 0x3c3   : > { %16239 = vmatprep.mubr.msk.bf16.mxu0 %vm1265_vm3, %v10158_v22  ;;  %v11129_v53 = vsel %vm11118_vm6, %v11126_v52, %v11128_v38  ;;  %v17941_v52 = vld [vmem:[%s18111_s27 + $0x90] sm:$0xff]  }
 0x3c4   : > { %v11131_v22 = vsel %vm11118_vm6, %v11128_v38, %v11130_v15  ;;  %v17942_v38 = vld [vmem:[%s18111_s27 + $0x98] sm:$0xff]  }
 0x3c5   : > { %v11148_v13 = vrot.slane %v17942_v38, 3  ;;  %v17957_v38 = vld [vmem:[%s18111_s27 + $0xd0] sm:$0xff]  }
 0x3c7   : > { %15620 = vmatmul.mubr.msk.bf16.gmra.mrb[60].mxu1 %vm1265_vm3, %v4392_v8  ;;  %v11133_v8 = vsel %vm11118_vm6, %v11130_v15, %v11132_v59 }
 0x3c8   : > { %15623 = vmatprep.mubr.msk.bf16.mxu1 %vm1265_vm3, %v4394_v33  ;;  %v17929_v33 = vld [vmem:[%s18111_s27 + $0x60] sm:$0xff]  }
 0x3c9   : > { %v11134_v54 = vrot.slane %v17929_v33, 3 }
 0x3ca   : > { %16240 = vmatmul.mubr.msk.bf16.gmra.mrb[128].mxu0 %vm1265_vm3, %v10167_v11 }
 0x3cb   : > { %16243 = vmatprep.mubr.msk.bf16.mxu0 %vm1265_vm3, %v10176_v27  ;;  %v11135_v11 = vsel %vm11118_vm6, %v11132_v59, %v11134_v54  ;;  %v11137_v51 = vsel %vm11118_vm6, %v11134_v54, %v11136_v20  ;;  %v4416_v27 = vsel %vm1471_vm1, %v4413_v60, %v4415_v47  ;;  %v11150_v59 = vrot.slane %v17945_v39, 3  ;;  %v19982_v54 = vld [vmem:[%s18111_s27 + $0x1b8] sm:$0xff]  }
 0x3cd   : > { %v11151_v33 = vsel %vm11118_vm6, %v11148_v13, %v11150_v59 }
 0x3cf   : > { %15624 = vmatmul.mubr.msk.bf16.gmra.mrb[64].mxu1 %vm1265_vm3, %v4396_v23  ;;  %v4418_v23 = vsel %vm1471_vm1, %v4415_v47, %v4417_v34  ;;  %v17949_v47 = vld [vmem:[%s18111_s27 + $0xb0] sm:$0xff]  }
 0x3d0   : > { %15627 = vmatprep.mubr.msk.bf16.mxu1 %vm1265_vm3, %v4398_v21  ;;  %v11140_v21 = vrot.slane %v17934_v18, 3  ;;  %v20000_v18 = vld [vmem:[%s18111_s27 + $0x1c8] sm:$0xff]  }
 0x3d2   : > { %16244 = vmatmul.mubr.msk.bf16.gmra.mrb[132].mxu0 %vm1265_vm3, %v10185_v29  ;;  %v4421_v29 = vrot.slane %v19928_v4, 1  ;;  %v11141_v48 = vsel %vm11118_vm6, %v11138_v24, %v11140_v21  ;;  %v4435_v24 = vrot.slane %v19995_v10, 1 }
 0x3d3   : > { %16249 = vmatprep.mubr.msk.bf16.mxu0 %vm1265_vm3, %v11121_v25  ;;  %v4420_v25 = vsel %vm1471_vm1, %v4417_v34, %v4419_v26 }
 0x3d4   : > { %v4422_v57 = vsel %vm1471_vm1, %v4419_v26, %v4421_v29  ;;  %v4424_v37 = vsel %vm1471_vm1, %v4421_v29, %v4423_v19  ;;  %v17953_v29 = vld [vmem:[%s18111_s27 + $0xc0] sm:$0xff]  }
 0x3d7   : > { %15628 = vmatmul.mubr.msk.bf16.gmra.mrb[68].mxu1 %vm1265_vm3, %v4400_v62  ;;  %v17937_v62 = vld [vmem:[%s18111_s27 + $0x80] sm:$0xff]  }
 0x3d8   : > { %15631 = vmatprep.mubr.msk.bf16.mxu1 %vm1265_vm3, %v4402_v46  ;;  %v11142_v30 = vrot.slane %v17937_v62, 3  ;;  %v17938_v46 = vld [vmem:[%s18111_s27 + $0x88] sm:$0xff]  }
 0x3d9   : > { %v11144_v1 = vrot.slane %v17938_v46, 3  ;;  %v17954_v62 = vld [vmem:[%s18111_s27 + $0xc8] sm:$0xff]  }
 0x3da   : > { %16250 = vmatmul.mubr.msk.bf16.vlgmr.msra.gmra.mrb[0].mxu0 %vm1265_vm3, %v11123_v43  ;;  %v11143_v43 = vsel %vm11118_vm6, %v11140_v21, %v11142_v30  ;;  %v4437_v21 = vrot.slane %v20000_v18, 1 }
 0x3db   : > { %16253 = vmatprep.mubr.msk.bf16.mxu0 %vm1265_vm3, %v11125_v35  ;;  %v4425_v35 = vrot.slane %v19946_v6, 1 }
 0x3dd   : > { %v4426_v40 = vsel %vm1471_vm1, %v4423_v19, %v4425_v35  ;;  %v20018_v19 = vld [vmem:[%s18111_s27 + $0x1d8] sm:$0xff]  }
 0x3df   : > { %15632 = vmatmul.mubr.msk.bf16.gmra.mrb[72].mxu1 %vm1265_vm3, %v4404_v50  ;;  %v11145_v50 = vsel %vm11118_vm6, %v11142_v30, %v11144_v1  ;;  %v11160_v30 = vrot.slane %v17954_v62, 3 }
 0x3e0   : > { %15635 = vmatprep.mubr.msk.bf16.mxu1 %vm1265_vm3, %v4406_v0  ;;  %v11146_v0 = vrot.slane %v17941_v52, 3 }
 0x3e2   : > { %16254 = vmatmul.mubr.msk.bf16.gmra.mrb[4].mxu0 %vm1265_vm3, %v11127_v58  ;;  %v19959_v58 = vld [vmem:[%s18111_s27 + $0x1a0] sm:$0xff]   ;;  %v11149_v15 = vsel %vm11118_vm6, %v11146_v0, %v11148_v13  ;;  %v11162_v13 = vrot.slane %v17957_v38, 3 }
 0x3e3   : > { %16257 = vmatprep.mubr.msk.bf16.mxu0 %vm1265_vm3, %v11129_v53  ;;  %v4427_v44 = vrot.slane %v19959_v58, 1  ;;  %v11147_v53 = vsel %vm11118_vm6, %v11144_v1, %v11146_v0  ;;  %v20091_v38 = vld [vmem:[%s18111_s27 + $0x200] sm:$0xff]  }
 0x3e4   : > { %v11163_v39 = vsel %vm11118_vm6, %v11160_v30, %v11162_v13 }
 0x3e7   : > { %15636 = vmatmul.mubr.msk.bf16.gmra.mrb[76].mxu1 %vm1265_vm3, %v4408_v45  ;;  %v19964_v45 = vld [vmem:[%s18111_s27 + $0x1a8] sm:$0xff]  }
 0x3e8   : > { %15639 = vmatprep.mubr.msk.bf16.mxu1 %vm1265_vm3, %v4410_v14  ;;  %v4429_v56 = vrot.slane %v19964_v45, 1  ;;  %v4428_v14 = vsel %vm1471_vm1, %v4425_v35, %v4427_v44 }
 0x3ea   : > { %16258 = vmatmul.mubr.msk.bf16.gmra.mrb[8].mxu0 %vm1265_vm3, %v11131_v22  ;;  %v4430_v28 = vsel %vm1471_vm1, %v4427_v44, %v4429_v56  ;;  %v17946_v22 = vld [vmem:[%s18111_s27 + $0xa8] sm:$0xff]  }
 0x3eb   : > { %16261 = vmatprep.mubr.msk.bf16.mxu0 %vm1265_vm3, %v11133_v8  ;;  %v11152_v60 = vrot.slane %v17946_v22, 3  ;;  %v19977_v8 = vld [vmem:[%s18111_s27 + $0x1b0] sm:$0xff]  }
 0x3ed   : > { %v11153_v9 = vsel %vm11118_vm6, %v11150_v59, %v11152_v60  ;;  %v20044_v59 = vld [vmem:[%s18111_s27 + $0x1e8] sm:$0xff]  }
 0x3ef   : > { %15640 = vmatmul.mubr.msk.bf16.gmra.mrb[80].mxu1 %vm1265_vm3, %v4412_v16  ;;  %v4431_v16 = vrot.slane %v19977_v8, 1 }
 0x3f0   : > { %15643 = vmatprep.mubr.msk.bf16.mxu1 %vm1265_vm3, %v4414_v2  ;;  %v4433_v2 = vrot.slane %v19982_v54, 1 }
 0x3f1   : > { %v4432_v20 = vsel %vm1471_vm1, %v4429_v56, %v4431_v16 }
 0x3f2   : > { %16262 = vmatmul.mubr.msk.bf16.gmra.mrb[12].mxu0 %vm1265_vm3, %v11135_v11  ;;  %v11154_v11 = vrot.slane %v17949_v47, 3  ;;  %v4434_v34 = vsel %vm1471_vm1, %v4431_v16, %v4433_v2 }
 0x3f3   : > { %16265 = vmatprep.mubr.msk.bf16.mxu0 %vm1265_vm3, %v11137_v51  ;;  %v17950_v51 = vld [vmem:[%s18111_s27 + $0xb8] sm:$0xff]  }
 0x3f7   : > { %15644 = vmatmul.mubr.msk.bf16.gmra.mrb[84].mxu1 %vm1265_vm3, %v4416_v27  ;;  %v11156_v27 = vrot.slane %v17950_v51, 3 }
 0x3f8   : > { %15647 = vmatprep.mubr.msk.bf16.mxu1 %vm1265_vm3, %v4418_v23  ;;  %v11155_v23 = vsel %vm11118_vm6, %v11152_v60, %v11154_v11 }
 0x3f9   : > { %v11157_v26 = vsel %vm11118_vm6, %v11154_v11, %v11156_v27 }
 0x3fa   : > { %16266 = vmatmul.mubr.msk.bf16.gmra.mrb[16].mxu0 %vm1265_vm3, %v11139_v63  ;;  %v4436_v63 = vsel %vm1471_vm1, %v4433_v2, %v4435_v24 }
 0x3fb   : > { %16269 = vmatprep.mubr.msk.bf16.mxu0 %vm1265_vm3, %v11141_v48  ;;  %v11158_v48 = vrot.slane %v17953_v29, 3 }
 0x3fd   : > { %v11159_v1 = vsel %vm11118_vm6, %v11156_v27, %v11158_v48  ;;  %v20065_v27 = vld [vmem:[%s18111_s27 + $0x1f0] sm:$0xff]  }
 0x3ff   : > { %15648 = vmatmul.mubr.msk.bf16.gmra.mrb[88].mxu1 %vm1265_vm3, %v4420_v25  ;;  %v4438_v25 = vsel %vm1471_vm1, %v4435_v24, %v4437_v21  ;;  %v4447_v24 = vrot.slane %v20065_v27, 1 }
 0x400   : > { %15651 = vmatprep.mubr.msk.bf16.mxu1 %vm1265_vm3, %v4422_v57  ;;  %v20013_v57 = vld [vmem:[%s18111_s27 + $0x1d0] sm:$0xff]  }
 0x401   : > { %v4439_v46 = vrot.slane %v20013_v57, 1 }
 0x402   : > { %16270 = vmatmul.mubr.msk.bf16.gmra.mrb[20].mxu0 %vm1265_vm3, %v11143_v43  ;;  %v4441_v43 = vrot.slane %v20018_v19, 1 }
 0x403   : > { %16273 = vmatprep.mubr.msk.bf16.mxu0 %vm1265_vm3, %v11145_v50  ;;  %v11161_v50 = vsel %vm11118_vm6, %v11158_v48, %v11160_v30  ;;  %v4440_v0 = vsel %vm1471_vm1, %v4437_v21, %v4439_v46  ;;  %v20070_v21 = vld [vmem:[%s18111_s27 + $0x1f8] sm:$0xff]  }
 0x404   : > { %v4442_v44 = vsel %vm1471_vm1, %v4439_v46, %v4441_v43  ;;  %v17965_v46 = vld [vmem:[%s18111_s27 + $0xf0] sm:$0xff]  }
 0x407   : > { %15652 = vmatmul.mubr.msk.bf16.gmra.mrb[92].mxu1 %vm1265_vm3, %v4424_v37 }
 0x408   : > { %15655 = vmatprep.mubr.msk.bf16.mxu1 %vm1265_vm3, %v4426_v40 }
 0x40a   : > { %16274 = vmatmul.mubr.msk.bf16.gmra.mrb[24].mxu0 %vm1265_vm3, %v11147_v53  ;;  %v17958_v53 = vld [vmem:[%s18111_s27 + $0xd8] sm:$0xff]  }
 0x40b   : > { %16277 = vmatprep.mubr.msk.bf16.mxu0 %vm1265_vm3, %v11149_v15  ;;  %v11164_v56 = vrot.slane %v17958_v53, 3  ;;  %v20039_v15 = vld [vmem:[%s18111_s27 + $0x1e0] sm:$0xff]   ;;  %v20096_v53 = vld [vmem:[%s18111_s27 + $0x208] sm:$0xff]  }
 0x40d   : > { %v11165_v60 = vsel %vm11118_vm6, %v11162_v13, %v11164_v56  ;;  %v4451_v13 = vrot.slane %v20091_v38, 1 }
 0x40f   : > { %15656 = vmatmul.mubr.msk.bf16.gmra.mrb[96].mxu1 %vm1265_vm3, %v4428_v14  ;;  %v4443_v14 = vrot.slane %v20039_v15, 1 }
 0x410   : > { %15659 = vmatprep.mubr.msk.bf16.mxu1 %vm1265_vm3, %v4430_v28  ;;  %v4445_v28 = vrot.slane %v20044_v59, 1 }
 0x411   : > { %v4444_v2 = vsel %vm1471_vm1, %v4441_v43, %v4443_v14 }
 0x412   : > { %16278 = vmatmul.mubr.msk.bf16.gmra.mrb[28].mxu0 %vm1265_vm3, %v11151_v33  ;;  %v4446_v11 = vsel %vm1471_vm1, %v4443_v14, %v4445_v28  ;;  %v4448_v62 = vsel %vm1471_vm1, %v4445_v28, %v4447_v24 }
 0x413   : > { %16281 = vmatprep.mubr.msk.bf16.mxu0 %vm1265_vm3, %v11153_v9 }
 0x417   : > { %15660 = vmatmul.mubr.msk.bf16.gmra.mrb[100].mxu1 %vm1265_vm3, %v4432_v20  ;;  %v17961_v20 = vld [vmem:[%s18111_s27 + $0xe0] sm:$0xff]  }
 0x418   : > { %15663 = vmatprep.mubr.msk.bf16.mxu1 %vm1265_vm3, %v4434_v34  ;;  %v11166_v47 = vrot.slane %v17961_v20, 3  ;;  %v17962_v34 = vld [vmem:[%s18111_s27 + $0xe8] sm:$0xff]  }
 0x419   : > { %v11168_v51 = vrot.slane %v17962_v34, 3 }
 0x41a   : > { %16282 = vmatmul.mubr.msk.bf16.gmra.mrb[32].mxu0 %vm1265_vm3, %v11155_v23  ;;  %v11167_v23 = vsel %vm11118_vm6, %v11164_v56, %v11166_v47  ;;  %v4453_v56 = vrot.slane %v20096_v53, 1 }
 0x41b   : > { %16285 = vmatprep.mubr.msk.bf16.mxu0 %vm1265_vm3, %v11157_v26  ;;  %v4449_v26 = vrot.slane %v20070_v21, 1  ;;  %v11169_v29 = vsel %vm11118_vm6, %v11166_v47, %v11168_v51  ;;  %v17969_v47 = vld [vmem:[%s18111_s27 + $0x100] sm:$0xff]  }
 0x41c   : > { %v4454_v34 = vsel %vm1471_vm1, %v4451_v13, %v4453_v56 }
 0x41d   : > { %v4450_v43 = vsel %vm1471_vm1, %v4447_v24, %v4449_v26 }
 0x41f   : > { %15664 = vmatmul.mubr.msk.bf16.gmra.mrb[104].mxu1 %vm1265_vm3, %v4436_v63 }
 0x420   : > { %15667 = vmatprep.mubr.msk.bf16.mxu1 %vm1265_vm3, %v4438_v25 }
 0x422   : > { %v20021_v35 = vpop.f32.mrb[0].mxu1  ;;  %16286 = vmatmul.mubr.msk.bf16.gmra.mrb[36].mxu0 %vm1265_vm3, %v11159_v1  ;;  %v11170_v1 = vrot.slane %v17965_v46, 3 }
 0x423   : > { %v20024_v37 = vpop.f32.mrb[1].mxu1  ;;  %16289 = vmatprep.mubr.msk.bf16.mxu0 %vm1265_vm3, %v11161_v50  ;;  %v17966_v50 = vld [vmem:[%s18111_s27 + $0xf8] sm:$0xff]  }
 0x424   : > { %v20027_v52 = vpop.f32.mrb[2].mxu1 }
 0x425   : > { %v20030_v40 = vpop.f32.mrb[3].mxu1 }
 0x427   : > { %15668 = vmatmul.mubr.msk.bf16.gmra.mrb[108].mxu1 %vm1265_vm3, %v4440_v0  ;;  %v11172_v0 = vrot.slane %v17966_v50, 3 }
 0x428   : > { %15671 = vmatprep.mubr.msk.bf16.mxu1 %vm1265_vm3, %v4442_v44  ;;  %v11171_v44 = vsel %vm11118_vm6, %v11168_v51, %v11170_v1  ;;  %v17970_v51 = vld [vmem:[%s18111_s27 + $0x108] sm:$0xff]  }
 0x429   : > { %v11176_v24 = vrot.slane %v17970_v51, 3 }
 0x42a   : > { %v20047_v22 = vpop.f32.mrb[4].mxu1  ;;  %16290 = vmatmul.mubr.msk.bf16.gmra.mrb[40].mxu0 %vm1265_vm3, %v11163_v39  ;;  %v11173_v39 = vsel %vm11118_vm6, %v11170_v1, %v11172_v0 }
 0x42b   : > { %v20050_v16 = vpop.f32.mrb[5].mxu1  ;;  %16293 = vmatprep.mubr.msk.bf16.mxu0 %vm1265_vm3, %v11165_v60 }
 0x42c   : > { %v20053_v33 = vpop.f32.mrb[6].mxu1 }
 0x42d   : > { %v20056_v9 = vpop.f32.mrb[7].mxu1 }
 0x42f   : > { %15672 = vmatmul.mubr.msk.bf16.gmra.mrb[112].mxu1 %vm1265_vm3, %v4444_v2  ;;  %v4452_v2 = vsel %vm1471_vm1, %v4449_v26, %v4451_v13 }
 0x430   : > { %15675 = vmatprep.mubr.msk.bf16.mxu1 %vm1265_vm3, %v4446_v11  ;;  %v11174_v11 = vrot.slane %v17969_v47, 3 }
 0x432   : > { %v20073_v63 = vpop.f32.mrb[8].mxu1  ;;  %16294 = vmatmul.mubr.msk.bf16.gmra.mrb[44].mxu0 %vm1265_vm3, %v11167_v23  ;;  %v20117_v23 = vld [vmem:[%s18111_s27 + $0x210] sm:$0xff]  }
 0x433   : > { %v20076_v48 = vpop.f32.mrb[9].mxu1  ;;  %16297 = vmatprep.mubr.msk.bf16.mxu0 %vm1265_vm3, %v11169_v29  ;;  %v4455_v26 = vrot.slane %v20117_v23, 1  ;;  %v11175_v29 = vsel %vm11118_vm6, %v11172_v0, %v11174_v11  ;;  %v17973_v0 = vld [vmem:[%s18111_s27 + $0x110] sm:$0xff]  }
 0x434   : > { %v20079_v25 = vpop.f32.mrb[10].mxu1 }
 0x435   : > { %v20082_v30 = vpop.f32.mrb[11].mxu1 }
 0x437   : > { %15676 = vmatmul.mubr.msk.bf16.gmra.mrb[116].mxu1 %vm1265_vm3, %v4448_v62  ;;  %v20122_v62 = vld [vmem:[%s18111_s27 + $0x218] sm:$0xff]  }
 0x438   : > { %15679 = vmatprep.mubr.msk.bf16.mxu1 %vm1265_vm3, %v4450_v43  ;;  %v4457_v46 = vrot.slane %v20122_v62, 1  ;;  %v11177_v43 = vsel %vm11118_vm6, %v11174_v11, %v11176_v24  ;;  %v20143_v11 = vld [vmem:[%s18111_s27 + $0x220] sm:$0xff]  }
 0x43a   : > { %v20099_v14 = vpop.f32.mrb[12].mxu1  ;;  %16298 = vmatmul.mubr.msk.bf16.gmra.mrb[48].mxu0 %vm1265_vm3, %v11171_v44  ;;  %v4456_v44 = vsel %vm1471_vm1, %v4453_v56, %v4455_v26  ;;  %v4458_v47 = vsel %vm1471_vm1, %v4455_v26, %v4457_v46  ;;  %v4459_v56 = vrot.slane %v20143_v11, 1  ;;  %v5713_v26 = vshrl.u32 %v19820_v5, 16 }
 0x43b   : > { %21346 = vst [vmem:[#allocation4_spill] sm:$0xff] %v20099_v14  ;;  %v20102_v28 = vpop.f32.mrb[13].mxu1  ;;  %16301 = vmatprep.mubr.msk.bf16.mxu0 %vm1265_vm3, %v11173_v39 }
 0x43c   : > { %21347 = vst [vmem:[#allocation7_spill] sm:$0xff] %v20102_v28  ;;  %v20105_v60 = vpop.f32.mrb[14].mxu1 }
 0x43d   : > { %21348 = vst [vmem:[#allocation5_spill] sm:$0xff] %v20105_v60  ;;  %v20108_v20 = vpop.f32.mrb[15].mxu1 }
 0x43e   : > { %21349 = vst [vmem:[#allocation6_spill] sm:$0xff] %v20108_v20  ;;  %v17977_v20 = vld [vmem:[%s18111_s27 + $0x120] sm:$0xff]  }
 0x43f   : > { %15680 = vmatmul.mubr.msk.bf16.gmra.mrb[120].mxu1 %vm1265_vm3, %v4452_v2  ;;  %v11178_v2 = vrot.slane %v17973_v0, 3  ;;  %v5716_v0 = vshll.u32 %v19820_v5, 16  ;;  %v11182_v60 = vrot.slane %v17977_v20, 3  ;;  %v5731_v20 = vshrl.u32 %v19838_v12, 16 }
 0x440   : > { %15683 = vmatprep.mubr.msk.bf16.mxu1 %vm1265_vm3, %v4454_v34  ;;  %v17974_v34 = vld [vmem:[%s18111_s27 + $0x118] sm:$0xff]  }
 0x441   : > { %v11180_v51 = vrot.slane %v17974_v34, 3  ;;  %v5718_v28 = vrot.slane %v5716_v0, 2 }
 0x442   : > { %v20125_v1 = vpop.f32.mrb[16].mxu1  ;;  %16302 = vmatmul.mubr.msk.bf16.gmra.mrb[52].mxu0 %vm1265_vm3, %v11175_v29  ;;  %v11179_v29 = vsel %vm11118_vm6, %v11176_v24, %v11178_v2  ;;  %v4460_v24 = vsel %vm1471_vm1, %v4457_v46, %v4459_v56  ;;  %v5722_v46 = vshrl.u32 %v19833_v49, 16 }
 0x443   : > { %21350 = vst [vmem:[#allocation8_spill] sm:$0xff] %v20125_v1  ;;  %v20128_v50 = vpop.f32.mrb[17].mxu1  ;;  %16305 = vmatprep.mubr.msk.bf16.mxu0 %vm1265_vm3, %v11177_v43 }
 0x444   : > { %21351 = vst [vmem:[#allocation11_spill] sm:$0xff] %v20128_v50  ;;  %v20131_v13 = vpop.f32.mrb[18].mxu1  ;;  %v17722_v50 = vld [vmem:[%s18111_s27 + $0x230] ss:$0 sps:$4 sm:$0x11]  }
 0x445   : > { %21352 = vst [vmem:[#allocation9_spill] sm:$0xff] %v20131_v13  ;;  %v20134_v39 = vpop.f32.mrb[19].mxu1 }
 0x446   : > { %21353 = vst [vmem:[#allocation10_spill] sm:$0xff] %v20134_v39  ;;  %v20148_v39 = vld [vmem:[%s18111_s27 + $0x228] sm:$0xff]  }
 0x447   : > { %15684 = vmatmul.mubr.msk.bf16.gmra.mrb[124].mxu1 %vm1265_vm3, %v4456_v44  ;;  %21354 = vst [vmem:[#allocation12_spill] sm:$0xff] %v20148_v39  ;;  %v4461_v43 = vrot.slane %v20148_v39, 1  ;;  %v11181_v44 = vsel %vm11118_vm6, %v11178_v2, %v11180_v51  ;;  %v17978_v2 = vld [vmem:[%s18111_s27 + $0x128] sm:$0xff]  }
 0x448   : > { %15687 = vmatprep.mubr.msk.bf16.mxu1 %vm1265_vm3, %v4458_v47  ;;  %v11184_v39 = vrot.slane %v17978_v2, 3  ;;  %v21361_v2 = vld [vmem:[#allocation3_spill] sm:$0xff] }
 0x449   : > { %v4462_v5 = vsel %vm1471_vm1, %v4459_v56, %v4461_v43  ;;  %v5734_v56 = vshll.u32 %v19838_v12, 16  ;;  %v17979_v12 = vld [vmem:[%s18111_s27 + $0x130] sm:$0xff]  }
 0x44a   : > { %v20153_v34 = vpop.f32.mrb[20].mxu1  ;;  %16306 = vmatmul.mubr.msk.bf16.gmra.mrb[56].mxu0 %vm1265_vm3, %v11179_v29  ;;  %v4463_v29 = vrot.slane %v17722_v50, 1  ;;  %v11185_v0 = vsel %vm11118_vm6, %v11182_v60, %v11184_v39 }
 0x44b   : > { %21355 = vst [vmem:[#allocation15_spill] sm:$0xff] %v20153_v34  ;;  %v20156_v47 = vpop.f32.mrb[21].mxu1  ;;  %16309 = vmatprep.mubr.msk.bf16.mxu0 %vm1265_vm3, %v11181_v44  ;;  %v5715_v34 = vrot.slane %v5713_v26, 1  ;;  %v11183_v44 = vsel %vm11118_vm6, %v11180_v51, %v11182_v60  ;;  %v5733_v60 = vrot.slane %v5731_v20, 1  ;;  %v5752_v20 = vshll.u32 %v19856_v36, 16 }
 0x44c   : > { %21356 = vst [vmem:[#allocation13_spill] sm:$0xff] %v20156_v47  ;;  %v20159_v13 = vpop.f32.mrb[22].mxu1  ;;  %v5736_v47 = vrot.slane %v5734_v56, 2 }
 0x44d   : > { %21357 = vst [vmem:[#allocation14_spill] sm:$0xff] %v20159_v13  ;;  %v20163_v1 = vpop.f32.mrb[23].mxu1  ;;  %v5719_v13 = vor.u32 %v5718_v28, %v5715_v34  ;;  %v11186_v34 = vrot.slane %v17979_v12, 3 }
 0x44e   : > { %21358 = vst [vmem:[#allocation16_spill] sm:$0xff] %v20163_v1  ;;  %v5725_v1 = vshll.u32 %v19833_v49, 16  ;;  %v4464_v49 = vsel %vm1471_vm1, %v4461_v43, %v4463_v29  ;;  %v5743_v29 = vshll.u32 %v19851_v32, 16 }
 0x44f   : > { %15688 = vmatmul.mubr.msk.bf16.gmra.mrb[128].mxu1 %vm1265_vm3, %v4460_v24 }
 0x450   : > { %15691 = vmatprep.mubr.msk.bf16.mxu1 %vm1265_vm3, %v4462_v5  ;;  %v5724_v5 = vrot.slane %v5722_v46, 1  ;;  %v5727_v51 = vrot.slane %v5725_v1, 2  ;;  %v5740_v1 = vshrl.u32 %v19851_v32, 16  ;;  %v11187_v46 = vsel %vm11118_vm6, %v11184_v39, %v11186_v34 }
 0x451   : > { %v5745_v39 = vrot.slane %v5743_v29, 2 }
 0x452   : > { %v20176_v26 = vpop.f32.mrb[24].mxu1  ;;  %16310 = vmatmul.mubr.msk.bf16.gmra.mrb[60].mxu0 %vm1265_vm3, %v11183_v44  ;;  %v5728_v43 = vor.u32 %v5727_v51, %v5724_v5  ;;  %v5737_v44 = vor.u32 %v5736_v47, %v5733_v60  ;;  %v5742_v5 = vrot.slane %v5740_v1, 1  ;;  %v17982_v60 = vld [vmem:[%s18111_s27 + $0x148] sm:$0xff]   ;;  %v5761_v1 = vshll.u32 %v19869_v61, 16 }
 0x453   : > { %21359 = vst [vmem:[#allocation19_spill] sm:$0xff] %v20176_v26  ;;  %v20179_v24 = vpop.f32.mrb[25].mxu1  ;;  %16313 = vmatprep.mubr.msk.bf16.mxu0 %vm1265_vm3, %v11185_v0  ;;  %v5720_v26 = vsel %vm5397_vm4, %v21361_v2, %v5719_v13  ;;  %v5749_v0 = vshrl.u32 %v19856_v36, 16  ;;  %v17981_v36 = vld [vmem:[%s18111_s27 + $0x140] sm:$0xff]  }
 0x454   : > { %21360 = vst [vmem:[#allocation17_spill] sm:$0xff] %v20179_v24  ;;  %v20182_v50 = vpop.f32.mrb[26].mxu1  ;;  %v17980_v24 = vld [vmem:[%s18111_s27 + $0x138] sm:$0xff]   ;;  %v5729_v32 = vsel %vm5397_vm4, %v5719_v13, %v5728_v43  ;;  %v11190_v51 = vrot.slane %v17981_v36, 3  ;;  %v5738_v12 = vsel %vm5397_vm4, %v5728_v43, %v5737_v44  ;;  %v5758_v13 = vshrl.u32 %v19869_v61, 16 }
 0x455   : > { %v20185_v28 = vpop.f32.mrb[27].mxu1  ;;  %v11188_v14 = vrot.slane %v17980_v24, 3  ;;  %v5751_v2 = vrot.slane %v5749_v0, 1  ;;  %v5767_v36 = vshrl.u32 %v19874_v7, 16  ;;  %v5770_v43 = vshll.u32 %v19874_v7, 16  ;;  %v17983_v7 = vld [vmem:[%s18111_s27 + $0x150] sm:$0xff]  }
 0x457   : > { %15692 = vmatmul.mubr.msk.bf16.gmra.mrb[132].mxu1 %vm1265_vm3, %v4464_v49  ;;  %v11189_v24 = vsel %vm11118_vm6, %v11186_v34, %v11188_v14  ;;  %v5754_v34 = vrot.slane %v5752_v20, 2  ;;  %v11191_v29 = vsel %vm11118_vm6, %v11188_v14, %v11190_v51  ;;  %v5763_v14 = vrot.slane %v5761_v1, 2 }
 0x458   : > { %15765 = vmatprep.mubr.msk.bf16.mxu1 %vm1265_vm3, %v5720_v26 }
 0x45a   : > { %v20199_v56 = vpop.f32.mrb[28].mxu1  ;;  %16314 = vmatmul.mubr.msk.bf16.gmra.mrb[64].mxu0 %vm1265_vm3, %v11187_v46  ;;  %v5746_v46 = vor.u32 %v5745_v39, %v5742_v5  ;;  %v5760_v39 = vrot.slane %v5758_v13, 1  ;;  %v5779_v13 = vshll.u32 %v19887_v3, 16 }
 0x45b   : > { %v20202_v49 = vpop.f32.mrb[29].mxu1  ;;  %16317 = vmatprep.mubr.msk.bf16.mxu0 %vm1265_vm3, %v11189_v24  ;;  %v5755_v24 = vor.u32 %v5754_v34, %v5751_v2  ;;  %v11194_v2 = vrot.slane %v17983_v7, 3  ;;  %v5785_v7 = vshrl.u32 %v19892_v55, 16 }
 0x45c   : > { %21362 = vst [vmem:[#allocation18_spill] sm:$0xff] %v20202_v49  ;;  %v20205_v26 = vpop.f32.mrb[30].mxu1  ;;  %v11192_v49 = vrot.slane %v17982_v60, 3  ;;  %v5747_v61 = vsel %vm5397_vm4, %v5737_v44, %v5746_v46  ;;  %v5769_v60 = vrot.slane %v5767_v36, 1  ;;  %v5776_v44 = vshrl.u32 %v19887_v3, 16 }
 0x45d   : > { %v20208_v47 = vpop.f32.mrb[31].mxu1  ;;  %v5756_v34 = vsel %vm5397_vm4, %v5746_v46, %v5755_v24  ;;  %v5788_v46 = vshll.u32 %v19892_v55, 16  ;;  %v17985_v55 = vld [vmem:[%s18111_s27 + $0x160] sm:$0xff]  }
 0x45e   : > { %v11193_v20 = vsel %vm11118_vm6, %v11190_v51, %v11192_v49  ;;  %v5772_v51 = vrot.slane %v5770_v43, 2  ;;  %v11195_v1 = vsel %vm11118_vm6, %v11192_v49, %v11194_v2  ;;  %v5781_v49 = vrot.slane %v5779_v13, 2 }
 0x45f   : > { %15766 = vmatmul.mubr.msk.bf16.vlgmr.msra.gmra.mrb[68].mxu1 %vm1265_vm3, %v5729_v32 }
 0x460   : > { %15769 = vmatprep.mubr.msk.bf16.mxu1 %vm1265_vm3, %v5738_v12 }
 0x462   : > { %v20221_v0 = vpop.f32.mrb[32].mxu1  ;;  %16318 = vmatmul.mubr.msk.bf16.gmra.mrb[68].mxu0 %vm1265_vm3, %v11191_v29  ;;  %v5764_v29 = vor.u32 %v5763_v14, %v5760_v39  ;;  %v5778_v39 = vrot.slane %v5776_v44, 1  ;;  %v5797_v44 = vshll.u32 %v19905_v41, 16 }
 0x463   : > { %21363 = vst [vmem:[#allocation20_spill] sm:$0xff] %v20221_v0  ;;  %v20224_v32 = vpop.f32.mrb[33].mxu1  ;;  %16321 = vmatprep.mubr.msk.bf16.mxu0 %vm1265_vm3, %v11193_v20  ;;  %v17984_v0 = vld [vmem:[%s18111_s27 + $0x158] sm:$0xff]   ;;  %v5773_v20 = vor.u32 %v5772_v51, %v5769_v60  ;;  %v5787_v51 = vrot.slane %v5785_v7, 1 }
 0x464   : > { %21364 = vst [vmem:[#allocation23_spill] sm:$0xff] %v20224_v32  ;;  %v20227_v5 = vpop.f32.mrb[34].mxu1  ;;  %v11196_v32 = vrot.slane %v17984_v0, 3  ;;  %v5765_v3 = vsel %vm5397_vm4, %v5755_v24, %v5764_v29  ;;  %v5794_v24 = vshrl.u32 %v19905_v41, 16 }
 0x465   : > { %v20230_v12 = vpop.f32.mrb[35].mxu1  ;;  %v5774_v60 = vsel %vm5397_vm4, %v5764_v29, %v5773_v20  ;;  %v5806_v29 = vshll.u32 %v19910_v42, 16 }
 0x466   : > { %v11197_v43 = vsel %vm11118_vm6, %v11194_v2, %v11196_v32  ;;  %v5790_v2 = vrot.slane %v5788_v46, 2 }
 0x467   : > { %15770 = vmatmul.mubr.msk.bf16.gmra.mrb[72].mxu1 %vm1265_vm3, %v5747_v61 }
 0x468   : > { %15773 = vmatprep.mubr.msk.bf16.mxu1 %vm1265_vm3, %v5756_v34  ;;  %v11198_v34 = vrot.slane %v17985_v55, 3  ;;  %v5803_v55 = vshrl.u32 %v19910_v42, 16  ;;  %v17987_v42 = vld [vmem:[%s18111_s27 + $0x170] sm:$0xff]  }
 0x46a   : > { %v20243_v36 = vpop.f32.mrb[36].mxu1  ;;  %16322 = vmatmul.mubr.msk.bf16.gmra.mrb[72].mxu0 %vm1265_vm3, %v11195_v1  ;;  %v5782_v1 = vor.u32 %v5781_v49, %v5778_v39  ;;  %v11199_v13 = vsel %vm11118_vm6, %v11196_v32, %v11198_v34  ;;  %v5796_v39 = vrot.slane %v5794_v24, 1  ;;  %v5799_v32 = vrot.slane %v5797_v44, 2 }
 0x46b   : > { %21365 = vst [vmem:[#allocation21_spill] sm:$0xff] %v20243_v36  ;;  %v20246_v0 = vpop.f32.mrb[37].mxu1  ;;  %16325 = vmatprep.mubr.msk.bf16.mxu0 %vm1265_vm3, %v11197_v43  ;;  %v17986_v36 = vld [vmem:[%s18111_s27 + $0x168] sm:$0xff]   ;;  %v5791_v43 = vor.u32 %v5790_v2, %v5787_v51  ;;  %v5805_v2 = vrot.slane %v5803_v55, 1  ;;  %v5815_v24 = vshll.u32 %v19923_v31, 16 }
 0x46c   : > { %21366 = vst [vmem:[#allocation22_spill] sm:$0xff] %v20246_v0  ;;  %v20249_v61 = vpop.f32.mrb[38].mxu1  ;;  %v11200_v0 = vrot.slane %v17986_v36, 3  ;;  %v5783_v41 = vsel %vm5397_vm4, %v5773_v20, %v5782_v1  ;;  %v5812_v20 = vshrl.u32 %v19923_v31, 16 }
 0x46d   : > { %v20252_v14 = vpop.f32.mrb[39].mxu1  ;;  %v5792_v51 = vsel %vm5397_vm4, %v5782_v1, %v5791_v43  ;;  %v5824_v1 = vshll.u32 %v19928_v4, 16 }
 0x46e   : > { %v11201_v46 = vsel %vm11118_vm6, %v11198_v34, %v11200_v0  ;;  %v5808_v34 = vrot.slane %v5806_v29, 2 }
 0x46f   : > { %15774 = vmatmul.mubr.msk.bf16.gmra.mrb[76].mxu1 %vm1265_vm3, %v5765_v3 }
 0x470   : > { %15777 = vmatprep.mubr.msk.bf16.mxu1 %vm1265_vm3, %v5774_v60  ;;  %v11202_v60 = vrot.slane %v17987_v42, 3  ;;  %v5821_v42 = vshrl.u32 %v19928_v4, 16  ;;  %v17989_v4 = vld [vmem:[%s18111_s27 + $0x180] sm:$0xff]  }
 0x472   : > { %v20265_v7 = vpop.f32.mrb[40].mxu1  ;;  %16326 = vmatmul.mubr.msk.bf16.gmra.mrb[76].mxu0 %vm1265_vm3, %v11199_v13  ;;  %v5800_v13 = vor.u32 %v5799_v32, %v5796_v39  ;;  %v11203_v44 = vsel %vm11118_vm6, %v11200_v0, %v11202_v60  ;;  %v5814_v39 = vrot.slane %v5812_v20, 1  ;;  %v5817_v0 = vrot.slane %v5815_v24, 2 }
 0x473   : > { %21367 = vst [vmem:[#allocation24_spill] sm:$0xff] %v20265_v7  ;;  %v20268_v36 = vpop.f32.mrb[41].mxu1  ;;  %16329 = vmatprep.mubr.msk.bf16.mxu0 %vm1265_vm3, %v11201_v46  ;;  %v17988_v7 = vld [vmem:[%s18111_s27 + $0x178] sm:$0xff]   ;;  %v5809_v46 = vor.u32 %v5808_v34, %v5805_v2  ;;  %v5823_v34 = vrot.slane %v5821_v42, 1  ;;  %v5833_v20 = vshll.u32 %v19941_v17, 16 }
 0x474   : > { %21368 = vst [vmem:[#allocation27_spill] sm:$0xff] %v20268_v36  ;;  %v20271_v3 = vpop.f32.mrb[42].mxu1  ;;  %v11204_v36 = vrot.slane %v17988_v7, 3  ;;  %v5801_v31 = vsel %vm5397_vm4, %v5791_v43, %v5800_v13  ;;  %v5830_v43 = vshrl.u32 %v19941_v17, 16 }
 0x475   : > { %v20274_v49 = vpop.f32.mrb[43].mxu1  ;;  %v5810_v2 = vsel %vm5397_vm4, %v5800_v13, %v5809_v46  ;;  %v5842_v13 = vshll.u32 %v19946_v6, 16 }
 0x476   : > { %v11205_v29 = vsel %vm11118_vm6, %v11202_v60, %v11204_v36  ;;  %v5826_v60 = vrot.slane %v5824_v1, 2 }
 0x477   : > { %15778 = vmatmul.mubr.msk.bf16.gmra.mrb[80].mxu1 %vm1265_vm3, %v5783_v41 }
 0x478   : > { %15781 = vmatprep.mubr.msk.bf16.mxu1 %vm1265_vm3, %v5792_v51  ;;  %v11206_v51 = vrot.slane %v17989_v4, 3  ;;  %v5839_v4 = vshrl.u32 %v19946_v6, 16  ;;  %v17991_v6 = vld [vmem:[%s18111_s27 + $0x190] sm:$0xff]  }
 0x47a   : > { %v20287_v55 = vpop.f32.mrb[44].mxu1  ;;  %16330 = vmatmul.mubr.msk.bf16.gmra.mrb[80].mxu0 %vm1265_vm3, %v11203_v44  ;;  %v5818_v44 = vor.u32 %v5817_v0, %v5814_v39  ;;  %v11207_v24 = vsel %vm11118_vm6, %v11204_v36, %v11206_v51  ;;  %v5832_v39 = vrot.slane %v5830_v43, 1  ;;  %v5835_v36 = vrot.slane %v5833_v20, 2 }
 0x47b   : > { %21369 = vst [vmem:[#allocation25_spill] sm:$0xff] %v20287_v55  ;;  %v20290_v7 = vpop.f32.mrb[45].mxu1  ;;  %16333 = vmatprep.mubr.msk.bf16.mxu0 %vm1265_vm3, %v11205_v29  ;;  %v17990_v55 = vld [vmem:[%s18111_s27 + $0x188] sm:$0xff]   ;;  %v5827_v29 = vor.u32 %v5826_v60, %v5823_v34  ;;  %v5841_v60 = vrot.slane %v5839_v4, 1  ;;  %v5851_v43 = vshll.u32 %v19959_v58, 16 }
 0x47c   : > { %21370 = vst [vmem:[#allocation26_spill] sm:$0xff] %v20290_v7  ;;  %v20293_v41 = vpop.f32.mrb[46].mxu1  ;;  %v11208_v7 = vrot.slane %v17990_v55, 3  ;;  %v5819_v17 = vsel %vm5397_vm4, %v5809_v46, %v5818_v44  ;;  %v5848_v46 = vshrl.u32 %v19959_v58, 16 }
 0x47d   : > { %v20296_v32 = vpop.f32.mrb[47].mxu1  ;;  %v5828_v34 = vsel %vm5397_vm4, %v5818_v44, %v5827_v29  ;;  %v5860_v44 = vshll.u32 %v19964_v45, 16 }
 0x47e   : > { %v11209_v1 = vsel %vm11118_vm6, %v11206_v51, %v11208_v7  ;;  %v5844_v51 = vrot.slane %v5842_v13, 2 }
 0x47f   : > { %15782 = vmatmul.mubr.msk.bf16.gmra.mrb[84].mxu1 %vm1265_vm3, %v5801_v31 }
 0x480   : > { %15785 = vmatprep.mubr.msk.bf16.mxu1 %vm1265_vm3, %v5810_v2  ;;  %v11210_v2 = vrot.slane %v17991_v6, 3  ;;  %v5857_v6 = vshrl.u32 %v19964_v45, 16  ;;  %v17993_v45 = vld [vmem:[%s18111_s27 + $0x1a0] sm:$0xff]  }
 0x482   : > { %v20309_v42 = vpop.f32.mrb[48].mxu1  ;;  %16334 = vmatmul.mubr.msk.bf16.gmra.mrb[84].mxu0 %vm1265_vm3, %v11207_v24  ;;  %v5836_v24 = vor.u32 %v5835_v36, %v5832_v39  ;;  %v11211_v20 = vsel %vm11118_vm6, %v11208_v7, %v11210_v2  ;;  %v5850_v39 = vrot.slane %v5848_v46, 1  ;;  %v5853_v7 = vrot.slane %v5851_v43, 2 }
 0x483   : > { %21371 = vst [vmem:[#allocation28_spill] sm:$0xff] %v20309_v42  ;;  %v20312_v55 = vpop.f32.mrb[49].mxu1  ;;  %16337 = vmatprep.mubr.msk.bf16.mxu0 %vm1265_vm3, %v11209_v1  ;;  %v17992_v42 = vld [vmem:[%s18111_s27 + $0x198] sm:$0xff]   ;;  %v5845_v1 = vor.u32 %v5844_v51, %v5841_v60  ;;  %v5859_v51 = vrot.slane %v5857_v6, 1  ;;  %v5869_v46 = vshll.u32 %v19977_v8, 16 }
 0x484   : > { %21372 = vst [vmem:[#allocation31_spill] sm:$0xff] %v20312_v55  ;;  %v20315_v31 = vpop.f32.mrb[50].mxu1  ;;  %v11212_v55 = vrot.slane %v17992_v42, 3  ;;  %v5837_v58 = vsel %vm5397_vm4, %v5827_v29, %v5836_v24  ;;  %v5866_v29 = vshrl.u32 %v19977_v8, 16 }
 0x485   : > { %v20318_v0 = vpop.f32.mrb[51].mxu1  ;;  %v5846_v60 = vsel %vm5397_vm4, %v5836_v24, %v5845_v1  ;;  %v5878_v24 = vshll.u32 %v19982_v54, 16 }
 0x486   : > { %v11213_v13 = vsel %vm11118_vm6, %v11210_v2, %v11212_v55  ;;  %v5862_v2 = vrot.slane %v5860_v44, 2 }
 0x487   : > { %15786 = vmatmul.mubr.msk.bf16.gmra.mrb[88].mxu1 %vm1265_vm3, %v5819_v17 }
 0x488   : > { %15789 = vmatprep.mubr.msk.bf16.mxu1 %vm1265_vm3, %v5828_v34  ;;  %v11214_v34 = vrot.slane %v17993_v45, 3  ;;  %v5875_v45 = vshrl.u32 %v19982_v54, 16  ;;  %v17995_v54 = vld [vmem:[%s18111_s27 + $0x1b0] sm:$0xff]  }
 0x48a   : > { %v20331_v4 = vpop.f32.mrb[52].mxu1  ;;  %16338 = vmatmul.mubr.msk.bf16.gmra.mrb[88].mxu0 %vm1265_vm3, %v11211_v20  ;;  %v5854_v20 = vor.u32 %v5853_v7, %v5850_v39  ;;  %v11215_v43 = vsel %vm11118_vm6, %v11212_v55, %v11214_v34  ;;  %v5868_v39 = vrot.slane %v5866_v29, 1  ;;  %v5871_v55 = vrot.slane %v5869_v46, 2 }
 0x48b   : > { %21373 = vst [vmem:[#allocation29_spill] sm:$0xff] %v20331_v4  ;;  %v20334_v42 = vpop.f32.mrb[53].mxu1  ;;  %16341 = vmatprep.mubr.msk.bf16.mxu0 %vm1265_vm3, %v11213_v13  ;;  %v17994_v4 = vld [vmem:[%s18111_s27 + $0x1a8] sm:$0xff]   ;;  %v5863_v13 = vor.u32 %v5862_v2, %v5859_v51  ;;  %v5877_v2 = vrot.slane %v5875_v45, 1  ;;  %v5887_v29 = vshll.u32 %v19995_v10, 16 }
 0x48c   : > { %21374 = vst [vmem:[#allocation30_spill] sm:$0xff] %v20334_v42  ;;  %v20337_v17 = vpop.f32.mrb[54].mxu1  ;;  %v11216_v42 = vrot.slane %v17994_v4, 3  ;;  %v5855_v8 = vsel %vm5397_vm4, %v5845_v1, %v5854_v20  ;;  %v5884_v1 = vshrl.u32 %v19995_v10, 16 }
 0x48d   : > { %v20340_v36 = vpop.f32.mrb[55].mxu1  ;;  %v5864_v51 = vsel %vm5397_vm4, %v5854_v20, %v5863_v13  ;;  %v5896_v20 = vshll.u32 %v20000_v18, 16 }
 0x48e   : > { %v11217_v44 = vsel %vm11118_vm6, %v11214_v34, %v11216_v42  ;;  %v5880_v34 = vrot.slane %v5878_v24, 2 }
 0x48f   : > { %15790 = vmatmul.mubr.msk.bf16.gmra.mrb[92].mxu1 %vm1265_vm3, %v5837_v58 }
 0x490   : > { %15793 = vmatprep.mubr.msk.bf16.mxu1 %vm1265_vm3, %v5846_v60  ;;  %v11218_v60 = vrot.slane %v17995_v54, 3  ;;  %v5893_v54 = vshrl.u32 %v20000_v18, 16  ;;  %v17997_v18 = vld [vmem:[%s18111_s27 + $0x1c0] sm:$0xff]  }
 0x492   : > { %v20353_v6 = vpop.f32.mrb[56].mxu1  ;;  %16342 = vmatmul.mubr.msk.bf16.gmra.mrb[92].mxu0 %vm1265_vm3, %v11215_v43  ;;  %v5872_v43 = vor.u32 %v5871_v55, %v5868_v39  ;;  %v11219_v46 = vsel %vm11118_vm6, %v11216_v42, %v11218_v60  ;;  %v5886_v39 = vrot.slane %v5884_v1, 1  ;;  %v5889_v42 = vrot.slane %v5887_v29, 2 }
 0x493   : > { %21375 = vst [vmem:[#allocation32_spill] sm:$0xff] %v20353_v6  ;;  %v20356_v4 = vpop.f32.mrb[57].mxu1  ;;  %16345 = vmatprep.mubr.msk.bf16.mxu0 %vm1265_vm3, %v11217_v44  ;;  %v17996_v6 = vld [vmem:[%s18111_s27 + $0x1b8] sm:$0xff]   ;;  %v5881_v44 = vor.u32 %v5880_v34, %v5877_v2  ;;  %v5895_v34 = vrot.slane %v5893_v54, 1 }
 0x494   : > { %21376 = vst [vmem:[#allocation35_spill] sm:$0xff] %v20356_v4  ;;  %v20359_v58 = vpop.f32.mrb[58].mxu1  ;;  %v11220_v4 = vrot.slane %v17996_v6, 3  ;;  %v5873_v10 = vsel %vm5397_vm4, %v5863_v13, %v5872_v43  ;;  %v5905_v13 = vshll.u32 %v20013_v57, 16  ;;  %v5890_v1 = vor.u32 %v5889_v42, %v5886_v39 }
 0x495   : > { %v20362_v7 = vpop.f32.mrb[59].mxu1  ;;  %v5882_v2 = vsel %vm5397_vm4, %v5872_v43, %v5881_v44  ;;  %v5914_v43 = vshll.u32 %v20018_v19, 16  ;;  %v5920_v42 = vshrl.u32 %v20039_v15, 16 }
 0x496   : > { %v11221_v24 = vsel %vm11118_vm6, %v11218_v60, %v11220_v4  ;;  %v5898_v60 = vrot.slane %v5896_v20, 2 }
 0x497   : > { %15794 = vmatmul.mubr.msk.bf16.gmra.mrb[96].mxu1 %vm1265_vm3, %v5855_v8 }
 0x498   : > { %15797 = vmatprep.mubr.msk.bf16.mxu1 %vm1265_vm3, %v5864_v51  ;;  %v11222_v51 = vrot.slane %v17997_v18, 3  ;;  %v5911_v18 = vshrl.u32 %v20018_v19, 16 }
 0x49a   : > { %v20375_v45 = vpop.f32.mrb[60].mxu1  ;;  %16346 = vmatmul.mubr.msk.bf16.gmra.mrb[96].mxu0 %vm1265_vm3, %v11219_v46  ;;  %v5902_v46 = vshrl.u32 %v20013_v57, 16  ;;  %v11223_v29 = vsel %vm11118_vm6, %v11220_v4, %v11222_v51  ;;  %v5907_v57 = vrot.slane %v5905_v13, 2  ;;  %v5891_v4 = vsel %vm5397_vm4, %v5881_v44, %v5890_v1 }
 0x49b   : > { %21377 = vst [vmem:[#allocation33_spill] sm:$0xff] %v20375_v45  ;;  %v20378_v6 = vpop.f32.mrb[61].mxu1  ;;  %16349 = vmatprep.mubr.msk.bf16.mxu0 %vm1265_vm3, %v11221_v24  ;;  %v17998_v45 = vld [vmem:[%s18111_s27 + $0x1c8] sm:$0xff]   ;;  %v5899_v24 = vor.u32 %v5898_v60, %v5895_v34  ;;  %v5916_v13 = vrot.slane %v5914_v43, 2 }
 0x49c   : > { %21378 = vst [vmem:[#allocation34_spill] sm:$0xff] %v20378_v6  ;;  %v20381_v8 = vpop.f32.mrb[62].mxu1  ;;  %v11224_v6 = vrot.slane %v17998_v45, 3 }
 0x49d   : > { %21379 = vst [vmem:[#allocation36_spill] sm:$0xff] %v20381_v8  ;;  %v20384_v55 = vpop.f32.mrb[63].mxu1  ;;  %v5900_v60 = vsel %vm5397_vm4, %v5890_v1, %v5899_v24  ;;  %v5941_v1 = vshll.u32 %v20065_v27, 16 }
 0x49e   : > { %21380 = vst [vmem:[#allocation37_spill] sm:$0xff] %v20384_v55  ;;  %v11225_v20 = vsel %vm11118_vm6, %v11222_v51, %v11224_v6  ;;  %v17999_v51 = vld [vmem:[%s18111_s27 + $0x1d0] sm:$0xff]  }
 0x49f   : > { %15798 = vmatmul.mubr.msk.bf16.gmra.mrb[100].mxu1 %vm1265_vm3, %v5873_v10  ;;  %v5904_v10 = vrot.slane %v5902_v46, 1  ;;  %v11226_v34 = vrot.slane %v17999_v51, 3  ;;  %v5913_v46 = vrot.slane %v5911_v18, 1  ;;  %v5938_v51 = vshrl.u32 %v20065_v27, 16 }
 0x4a0   : > { %15801 = vmatprep.mubr.msk.bf16.mxu1 %vm1265_vm3, %v5882_v2  ;;  %v5923_v2 = vshll.u32 %v20039_v15, 16  ;;  %v5932_v15 = vshll.u32 %v20044_v59, 16 }
 0x4a1   : > { %v5908_v44 = vor.u32 %v5907_v57, %v5904_v10  ;;  %v11227_v18 = vsel %vm11118_vm6, %v11224_v6, %v11226_v34  ;;  %v5917_v43 = vor.u32 %v5916_v13, %v5913_v46  ;;  %v18002_v10 = vld [vmem:[%s18111_s27 + $0x1e8] sm:$0xff]   ;;  %v5947_v6 = vshrl.u32 %v20070_v21, 16 }
 0x4a2   : > { %v20397_v54 = vpop.f32.mrb[64].mxu1  ;;  %16350 = vmatmul.mubr.msk.bf16.gmra.mrb[100].mxu0 %vm1265_vm3, %v11223_v29  ;;  %v18000_v29 = vld [vmem:[%s18111_s27 + $0x1d8] sm:$0xff]   ;;  %v11232_v57 = vrot.slane %v18002_v10, 3  ;;  %v5934_v8 = vrot.slane %v5932_v15, 2  ;;  %v5959_v46 = vshll.u32 %v20091_v38, 16 }
 0x4a3   : > { %21381 = vst [vmem:[#allocation38_spill] sm:$0xff] %v20397_v54  ;;  %v20400_v45 = vpop.f32.mrb[65].mxu1  ;;  %16353 = vmatprep.mubr.msk.bf16.mxu0 %vm1265_vm3, %v11225_v20  ;;  %v5922_v20 = vrot.slane %v5920_v42, 1  ;;  %v18001_v54 = vld [vmem:[%s18111_s27 + $0x1e0] sm:$0xff]   ;;  %v5918_v27 = vsel %vm5397_vm4, %v5908_v44, %v5917_v43 }
 0x4a4   : > { %21382 = vst [vmem:[#allocation2_spill] sm:$0xff] %v20400_v45  ;;  %v20403_v39 = vpop.f32.mrb[66].mxu1  ;;  %v5929_v45 = vshrl.u32 %v20044_v59, 16  ;;  %v5909_v59 = vsel %vm5397_vm4, %v5899_v24, %v5908_v44 }
 0x4a5   : > { %21383 = vst [vmem:[#allocation3_spill] sm:$0xff] %v20403_v39  ;;  %v20408_v19 = vpop.f32.mrb[67].mxu1  ;;  %v11228_v39 = vrot.slane %v18000_v29, 3 }
 0x4a6   : > { %21384 = vst [vmem:[#allocation39_spill] sm:$0xff] %v20408_v19  ;;  %v5925_v19 = vrot.slane %v5923_v2, 2  ;;  %v5931_v55 = vrot.slane %v5929_v45, 1  ;;  %v5940_v2 = vrot.slane %v5938_v51, 1  ;;  %v18004_v51 = vld [vmem:[%s18111_s27 + $0x1f8] sm:$0xff]  }
 0x4a7   : > { %15802 = vmatmul.mubr.msk.bf16.gmra.mrb[104].mxu1 %vm1265_vm3, %v5891_v4  ;;  %v11229_v29 = vsel %vm11118_vm6, %v11226_v34, %v11228_v39  ;;  %v11230_v4 = vrot.slane %v18001_v54, 3  ;;  %v5950_v54 = vshll.u32 %v20070_v21, 16  ;;  %v5956_v34 = vshrl.u32 %v20091_v38, 16  ;;  %v18003_v21 = vld [vmem:[%s18111_s27 + $0x1f0] sm:$0xff]  }
 0x4a8   : > { %15805 = vmatprep.mubr.msk.bf16.mxu1 %vm1265_vm3, %v5900_v60  ;;  %v5926_v42 = vor.u32 %v5925_v19, %v5922_v20  ;;  %v5943_v60 = vrot.slane %v5941_v1, 2  ;;  %v20436_v19 = vld [vmem:[%s21216_s2] ss:$0 sm:$0xff]  ;;  %v11234_v44 = vrot.slane %v18003_v21, 3  ;;  %v5935_v15 = vor.u32 %v5934_v8, %v5931_v55 }
 0x4a9   : > { %v11231_v45 = vsel %vm11118_vm6, %v11228_v39, %v11230_v4  ;;  %v11233_v13 = vsel %vm11118_vm6, %v11230_v4, %v11232_v57  ;;  %v11236_v1 = vrot.slane %v18004_v51, 3  ;;  %v20452_v8 = vld [vmem:[%s18111_s27 + $0x200] sm:$0xff]   ;;  %v5949_v55 = vrot.slane %v5947_v6, 1 }
 0x4aa   : > { %16354 = vmatmul.mubr.msk.bf16.gmra.mrb[104].mxu0 %vm1265_vm3, %v11227_v18  ;;  %v5927_v38 = vsel %vm5397_vm4, %v5917_v43, %v5926_v42  ;;  %v5944_v18 = vor.u32 %v5943_v60, %v5940_v2  ;;  %v5958_v2 = vrot.slane %v5956_v34, 1  ;;  %v5961_v60 = vrot.slane %v5959_v46, 2 }
 0x4ab   : > { %16357 = vmatprep.mubr.msk.bf16.mxu0 %vm1265_vm3, %v11229_v29  ;;  %v20448_v29 = vld [vmem:[%s21216_s2 + $0x1] ss:$0 sm:$0xff]  ;;  %v5936_v51 = vsel %vm5397_vm4, %v5926_v42, %v5935_v15 }
 0x4ac   : > { %v5945_v34 = vsel %vm5397_vm4, %v5935_v15, %v5944_v18  ;;  %v20480_v15 = vor.u32 %v5961_v60, %v5958_v2 }
 0x4ad   : > { %v16251_v24 = vpop.f32.mrb[0].mxu0 }
 0x4ae   : > { %v16387_v39 = vadd.f32 %v16251_v24, %v20021_v35  ;;  %v11502_v20 = vpop.f32.mrb[1].mxu0  ;;  %v11238_v35 = vrot.slane %v20452_v8, 3 }
 0x4af   : > { %15806 = vmatmul.mubr.msk.bf16.gmra.mrb[108].mxu1 %vm1265_vm3, %v5909_v59  ;;  %v16388_v4 = vadd.f32 %v11502_v20, %v20024_v37  ;;  %v16252_v10 = vpop.f32.mrb[2].mxu0  ;;  %v5952_v59 = vrot.slane %v5950_v54, 2  ;;  %v11235_v20 = vsel %vm11118_vm6, %v11232_v57, %v11234_v44 }
 0x4b0   : > { %15809 = vmatprep.mubr.msk.bf16.mxu1 %vm1265_vm3, %v5918_v27  ;;  %v12188_v43 = vmul.f32 %v16387_v39, %v20436_v19  ;;  %v16389_v27 = vadd.f32 %v16252_v10, %v20027_v52  ;;  %v11505_v24 = vpop.f32.mrb[3].mxu0  ;;  %v11237_v52 = vsel %vm11118_vm6, %v11234_v44, %v11236_v1 }
 0x4b1   : > { %v12186_v21 = vmul.f32 %v16388_v4, %v20436_v19  ;;  %v16390_v37 = vadd.f32 %v11505_v24, %v20030_v40  ;;  %v20473_v40 = vsel %vm11118_vm6, %v11236_v1, %v11238_v35  ;;  %v5953_v57 = vor.u32 %v5952_v59, %v5949_v55  ;;  %v20477_v4 = vld [vmem:[%s18111_s27 + $0x208] sm:$0xff]   ;;  %v20490_v55 = vld [vmem:[%s18111_s27 + $0x210] sm:$0xff]  }
 0x4b2   : > { %v12329_v6 = vadd.f32 %v20448_v29, %v12188_v43  ;;  %v12189_v54 = vmul.f32 %v16389_v27, %v20436_v19  ;;  %16358 = vmatmul.mubr.msk.bf16.gmra.mrb[108].mxu0 %vm1265_vm3, %v11231_v45  ;;  %v11240_v44 = vrot.slane %v20477_v4, 3  ;;  %v11242_v59 = vrot.slane %v20490_v55, 3 }
 0x4b3   : > { %v12327_v46 = vadd.f32 %v20448_v29, %v12186_v21  ;;  %v12187_v39 = vmul.f32 %v16390_v37, %v20436_v19  ;;  %16361 = vmatprep.mubr.msk.bf16.mxu0 %vm1265_vm3, %v11233_v13  ;;  %v5965_v43 = vshrl.u32 %v20096_v53, 16  ;;  %v5968_v21 = vshll.u32 %v20096_v53, 16 }
 0x4b4   : > { %v12465_v42 = vmax.f32 %v12329_v6, 0.0  ;;  %v12330_v45 = vadd.f32 %v20448_v29, %v12189_v54 }
 0x4b5   : > { %v12463_v13 = vmax.f32 %v12327_v46, 0.0  ;;  %v12328_v10 = vadd.f32 %v20448_v29, %v12187_v39  ;;  %v16255_v1 = vpop.f32.mrb[4].mxu0  ;;  %v5954_v46 = vsel %vm5397_vm4, %v5944_v18, %v5953_v57  ;;  %v5977_v18 = vshll.u32 %v20117_v23, 16 }
 0x4b6   : > { %v14388_v27 = vpack.c.bf16 %v12465_v42, %v12465_v42  ;;  %v12466_v24 = vmax.f32 %v12330_v45, 0.0  ;;  %v16391_v2 = vadd.f32 %v16255_v1, %v20047_v22  ;;  %v11518_v60 = vpop.f32.mrb[5].mxu0 }
 0x4b7   : > { %15810 = vmatmul.mubr.msk.bf16.gmra.mrb[112].mxu1 %vm1265_vm3, %v5927_v38  ;;  %v14386_v37 = vpack.c.bf16 %v12463_v13, %v12463_v13  ;;  %v12464_v6 = vmax.f32 %v12328_v10, 0.0  ;;  %v16392_v38 = vadd.f32 %v11518_v60, %v20050_v16  ;;  %v16256_v54 = vpop.f32.mrb[6].mxu0  ;;  %v5979_v8 = vrot.slane %v5977_v18, 2 }
 0x4b8   : > { %15813 = vmatprep.mubr.msk.bf16.mxu1 %vm1265_vm3, %v5936_v51  ;;  %13146 = vst.msk [vmem:[%s20485_s21 + $0x8] sm:$0xf] %vm13143_vm7, %v14388_v27  ;;  %v14389_v39 = vpack.c.bf16 %v12466_v24, %v12466_v24  ;;  %v12192_v42 = vmul.f32 %v16391_v2, %v20436_v19  ;;  %v16393_v22 = vadd.f32 %v16256_v54, %v20053_v33  ;;  %v11521_v45 = vpop.f32.mrb[7].mxu0  ;;  %v5974_v51 = vshrl.u32 %v20117_v23, 16 }
 0x4b9   : > { %13144 = vst.msk [vmem:[%s20485_s21] sm:$0xf] %vm13143_vm7, %v14386_v37  ;;  %v14387_v53 = vpack.c.bf16 %v12464_v6, %v12464_v6  ;;  %v12190_v13 = vmul.f32 %v16392_v38, %v20436_v19  ;;  %v16394_v16 = vadd.f32 %v11521_v45, %v20056_v9  ;;  %v5967_v33 = vrot.slane %v5965_v43, 1 }
 0x4ba   : > { %13147 = vst.msk [vmem:[%s20485_s21 + $0xc] sm:$0xf] %vm13143_vm7, %v14389_v39  ;;  %v12333_v10 = vadd.f32 %v20448_v29, %v12192_v42  ;;  %v12193_v1 = vmul.f32 %v16393_v22, %v20436_v19  ;;  %16362 = vmatmul.mubr.msk.bf16.gmra.mrb[112].mxu0 %vm1265_vm3, %v11235_v20  ;;  %v5970_v27 = vrot.slane %v5968_v21, 2  ;;  %v11241_v9 = vsel %vm11118_vm6, %v11238_v35, %v11240_v44 }
 0x4bb   : > { %13145 = vst.msk [vmem:[%s20485_s21 + $0x4] sm:$0xf] %vm13143_vm7, %v14387_v53  ;;  %v12331_v24 = vadd.f32 %v20448_v29, %v12190_v13  ;;  %v12191_v2 = vmul.f32 %v16394_v16, %v20436_v19  ;;  %16365 = vmatprep.mubr.msk.bf16.mxu0 %vm1265_vm3, %v11237_v52  ;;  %v5963_v23 = vsel %vm5397_vm4, %v5953_v57, %v20480_v15  ;;  %v5976_v60 = vrot.slane %v5974_v51, 1 }
 0x4bc   : > { %v12469_v20 = vmax.f32 %v12333_v10, 0.0  ;;  %v12334_v43 = vadd.f32 %v20448_v29, %v12193_v1  ;;  %v5983_v21 = vshrl.u32 %v20122_v62, 16  ;;  %v5986_v35 = vshll.u32 %v20122_v62, 16 }
 0x4bd   : > { %v12467_v37 = vmax.f32 %v12331_v24, 0.0  ;;  %v12332_v6 = vadd.f32 %v20448_v29, %v12191_v2  ;;  %v16259_v52 = vpop.f32.mrb[8].mxu0  ;;  %v20533_v42 = vor.u32 %v5970_v27, %v5967_v33  ;;  %v5980_v2 = vor.u32 %v5979_v8, %v5976_v60 }
 0x4be   : > { %v14392_v38 = vpack.c.bf16 %v12469_v20, %v12469_v20  ;;  %v12470_v54 = vmax.f32 %v12334_v43, 0.0  ;;  %v16395_v57 = vadd.f32 %v16259_v52, %v20073_v63  ;;  %v11534_v39 = vpop.f32.mrb[9].mxu0  ;;  %v5985_v18 = vrot.slane %v5983_v21, 1 }
 0x4bf   : > { %15814 = vmatmul.mubr.msk.bf16.gmra.mrb[116].mxu1 %vm1265_vm3, %v5945_v34  ;;  %v14390_v22 = vpack.c.bf16 %v12467_v37, %v12467_v37  ;;  %v12468_v45 = vmax.f32 %v12332_v6, 0.0  ;;  %v16396_v51 = vadd.f32 %v11534_v39, %v20076_v48  ;;  %v16260_v53 = vpop.f32.mrb[10].mxu0  ;;  %v20537_v34 = vld [vmem:[%s18111_s27 + $0x218] sm:$0xff]   ;;  %v5988_v33 = vrot.slane %v5986_v35, 2 }
 0x4c0   : > { %15817 = vmatprep.mubr.msk.bf16.mxu1 %vm1265_vm3, %v5954_v46  ;;  %v11244_v62 = vrot.slane %v20537_v34, 3  ;;  %13150 = vst.msk [vmem:[%s20485_s21 + $0x18] sm:$0xf] %vm13143_vm7, %v14392_v38  ;;  %v14393_v13 = vpack.c.bf16 %v12470_v54, %v12470_v54  ;;  %v12196_v63 = vmul.f32 %v16395_v57, %v20436_v19  ;;  %v16397_v46 = vadd.f32 %v16260_v53, %v20079_v25  ;;  %v11537_v16 = vpop.f32.mrb[11].mxu0  ;;  %v21385_v54 = vld [vmem:[#allocation4_spill] sm:$0xff] }
 0x4c1   : > { %13148 = vst.msk [vmem:[%s20485_s21 + $0x10] sm:$0xf] %vm13143_vm7, %v14390_v22  ;;  %v14391_v10 = vpack.c.bf16 %v12468_v45, %v12468_v45  ;;  %v12194_v48 = vmul.f32 %v16396_v51, %v20436_v19  ;;  %v16398_v1 = vadd.f32 %v11537_v16, %v20082_v30  ;;  %v11243_v25 = vsel %vm11118_vm6, %v11240_v44, %v11242_v59  ;;  %v21387_v51 = vld [vmem:[#allocation7_spill] sm:$0xff] }
 0x4c2   : > { %13151 = vst.msk [vmem:[%s20485_s21 + $0x1c] sm:$0xf] %vm13143_vm7, %v14393_v13  ;;  %v12337_v27 = vadd.f32 %v20448_v29, %v12196_v63  ;;  %v12197_v24 = vmul.f32 %v16397_v46, %v20436_v19  ;;  %16366 = vmatmul.mubr.msk.bf16.gmra.mrb[116].mxu0 %vm1265_vm3, %v20473_v40  ;;  %v5972_v43 = vsel %vm5397_vm4, %v20480_v15, %v20533_v42  ;;  %v20568_v40 = vld [vmem:[%s18111_s27 + $0x220] sm:$0xff]   ;;  %v5992_v37 = vshrl.u32 %v20143_v11, 16  ;;  %v21388_v46 = vld [vmem:[#allocation5_spill] sm:$0xff] }
 0x4c3   : > { %13149 = vst.msk [vmem:[%s20485_s21 + $0x14] sm:$0xf] %vm13143_vm7, %v14391_v10  ;;  %v12335_v30 = vadd.f32 %v20448_v29, %v12194_v48  ;;  %v12195_v20 = vmul.f32 %v16398_v1, %v20436_v19  ;;  %16369 = vmatprep.mubr.msk.bf16.mxu0 %vm1265_vm3, %v11241_v9  ;;  %v11246_v21 = vrot.slane %v20568_v40, 3  ;;  %v11245_v60 = vsel %vm11118_vm6, %v11242_v59, %v11244_v62  ;;  %v21386_v59 = vld [vmem:[#allocation12_spill] sm:$0xff] }
 0x4c4   : > { %v12473_v4 = vmax.f32 %v12337_v27, 0.0  ;;  %v12338_v44 = vadd.f32 %v20448_v29, %v12197_v24  ;;  %v20580_v52 = vor.u32 %v5988_v33, %v5985_v18  ;;  %v5995_v8 = vshll.u32 %v20143_v11, 16  ;;  %v21389_v33 = vld [vmem:[#allocation6_spill] sm:$0xff] }
 0x4c5   : > { %v12471_v9 = vmax.f32 %v12335_v30, 0.0  ;;  %v12336_v6 = vadd.f32 %v20448_v29, %v12195_v20  ;;  %v16263_v15 = vpop.f32.mrb[12].mxu0  ;;  %v6001_v39 = vshrl.u32 %v21386_v59, 16  ;;  %v6004_v13 = vshll.u32 %v21386_v59, 16 }
 0x4c6   : > { %v14396_v35 = vpack.c.bf16 %v12473_v4, %v12473_v4  ;;  %v12474_v38 = vmax.f32 %v12338_v44, 0.0  ;;  %v16399_v55 = vadd.f32 %v16263_v15, %v21385_v54  ;;  %v11550_v57 = vpop.f32.mrb[13].mxu0  ;;  %v5994_v10 = vrot.slane %v5992_v37, 1 }
 0x4c7   : > { %15818 = vmatmul.mubr.msk.bf16.gmra.mrb[120].mxu1 %vm1265_vm3, %v5963_v23  ;;  %v14394_v22 = vpack.c.bf16 %v12471_v9, %v12471_v9  ;;  %v12472_v45 = vmax.f32 %v12336_v6, 0.0  ;;  %v16400_v53 = vadd.f32 %v11550_v57, %v21387_v51  ;;  %v16264_v23 = vpop.f32.mrb[14].mxu0  ;;  %v5997_v24 = vrot.slane %v5995_v8, 2 }
 0x4c8   : > { %15821 = vmatprep.mubr.msk.bf16.mxu1 %vm1265_vm3, %v5972_v43  ;;  %13154 = vst.msk [vmem:[%s20485_s21 + $0x28] sm:$0xf] %vm13143_vm7, %v14396_v35  ;;  %v14397_v11 = vpack.c.bf16 %v12474_v38, %v12474_v38  ;;  %v12200_v63 = vmul.f32 %v16399_v55, %v20436_v19  ;;  %v16401_v16 = vadd.f32 %v16264_v23, %v21388_v46  ;;  %v11553_v18 = vpop.f32.mrb[15].mxu0  ;;  %v6003_v9 = vrot.slane %v6001_v39, 1  ;;  %v21391_v23 = vld [vmem:[#allocation11_spill] sm:$0xff] }
 0x4c9   : > { %13152 = vst.msk [vmem:[%s20485_s21 + $0x20] sm:$0xf] %vm13143_vm7, %v14394_v22  ;;  %v14395_v48 = vpack.c.bf16 %v12472_v45, %v12472_v45  ;;  %v12198_v1 = vmul.f32 %v16400_v53, %v20436_v19  ;;  %v16402_v27 = vadd.f32 %v11553_v18, %v21389_v33  ;;  %v5981_v43 = vsel %vm5397_vm4, %v20533_v42, %v5980_v2  ;;  %v18011_v55 = vld [vmem:[%s18111_s27 + $0x230] ss:$0 sps:$4 sm:$0x33]   ;;  %v21392_v18 = vld [vmem:[#allocation9_spill] sm:$0xff] }
 0x4ca   : > { %13155 = vst.msk [vmem:[%s20485_s21 + $0x2c] sm:$0xf] %vm13143_vm7, %v14397_v11  ;;  %v12341_v30 = vadd.f32 %v20448_v29, %v12200_v63  ;;  %v12201_v20 = vmul.f32 %v16401_v16, %v20436_v19  ;;  %16370 = vmatmul.mubr.msk.bf16.gmra.mrb[120].mxu0 %vm1265_vm3, %v11243_v25  ;;  %v5990_v4 = vsel %vm5397_vm4, %v5980_v2, %v20580_v52  ;;  %v6006_v6 = vrot.slane %v6004_v13, 2  ;;  %v20617_v2 = vld [vmem:[%s18111_s27 + $0x228] sm:$0xff]   ;;  %v21390_v22 = vld [vmem:[#allocation8_spill] sm:$0xff] }
 0x4cb   : > { %13153 = vst.msk [vmem:[%s20485_s21 + $0x24] sm:$0xf] %vm13143_vm7, %v14395_v48  ;;  %v12339_v44 = vadd.f32 %v20448_v29, %v12198_v1  ;;  %v12199_v37 = vmul.f32 %v16402_v27, %v20436_v19  ;;  %16373 = vmatprep.mubr.msk.bf16.mxu0 %vm1265_vm3, %v11245_v60  ;;  %v11247_v42 = vsel %vm11118_vm6, %v11244_v62, %v11246_v21  ;;  %v11248_v8 = vrot.slane %v20617_v2, 3  ;;  %v18013_v2 = vld [vmem:[%s18111_s27 + $0x238] sm:$0xff]  }
 0x4cc   : > { %v12477_v15 = vmax.f32 %v12341_v30, 0.0  ;;  %v12342_v25 = vadd.f32 %v20448_v29, %v12201_v20  ;;  %v5998_v60 = vor.u32 %v5997_v24, %v5994_v10  ;;  %v6010_v57 = vshrl.u32 %v18011_v55, 16  ;;  %v21393_v24 = vld [vmem:[#allocation10_spill] sm:$0xff] }
 0x4cd   : > { %v12475_v35 = vmax.f32 %v12339_v44, 0.0  ;;  %v12340_v38 = vadd.f32 %v20448_v29, %v12199_v37  ;;  %v16267_v54 = vpop.f32.mrb[16].mxu0  ;;  %v6013_v45 = vshll.u32 %v18011_v55, 16  ;;  %v6007_v63 = vor.u32 %v6006_v6, %v6003_v9 }
 0x4ce   : > { %v14400_v59 = vpack.c.bf16 %v12477_v15, %v12477_v15  ;;  %v12478_v39 = vmax.f32 %v12342_v25, 0.0  ;;  %v16403_v34 = vadd.f32 %v16267_v54, %v21390_v22  ;;  %v11566_v62 = vpop.f32.mrb[17].mxu0  ;;  %v11249_v1 = vsel %vm11118_vm6, %v11246_v21, %v11248_v8 }
 0x4cf   : > { %15822 = vmatmul.mubr.msk.bf16.gmra.mrb[124].mxu1 %vm1265_vm3, %v5981_v43  ;;  %v14398_v51 = vpack.c.bf16 %v12475_v35, %v12475_v35  ;;  %v12476_v53 = vmax.f32 %v12340_v38, 0.0  ;;  %v16404_v13 = vadd.f32 %v11566_v62, %v21391_v23  ;;  %v16268_v11 = vpop.f32.mrb[18].mxu0  ;;  %v5999_v20 = vsel %vm5397_vm4, %v20580_v52, %v5998_v60  ;;  %v18012_v52 = vld [vmem:[%s18111_s27 + $0x230] sm:$0xff]  }
 0x4d0   : > { %15825 = vmatprep.mubr.msk.bf16.mxu1 %vm1265_vm3, %v5990_v4  ;;  %13158 = vst.msk [vmem:[%s20485_s21 + $0x38] sm:$0xf] %vm13143_vm7, %v14400_v59  ;;  %v14401_v46 = vpack.c.bf16 %v12478_v39, %v12478_v39  ;;  %v12204_v16 = vmul.f32 %v16403_v34, %v20436_v19  ;;  %v16405_v10 = vadd.f32 %v16268_v11, %v21392_v18  ;;  %v11569_v48 = vpop.f32.mrb[19].mxu0  ;;  %v6012_v21 = vrot.slane %v6010_v57, 1  ;;  %v21394_v59 = vld [vmem:[#allocation15_spill] sm:$0xff] }
 0x4d1   : > { %13156 = vst.msk [vmem:[%s20485_s21 + $0x30] sm:$0xf] %vm13143_vm7, %v14398_v51  ;;  %v14399_v33 = vpack.c.bf16 %v12476_v53, %v12476_v53  ;;  %v12202_v27 = vmul.f32 %v16404_v13, %v20436_v19  ;;  %v16406_v30 = vadd.f32 %v11569_v48, %v21393_v24  ;;  %v6015_v4 = vrot.slane %v6013_v45, 2  ;;  %v21395_v45 = vld [vmem:[#allocation13_spill] sm:$0xff] }
 0x4d2   : > { %13159 = vst.msk [vmem:[%s20485_s21 + $0x3c] sm:$0xf] %vm13143_vm7, %v14401_v46  ;;  %v12345_v43 = vadd.f32 %v20448_v29, %v12204_v16  ;;  %v12205_v40 = vmul.f32 %v16405_v10, %v20436_v19  ;;  %16374 = vmatmul.mubr.msk.bf16.gmra.mrb[124].mxu0 %vm1265_vm3, %v11247_v42  ;;  %v11250_v9 = vrot.slane %v18012_v52, 3  ;;  %v6008_v6 = vsel %vm5397_vm4, %v5998_v60, %v6007_v63  ;;  %v21396_v46 = vld [vmem:[#allocation14_spill] sm:$0xff] }
 0x4d3   : > { %13157 = vst.msk [vmem:[%s20485_s21 + $0x34] sm:$0xf] %vm13143_vm7, %v14399_v33  ;;  %v12343_v44 = vadd.f32 %v20448_v29, %v12202_v27  ;;  %v12203_v37 = vmul.f32 %v16406_v30, %v20436_v19  ;;  %16377 = vmatprep.mubr.msk.bf16.mxu0 %vm1265_vm3, %v11249_v1  ;;  %v11252_v35 = vrot.slane %v18013_v2, 3  ;;  %v6016_v60 = vor.u32 %v6015_v4, %v6012_v21  ;;  %v21397_v33 = vld [vmem:[#allocation16_spill] sm:$0xff] }
 0x4d4   : > { %v12481_v15 = vmax.f32 %v12345_v43, 0.0  ;;  %v12346_v25 = vadd.f32 %v20448_v29, %v12205_v40  ;;  %v11251_v23 = vsel %vm11118_vm6, %v11248_v8, %v11250_v9  ;;  %v18014_v40 = vld [vmem:[%s18111_s27 + $0x240] ss:$0 sps:$4 sm:$0x77]  }
 0x4d5   : > { %v12479_v42 = vmax.f32 %v12343_v44, 0.0  ;;  %v12344_v38 = vadd.f32 %v20448_v29, %v12203_v37  ;;  %v16271_v54 = vpop.f32.mrb[20].mxu0  ;;  %v11253_v10 = vsel %vm11118_vm6, %v11250_v9, %v11252_v35  ;;  %v6017_v30 = vsel %vm5397_vm4, %v6007_v63, %v6016_v60 }
 0x4d6   : > { %v14404_v55 = vpack.c.bf16 %v12481_v15, %v12481_v15  ;;  %v12482_v57 = vmax.f32 %v12346_v25, 0.0  ;;  %v16407_v39 = vadd.f32 %v16271_v54, %v21394_v59  ;;  %v11582_v22 = vpop.f32.mrb[21].mxu0  ;;  %v11254_v21 = vrot.slane %v18014_v40, 3  ;;  %v21398_v15 = vld [vmem:[#allocation19_spill] sm:$0xff]  ;;  %v21399_v54 = vld [vmem:[#allocation17_spill] sm:$0xff] }
 0x4d7   : > { %15826 = vmatmul.mubr.msk.bf16.gmra.mrb[128].mxu1 %vm1265_vm3, %v5999_v20  ;;  %v14402_v34 = vpack.c.bf16 %v12479_v42, %v12479_v42  ;;  %v12480_v62 = vmax.f32 %v12344_v38, 0.0  ;;  %v16408_v51 = vadd.f32 %v11582_v22, %v21395_v45  ;;  %v16272_v53 = vpop.f32.mrb[22].mxu0 }
 0x4d8   : > { %15829 = vmatprep.mubr.msk.bf16.mxu1 %vm1265_vm3, %v6008_v6  ;;  %13162 = vst.msk [vmem:[%s20485_s21 + $0x48] sm:$0xf] %vm13143_vm7, %v14404_v55  ;;  %v14405_v13 = vpack.c.bf16 %v12482_v57, %v12482_v57  ;;  %v12208_v11 = vmul.f32 %v16407_v39, %v20436_v19  ;;  %v16409_v16 = vadd.f32 %v16272_v53, %v21396_v46  ;;  %v11585_v18 = vpop.f32.mrb[23].mxu0 }
 0x4d9   : > { %13160 = vst.msk [vmem:[%s20485_s21 + $0x40] sm:$0xf] %vm13143_vm7, %v14402_v34  ;;  %v14403_v48 = vpack.c.bf16 %v12480_v62, %v12480_v62  ;;  %v12206_v1 = vmul.f32 %v16408_v51, %v20436_v19  ;;  %v16410_v27 = vadd.f32 %v11585_v18, %v21397_v33  ;;  %v11255_v59 = vsel %vm11118_vm6, %v11252_v35, %v11254_v21 }
 0x4da   : > { %13163 = vst.msk [vmem:[%s20485_s21 + $0x4c] sm:$0xf] %vm13143_vm7, %v14405_v13  ;;  %v12349_v8 = vadd.f32 %v20448_v29, %v12208_v11  ;;  %v12209_v24 = vmul.f32 %v16409_v16, %v20436_v19  ;;  %16378 = vmatmul.mubr.msk.bf16.gmra.mrb[128].mxu0 %vm1265_vm3, %v11251_v23 }
 0x4db   : > { %13161 = vst.msk [vmem:[%s20485_s21 + $0x44] sm:$0xf] %vm13143_vm7, %v14403_v48  ;;  %v12347_v20 = vadd.f32 %v20448_v29, %v12206_v1  ;;  %v12207_v43 = vmul.f32 %v16410_v27, %v20436_v19  ;;  %16381 = vmatprep.mubr.msk.bf16.mxu0 %vm1265_vm3, %v11253_v10 }
 0x4dc   : > { %v12485_v4 = vmax.f32 %v12349_v8, 0.0  ;;  %v12350_v44 = vadd.f32 %v20448_v29, %v12209_v24  ;;  %v21400_v8 = vld [vmem:[#allocation18_spill] sm:$0xff] }
 0x4dd   : > { %v12483_v37 = vmax.f32 %v12347_v20, 0.0  ;;  %v12348_v52 = vadd.f32 %v20448_v29, %v12207_v43  ;;  %v16275_v9 = vpop.f32.mrb[24].mxu0 }
 0x4de   : > { %v14408_v63 = vpack.c.bf16 %v12485_v4, %v12485_v4  ;;  %v12486_v6 = vmax.f32 %v12350_v44, 0.0  ;;  %v16411_v25 = vadd.f32 %v16275_v9, %v21398_v15  ;;  %v11598_v2 = vpop.f32.mrb[25].mxu0 }
 0x4df   : > { %15830 = vmatmul.mubr.msk.bf16.gmra.mrb[132].mxu1 %vm1265_vm3, %v6017_v30  ;;  %v14406_v42 = vpack.c.bf16 %v12483_v37, %v12483_v37  ;;  %v12484_v38 = vmax.f32 %v12348_v52, 0.0  ;;  %v16412_v55 = vadd.f32 %v11598_v2, %v21399_v54  ;;  %v16276_v57 = vpop.f32.mrb[26].mxu0 }
 0x4e0   : > { %13166 = vst.msk [vmem:[%s20485_s21 + $0x58] sm:$0xf] %vm13143_vm7, %v14408_v63  ;;  %v14409_v39 = vpack.c.bf16 %v12486_v6, %v12486_v6  ;;  %v12212_v22 = vmul.f32 %v16411_v25, %v20436_v19  ;;  %v16413_v60 = vadd.f32 %v16276_v57, %v20182_v50  ;;  %v11601_v34 = vpop.f32.mrb[27].mxu0 }
 0x4e1   : > { %13164 = vst.msk [vmem:[%s20485_s21 + $0x50] sm:$0xf] %vm13143_vm7, %v14406_v42  ;;  %v14407_v62 = vpack.c.bf16 %v12484_v38, %v12484_v38  ;;  %v12210_v45 = vmul.f32 %v16412_v55, %v20436_v19  ;;  %v16414_v51 = vadd.f32 %v11601_v34, %v20185_v28  ;;  %v21401_v38 = vld [vmem:[#allocation20_spill] sm:$0xff] }
 0x4e2   : > { %13167 = vst.msk [vmem:[%s20485_s21 + $0x5c] sm:$0xf] %vm13143_vm7, %v14409_v39  ;;  %v12353_v53 = vadd.f32 %v20448_v29, %v12212_v22  ;;  %v12213_v35 = vmul.f32 %v16413_v60, %v20436_v19  ;;  %16382 = vmatmul.mubr.msk.bf16.gmra.mrb[132].mxu0 %vm1265_vm3, %v11255_v59  ;;  %v21402_v39 = vld [vmem:[#allocation23_spill] sm:$0xff] }
 0x4e3   : > { %13165 = vst.msk [vmem:[%s20485_s21 + $0x54] sm:$0xf] %vm13143_vm7, %v14407_v62  ;;  %v12351_v50 = vadd.f32 %v20448_v29, %v12210_v45  ;;  %v12211_v23 = vmul.f32 %v16414_v51, %v20436_v19 }
 0x4e4   : > { %v12489_v13 = vmax.f32 %v12353_v53, 0.0  ;;  %v12354_v11 = vadd.f32 %v20448_v29, %v12213_v35 }
 0x4e5   : > { %v12487_v46 = vmax.f32 %v12351_v50, 0.0  ;;  %v12352_v28 = vadd.f32 %v20448_v29, %v12211_v23  ;;  %v16279_v16 = vpop.f32.mrb[28].mxu0 }
 0x4e6   : > { %v14412_v18 = vpack.c.bf16 %v12489_v13, %v12489_v13  ;;  %v12490_v10 = vmax.f32 %v12354_v11, 0.0  ;;  %v16415_v48 = vadd.f32 %v16279_v16, %v20199_v56  ;;  %v11614_v1 = vpop.f32.mrb[29].mxu0 }
 0x4e7   : > { %v14410_v33 = vpack.c.bf16 %v12487_v46, %v12487_v46  ;;  %v12488_v27 = vmax.f32 %v12352_v28, 0.0  ;;  %v16416_v24 = vadd.f32 %v11614_v1, %v21400_v8  ;;  %v16280_v30 = vpop.f32.mrb[30].mxu0  ;;  %v21403_v1 = vld [vmem:[#allocation21_spill] sm:$0xff] }
 0x4e8   : > { %13170 = vst.msk [vmem:[%s20485_s21 + $0x68] sm:$0xf] %vm13143_vm7, %v14412_v18  ;;  %v14413_v20 = vpack.c.bf16 %v12490_v10, %v12490_v10  ;;  %v12216_v43 = vmul.f32 %v16415_v48, %v20436_v19  ;;  %v16417_v40 = vadd.f32 %v16280_v30, %v20205_v26  ;;  %v11617_v21 = vpop.f32.mrb[31].mxu0  ;;  %v21404_v30 = vld [vmem:[#allocation22_spill] sm:$0xff] }
 0x4e9   : > { %13168 = vst.msk [vmem:[%s20485_s21 + $0x60] sm:$0xf] %vm13143_vm7, %v14410_v33  ;;  %v14411_v4 = vpack.c.bf16 %v12488_v27, %v12488_v27  ;;  %v12214_v56 = vmul.f32 %v16416_v24, %v20436_v19  ;;  %v16418_v44 = vadd.f32 %v11617_v21, %v20208_v47 }
 0x4ea   : > { %13171 = vst.msk [vmem:[%s20485_s21 + $0x6c] sm:$0xf] %vm13143_vm7, %v14413_v20  ;;  %v12357_v37 = vadd.f32 %v20448_v29, %v12216_v43  ;;  %v12217_v52 = vmul.f32 %v16417_v40, %v20436_v19 }
 0x4eb   : > { %13169 = vst.msk [vmem:[%s20485_s21 + $0x64] sm:$0xf] %vm13143_vm7, %v14411_v4  ;;  %v12355_v9 = vadd.f32 %v20448_v29, %v12214_v56  ;;  %v12215_v26 = vmul.f32 %v16418_v44, %v20436_v19 }
 0x4ec   : > { %v12493_v63 = vmax.f32 %v12357_v37, 0.0  ;;  %v12358_v6 = vadd.f32 %v20448_v29, %v12217_v52 }
 0x4ed   : > { %v12491_v15 = vmax.f32 %v12355_v9, 0.0  ;;  %v12356_v47 = vadd.f32 %v20448_v29, %v12215_v26  ;;  %v16283_v25 = vpop.f32.mrb[32].mxu0 }
 0x4ee   : > { %v14416_v2 = vpack.c.bf16 %v12493_v63, %v12493_v63  ;;  %v12494_v42 = vmax.f32 %v12358_v6, 0.0  ;;  %v16419_v54 = vadd.f32 %v16283_v25, %v21401_v38  ;;  %v11630_v55 = vpop.f32.mrb[33].mxu0  ;;  %v21405_v38 = vld [vmem:[#allocation24_spill] sm:$0xff] }
 0x4ef   : > { %v14414_v57 = vpack.c.bf16 %v12491_v15, %v12491_v15  ;;  %v12492_v59 = vmax.f32 %v12356_v47, 0.0  ;;  %v16420_v22 = vadd.f32 %v11630_v55, %v21402_v39  ;;  %v16284_v60 = vpop.f32.mrb[34].mxu0  ;;  %v21406_v39 = vld [vmem:[#allocation27_spill] sm:$0xff] }
 0x4f0   : > { %13174 = vst.msk [vmem:[%s20485_s21 + $0x78] sm:$0xf] %vm13143_vm7, %v14416_v2  ;;  %v14417_v34 = vpack.c.bf16 %v12494_v42, %v12494_v42  ;;  %v12220_v62 = vmul.f32 %v16419_v54, %v20436_v19  ;;  %v16421_v45 = vadd.f32 %v16284_v60, %v20227_v5  ;;  %v11633_v51 = vpop.f32.mrb[35].mxu0 }
 0x4f1   : > { %13172 = vst.msk [vmem:[%s20485_s21 + $0x70] sm:$0xf] %vm13143_vm7, %v14414_v57  ;;  %v14415_v53 = vpack.c.bf16 %v12492_v59, %v12492_v59  ;;  %v12218_v35 = vmul.f32 %v16420_v22, %v20436_v19  ;;  %v16422_v50 = vadd.f32 %v11633_v51, %v20230_v12 }
 0x4f2   : > { %13175 = vst.msk [vmem:[%s20485_s21 + $0x7c] sm:$0xf] %vm13143_vm7, %v14417_v34  ;;  %v12361_v23 = vadd.f32 %v20448_v29, %v12220_v62  ;;  %v12221_v13 = vmul.f32 %v16421_v45, %v20436_v19 }
 0x4f3   : > { %13173 = vst.msk [vmem:[%s20485_s21 + $0x74] sm:$0xf] %vm13143_vm7, %v14415_v53  ;;  %v12359_v11 = vadd.f32 %v20448_v29, %v12218_v35  ;;  %v12219_v5 = vmul.f32 %v16422_v50, %v20436_v19 }
 0x4f4   : > { %v12497_v46 = vmax.f32 %v12361_v23, 0.0  ;;  %v12362_v28 = vadd.f32 %v20448_v29, %v12221_v13 }
 0x4f5   : > { %v12495_v16 = vmax.f32 %v12359_v11, 0.0  ;;  %v12360_v12 = vadd.f32 %v20448_v29, %v12219_v5  ;;  %v16287_v18 = vpop.f32.mrb[36].mxu0 }
 0x4f6   : > { %v14420_v10 = vpack.c.bf16 %v12497_v46, %v12497_v46  ;;  %v12498_v48 = vmax.f32 %v12362_v28, 0.0  ;;  %v16423_v33 = vadd.f32 %v16287_v18, %v21403_v1  ;;  %v11646_v27 = vpop.f32.mrb[37].mxu0 }
 0x4f7   : > { %v14418_v8 = vpack.c.bf16 %v12495_v16, %v12495_v16  ;;  %v12496_v24 = vmax.f32 %v12360_v12, 0.0  ;;  %v16424_v20 = vadd.f32 %v11646_v27, %v21404_v30  ;;  %v16288_v43 = vpop.f32.mrb[38].mxu0 }
 0x4f8   : > { %13178 = vst.msk [vmem:[%s20485_s21 + $0x88] sm:$0xf] %vm13143_vm7, %v14420_v10  ;;  %v14421_v40 = vpack.c.bf16 %v12498_v48, %v12498_v48  ;;  %v12224_v21 = vmul.f32 %v16423_v33, %v20436_v19  ;;  %v16425_v4 = vadd.f32 %v16288_v43, %v20249_v61  ;;  %v11649_v56 = vpop.f32.mrb[39].mxu0  ;;  %v21407_v10 = vld [vmem:[#allocation25_spill] sm:$0xff] }
 0x4f9   : > { %13176 = vst.msk [vmem:[%s20485_s21 + $0x80] sm:$0xf] %vm13143_vm7, %v14418_v8  ;;  %v14419_v44 = vpack.c.bf16 %v12496_v24, %v12496_v24  ;;  %v12222_v37 = vmul.f32 %v16424_v20, %v20436_v19  ;;  %v16426_v52 = vadd.f32 %v11649_v56, %v20252_v14  ;;  %v21408_v8 = vld [vmem:[#allocation26_spill] sm:$0xff] }
 0x4fa   : > { %13179 = vst.msk [vmem:[%s20485_s21 + $0x8c] sm:$0xf] %vm13143_vm7, %v14421_v40  ;;  %v12365_v9 = vadd.f32 %v20448_v29, %v12224_v21  ;;  %v12225_v26 = vmul.f32 %v16425_v4, %v20436_v19 }
 0x4fb   : > { %13177 = vst.msk [vmem:[%s20485_s21 + $0x84] sm:$0xf] %vm13143_vm7, %v14419_v44  ;;  %v12363_v63 = vadd.f32 %v20448_v29, %v12222_v37  ;;  %v12223_v61 = vmul.f32 %v16426_v52, %v20436_v19 }
 0x4fc   : > { %v12501_v6 = vmax.f32 %v12365_v9, 0.0  ;;  %v12366_v15 = vadd.f32 %v20448_v29, %v12225_v26 }
 0x4fd   : > { %v12499_v47 = vmax.f32 %v12363_v63, 0.0  ;;  %v12364_v14 = vadd.f32 %v20448_v29, %v12223_v61  ;;  %v16291_v25 = vpop.f32.mrb[40].mxu0 }
 0x4fe   : > { %v14424_v2 = vpack.c.bf16 %v12501_v6, %v12501_v6  ;;  %v12502_v42 = vmax.f32 %v12366_v15, 0.0  ;;  %v16427_v54 = vadd.f32 %v16291_v25, %v21405_v38  ;;  %v11662_v55 = vpop.f32.mrb[41].mxu0 }
 0x4ff   : > { %v14422_v57 = vpack.c.bf16 %v12499_v47, %v12499_v47  ;;  %v12500_v59 = vmax.f32 %v12364_v14, 0.0  ;;  %v16428_v22 = vadd.f32 %v11662_v55, %v21406_v39  ;;  %v16292_v60 = vpop.f32.mrb[42].mxu0  ;;  %v21409_v14 = vld [vmem:[#allocation28_spill] sm:$0xff] }
 0x500   : > { %13182 = vst.msk [vmem:[%s20485_s21 + $0x98] sm:$0xf] %vm13143_vm7, %v14424_v2  ;;  %v14425_v34 = vpack.c.bf16 %v12502_v42, %v12502_v42  ;;  %v12228_v62 = vmul.f32 %v16427_v54, %v20436_v19  ;;  %v16429_v45 = vadd.f32 %v16292_v60, %v20271_v3  ;;  %v11665_v51 = vpop.f32.mrb[43].mxu0  ;;  %v21410_v54 = vld [vmem:[#allocation31_spill] sm:$0xff] }
 0x501   : > { %13180 = vst.msk [vmem:[%s20485_s21 + $0x90] sm:$0xf] %vm13143_vm7, %v14422_v57  ;;  %v14423_v53 = vpack.c.bf16 %v12500_v59, %v12500_v59  ;;  %v12226_v35 = vmul.f32 %v16428_v22, %v20436_v19  ;;  %v16430_v50 = vadd.f32 %v11665_v51, %v20274_v49 }
 0x502   : > { %13183 = vst.msk [vmem:[%s20485_s21 + $0x9c] sm:$0xf] %vm13143_vm7, %v14425_v34  ;;  %v12369_v23 = vadd.f32 %v20448_v29, %v12228_v62  ;;  %v12229_v13 = vmul.f32 %v16429_v45, %v20436_v19 }
 0x503   : > { %13181 = vst.msk [vmem:[%s20485_s21 + $0x94] sm:$0xf] %vm13143_vm7, %v14423_v53  ;;  %v12367_v11 = vadd.f32 %v20448_v29, %v12226_v35  ;;  %v12227_v3 = vmul.f32 %v16430_v50, %v20436_v19 }
 0x504   : > { %v12505_v5 = vmax.f32 %v12369_v23, 0.0  ;;  %v12370_v46 = vadd.f32 %v20448_v29, %v12229_v13 }
 0x505   : > { %v12503_v28 = vmax.f32 %v12367_v11, 0.0  ;;  %v12368_v49 = vadd.f32 %v20448_v29, %v12227_v3  ;;  %v16295_v16 = vpop.f32.mrb[44].mxu0 }
 0x506   : > { %v14428_v12 = vpack.c.bf16 %v12505_v5, %v12505_v5  ;;  %v12506_v18 = vmax.f32 %v12370_v46, 0.0  ;;  %v16431_v48 = vadd.f32 %v16295_v16, %v21407_v10  ;;  %v11678_v1 = vpop.f32.mrb[45].mxu0  ;;  %v21411_v46 = vld [vmem:[#allocation29_spill] sm:$0xff] }
 0x507   : > { %v14426_v33 = vpack.c.bf16 %v12503_v28, %v12503_v28  ;;  %v12504_v27 = vmax.f32 %v12368_v49, 0.0  ;;  %v16432_v24 = vadd.f32 %v11678_v1, %v21408_v8  ;;  %v16296_v30 = vpop.f32.mrb[46].mxu0 }
 0x508   : > { %13186 = vst.msk [vmem:[%s20485_s21 + $0xa8] sm:$0xf] %vm13143_vm7, %v14428_v12  ;;  %v14429_v20 = vpack.c.bf16 %v12506_v18, %v12506_v18  ;;  %v12232_v43 = vmul.f32 %v16431_v48, %v20436_v19  ;;  %v16433_v40 = vadd.f32 %v16296_v30, %v20293_v41  ;;  %v11681_v21 = vpop.f32.mrb[47].mxu0  ;;  %v21412_v18 = vld [vmem:[#allocation30_spill] sm:$0xff] }
 0x509   : > { %13184 = vst.msk [vmem:[%s20485_s21 + $0xa0] sm:$0xf] %vm13143_vm7, %v14426_v33  ;;  %v14427_v4 = vpack.c.bf16 %v12504_v27, %v12504_v27  ;;  %v12230_v56 = vmul.f32 %v16432_v24, %v20436_v19  ;;  %v16434_v44 = vadd.f32 %v11681_v21, %v20296_v32 }
 0x50a   : > { %13187 = vst.msk [vmem:[%s20485_s21 + $0xac] sm:$0xf] %vm13143_vm7, %v14429_v20  ;;  %v12373_v37 = vadd.f32 %v20448_v29, %v12232_v43  ;;  %v12233_v52 = vmul.f32 %v16433_v40, %v20436_v19 }
 0x50b   : > { %13185 = vst.msk [vmem:[%s20485_s21 + $0xa4] sm:$0xf] %vm13143_vm7, %v14427_v4  ;;  %v12371_v9 = vadd.f32 %v20448_v29, %v12230_v56  ;;  %v12231_v41 = vmul.f32 %v16434_v44, %v20436_v19 }
 0x50c   : > { %v12509_v26 = vmax.f32 %v12373_v37, 0.0  ;;  %v12374_v63 = vadd.f32 %v20448_v29, %v12233_v52 }
 0x50d   : > { %v12507_v61 = vmax.f32 %v12371_v9, 0.0  ;;  %v12372_v32 = vadd.f32 %v20448_v29, %v12231_v41  ;;  %v16299_v6 = vpop.f32.mrb[48].mxu0  ;;  %v21413_v41 = vld [vmem:[#allocation32_spill] sm:$0xff] }
 0x50e   : > { %v14432_v15 = vpack.c.bf16 %v12509_v26, %v12509_v26  ;;  %v12510_v47 = vmax.f32 %v12374_v63, 0.0  ;;  %v16435_v25 = vadd.f32 %v16299_v6, %v21409_v14  ;;  %v11694_v2 = vpop.f32.mrb[49].mxu0  ;;  %v21414_v6 = vld [vmem:[#allocation35_spill] sm:$0xff] }
 0x50f   : > { %v14430_v42 = vpack.c.bf16 %v12507_v61, %v12507_v61  ;;  %v12508_v38 = vmax.f32 %v12372_v32, 0.0  ;;  %v16436_v55 = vadd.f32 %v11694_v2, %v21410_v54  ;;  %v16300_v57 = vpop.f32.mrb[50].mxu0 }
 0x510   : > { %13190 = vst.msk [vmem:[%s20485_s21 + $0xb8] sm:$0xf] %vm13143_vm7, %v14432_v15  ;;  %v14433_v59 = vpack.c.bf16 %v12510_v47, %v12510_v47  ;;  %v12236_v39 = vmul.f32 %v16435_v25, %v20436_v19  ;;  %v16437_v22 = vadd.f32 %v16300_v57, %v20315_v31  ;;  %v11697_v60 = vpop.f32.mrb[51].mxu0 }
 0x511   : > { %13188 = vst.msk [vmem:[%s20485_s21 + $0xb0] sm:$0xf] %vm13143_vm7, %v14430_v42  ;;  %v14431_v34 = vpack.c.bf16 %v12508_v38, %v12508_v38  ;;  %v12234_v62 = vmul.f32 %v16436_v55, %v20436_v19  ;;  %v16438_v45 = vadd.f32 %v11697_v60, %v20318_v0 }
 0x512   : > { %13191 = vst.msk [vmem:[%s20485_s21 + $0xbc] sm:$0xf] %vm13143_vm7, %v14433_v59  ;;  %v12377_v51 = vadd.f32 %v20448_v29, %v12236_v39  ;;  %v12237_v53 = vmul.f32 %v16437_v22, %v20436_v19 }
 0x513   : > { %13189 = vst.msk [vmem:[%s20485_s21 + $0xb4] sm:$0xf] %vm13143_vm7, %v14431_v34  ;;  %v12375_v35 = vadd.f32 %v20448_v29, %v12234_v62  ;;  %v12235_v31 = vmul.f32 %v16438_v45, %v20436_v19 }
 0x514   : > { %v12513_v50 = vmax.f32 %v12377_v51, 0.0  ;;  %v12378_v23 = vadd.f32 %v20448_v29, %v12237_v53  ;;  %v21415_v53 = vld [vmem:[#allocation33_spill] sm:$0xff] }
 0x515   : > { %v12511_v13 = vmax.f32 %v12375_v35, 0.0  ;;  %v12376_v0 = vadd.f32 %v20448_v29, %v12235_v31  ;;  %v16303_v11 = vpop.f32.mrb[52].mxu0 }
 0x516   : > { %v14436_v3 = vpack.c.bf16 %v12513_v50, %v12513_v50  ;;  %v12514_v5 = vmax.f32 %v12378_v23, 0.0  ;;  %v16439_v28 = vadd.f32 %v16303_v11, %v21411_v46  ;;  %v11710_v49 = vpop.f32.mrb[53].mxu0 }
 0x517   : > { %v14434_v16 = vpack.c.bf16 %v12511_v13, %v12511_v13  ;;  %v12512_v12 = vmax.f32 %v12376_v0, 0.0  ;;  %v16440_v10 = vadd.f32 %v11710_v49, %v21412_v18  ;;  %v16304_v48 = vpop.f32.mrb[54].mxu0  ;;  %v21416_v13 = vld [vmem:[#allocation34_spill] sm:$0xff] }
 0x518   : > { %13194 = vst.msk [vmem:[%s20485_s21 + $0xc8] sm:$0xf] %vm13143_vm7, %v14436_v3  ;;  %v14437_v1 = vpack.c.bf16 %v12514_v5, %v12514_v5  ;;  %v12240_v33 = vmul.f32 %v16439_v28, %v20436_v19  ;;  %v16441_v27 = vadd.f32 %v16304_v48, %v20337_v17  ;;  %v11713_v8 = vpop.f32.mrb[55].mxu0  ;;  %v21417_v5 = vld [vmem:[#allocation36_spill] sm:$0xff] }
 0x519   : > { %13192 = vst.msk [vmem:[%s20485_s21 + $0xc0] sm:$0xf] %vm13143_vm7, %v14434_v16  ;;  %v14435_v24 = vpack.c.bf16 %v12512_v12, %v12512_v12  ;;  %v12238_v30 = vmul.f32 %v16440_v10, %v20436_v19  ;;  %v16442_v20 = vadd.f32 %v11713_v8, %v20340_v36  ;;  %v21418_v12 = vld [vmem:[#allocation37_spill] sm:$0xff]  ;;  %v20885_v10 = vld [vmem:[%s21216_s2 + $0x1] ss:$0 sm:$0xff] }
 0x51a   : > { %13195 = vst.msk [vmem:[%s20485_s21 + $0xcc] sm:$0xf] %vm13143_vm7, %v14437_v1  ;;  %v12381_v43 = vadd.f32 %v20448_v29, %v12240_v33  ;;  %v12241_v40 = vmul.f32 %v16441_v27, %v20436_v19 }
 0x51b   : > { %13193 = vst.msk [vmem:[%s20485_s21 + $0xc4] sm:$0xf] %vm13143_vm7, %v14435_v24  ;;  %v12379_v21 = vadd.f32 %v20448_v29, %v12238_v30  ;;  %v12239_v17 = vmul.f32 %v16442_v20, %v20436_v19 }
 0x51c   : > { %v12517_v4 = vmax.f32 %v12381_v43, 0.0  ;;  %v12382_v56 = vadd.f32 %v20448_v29, %v12241_v40 }
 0x51d   : > { %v12515_v44 = vmax.f32 %v12379_v21, 0.0  ;;  %v12380_v36 = vadd.f32 %v20448_v29, %v12239_v17  ;;  %v16307_v37 = vpop.f32.mrb[56].mxu0  ;;  %v21419_v17 = vld [vmem:[#allocation38_spill] sm:$0xff] }
 0x51e   : > { %v14440_v52 = vpack.c.bf16 %v12517_v4, %v12517_v4  ;;  %v12518_v9 = vmax.f32 %v12382_v56, 0.0  ;;  %v16443_v26 = vadd.f32 %v16307_v37, %v21413_v41  ;;  %v11726_v63 = vpop.f32.mrb[57].mxu0  ;;  %v21420_v37 = vld [vmem:[#allocation2_spill] sm:$0xff] }
 0x51f   : > { %v14438_v61 = vpack.c.bf16 %v12515_v44, %v12515_v44  ;;  %v12516_v32 = vmax.f32 %v12380_v36, 0.0  ;;  %v16444_v15 = vadd.f32 %v11726_v63, %v21414_v6  ;;  %v16308_v47 = vpop.f32.mrb[58].mxu0  ;;  %v21421_v63 = vld [vmem:[#allocation3_spill] sm:$0xff] }
 0x520   : > { %13198 = vst.msk [vmem:[%s20485_s21 + $0xd8] sm:$0xf] %vm13143_vm7, %v14440_v52  ;;  %v14441_v14 = vpack.c.bf16 %v12518_v9, %v12518_v9  ;;  %v12244_v25 = vmul.f32 %v16443_v26, %v20436_v19  ;;  %v16445_v2 = vadd.f32 %v16308_v47, %v20359_v58  ;;  %v11729_v42 = vpop.f32.mrb[59].mxu0 }
 0x521   : > { %13196 = vst.msk [vmem:[%s20485_s21 + $0xd0] sm:$0xf] %vm13143_vm7, %v14438_v61  ;;  %v14439_v38 = vpack.c.bf16 %v12516_v32, %v12516_v32  ;;  %v12242_v54 = vmul.f32 %v16444_v15, %v20436_v19  ;;  %v16446_v55 = vadd.f32 %v11729_v42, %v20362_v7 }
 0x522   : > { %13199 = vst.msk [vmem:[%s20485_s21 + $0xdc] sm:$0xf] %vm13143_vm7, %v14441_v14  ;;  %v12385_v57 = vadd.f32 %v20448_v29, %v12244_v25  ;;  %v12245_v59 = vmul.f32 %v16445_v2, %v20436_v19  ;;  %v21422_v14 = vld [vmem:[#allocation39_spill] sm:$0xff] }
 0x523   : > { %13197 = vst.msk [vmem:[%s20485_s21 + $0xd4] sm:$0xf] %vm13143_vm7, %v14439_v38  ;;  %v12383_v39 = vadd.f32 %v20448_v29, %v12242_v54  ;;  %v12243_v58 = vmul.f32 %v16446_v55, %v20436_v19 }
 0x524   : > { %v12521_v22 = vmax.f32 %v12385_v57, 0.0  ;;  %v12386_v60 = vadd.f32 %v20448_v29, %v12245_v59 }
 0x525   : > { %v12519_v34 = vmax.f32 %v12383_v39, 0.0  ;;  %v12384_v62 = vadd.f32 %v20448_v29, %v12243_v58  ;;  %v16311_v7 = vpop.f32.mrb[60].mxu0  ;;  %v20872_v29 = vld [vmem:[%s21216_s2] ss:$0 sm:$0xff] }
 0x526   : > { %v14444_v45 = vpack.c.bf16 %v12521_v22, %v12521_v22  ;;  %v12522_v51 = vmax.f32 %v12386_v60, 0.0  ;;  %v16447_v35 = vadd.f32 %v16311_v7, %v21415_v53  ;;  %v11742_v31 = vpop.f32.mrb[61].mxu0 }
 0x527   : > { %v14442_v50 = vpack.c.bf16 %v12519_v34, %v12519_v34  ;;  %v12520_v23 = vmax.f32 %v12384_v62, 0.0  ;;  %v16448_v0 = vadd.f32 %v11742_v31, %v21416_v13  ;;  %v16312_v19 = vpop.f32.mrb[62].mxu0 }
 0x528   : > { %13202 = vst.msk [vmem:[%s20485_s21 + $0xe8] sm:$0xf] %vm13143_vm7, %v14444_v45  ;;  %v14445_v11 = vpack.c.bf16 %v12522_v51, %v12522_v51  ;;  %v12248_v3 = vmul.f32 %v20872_v29, %v16447_v35  ;;  %v16449_v46 = vadd.f32 %v16312_v19, %v21417_v5  ;;  %v11745_v28 = vpop.f32.mrb[63].mxu0 }
 0x529   : > { %13200 = vst.msk [vmem:[%s20485_s21 + $0xe0] sm:$0xf] %vm13143_vm7, %v14442_v50  ;;  %v14443_v49 = vpack.c.bf16 %v12520_v23, %v12520_v23  ;;  %v12246_v16 = vmul.f32 %v20872_v29, %v16448_v0  ;;  %v16450_v18 = vadd.f32 %v11745_v28, %v21418_v12 }
 0x52a   : > { %13203 = vst.msk [vmem:[%s20485_s21 + $0xec] sm:$0xf] %vm13143_vm7, %v14445_v11  ;;  %v12389_v48 = vadd.f32 %v20885_v10, %v12248_v3  ;;  %v12249_v1 = vmul.f32 %v20872_v29, %v16449_v46 }
 0x52b   : > { %13201 = vst.msk [vmem:[%s20485_s21 + $0xe4] sm:$0xf] %vm13143_vm7, %v14443_v49  ;;  %v12387_v33 = vadd.f32 %v20885_v10, %v12246_v16  ;;  %v12247_v27 = vmul.f32 %v20872_v29, %v16450_v18 }
 0x52c   : > { %v12525_v8 = vmax.f32 %v12389_v48, 0.0  ;;  %v12390_v24 = vadd.f32 %v20885_v10, %v12249_v1 }
 0x52d   : > { %v12523_v30 = vmax.f32 %v12387_v33, 0.0  ;;  %v12388_v20 = vadd.f32 %v20885_v10, %v12247_v27  ;;  %v16315_v43 = vpop.f32.mrb[64].mxu0 }
 0x52e   : > { %v14448_v40 = vpack.c.bf16 %v12525_v8, %v12525_v8  ;;  %v12526_v21 = vmax.f32 %v12390_v24, 0.0  ;;  %v16451_v4 = vadd.f32 %v16315_v43, %v21419_v17  ;;  %v11758_v56 = vpop.f32.mrb[65].mxu0 }
 0x52f   : > { %v14446_v44 = vpack.c.bf16 %v12523_v30, %v12523_v30  ;;  %v12524_v36 = vmax.f32 %v12388_v20, 0.0  ;;  %v16452_v52 = vadd.f32 %v11758_v56, %v21420_v37  ;;  %v16316_v9 = vpop.f32.mrb[66].mxu0 }
 0x530   : > { %13206 = vst.msk [vmem:[%s20485_s21 + $0xf8] sm:$0xf] %vm13143_vm7, %v14448_v40  ;;  %v14449_v41 = vpack.c.bf16 %v12526_v21, %v12526_v21  ;;  %v12252_v26 = vmul.f32 %v20872_v29, %v16451_v4  ;;  %v16453_v61 = vadd.f32 %v16316_v9, %v21421_v63  ;;  %v11761_v32 = vpop.f32.mrb[67].mxu0 }
 0x531   : > { %13204 = vst.msk [vmem:[%s20485_s21 + $0xf0] sm:$0xf] %vm13143_vm7, %v14446_v44  ;;  %v14447_v15 = vpack.c.bf16 %v12524_v36, %v12524_v36  ;;  %v12250_v47 = vmul.f32 %v20872_v29, %v16452_v52  ;;  %v16454_v25 = vadd.f32 %v11761_v32, %v21422_v14 }
 0x532   : > { %v15767_v6 = vpop.f32.mrb[68].mxu1  ;;  %13207 = vst.msk [vmem:[%s20485_s21 + $0xfc] sm:$0xf] %vm13143_vm7, %v14449_v41  ;;  %v12393_v42 = vadd.f32 %v20885_v10, %v12252_v26  ;;  %v12253_v38 = vmul.f32 %v20872_v29, %v16453_v61 }
 0x533   : > { %v6536_v2 = vpop.f32.mrb[69].mxu1  ;;  %13205 = vst.msk [vmem:[%s20485_s21 + $0xf4] sm:$0xf] %vm13143_vm7, %v14447_v15  ;;  %v12391_v55 = vadd.f32 %v20885_v10, %v12250_v47  ;;  %v12251_v57 = vmul.f32 %v20872_v29, %v16454_v25 }
 0x534   : > { %v15768_v54 = vpop.f32.mrb[70].mxu1  ;;  %v12529_v39 = vmax.f32 %v12393_v42, 0.0  ;;  %v12394_v58 = vadd.f32 %v20885_v10, %v12253_v38 }
 0x535   : > { %v6539_v59 = vpop.f32.mrb[71].mxu1  ;;  %v12527_v22 = vmax.f32 %v12391_v55, 0.0  ;;  %v12392_v60 = vadd.f32 %v20885_v10, %v12251_v57  ;;  %v16319_v34 = vpop.f32.mrb[68].mxu0 }
 0x536   : > { %v14452_v62 = vpack.c.bf16 %v12529_v39, %v12529_v39  ;;  %v12530_v7 = vmax.f32 %v12394_v58, 0.0  ;;  %v16455_v45 = vadd.f32 %v16319_v34, %v15767_v6  ;;  %v11774_v51 = vpop.f32.mrb[69].mxu0 }
 0x537   : > { %v14450_v53 = vpack.c.bf16 %v12527_v22, %v12527_v22  ;;  %v12528_v35 = vmax.f32 %v12392_v60, 0.0  ;;  %v16456_v31 = vadd.f32 %v11774_v51, %v6536_v2  ;;  %v16320_v50 = vpop.f32.mrb[70].mxu0 }
 0x538   : > { %13210 = vst.msk [vmem:[%s20485_s21 + $0x108] sm:$0xf] %vm13143_vm7, %v14452_v62  ;;  %v14453_v23 = vpack.c.bf16 %v12530_v7, %v12530_v7  ;;  %v12256_v13 = vmul.f32 %v20872_v29, %v16455_v45  ;;  %v16457_v0 = vadd.f32 %v16320_v50, %v15768_v54  ;;  %v11777_v19 = vpop.f32.mrb[71].mxu0 }
 0x539   : > { %13208 = vst.msk [vmem:[%s20485_s21 + $0x100] sm:$0xf] %vm13143_vm7, %v14450_v53  ;;  %v14451_v3 = vpack.c.bf16 %v12528_v35, %v12528_v35  ;;  %v12254_v5 = vmul.f32 %v20872_v29, %v16456_v31  ;;  %v16458_v46 = vadd.f32 %v11777_v19, %v6539_v59 }
 0x53a   : > { %v15771_v11 = vpop.f32.mrb[72].mxu1  ;;  %13211 = vst.msk [vmem:[%s20485_s21 + $0x10c] sm:$0xf] %vm13143_vm7, %v14453_v23  ;;  %v12397_v49 = vadd.f32 %v20885_v10, %v12256_v13  ;;  %v12257_v16 = vmul.f32 %v20872_v29, %v16457_v0 }
 0x53b   : > { %v6552_v28 = vpop.f32.mrb[73].mxu1  ;;  %13209 = vst.msk [vmem:[%s20485_s21 + $0x104] sm:$0xf] %vm13143_vm7, %v14451_v3  ;;  %v12395_v18 = vadd.f32 %v20885_v10, %v12254_v5  ;;  %v12255_v48 = vmul.f32 %v20872_v29, %v16458_v46 }
 0x53c   : > { %v15772_v12 = vpop.f32.mrb[74].mxu1  ;;  %v12533_v33 = vmax.f32 %v12397_v49, 0.0  ;;  %v12398_v27 = vadd.f32 %v20885_v10, %v12257_v16 }
 0x53d   : > { %v6555_v1 = vpop.f32.mrb[75].mxu1  ;;  %v12531_v8 = vmax.f32 %v12395_v18, 0.0  ;;  %v12396_v24 = vadd.f32 %v20885_v10, %v12255_v48  ;;  %v16323_v30 = vpop.f32.mrb[72].mxu0 }
 0x53e   : > { %v14456_v20 = vpack.c.bf16 %v12533_v33, %v12533_v33  ;;  %v12534_v43 = vmax.f32 %v12398_v27, 0.0  ;;  %v16459_v40 = vadd.f32 %v16323_v30, %v15771_v11  ;;  %v11790_v21 = vpop.f32.mrb[73].mxu0 }
 0x53f   : > { %v14454_v17 = vpack.c.bf16 %v12531_v8, %v12531_v8  ;;  %v12532_v4 = vmax.f32 %v12396_v24, 0.0  ;;  %v16460_v56 = vadd.f32 %v11790_v21, %v6552_v28  ;;  %v16324_v44 = vpop.f32.mrb[74].mxu0 }
 0x540   : > { %13214 = vst.msk [vmem:[%s20485_s21 + $0x118] sm:$0xf] %vm13143_vm7, %v14456_v20  ;;  %v14457_v36 = vpack.c.bf16 %v12534_v43, %v12534_v43  ;;  %v12260_v37 = vmul.f32 %v20872_v29, %v16459_v40  ;;  %v16461_v52 = vadd.f32 %v16324_v44, %v15772_v12  ;;  %v11793_v9 = vpop.f32.mrb[75].mxu0 }
 0x541   : > { %13212 = vst.msk [vmem:[%s20485_s21 + $0x110] sm:$0xf] %vm13143_vm7, %v14454_v17  ;;  %v14455_v26 = vpack.c.bf16 %v12532_v4, %v12532_v4  ;;  %v12258_v63 = vmul.f32 %v20872_v29, %v16460_v56  ;;  %v16462_v61 = vadd.f32 %v11793_v9, %v6555_v1 }
 0x542   : > { %v15775_v41 = vpop.f32.mrb[76].mxu1  ;;  %13215 = vst.msk [vmem:[%s20485_s21 + $0x11c] sm:$0xf] %vm13143_vm7, %v14457_v36  ;;  %v12401_v6 = vadd.f32 %v20885_v10, %v12260_v37  ;;  %v12261_v15 = vmul.f32 %v20872_v29, %v16461_v52 }
 0x543   : > { %v6568_v32 = vpop.f32.mrb[77].mxu1  ;;  %13213 = vst.msk [vmem:[%s20485_s21 + $0x114] sm:$0xf] %vm13143_vm7, %v14455_v26  ;;  %v12399_v14 = vadd.f32 %v20885_v10, %v12258_v63  ;;  %v12259_v25 = vmul.f32 %v20872_v29, %v16462_v61 }
 0x544   : > { %v15776_v47 = vpop.f32.mrb[78].mxu1  ;;  %v12537_v42 = vmax.f32 %v12401_v6, 0.0  ;;  %v12402_v38 = vadd.f32 %v20885_v10, %v12261_v15 }
 0x545   : > { %v6571_v2 = vpop.f32.mrb[79].mxu1  ;;  %v12535_v54 = vmax.f32 %v12399_v14, 0.0  ;;  %v12400_v55 = vadd.f32 %v20885_v10, %v12259_v25  ;;  %v16327_v57 = vpop.f32.mrb[76].mxu0 }
 0x546   : > { %v14460_v59 = vpack.c.bf16 %v12537_v42, %v12537_v42  ;;  %v12538_v39 = vmax.f32 %v12402_v38, 0.0  ;;  %v16463_v58 = vadd.f32 %v16327_v57, %v15775_v41  ;;  %v11806_v22 = vpop.f32.mrb[77].mxu0 }
 0x547   : > { %v14458_v60 = vpack.c.bf16 %v12535_v54, %v12535_v54  ;;  %v12536_v34 = vmax.f32 %v12400_v55, 0.0  ;;  %v16464_v62 = vadd.f32 %v11806_v22, %v6568_v32  ;;  %v16328_v7 = vpop.f32.mrb[78].mxu0 }
 0x548   : > { %13218 = vst.msk [vmem:[%s20485_s21 + $0x128] sm:$0xf] %vm13143_vm7, %v14460_v59  ;;  %v14461_v45 = vpack.c.bf16 %v12538_v39, %v12538_v39  ;;  %v12264_v51 = vmul.f32 %v20872_v29, %v16463_v58  ;;  %v16465_v53 = vadd.f32 %v16328_v7, %v15776_v47  ;;  %v11809_v35 = vpop.f32.mrb[79].mxu0 }
 0x549   : > { %13216 = vst.msk [vmem:[%s20485_s21 + $0x120] sm:$0xf] %vm13143_vm7, %v14458_v60  ;;  %v14459_v50 = vpack.c.bf16 %v12536_v34, %v12536_v34  ;;  %v12262_v23 = vmul.f32 %v20872_v29, %v16464_v62  ;;  %v16466_v13 = vadd.f32 %v11809_v35, %v6571_v2 }
 0x54a   : > { %v15779_v31 = vpop.f32.mrb[80].mxu1  ;;  %13219 = vst.msk [vmem:[%s20485_s21 + $0x12c] sm:$0xf] %vm13143_vm7, %v14461_v45  ;;  %v12405_v19 = vadd.f32 %v20885_v10, %v12264_v51  ;;  %v12265_v11 = vmul.f32 %v20872_v29, %v16465_v53 }
 0x54b   : > { %v6584_v0 = vpop.f32.mrb[81].mxu1  ;;  %13217 = vst.msk [vmem:[%s20485_s21 + $0x124] sm:$0xf] %vm13143_vm7, %v14459_v50  ;;  %v12403_v5 = vadd.f32 %v20885_v10, %v12262_v23  ;;  %v12263_v46 = vmul.f32 %v20872_v29, %v16466_v13 }
 0x54c   : > { %v15780_v3 = vpop.f32.mrb[82].mxu1  ;;  %v12541_v49 = vmax.f32 %v12405_v19, 0.0  ;;  %v12406_v16 = vadd.f32 %v20885_v10, %v12265_v11 }
 0x54d   : > { %v6587_v28 = vpop.f32.mrb[83].mxu1  ;;  %v12539_v12 = vmax.f32 %v12403_v5, 0.0  ;;  %v12404_v18 = vadd.f32 %v20885_v10, %v12263_v46  ;;  %v16331_v48 = vpop.f32.mrb[80].mxu0 }
 0x54e   : > { %v14464_v1 = vpack.c.bf16 %v12541_v49, %v12541_v49  ;;  %v12542_v33 = vmax.f32 %v12406_v16, 0.0  ;;  %v16467_v27 = vadd.f32 %v16331_v48, %v15779_v31  ;;  %v11822_v8 = vpop.f32.mrb[81].mxu0 }
 0x54f   : > { %v14462_v24 = vpack.c.bf16 %v12539_v12, %v12539_v12  ;;  %v12540_v30 = vmax.f32 %v12404_v18, 0.0  ;;  %v16468_v20 = vadd.f32 %v11822_v8, %v6584_v0  ;;  %v16332_v43 = vpop.f32.mrb[82].mxu0 }
 0x550   : > { %13222 = vst.msk [vmem:[%s20485_s21 + $0x138] sm:$0xf] %vm13143_vm7, %v14464_v1  ;;  %v14465_v40 = vpack.c.bf16 %v12542_v33, %v12542_v33  ;;  %v12268_v21 = vmul.f32 %v20872_v29, %v16467_v27  ;;  %v16469_v17 = vadd.f32 %v16332_v43, %v15780_v3  ;;  %v11825_v4 = vpop.f32.mrb[83].mxu0 }
 0x551   : > { %13220 = vst.msk [vmem:[%s20485_s21 + $0x130] sm:$0xf] %vm13143_vm7, %v14462_v24  ;;  %v14463_v44 = vpack.c.bf16 %v12540_v30, %v12540_v30  ;;  %v12266_v36 = vmul.f32 %v20872_v29, %v16468_v20  ;;  %v16470_v37 = vadd.f32 %v11825_v4, %v6587_v28 }
 0x552   : > { %v15783_v56 = vpop.f32.mrb[84].mxu1  ;;  %13223 = vst.msk [vmem:[%s20485_s21 + $0x13c] sm:$0xf] %vm13143_vm7, %v14465_v40  ;;  %v12409_v9 = vadd.f32 %v20885_v10, %v12268_v21  ;;  %v12269_v41 = vmul.f32 %v20872_v29, %v16469_v17 }
 0x553   : > { %v6600_v52 = vpop.f32.mrb[85].mxu1  ;;  %13221 = vst.msk [vmem:[%s20485_s21 + $0x134] sm:$0xf] %vm13143_vm7, %v14463_v44  ;;  %v12407_v63 = vadd.f32 %v20885_v10, %v12266_v36  ;;  %v12267_v61 = vmul.f32 %v20872_v29, %v16470_v37 }
 0x554   : > { %v15784_v26 = vpop.f32.mrb[86].mxu1  ;;  %v12545_v6 = vmax.f32 %v12409_v9, 0.0  ;;  %v12410_v15 = vadd.f32 %v20885_v10, %v12269_v41 }
 0x555   : > { %v6603_v32 = vpop.f32.mrb[87].mxu1  ;;  %v12543_v47 = vmax.f32 %v12407_v63, 0.0  ;;  %v12408_v14 = vadd.f32 %v20885_v10, %v12267_v61  ;;  %v16335_v25 = vpop.f32.mrb[84].mxu0 }
 0x556   : > { %v14468_v2 = vpack.c.bf16 %v12545_v6, %v12545_v6  ;;  %v12546_v42 = vmax.f32 %v12410_v15, 0.0  ;;  %v16471_v38 = vadd.f32 %v16335_v25, %v15783_v56  ;;  %v11838_v54 = vpop.f32.mrb[85].mxu0 }
 0x557   : > { %v14466_v55 = vpack.c.bf16 %v12543_v47, %v12543_v47  ;;  %v12544_v57 = vmax.f32 %v12408_v14, 0.0  ;;  %v16472_v59 = vadd.f32 %v11838_v54, %v6600_v52  ;;  %v16336_v39 = vpop.f32.mrb[86].mxu0 }
 0x558   : > { %13226 = vst.msk [vmem:[%s20485_s21 + $0x148] sm:$0xf] %vm13143_vm7, %v14468_v2  ;;  %v14469_v58 = vpack.c.bf16 %v12546_v42, %v12546_v42  ;;  %v12272_v22 = vmul.f32 %v20872_v29, %v16471_v38  ;;  %v16473_v60 = vadd.f32 %v16336_v39, %v15784_v26  ;;  %v11841_v34 = vpop.f32.mrb[87].mxu0 }
 0x559   : > { %13224 = vst.msk [vmem:[%s20485_s21 + $0x140] sm:$0xf] %vm13143_vm7, %v14466_v55  ;;  %v14467_v7 = vpack.c.bf16 %v12544_v57, %v12544_v57  ;;  %v12270_v45 = vmul.f32 %v20872_v29, %v16472_v59  ;;  %v16474_v51 = vadd.f32 %v11841_v34, %v6603_v32 }
 0x55a   : > { %v15787_v62 = vpop.f32.mrb[88].mxu1  ;;  %13227 = vst.msk [vmem:[%s20485_s21 + $0x14c] sm:$0xf] %vm13143_vm7, %v14469_v58  ;;  %v12413_v35 = vadd.f32 %v20885_v10, %v12272_v22  ;;  %v12273_v31 = vmul.f32 %v20872_v29, %v16473_v60 }
 0x55b   : > { %v6616_v53 = vpop.f32.mrb[89].mxu1  ;;  %13225 = vst.msk [vmem:[%s20485_s21 + $0x144] sm:$0xf] %vm13143_vm7, %v14467_v7  ;;  %v12411_v23 = vadd.f32 %v20885_v10, %v12270_v45  ;;  %v12271_v13 = vmul.f32 %v20872_v29, %v16474_v51 }
 0x55c   : > { %v15788_v50 = vpop.f32.mrb[90].mxu1  ;;  %v12549_v19 = vmax.f32 %v12413_v35, 0.0  ;;  %v12414_v11 = vadd.f32 %v20885_v10, %v12273_v31 }
 0x55d   : > { %v6619_v0 = vpop.f32.mrb[91].mxu1  ;;  %v12547_v3 = vmax.f32 %v12411_v23, 0.0  ;;  %v12412_v5 = vadd.f32 %v20885_v10, %v12271_v13  ;;  %v16339_v46 = vpop.f32.mrb[88].mxu0 }
 0x55e   : > { %v14472_v28 = vpack.c.bf16 %v12549_v19, %v12549_v19  ;;  %v12550_v49 = vmax.f32 %v12414_v11, 0.0  ;;  %v16475_v16 = vadd.f32 %v16339_v46, %v15787_v62  ;;  %v11854_v12 = vpop.f32.mrb[89].mxu0 }
 0x55f   : > { %v14470_v18 = vpack.c.bf16 %v12547_v3, %v12547_v3  ;;  %v12548_v48 = vmax.f32 %v12412_v5, 0.0  ;;  %v16476_v1 = vadd.f32 %v11854_v12, %v6616_v53  ;;  %v16340_v33 = vpop.f32.mrb[90].mxu0 }
 0x560   : > { %13230 = vst.msk [vmem:[%s20485_s21 + $0x158] sm:$0xf] %vm13143_vm7, %v14472_v28  ;;  %v14473_v27 = vpack.c.bf16 %v12550_v49, %v12550_v49  ;;  %v12276_v8 = vmul.f32 %v20872_v29, %v16475_v16  ;;  %v16477_v24 = vadd.f32 %v16340_v33, %v15788_v50  ;;  %v11857_v30 = vpop.f32.mrb[91].mxu0 }
 0x561   : > { %13228 = vst.msk [vmem:[%s20485_s21 + $0x150] sm:$0xf] %vm13143_vm7, %v14470_v18  ;;  %v14471_v43 = vpack.c.bf16 %v12548_v48, %v12548_v48  ;;  %v12274_v40 = vmul.f32 %v20872_v29, %v16476_v1  ;;  %v16478_v21 = vadd.f32 %v11857_v30, %v6619_v0 }
 0x562   : > { %v15791_v20 = vpop.f32.mrb[92].mxu1  ;;  %13231 = vst.msk [vmem:[%s20485_s21 + $0x15c] sm:$0xf] %vm13143_vm7, %v14473_v27  ;;  %v12417_v4 = vadd.f32 %v20885_v10, %v12276_v8  ;;  %v12277_v56 = vmul.f32 %v20872_v29, %v16477_v24 }
 0x563   : > { %v6632_v17 = vpop.f32.mrb[93].mxu1  ;;  %13229 = vst.msk [vmem:[%s20485_s21 + $0x154] sm:$0xf] %vm13143_vm7, %v14471_v43  ;;  %v12415_v36 = vadd.f32 %v20885_v10, %v12274_v40  ;;  %v12275_v37 = vmul.f32 %v20872_v29, %v16478_v21 }
 0x564   : > { %v15792_v44 = vpop.f32.mrb[94].mxu1  ;;  %v12553_v9 = vmax.f32 %v12417_v4, 0.0  ;;  %v12418_v41 = vadd.f32 %v20885_v10, %v12277_v56 }
 0x565   : > { %v6635_v52 = vpop.f32.mrb[95].mxu1  ;;  %v12551_v26 = vmax.f32 %v12415_v36, 0.0  ;;  %v12416_v63 = vadd.f32 %v20885_v10, %v12275_v37  ;;  %v16343_v61 = vpop.f32.mrb[92].mxu0 }
 0x566   : > { %v14476_v32 = vpack.c.bf16 %v12553_v9, %v12553_v9  ;;  %v12554_v6 = vmax.f32 %v12418_v41, 0.0  ;;  %v16479_v15 = vadd.f32 %v16343_v61, %v15791_v20  ;;  %v11870_v47 = vpop.f32.mrb[93].mxu0 }
 0x567   : > { %v14474_v14 = vpack.c.bf16 %v12551_v26, %v12551_v26  ;;  %v12552_v25 = vmax.f32 %v12416_v63, 0.0  ;;  %v16480_v2 = vadd.f32 %v11870_v47, %v6632_v17  ;;  %v16344_v42 = vpop.f32.mrb[94].mxu0 }
 0x568   : > { %13234 = vst.msk [vmem:[%s20485_s21 + $0x168] sm:$0xf] %vm13143_vm7, %v14476_v32  ;;  %v14477_v38 = vpack.c.bf16 %v12554_v6, %v12554_v6  ;;  %v12280_v54 = vmul.f32 %v20872_v29, %v16479_v15  ;;  %v16481_v55 = vadd.f32 %v16344_v42, %v15792_v44  ;;  %v11873_v57 = vpop.f32.mrb[95].mxu0 }
 0x569   : > { %13232 = vst.msk [vmem:[%s20485_s21 + $0x160] sm:$0xf] %vm13143_vm7, %v14474_v14  ;;  %v14475_v39 = vpack.c.bf16 %v12552_v25, %v12552_v25  ;;  %v12278_v58 = vmul.f32 %v20872_v29, %v16480_v2  ;;  %v16482_v22 = vadd.f32 %v11873_v57, %v6635_v52 }
 0x56a   : > { %v15795_v59 = vpop.f32.mrb[96].mxu1  ;;  %13235 = vst.msk [vmem:[%s20485_s21 + $0x16c] sm:$0xf] %vm13143_vm7, %v14477_v38  ;;  %v12421_v34 = vadd.f32 %v20885_v10, %v12280_v54  ;;  %v12281_v62 = vmul.f32 %v20872_v29, %v16481_v55 }
 0x56b   : > { %v6648_v60 = vpop.f32.mrb[97].mxu1  ;;  %13233 = vst.msk [vmem:[%s20485_s21 + $0x164] sm:$0xf] %vm13143_vm7, %v14475_v39  ;;  %v12419_v45 = vadd.f32 %v20885_v10, %v12278_v58  ;;  %v12279_v51 = vmul.f32 %v20872_v29, %v16482_v22 }
 0x56c   : > { %v15796_v7 = vpop.f32.mrb[98].mxu1  ;;  %v12557_v35 = vmax.f32 %v12421_v34, 0.0  ;;  %v12422_v31 = vadd.f32 %v20885_v10, %v12281_v62 }
 0x56d   : > { %v6651_v53 = vpop.f32.mrb[99].mxu1  ;;  %v12555_v50 = vmax.f32 %v12419_v45, 0.0  ;;  %v12420_v23 = vadd.f32 %v20885_v10, %v12279_v51  ;;  %v16347_v13 = vpop.f32.mrb[96].mxu0 }
 0x56e   : > { %v14480_v0 = vpack.c.bf16 %v12557_v35, %v12557_v35  ;;  %v12558_v19 = vmax.f32 %v12422_v31, 0.0  ;;  %v16483_v11 = vadd.f32 %v16347_v13, %v15795_v59  ;;  %v11886_v3 = vpop.f32.mrb[97].mxu0 }
 0x56f   : > { %v14478_v5 = vpack.c.bf16 %v12555_v50, %v12555_v50  ;;  %v12556_v46 = vmax.f32 %v12420_v23, 0.0  ;;  %v16484_v28 = vadd.f32 %v11886_v3, %v6648_v60  ;;  %v16348_v49 = vpop.f32.mrb[98].mxu0 }
 0x570   : > { %13238 = vst.msk [vmem:[%s20485_s21 + $0x178] sm:$0xf] %vm13143_vm7, %v14480_v0  ;;  %v14481_v16 = vpack.c.bf16 %v12558_v19, %v12558_v19  ;;  %v12284_v12 = vmul.f32 %v20872_v29, %v16483_v11  ;;  %v16485_v18 = vadd.f32 %v16348_v49, %v15796_v7  ;;  %v11889_v48 = vpop.f32.mrb[99].mxu0 }
 0x571   : > { %13236 = vst.msk [vmem:[%s20485_s21 + $0x170] sm:$0xf] %vm13143_vm7, %v14478_v5  ;;  %v14479_v33 = vpack.c.bf16 %v12556_v46, %v12556_v46  ;;  %v12282_v27 = vmul.f32 %v20872_v29, %v16484_v28  ;;  %v16486_v8 = vadd.f32 %v11889_v48, %v6651_v53 }
 0x572   : > { %v15799_v1 = vpop.f32.mrb[100].mxu1  ;;  %13239 = vst.msk [vmem:[%s20485_s21 + $0x17c] sm:$0xf] %vm13143_vm7, %v14481_v16  ;;  %v12425_v30 = vadd.f32 %v20885_v10, %v12284_v12  ;;  %v12285_v20 = vmul.f32 %v20872_v29, %v16485_v18 }
 0x573   : > { %v6664_v24 = vpop.f32.mrb[101].mxu1  ;;  %13237 = vst.msk [vmem:[%s20485_s21 + $0x174] sm:$0xf] %vm13143_vm7, %v14479_v33  ;;  %v12423_v40 = vadd.f32 %v20885_v10, %v12282_v27  ;;  %v12283_v21 = vmul.f32 %v20872_v29, %v16486_v8 }
 0x574   : > { %v15800_v43 = vpop.f32.mrb[102].mxu1  ;;  %v12561_v4 = vmax.f32 %v12425_v30, 0.0  ;;  %v12426_v56 = vadd.f32 %v20885_v10, %v12285_v20 }
 0x575   : > { %v6667_v17 = vpop.f32.mrb[103].mxu1  ;;  %v12559_v44 = vmax.f32 %v12423_v40, 0.0  ;;  %v12424_v36 = vadd.f32 %v20885_v10, %v12283_v21  ;;  %v16351_v37 = vpop.f32.mrb[100].mxu0 }
 0x576   : > { %v14484_v52 = vpack.c.bf16 %v12561_v4, %v12561_v4  ;;  %v12562_v9 = vmax.f32 %v12426_v56, 0.0  ;;  %v16487_v41 = vadd.f32 %v16351_v37, %v15799_v1  ;;  %v11902_v26 = vpop.f32.mrb[101].mxu0 }
 0x577   : > { %v14482_v63 = vpack.c.bf16 %v12559_v44, %v12559_v44  ;;  %v12560_v61 = vmax.f32 %v12424_v36, 0.0  ;;  %v16488_v32 = vadd.f32 %v11902_v26, %v6664_v24  ;;  %v16352_v6 = vpop.f32.mrb[102].mxu0 }
 0x578   : > { %13242 = vst.msk [vmem:[%s20485_s21 + $0x188] sm:$0xf] %vm13143_vm7, %v14484_v52  ;;  %v14485_v15 = vpack.c.bf16 %v12562_v9, %v12562_v9  ;;  %v12288_v47 = vmul.f32 %v20872_v29, %v16487_v41  ;;  %v16489_v14 = vadd.f32 %v16352_v6, %v15800_v43  ;;  %v11905_v25 = vpop.f32.mrb[103].mxu0 }
 0x579   : > { %13240 = vst.msk [vmem:[%s20485_s21 + $0x180] sm:$0xf] %vm13143_vm7, %v14482_v63  ;;  %v14483_v42 = vpack.c.bf16 %v12560_v61, %v12560_v61  ;;  %v12286_v38 = vmul.f32 %v20872_v29, %v16488_v32  ;;  %v16490_v54 = vadd.f32 %v11905_v25, %v6667_v17 }
 0x57a   : > { %v15803_v2 = vpop.f32.mrb[104].mxu1  ;;  %13243 = vst.msk [vmem:[%s20485_s21 + $0x18c] sm:$0xf] %vm13143_vm7, %v14485_v15  ;;  %v12429_v57 = vadd.f32 %v20885_v10, %v12288_v47  ;;  %v12289_v59 = vmul.f32 %v20872_v29, %v16489_v14 }
 0x57b   : > { %v6680_v55 = vpop.f32.mrb[105].mxu1  ;;  %13241 = vst.msk [vmem:[%s20485_s21 + $0x184] sm:$0xf] %vm13143_vm7, %v14483_v42  ;;  %v12427_v58 = vadd.f32 %v20885_v10, %v12286_v38  ;;  %v12287_v22 = vmul.f32 %v20872_v29, %v16490_v54 }
 0x57c   : > { %v15804_v39 = vpop.f32.mrb[106].mxu1  ;;  %v12565_v34 = vmax.f32 %v12429_v57, 0.0  ;;  %v12430_v62 = vadd.f32 %v20885_v10, %v12289_v59 }
 0x57d   : > { %v6683_v60 = vpop.f32.mrb[107].mxu1  ;;  %v12563_v7 = vmax.f32 %v12427_v58, 0.0  ;;  %v12428_v45 = vadd.f32 %v20885_v10, %v12287_v22  ;;  %v16355_v51 = vpop.f32.mrb[104].mxu0 }
 0x57e   : > { %v14488_v53 = vpack.c.bf16 %v12565_v34, %v12565_v34  ;;  %v12566_v35 = vmax.f32 %v12430_v62, 0.0  ;;  %v16491_v31 = vadd.f32 %v16355_v51, %v15803_v2  ;;  %v11918_v50 = vpop.f32.mrb[105].mxu0 }
 0x57f   : > { %v14486_v23 = vpack.c.bf16 %v12563_v7, %v12563_v7  ;;  %v12564_v13 = vmax.f32 %v12428_v45, 0.0  ;;  %v16492_v0 = vadd.f32 %v11918_v50, %v6680_v55  ;;  %v16356_v19 = vpop.f32.mrb[106].mxu0 }
 0x580   : > { %13246 = vst.msk [vmem:[%s20485_s21 + $0x198] sm:$0xf] %vm13143_vm7, %v14488_v53  ;;  %v14489_v11 = vpack.c.bf16 %v12566_v35, %v12566_v35  ;;  %v12292_v3 = vmul.f32 %v20872_v29, %v16491_v31  ;;  %v16493_v5 = vadd.f32 %v16356_v19, %v15804_v39  ;;  %v11921_v46 = vpop.f32.mrb[107].mxu0 }
 0x581   : > { %13244 = vst.msk [vmem:[%s20485_s21 + $0x190] sm:$0xf] %vm13143_vm7, %v14486_v23  ;;  %v14487_v49 = vpack.c.bf16 %v12564_v13, %v12564_v13  ;;  %v12290_v16 = vmul.f32 %v20872_v29, %v16492_v0  ;;  %v16494_v12 = vadd.f32 %v11921_v46, %v6683_v60 }
 0x582   : > { %v15807_v28 = vpop.f32.mrb[108].mxu1  ;;  %13247 = vst.msk [vmem:[%s20485_s21 + $0x19c] sm:$0xf] %vm13143_vm7, %v14489_v11  ;;  %v12433_v48 = vadd.f32 %v20885_v10, %v12292_v3  ;;  %v12293_v1 = vmul.f32 %v20872_v29, %v16493_v5 }
 0x583   : > { %v6696_v18 = vpop.f32.mrb[109].mxu1  ;;  %13245 = vst.msk [vmem:[%s20485_s21 + $0x194] sm:$0xf] %vm13143_vm7, %v14487_v49  ;;  %v12431_v27 = vadd.f32 %v20885_v10, %v12290_v16  ;;  %v12291_v8 = vmul.f32 %v20872_v29, %v16494_v12 }
 0x584   : > { %v15808_v33 = vpop.f32.mrb[110].mxu1  ;;  %v12569_v30 = vmax.f32 %v12433_v48, 0.0  ;;  %v12434_v20 = vadd.f32 %v20885_v10, %v12293_v1 }
 0x585   : > { %v6699_v24 = vpop.f32.mrb[111].mxu1  ;;  %v12567_v43 = vmax.f32 %v12431_v27, 0.0  ;;  %v12432_v40 = vadd.f32 %v20885_v10, %v12291_v8  ;;  %v16359_v21 = vpop.f32.mrb[108].mxu0 }
 0x586   : > { %v14492_v17 = vpack.c.bf16 %v12569_v30, %v12569_v30  ;;  %v12570_v4 = vmax.f32 %v12434_v20, 0.0  ;;  %v16495_v56 = vadd.f32 %v16359_v21, %v15807_v28  ;;  %v11934_v44 = vpop.f32.mrb[109].mxu0 }
 0x587   : > { %v14490_v36 = vpack.c.bf16 %v12567_v43, %v12567_v43  ;;  %v12568_v37 = vmax.f32 %v12432_v40, 0.0  ;;  %v16496_v52 = vadd.f32 %v11934_v44, %v6696_v18  ;;  %v16360_v9 = vpop.f32.mrb[110].mxu0 }
 0x588   : > { %13250 = vst.msk [vmem:[%s20485_s21 + $0x1a8] sm:$0xf] %vm13143_vm7, %v14492_v17  ;;  %v14493_v41 = vpack.c.bf16 %v12570_v4, %v12570_v4  ;;  %v12296_v26 = vmul.f32 %v20872_v29, %v16495_v56  ;;  %v16497_v63 = vadd.f32 %v16360_v9, %v15808_v33  ;;  %v11937_v61 = vpop.f32.mrb[111].mxu0 }
 0x589   : > { %13248 = vst.msk [vmem:[%s20485_s21 + $0x1a0] sm:$0xf] %vm13143_vm7, %v14490_v36  ;;  %v14491_v6 = vpack.c.bf16 %v12568_v37, %v12568_v37  ;;  %v12294_v15 = vmul.f32 %v20872_v29, %v16496_v52  ;;  %v16498_v47 = vadd.f32 %v11937_v61, %v6699_v24 }
 0x58a   : > { %v15811_v32 = vpop.f32.mrb[112].mxu1  ;;  %13251 = vst.msk [vmem:[%s20485_s21 + $0x1ac] sm:$0xf] %vm13143_vm7, %v14493_v41  ;;  %v12437_v25 = vadd.f32 %v20885_v10, %v12296_v26  ;;  %v12297_v2 = vmul.f32 %v20872_v29, %v16497_v63 }
 0x58b   : > { %v6712_v14 = vpop.f32.mrb[113].mxu1  ;;  %13249 = vst.msk [vmem:[%s20485_s21 + $0x1a4] sm:$0xf] %vm13143_vm7, %v14491_v6  ;;  %v12435_v38 = vadd.f32 %v20885_v10, %v12294_v15  ;;  %v12295_v54 = vmul.f32 %v20872_v29, %v16498_v47 }
 0x58c   : > { %v15812_v42 = vpop.f32.mrb[114].mxu1  ;;  %v12573_v57 = vmax.f32 %v12437_v25, 0.0  ;;  %v12438_v59 = vadd.f32 %v20885_v10, %v12297_v2 }
 0x58d   : > { %v6715_v55 = vpop.f32.mrb[115].mxu1  ;;  %v12571_v39 = vmax.f32 %v12435_v38, 0.0  ;;  %v12436_v58 = vadd.f32 %v20885_v10, %v12295_v54  ;;  %v16363_v22 = vpop.f32.mrb[112].mxu0 }
 0x58e   : > { %v14496_v60 = vpack.c.bf16 %v12573_v57, %v12573_v57  ;;  %v12574_v34 = vmax.f32 %v12438_v59, 0.0  ;;  %v16499_v62 = vadd.f32 %v16363_v22, %v15811_v32  ;;  %v11950_v7 = vpop.f32.mrb[113].mxu0 }
 0x58f   : > { %v14494_v45 = vpack.c.bf16 %v12571_v39, %v12571_v39  ;;  %v12572_v51 = vmax.f32 %v12436_v58, 0.0  ;;  %v16500_v53 = vadd.f32 %v11950_v7, %v6712_v14  ;;  %v16364_v35 = vpop.f32.mrb[114].mxu0 }
 0x590   : > { %13254 = vst.msk [vmem:[%s20485_s21 + $0x1b8] sm:$0xf] %vm13143_vm7, %v14496_v60  ;;  %v14497_v31 = vpack.c.bf16 %v12574_v34, %v12574_v34  ;;  %v12300_v50 = vmul.f32 %v20872_v29, %v16499_v62  ;;  %v16501_v23 = vadd.f32 %v16364_v35, %v15812_v42  ;;  %v11953_v13 = vpop.f32.mrb[115].mxu0 }
 0x591   : > { %13252 = vst.msk [vmem:[%s20485_s21 + $0x1b0] sm:$0xf] %vm13143_vm7, %v14494_v45  ;;  %v14495_v19 = vpack.c.bf16 %v12572_v51, %v12572_v51  ;;  %v12298_v11 = vmul.f32 %v20872_v29, %v16500_v53  ;;  %v16502_v3 = vadd.f32 %v11953_v13, %v6715_v55 }
 0x592   : > { %v15815_v0 = vpop.f32.mrb[116].mxu1  ;;  %13255 = vst.msk [vmem:[%s20485_s21 + $0x1bc] sm:$0xf] %vm13143_vm7, %v14497_v31  ;;  %v12441_v46 = vadd.f32 %v20885_v10, %v12300_v50  ;;  %v12301_v28 = vmul.f32 %v20872_v29, %v16501_v23 }
 0x593   : > { %v6728_v5 = vpop.f32.mrb[117].mxu1  ;;  %13253 = vst.msk [vmem:[%s20485_s21 + $0x1b4] sm:$0xf] %vm13143_vm7, %v14495_v19  ;;  %v12439_v16 = vadd.f32 %v20885_v10, %v12298_v11  ;;  %v12299_v12 = vmul.f32 %v20872_v29, %v16502_v3 }
 0x594   : > { %v15816_v49 = vpop.f32.mrb[118].mxu1  ;;  %v12577_v48 = vmax.f32 %v12441_v46, 0.0  ;;  %v12442_v1 = vadd.f32 %v20885_v10, %v12301_v28 }
 0x595   : > { %v6731_v18 = vpop.f32.mrb[119].mxu1  ;;  %v12575_v33 = vmax.f32 %v12439_v16, 0.0  ;;  %v12440_v27 = vadd.f32 %v20885_v10, %v12299_v12  ;;  %v16367_v8 = vpop.f32.mrb[116].mxu0 }
 0x596   : > { %v14500_v24 = vpack.c.bf16 %v12577_v48, %v12577_v48  ;;  %v12578_v30 = vmax.f32 %v12442_v1, 0.0  ;;  %v16503_v20 = vadd.f32 %v16367_v8, %v15815_v0  ;;  %v11966_v43 = vpop.f32.mrb[117].mxu0 }
 0x597   : > { %v14498_v40 = vpack.c.bf16 %v12575_v33, %v12575_v33  ;;  %v12576_v21 = vmax.f32 %v12440_v27, 0.0  ;;  %v16504_v17 = vadd.f32 %v11966_v43, %v6728_v5  ;;  %v16368_v4 = vpop.f32.mrb[118].mxu0 }
 0x598   : > { %13258 = vst.msk [vmem:[%s20485_s21 + $0x1c8] sm:$0xf] %vm13143_vm7, %v14500_v24  ;;  %v14501_v56 = vpack.c.bf16 %v12578_v30, %v12578_v30  ;;  %v12304_v44 = vmul.f32 %v20872_v29, %v16503_v20  ;;  %v16505_v36 = vadd.f32 %v16368_v4, %v15816_v49  ;;  %v11969_v37 = vpop.f32.mrb[119].mxu0 }
 0x599   : > { %13256 = vst.msk [vmem:[%s20485_s21 + $0x1c0] sm:$0xf] %vm13143_vm7, %v14498_v40  ;;  %v14499_v9 = vpack.c.bf16 %v12576_v21, %v12576_v21  ;;  %v12302_v41 = vmul.f32 %v20872_v29, %v16504_v17  ;;  %v16506_v26 = vadd.f32 %v11969_v37, %v6731_v18 }
 0x59a   : > { %v15819_v52 = vpop.f32.mrb[120].mxu1  ;;  %13259 = vst.msk [vmem:[%s20485_s21 + $0x1cc] sm:$0xf] %vm13143_vm7, %v14501_v56  ;;  %v12445_v61 = vadd.f32 %v20885_v10, %v12304_v44  ;;  %v12305_v32 = vmul.f32 %v20872_v29, %v16505_v36  ;;  %v21147_v56 = vld [vmem:[%s21216_s2] ss:$0 sm:$0xff] }
 0x59b   : > { %v6744_v63 = vpop.f32.mrb[121].mxu1  ;;  %13257 = vst.msk [vmem:[%s20485_s21 + $0x1c4] sm:$0xf] %vm13143_vm7, %v14499_v9  ;;  %v12443_v15 = vadd.f32 %v20885_v10, %v12302_v41  ;;  %v12303_v47 = vmul.f32 %v20872_v29, %v16506_v26  ;;  %v21159_v41 = vld [vmem:[%s21216_s2 + $0x1] ss:$0 sm:$0xff] }
 0x59c   : > { %v15820_v6 = vpop.f32.mrb[122].mxu1  ;;  %v12581_v25 = vmax.f32 %v12445_v61, 0.0  ;;  %v12446_v2 = vadd.f32 %v20885_v10, %v12305_v32 }
 0x59d   : > { %v6747_v14 = vpop.f32.mrb[123].mxu1  ;;  %v12579_v42 = vmax.f32 %v12443_v15, 0.0  ;;  %v12444_v38 = vadd.f32 %v20885_v10, %v12303_v47  ;;  %v16371_v54 = vpop.f32.mrb[120].mxu0 }
 0x59e   : > { %v14504_v55 = vpack.c.bf16 %v12581_v25, %v12581_v25  ;;  %v12582_v57 = vmax.f32 %v12446_v2, 0.0  ;;  %v16507_v59 = vadd.f32 %v16371_v54, %v15819_v52  ;;  %v11982_v39 = vpop.f32.mrb[121].mxu0 }
 0x59f   : > { %v14502_v58 = vpack.c.bf16 %v12579_v42, %v12579_v42  ;;  %v12580_v22 = vmax.f32 %v12444_v38, 0.0  ;;  %v16508_v60 = vadd.f32 %v11982_v39, %v6744_v63  ;;  %v16372_v34 = vpop.f32.mrb[122].mxu0 }
 0x5a0   : > { %13262 = vst.msk [vmem:[%s20485_s21 + $0x1d8] sm:$0xf] %vm13143_vm7, %v14504_v55  ;;  %v14505_v62 = vpack.c.bf16 %v12582_v57, %v12582_v57  ;;  %v12308_v7 = vmul.f32 %v20872_v29, %v16507_v59  ;;  %v16509_v45 = vadd.f32 %v16372_v34, %v15820_v6  ;;  %v11985_v51 = vpop.f32.mrb[123].mxu0 }
 0x5a1   : > { %13260 = vst.msk [vmem:[%s20485_s21 + $0x1d0] sm:$0xf] %vm13143_vm7, %v14502_v58  ;;  %v14503_v35 = vpack.c.bf16 %v12580_v22, %v12580_v22  ;;  %v12306_v31 = vmul.f32 %v20872_v29, %v16508_v60  ;;  %v16510_v50 = vadd.f32 %v11985_v51, %v6747_v14 }
 0x5a2   : > { %v15823_v53 = vpop.f32.mrb[124].mxu1  ;;  %13263 = vst.msk [vmem:[%s20485_s21 + $0x1dc] sm:$0xf] %vm13143_vm7, %v14505_v62  ;;  %v12449_v13 = vadd.f32 %v20885_v10, %v12308_v7  ;;  %v12309_v0 = vmul.f32 %v20872_v29, %v16509_v45 }
 0x5a3   : > { %v6760_v23 = vpop.f32.mrb[125].mxu1  ;;  %13261 = vst.msk [vmem:[%s20485_s21 + $0x1d4] sm:$0xf] %vm13143_vm7, %v14503_v35  ;;  %v12447_v11 = vadd.f32 %v20885_v10, %v12306_v31  ;;  %v12307_v3 = vmul.f32 %v20872_v29, %v16510_v50 }
 0x5a4   : > { %v15824_v19 = vpop.f32.mrb[126].mxu1  ;;  %v12585_v46 = vmax.f32 %v12449_v13, 0.0  ;;  %v12450_v28 = vadd.f32 %v20885_v10, %v12309_v0 }
 0x5a5   : > { %v6763_v5 = vpop.f32.mrb[127].mxu1  ;;  %v12583_v49 = vmax.f32 %v12447_v11, 0.0  ;;  %v12448_v16 = vadd.f32 %v20885_v10, %v12307_v3  ;;  %v16375_v12 = vpop.f32.mrb[124].mxu0 }
 0x5a6   : > { %v14508_v18 = vpack.c.bf16 %v12585_v46, %v12585_v46  ;;  %v12586_v48 = vmax.f32 %v12450_v28, 0.0  ;;  %v16511_v1 = vadd.f32 %v16375_v12, %v15823_v53  ;;  %v11998_v33 = vpop.f32.mrb[125].mxu0 }
 0x5a7   : > { %v14506_v27 = vpack.c.bf16 %v12583_v49, %v12583_v49  ;;  %v12584_v8 = vmax.f32 %v12448_v16, 0.0  ;;  %v16512_v24 = vadd.f32 %v11998_v33, %v6760_v23  ;;  %v16376_v30 = vpop.f32.mrb[126].mxu0 }
 0x5a8   : > { %13266 = vst.msk [vmem:[%s20485_s21 + $0x1e8] sm:$0xf] %vm13143_vm7, %v14508_v18  ;;  %v14509_v20 = vpack.c.bf16 %v12586_v48, %v12586_v48  ;;  %v12312_v43 = vmul.f32 %v20872_v29, %v16511_v1  ;;  %v16513_v40 = vadd.f32 %v16376_v30, %v15824_v19  ;;  %v12001_v21 = vpop.f32.mrb[127].mxu0 }
 0x5a9   : > { %13264 = vst.msk [vmem:[%s20485_s21 + $0x1e0] sm:$0xf] %vm13143_vm7, %v14506_v27  ;;  %v14507_v4 = vpack.c.bf16 %v12584_v8, %v12584_v8  ;;  %v12310_v44 = vmul.f32 %v21147_v56, %v16512_v24  ;;  %v16514_v36 = vadd.f32 %v12001_v21, %v6763_v5 }
 0x5aa   : > { %v15827_v17 = vpop.f32.mrb[128].mxu1  ;;  %13267 = vst.msk [vmem:[%s20485_s21 + $0x1ec] sm:$0xf] %vm13143_vm7, %v14509_v20  ;;  %v12453_v52 = vadd.f32 %v20885_v10, %v12312_v43  ;;  %v12313_v29 = vmul.f32 %v21147_v56, %v16513_v40 }
 0x5ab   : > { %v6776_v37 = vpop.f32.mrb[129].mxu1  ;;  %13265 = vst.msk [vmem:[%s20485_s21 + $0x1e4] sm:$0xf] %vm13143_vm7, %v14507_v4  ;;  %v12451_v26 = vadd.f32 %v21159_v41, %v12310_v44  ;;  %v12311_v63 = vmul.f32 %v21147_v56, %v16514_v36 }
 0x5ac   : > { %v15828_v9 = vpop.f32.mrb[130].mxu1  ;;  %v12589_v32 = vmax.f32 %v12453_v52, 0.0  ;;  %v12454_v6 = vadd.f32 %v21159_v41, %v12313_v29 }
 0x5ad   : > { %v6779_v61 = vpop.f32.mrb[131].mxu1  ;;  %v12587_v10 = vmax.f32 %v12451_v26, 0.0  ;;  %v12452_v15 = vadd.f32 %v21159_v41, %v12311_v63  ;;  %v16379_v47 = vpop.f32.mrb[128].mxu0 }
 0x5ae   : > { %v14512_v14 = vpack.c.bf16 %v12589_v32, %v12589_v32  ;;  %v12590_v25 = vmax.f32 %v12454_v6, 0.0  ;;  %v16515_v2 = vadd.f32 %v16379_v47, %v15827_v17  ;;  %v12014_v42 = vpop.f32.mrb[129].mxu0 }
 0x5af   : > { %v14510_v38 = vpack.c.bf16 %v12587_v10, %v12587_v10  ;;  %v12588_v54 = vmax.f32 %v12452_v15, 0.0  ;;  %v16516_v55 = vadd.f32 %v12014_v42, %v6776_v37  ;;  %v16380_v57 = vpop.f32.mrb[130].mxu0 }
 0x5b0   : > { %13270 = vst.msk [vmem:[%s20485_s21 + $0x1f8] sm:$0xf] %vm13143_vm7, %v14512_v14  ;;  %v14513_v59 = vpack.c.bf16 %v12590_v25, %v12590_v25  ;;  %v12316_v39 = vmul.f32 %v21147_v56, %v16515_v2  ;;  %v16517_v58 = vadd.f32 %v16380_v57, %v15828_v9  ;;  %v12017_v22 = vpop.f32.mrb[131].mxu0 }
 0x5b1   : > { %13268 = vst.msk [vmem:[%s20485_s21 + $0x1f0] sm:$0xf] %vm13143_vm7, %v14510_v38  ;;  %v14511_v34 = vpack.c.bf16 %v12588_v54, %v12588_v54  ;;  %v12314_v62 = vmul.f32 %v21147_v56, %v16516_v55  ;;  %v16518_v7 = vadd.f32 %v12017_v22, %v6779_v61 }
 0x5b2   : > { %v15831_v60 = vpop.f32.mrb[132].mxu1  ;;  %13271 = vst.msk [vmem:[%s20485_s21 + $0x1fc] sm:$0xf] %vm13143_vm7, %v14513_v59  ;;  %v12457_v51 = vadd.f32 %v21159_v41, %v12316_v39  ;;  %v12317_v53 = vmul.f32 %v21147_v56, %v16517_v58 }
 0x5b3   : > { %v6792_v45 = vpop.f32.mrb[133].mxu1  ;;  %13269 = vst.msk [vmem:[%s20485_s21 + $0x1f4] sm:$0xf] %vm13143_vm7, %v14511_v34  ;;  %v12455_v31 = vadd.f32 %v21159_v41, %v12314_v62  ;;  %v12315_v50 = vmul.f32 %v21147_v56, %v16518_v7 }
 0x5b4   : > { %v15832_v35 = vpop.f32.mrb[134].mxu1  ;;  %v12593_v13 = vmax.f32 %v12457_v51, 0.0  ;;  %v12458_v0 = vadd.f32 %v21159_v41, %v12317_v53 }
 0x5b5   : > { %v6795_v23 = vpop.f32.mrb[135].mxu1  ;;  %v12591_v19 = vmax.f32 %v12455_v31, 0.0  ;;  %v12456_v11 = vadd.f32 %v21159_v41, %v12315_v50  ;;  %v16383_v3 = vpop.f32.mrb[132].mxu0 }
 0x5b6   : > { %v14516_v5 = vpack.c.bf16 %v12593_v13, %v12593_v13  ;;  %v12594_v46 = vmax.f32 %v12458_v0, 0.0  ;;  %v16519_v28 = vadd.f32 %v16383_v3, %v15831_v60  ;;  %v12030_v49 = vpop.f32.mrb[133].mxu0 }
 0x5b7   : > { %v14514_v16 = vpack.c.bf16 %v12591_v19, %v12591_v19  ;;  %v12592_v12 = vmax.f32 %v12456_v11, 0.0  ;;  %v16520_v18 = vadd.f32 %v12030_v49, %v6792_v45  ;;  %v16384_v48 = vpop.f32.mrb[134].mxu0 }
 0x5b8   : > { %13274 = vst.msk [vmem:[%s20485_s21 + $0x208] sm:$0xf] %vm13143_vm7, %v14516_v5  ;;  %v14517_v1 = vpack.c.bf16 %v12594_v46, %v12594_v46  ;;  %v12320_v33 = vmul.f32 %v21147_v56, %v16519_v28  ;;  %v16521_v27 = vadd.f32 %v16384_v48, %v15832_v35  ;;  %v12033_v8 = vpop.f32.mrb[135].mxu0 }
 0x5b9   : > { %13272 = vst.msk [vmem:[%s20485_s21 + $0x200] sm:$0xf] %vm13143_vm7, %v14514_v16  ;;  %v14515_v24 = vpack.c.bf16 %v12592_v12, %v12592_v12  ;;  %v12318_v30 = vmul.f32 %v21147_v56, %v16520_v18  ;;  %v16522_v20 = vadd.f32 %v12033_v8, %v6795_v23 }
 0x5ba   : > { %13275 = vst.msk [vmem:[%s20485_s21 + $0x20c] sm:$0xf] %vm13143_vm7, %v14517_v1  ;;  %v12461_v43 = vadd.f32 %v21159_v41, %v12320_v33  ;;  %v12321_v40 = vmul.f32 %v21147_v56, %v16521_v27 }
 0x5bb   : > { %13273 = vst.msk [vmem:[%s20485_s21 + $0x204] sm:$0xf] %vm13143_vm7, %v14515_v24  ;;  %v12459_v21 = vadd.f32 %v21159_v41, %v12318_v30  ;;  %v12319_v17 = vmul.f32 %v21147_v56, %v16522_v20 }
 0x5bc   : > { %v12597_v4 = vmax.f32 %v12461_v43, 0.0  ;;  %v12462_v44 = vadd.f32 %v21159_v41, %v12321_v40 }
 0x5bd   : > { %v12595_v36 = vmax.f32 %v12459_v21, 0.0  ;;  %v12460_v37 = vadd.f32 %v21159_v41, %v12319_v17 }
 0x5be   : > { %v14520_v52 = vpack.c.bf16 %v12597_v4, %v12597_v4  ;;  %v12598_v29 = vmax.f32 %v12462_v44, 0.0 }
 0x5bf   : > { %v14518_v9 = vpack.c.bf16 %v12595_v36, %v12595_v36  ;;  %v12596_v26 = vmax.f32 %v12460_v37, 0.0 }
 0x5c0   : > { %13278 = vst.msk [vmem:[%s20485_s21 + $0x218] sm:$0xf] %vm13143_vm7, %v14520_v52  ;;  %v14521_v63 = vpack.c.bf16 %v12598_v29, %v12598_v29 }
 0x5c1   : > { %13276 = vst.msk [vmem:[%s20485_s21 + $0x210] sm:$0xf] %vm13143_vm7, %v14518_v9  ;;  %v14519_v61 = vpack.c.bf16 %v12596_v26, %v12596_v26 }
 0x5c2   : > { %13279 = vst.msk [vmem:[%s20485_s21 + $0x21c] sm:$0xf] %vm13143_vm7, %v14521_v63 }
 0x5c3   : > { %13277 = vst.msk [vmem:[%s20485_s21 + $0x214] sm:$0xf] %vm13143_vm7, %v14519_v61 }
 0x5c4 PF: > { %s13_s14 = sadd.s32 1, %s18041_s14   ;;  %s21423_s12 = smov %s18037_s13 }
 0x5c5   : > { %p10_p5 = scmp.ge.s32.totalorder %s13_s14, 7   ;;  %s21424_s13 = smov %s21426_s15 }
 0x5c7   :  { %12 = sbr.rel (!%p10_p5) target bundleno = 2 (0x2), region = 76 }

</bundles_post_ra>
